<compile_context>
chip_gen: v5e
topology: v5e:2x2
jax: 0.10.0
libtpu: 0.0.40
codegen_flags: <defaults>
</compile_context>

<pallas_src>
import functools

import jax
import jax.numpy as jnp
from jax import lax
from jax.experimental import pallas as pl
from jax.experimental.pallas import tpu as pltpu


# ----------------------------- fused kernel -----------------------------

def _thin_block_kernel(params_ref, *refs, cin, c4, oup, H, W, stride, th, n_phases):
    # refs = (x_phase_0 [, x_phase_1, x_phase_2, x_phase_3], o_ref)
    x_refs = refs[:n_phases]
    o_ref = refs[n_phases]

    w_out = W // stride

    # ---- static offsets into the flat SMEM parameter vector ----
    OFF_W1 = 0                      # (cin, c4) row-major, BN scale folded in
    OFF_B1 = OFF_W1 + cin * c4      # (c4,)
    OFF_W2 = OFF_B1 + c4            # (3, 3, c4) row-major, BN scale folded in
    OFF_B2 = OFF_W2 + 9 * c4        # (c4,)
    OFF_W3 = OFF_B2 + c4            # (c4, oup) row-major, BN scale folded in
    OFF_B3 = OFF_W3 + c4 * oup      # (oup,)

    def w1(c, ch):      return params_ref[OFF_W1 + c * c4 + ch]
    def b1(ch):         return params_ref[OFF_B1 + ch]
    def w2(kh, kw, ch): return params_ref[OFF_W2 + (kh * 3 + kw) * c4 + ch]
    def b2(ch):         return params_ref[OFF_B2 + ch]
    def w3(ch, oc):     return params_ref[OFF_W3 + ch * oup + oc]
    def b3(oc):         return params_ref[OFF_B3 + oc]

    if stride == 1:
        span_r, span_c = th + 2, W + 2          # halo rows, padded width
    else:
        span_r, span_c = th + 1, w_out + 1      # per-polyphase halo rows / width

    i = pl.program_id(1)
    q0 = i * th
    if th % 8 == 0:
        q0 = pl.multiple_of(q0, 8)              # aligned, unmasked sublane loads

    # ---- hoisted input plane loads: xs[phase][in_channel] is (span_r, span_c) ----
    xs = [[x_refs[p][0, c, pl.ds(q0, span_r), :] for c in range(cin)]
          for p in range(n_phases)]

    # ---- channel-invariant interior masks, one small 2-D mask per phase.
    # Value 6.0 inside the image, 0.0 on the zero-pad ring; used as the ReLU6 upper
    # clip so masking costs ZERO extra per-channel ops.
    masks6 = []
    for p in range(n_phases):
        rows = lax.broadcasted_iota(jnp.int32, (span_r, span_c), 0)
        cols = lax.broadcasted_iota(jnp.int32, (span_r, span_c), 1)
        if stride == 1:
            prow = q0 + rows                     # padded-image row coordinate
            pcol = cols
        else:
            rp, cp = p // 2, p % 2               # row / column parity of this phase
            prow = 2 * (q0 + rows) + rp
            pcol = 2 * cols + cp
        interior = (prow >= 1) & (prow <= H) & (pcol >= 1) & (pcol <= W)
        masks6.append(jnp.where(interior, 6.0, 0.0).astype(jnp.float32))

    # ---- stream over the c4 expanded channels; only oup accumulators persist ----
    acc = [None] * oup
    for ch in range(c4):
        # stage 1: 1x1 expand (+bias, ReLU6-with-mask) for this expanded channel
        e = []
        for p in range(n_phases):
            t = xs[p][0] * w1(0, ch)
            for c in range(1, cin):
                t = t + xs[p][c] * w1(c, ch)
            e.append(jnp.minimum(jnp.maximum(t + b1(ch), 0.0), masks6[p]))

        # stage 2: depthwise 3x3 (+bias, ReLU6); every tap is a static full-tensor slice
        y = None
        for kh in range(3):
            for kw in range(3):
                if stride == 1:
                    tap = e[0][kh:kh + th, kw:kw + w_out]
                else:
                    pp = 2 * (kh % 2) + (kw % 2)          # which (row,col) parity phase
                    tap = e[pp][kh // 2:kh // 2 + th, kw // 2:kw // 2 + w_out]
                t = tap * w2(kh, kw, ch)
                y = t if y is None else y + t
        y = jnp.minimum(jnp.maximum(y + b2(ch), 0.0), 6.0)

        # stage 3: accumulate the 1x1 projection into the oup output planes
        for oc in range(oup):
            t = y * w3(ch, oc)
            acc[oc] = t if acc[oc] is None else acc[oc] + t

    # bias + ReLU6, then one contiguous (th, w_out) plane store per output channel
    # (native NCHW output; width in the lane dim).
    for oc in range(oup):
        out = jnp.minimum(jnp.maximum(acc[oc] + b3(oc), 0.0), 6.0)
        o_ref[0, oc] = out.astype(o_ref.dtype)


# ----------------------------- wrapper -----------------------------

def _fold_and_pack_params(params):
    """Fold eval-mode BN scale into the conv weights and flatten all weights/biases
    into a single 1-D f32 vector (placed in SMEM via scalar prefetch)."""
    w1 = params["w1"] * params["s1"][None, :]            # (cin, c4)
    w2 = params["w2"] * params["s2"][None, None, :]      # (3, 3, c4)
    w3 = params["w3"] * params["s3"][None, :]            # (c4, oup)
    return jnp.concatenate([
        w1.reshape(-1), params["b1"].reshape(-1),
        w2.reshape(-1), params["b2"].reshape(-1),
        w3.reshape(-1), params["b3"].reshape(-1)]).astype(jnp.float32)


def _pick_row_tile(h_out, w_out, oup, budget_bytes=4 << 20):
    # Largest tile first: per-grid-step overhead (~0.35us) dominates at small sizes.
    if h_out * w_out * oup * 4 <= budget_bytes:
        return h_out
    for th in range(h_out, 0, -1):
        if h_out % th == 0 and th % 8 == 0 and th * w_out * oup * 4 <= budget_bytes:
            return th
    return h_out


def thin_block_forward(params, x_nchw, stride):
    assert stride in (1, 2)
    N, cin, H, W = x_nchw.shape
    if stride == 2:
        # TODO(synk): odd H/W with stride 2 (output ceil(H/2)) is not handled.
        assert H % 2 == 0 and W % 2 == 0
    c4 = params["w1"].shape[1]
    oup = params["w3"].shape[1]
    pvec = _fold_and_pack_params(params)

    x = x_nchw.astype(jnp.float32)                        # NCHW end-to-end, no transposes
    xp = jnp.pad(x, ((0, 0), (0, 0), (1, 1), (1, 1)))     # pad only the small cin input
    if stride == 1:
        phases = (xp,)
    else:
        # 4-way polyphase (row parity x column parity) so the strided depthwise becomes
        # unit-stride static slices in-kernel.
        phases = tuple(xp[:, :, rp::2, cp::2] for rp in (0, 1) for cp in (0, 1))

    h_out, w_out = H // stride, W // stride
    th = _pick_row_tile(h_out, w_out, oup)
    n_tiles = h_out // th

    kernel = functools.partial(
        _thin_block_kernel, cin=cin, c4=c4, oup=oup, H=H, W=W,
        stride=stride, th=th, n_phases=len(phases))

    # TODO(synk): for production resolutions switch the inputs to memory_space=pl.ANY +
    # manual make_async_copy of just the span-row halo window per tile (v7x 64 MiB VMEM).
    x_specs = [pl.BlockSpec((1, cin, ph.shape[2], ph.shape[3]),
                            lambda n, i, s: (n, 0, 0, 0))
               for ph in phases]

    out = pl.pallas_call(
        kernel,
        out_shape=jax.ShapeDtypeStruct((N, oup, h_out, w_out), jnp.float32),
        grid_spec=pltpu.PrefetchScalarGridSpec(
            num_scalar_prefetch=1,                         # the flat param vector (SMEM)
            grid=(N, n_tiles),
            in_specs=x_specs,
            out_specs=pl.BlockSpec((1, oup, th, w_out),
                                   lambda n, i, s: (n, 0, i, 0)),
        ),
        compiler_params=pltpu.CompilerParams(
            dimension_semantics=("parallel", "parallel")),
    )(pvec, *phases)
    return out                                             # already NCHW


# ------------------- parameter setup (deterministic) -------------------

def init_thin_block_params(key, inp, oup, scale_factor=4):
    c4 = inp * scale_factor
    kw1, kw2, kw3, kbn1, kbn2, kbn3 = jax.random.split(key, 6)

    def bn(k, c, eps=1e-5):
        kg, kb, km, kv = jax.random.split(k, 4)
        gamma = 1.0 + 0.1 * jax.random.normal(kg, (c,), jnp.float32)
        beta = 0.1 * jax.random.normal(kb, (c,), jnp.float32)
        mean = 0.05 * jax.random.normal(km, (c,), jnp.float32)
        var = jnp.abs(0.2 * jax.random.normal(kv, (c,), jnp.float32)) + 0.5
        scale = gamma / jnp.sqrt(var + eps)   # eval-mode BN folded to scale/bias
        bias = beta - mean * scale
        return scale, bias

    w1 = 0.2 * jax.random.normal(kw1, (inp, c4), jnp.float32)      # 1x1 expand
    w2 = 0.2 * jax.random.normal(kw2, (3, 3, c4), jnp.float32)     # depthwise 3x3
    w3 = 0.2 * jax.random.normal(kw3, (c4, oup), jnp.float32)      # 1x1 project
    s1, b1 = bn(kbn1, c4)
    s2, b2 = bn(kbn2, c4)
    s3, b3 = bn(kbn3, oup)
    return {"w1": w1, "s1": s1, "b1": b1,
            "w2": w2, "s2": s2, "b2": b2,
            "w3": w3, "s3": s3, "b3": b3}


# --------------- pure-JAX reference (for verification) ---------------

def thin_block_reference(params, x_nchw, stride):
    x = jnp.transpose(x_nchw, (0, 2, 3, 1)).astype(jnp.float32)
    c4 = params["w1"].shape[1]
    dn = ("NHWC", "HWIO", "NHWC")

    y = lax.conv_general_dilated(
        x, params["w1"].reshape(1, 1, *params["w1"].shape),
        window_strides=(1, 1), padding="VALID", dimension_numbers=dn)
    y = jnp.clip(y * params["s1"] + params["b1"], 0.0, 6.0)

    wdw = params["w2"].reshape(3, 3, 1, c4)
    y = lax.conv_general_dilated(
        y, wdw, window_strides=(stride, stride), padding=((1, 1), (1, 1)),
        dimension_numbers=dn, feature_group_count=c4)
    y = jnp.clip(y * params["s2"] + params["b2"], 0.0, 6.0)

    y = lax.conv_general_dilated(
        y, params["w3"].reshape(1, 1, *params["w3"].shape),
        window_strides=(1, 1), padding="VALID", dimension_numbers=dn)
    y = jnp.clip(y * params["s3"] + params["b3"], 0.0, 6.0)
    return jnp.transpose(y, (0, 3, 1, 2))


# ----------------------------- main -----------------------------

if __name__ == "__main__":
    key = jax.random.PRNGKey(0)
    kx, kp = jax.random.split(key)

    N, inp, H, W, oup = 2, 4, 16, 16, 4
    x = jax.random.normal(kx, (N, inp, H, W), jnp.float32)
    params = init_thin_block_params(kp, inp, oup)

    fwd = jax.jit(thin_block_forward, static_argnums=2)
    for stride in (1, 2):
        out = jax.block_until_ready(fwd(params, x, stride))
        ref = jax.block_until_ready(thin_block_reference(params, x, stride))
        assert out.shape == ref.shape == (N, oup, H // stride, W // stride)
        assert jnp.allclose(out, ref, atol=1e-4, rtol=1e-4), f"mismatch at stride={stride}"

    print("KERNEL_OK")
</pallas_src>

<mosaic_0001>
module attributes {stable_mosaic.version = 11 : i64} {
  func.func @_thin_block_kernel(%arg0: i32, %arg1: i32, %arg2: memref<308xf32, #tpu.memory_space<smem>>, %arg3: memref<1x4x18x18xf32, #tpu.memory_space<vmem>>, %arg4: memref<1x4x16x16xf32, #tpu.memory_space<vmem>>) attributes {dimension_semantics = [#tpu.dimension_semantics<parallel>, #tpu.dimension_semantics<parallel>], iteration_bounds = array<i64: 2, 1>, scalar_prefetch = 1 : i64, scratch_operands = 0 : i64, tpu.core_type = #tpu.core_type<tc>, window_params = [{transform_indices = @transform_0, window_bounds = array<i64: 1, 4, 18, 18>}, {transform_indices = @transform_1, window_bounds = array<i64: 1, 4, 16, 16>}]} {
    %c16_i32 = arith.constant 16 : i32
    %0 = arith.muli %arg1, %c16_i32 : i32
    %1 = tpu.assume_multiple %0, 8 : i32
    %c0 = arith.constant 0 : index
    %c0_0 = arith.constant 0 : index
    %2 = arith.index_cast %1 : i32 to index
    %c0_1 = arith.constant 0 : index
    %3 = vector.load %arg3[%c0, %c0_0, %2, %c0_1] : memref<1x4x18x18xf32, #tpu.memory_space<vmem>>, vector<1x1x18x18xf32>
    %4 = vector.shape_cast %3 : vector<1x1x18x18xf32> to vector<18x18xf32>
    %c0_2 = arith.constant 0 : index
    %c1 = arith.constant 1 : index
    %5 = arith.index_cast %1 : i32 to index
    %c0_3 = arith.constant 0 : index
    %6 = vector.load %arg3[%c0_2, %c1, %5, %c0_3] : memref<1x4x18x18xf32, #tpu.memory_space<vmem>>, vector<1x1x18x18xf32>
    %7 = vector.shape_cast %6 : vector<1x1x18x18xf32> to vector<18x18xf32>
    %c0_4 = arith.constant 0 : index
    %c2 = arith.constant 2 : index
    %8 = arith.index_cast %1 : i32 to index
    %c0_5 = arith.constant 0 : index
    %9 = vector.load %arg3[%c0_4, %c2, %8, %c0_5] : memref<1x4x18x18xf32, #tpu.memory_space<vmem>>, vector<1x1x18x18xf32>
    %10 = vector.shape_cast %9 : vector<1x1x18x18xf32> to vector<18x18xf32>
    %c0_6 = arith.constant 0 : index
    %c3 = arith.constant 3 : index
    %11 = arith.index_cast %1 : i32 to index
    %c0_7 = arith.constant 0 : index
    %12 = vector.load %arg3[%c0_6, %c3, %11, %c0_7] : memref<1x4x18x18xf32, #tpu.memory_space<vmem>>, vector<1x1x18x18xf32>
    %13 = vector.shape_cast %12 : vector<1x1x18x18xf32> to vector<18x18xf32>
    %14 = tpu.iota {dimensions = array<i32: 0>} : vector<18x18xi32>
    %15 = tpu.iota {dimensions = array<i32: 1>} : vector<18x18xi32>
    %16 = vector.broadcast %1 : i32 to vector<18x18xi32>
    %17 = arith.addi %16, %14 : vector<18x18xi32>
    %c1_i32 = arith.constant 1 : i32
    %18 = vector.broadcast %c1_i32 : i32 to vector<18x18xi32>
    %19 = arith.cmpi sge, %17, %18 : vector<18x18xi32>
    %c16_i32_8 = arith.constant 16 : i32
    %20 = vector.broadcast %c16_i32_8 : i32 to vector<18x18xi32>
    %21 = arith.cmpi sle, %17, %20 : vector<18x18xi32>
    %22 = arith.andi %19, %21 : vector<18x18xi1>
    %c1_i32_9 = arith.constant 1 : i32
    %23 = vector.broadcast %c1_i32_9 : i32 to vector<18x18xi32>
    %24 = arith.cmpi sge, %15, %23 : vector<18x18xi32>
    %25 = arith.andi %22, %24 : vector<18x18xi1>
    %c16_i32_10 = arith.constant 16 : i32
    %26 = vector.broadcast %c16_i32_10 : i32 to vector<18x18xi32>
    %27 = arith.cmpi sle, %15, %26 : vector<18x18xi32>
    %28 = arith.andi %25, %27 : vector<18x18xi1>
    %cst = arith.constant 6.000000e+00 : f32
    %cst_11 = arith.constant 0.000000e+00 : f32
    %29 = vector.broadcast %cst : f32 to vector<18x18xf32>
    %30 = vector.broadcast %cst_11 : f32 to vector<18x18xf32>
    %31 = arith.select %28, %29, %30 : vector<18x18xi1>, vector<18x18xf32>
    %c0_12 = arith.constant 0 : index
    %32 = memref.load %arg2[%c0_12] : memref<308xf32, #tpu.memory_space<smem>>
    %33 = vector.broadcast %32 : f32 to vector<18x18xf32>
    %34 = arith.mulf %4, %33 : vector<18x18xf32>
    %c16 = arith.constant 16 : index
    %35 = memref.load %arg2[%c16] : memref<308xf32, #tpu.memory_space<smem>>
    %36 = vector.broadcast %35 : f32 to vector<18x18xf32>
    %37 = arith.mulf %7, %36 : vector<18x18xf32>
    %38 = arith.addf %34, %37 : vector<18x18xf32>
    %c32 = arith.constant 32 : index
    %39 = memref.load %arg2[%c32] : memref<308xf32, #tpu.memory_space<smem>>
    %40 = vector.broadcast %39 : f32 to vector<18x18xf32>
    %41 = arith.mulf %10, %40 : vector<18x18xf32>
    %42 = arith.addf %38, %41 : vector<18x18xf32>
    %c48 = arith.constant 48 : index
    %43 = memref.load %arg2[%c48] : memref<308xf32, #tpu.memory_space<smem>>
    %44 = vector.broadcast %43 : f32 to vector<18x18xf32>
    %45 = arith.mulf %13, %44 : vector<18x18xf32>
    %46 = arith.addf %42, %45 : vector<18x18xf32>
    %c64 = arith.constant 64 : index
    %47 = memref.load %arg2[%c64] : memref<308xf32, #tpu.memory_space<smem>>
    %48 = vector.broadcast %47 : f32 to vector<18x18xf32>
    %49 = arith.addf %46, %48 : vector<18x18xf32>
    %cst_13 = arith.constant 0.000000e+00 : f32
    %50 = vector.broadcast %cst_13 : f32 to vector<18x18xf32>
    %51 = arith.maximumf %49, %50 : vector<18x18xf32>
    %52 = arith.minimumf %51, %31 : vector<18x18xf32>
    %53 = vector.extract_strided_slice %52 {offsets = [0, 0], sizes = [16, 16], strides = [1, 1]} : vector<18x18xf32> to vector<16x16xf32>
    %c80 = arith.constant 80 : index
    %54 = memref.load %arg2[%c80] : memref<308xf32, #tpu.memory_space<smem>>
    %55 = vector.broadcast %54 : f32 to vector<16x16xf32>
    %56 = arith.mulf %53, %55 : vector<16x16xf32>
    %57 = vector.extract_strided_slice %52 {offsets = [0, 1], sizes = [16, 16], strides = [1, 1]} : vector<18x18xf32> to vector<16x16xf32>
    %c96 = arith.constant 96 : index
    %58 = memref.load %arg2[%c96] : memref<308xf32, #tpu.memory_space<smem>>
    %59 = vector.broadcast %58 : f32 to vector<16x16xf32>
    %60 = arith.mulf %57, %59 : vector<16x16xf32>
    %61 = arith.addf %56, %60 : vector<16x16xf32>
    %62 = vector.extract_strided_slice %52 {offsets = [0, 2], sizes = [16, 16], strides = [1, 1]} : vector<18x18xf32> to vector<16x16xf32>
    %c112 = arith.constant 112 : index
    %63 = memref.load %arg2[%c112] : memref<308xf32, #tpu.memory_space<smem>>
    %64 = vector.broadcast %63 : f32 to vector<16x16xf32>
    %65 = arith.mulf %62, %64 : vector<16x16xf32>
    %66 = arith.addf %61, %65 : vector<16x16xf32>
    %67 = vector.extract_strided_slice %52 {offsets = [1, 0], sizes = [16, 16], strides = [1, 1]} : vector<18x18xf32> to vector<16x16xf32>
    %c128 = arith.constant 128 : index
    %68 = memref.load %arg2[%c128] : memref<308xf32, #tpu.memory_space<smem>>
    %69 = vector.broadcast %68 : f32 to vector<16x16xf32>
    %70 = arith.mulf %67, %69 : vector<16x16xf32>
    %71 = arith.addf %66, %70 : vector<16x16xf32>
    %72 = vector.extract_strided_slice %52 {offsets = [1, 1], sizes = [16, 16], strides = [1, 1]} : vector<18x18xf32> to vector<16x16xf32>
    %c144 = arith.constant 144 : index
    %73 = memref.load %arg2[%c144] : memref<308xf32, #tpu.memory_space<smem>>
    %74 = vector.broadcast %73 : f32 to vector<16x16xf32>
    %75 = arith.mulf %72, %74 : vector<16x16xf32>
    %76 = arith.addf %71, %75 : vector<16x16xf32>
    %77 = vector.extract_strided_slice %52 {offsets = [1, 2], sizes = [16, 16], strides = [1, 1]} : vector<18x18xf32> to vector<16x16xf32>
    %c160 = arith.constant 160 : index
    %78 = memref.load %arg2[%c160] : memref<308xf32, #tpu.memory_space<smem>>
    %79 = vector.broadcast %78 : f32 to vector<16x16xf32>
    %80 = arith.mulf %77, %79 : vector<16x16xf32>
    %81 = arith.addf %76, %80 : vector<16x16xf32>
    %82 = vector.extract_strided_slice %52 {offsets = [2, 0], sizes = [16, 16], strides = [1, 1]} : vector<18x18xf32> to vector<16x16xf32>
    %c176 = arith.constant 176 : index
    %83 = memref.load %arg2[%c176] : memref<308xf32, #tpu.memory_space<smem>>
    %84 = vector.broadcast %83 : f32 to vector<16x16xf32>
    %85 = arith.mulf %82, %84 : vector<16x16xf32>
    %86 = arith.addf %81, %85 : vector<16x16xf32>
    %87 = vector.extract_strided_slice %52 {offsets = [2, 1], sizes = [16, 16], strides = [1, 1]} : vector<18x18xf32> to vector<16x16xf32>
    %c192 = arith.constant 192 : index
    %88 = memref.load %arg2[%c192] : memref<308xf32, #tpu.memory_space<smem>>
    %89 = vector.broadcast %88 : f32 to vector<16x16xf32>
    %90 = arith.mulf %87, %89 : vector<16x16xf32>
    %91 = arith.addf %86, %90 : vector<16x16xf32>
    %92 = vector.extract_strided_slice %52 {offsets = [2, 2], sizes = [16, 16], strides = [1, 1]} : vector<18x18xf32> to vector<16x16xf32>
    %c208 = arith.constant 208 : index
    %93 = memref.load %arg2[%c208] : memref<308xf32, #tpu.memory_space<smem>>
    %94 = vector.broadcast %93 : f32 to vector<16x16xf32>
    %95 = arith.mulf %92, %94 : vector<16x16xf32>
    %96 = arith.addf %91, %95 : vector<16x16xf32>
    %c224 = arith.constant 224 : index
    %97 = memref.load %arg2[%c224] : memref<308xf32, #tpu.memory_space<smem>>
    %98 = vector.broadcast %97 : f32 to vector<16x16xf32>
    %99 = arith.addf %96, %98 : vector<16x16xf32>
    %cst_14 = arith.constant 0.000000e+00 : f32
    %100 = vector.broadcast %cst_14 : f32 to vector<16x16xf32>
    %101 = arith.maximumf %99, %100 : vector<16x16xf32>
    %cst_15 = arith.constant 6.000000e+00 : f32
    %102 = vector.broadcast %cst_15 : f32 to vector<16x16xf32>
    %103 = arith.minimumf %101, %102 : vector<16x16xf32>
    %c240 = arith.constant 240 : index
    %104 = memref.load %arg2[%c240] : memref<308xf32, #tpu.memory_space<smem>>
    %105 = vector.broadcast %104 : f32 to vector<16x16xf32>
    %106 = arith.mulf %103, %105 : vector<16x16xf32>
    %c241 = arith.constant 241 : index
    %107 = memref.load %arg2[%c241] : memref<308xf32, #tpu.memory_space<smem>>
    %108 = vector.broadcast %107 : f32 to vector<16x16xf32>
    %109 = arith.mulf %103, %108 : vector<16x16xf32>
    %c242 = arith.constant 242 : index
    %110 = memref.load %arg2[%c242] : memref<308xf32, #tpu.memory_space<smem>>
    %111 = vector.broadcast %110 : f32 to vector<16x16xf32>
    %112 = arith.mulf %103, %111 : vector<16x16xf32>
    %c243 = arith.constant 243 : index
    %113 = memref.load %arg2[%c243] : memref<308xf32, #tpu.memory_space<smem>>
    %114 = vector.broadcast %113 : f32 to vector<16x16xf32>
    %115 = arith.mulf %103, %114 : vector<16x16xf32>
    %c1_16 = arith.constant 1 : index
    %116 = memref.load %arg2[%c1_16] : memref<308xf32, #tpu.memory_space<smem>>
    %117 = vector.broadcast %116 : f32 to vector<18x18xf32>
    %118 = arith.mulf %4, %117 : vector<18x18xf32>
    %c17 = arith.constant 17 : index
    %119 = memref.load %arg2[%c17] : memref<308xf32, #tpu.memory_space<smem>>
    %120 = vector.broadcast %119 : f32 to vector<18x18xf32>
    %121 = arith.mulf %7, %120 : vector<18x18xf32>
    %122 = arith.addf %118, %121 : vector<18x18xf32>
    %c33 = arith.constant 33 : index
    %123 = memref.load %arg2[%c33] : memref<308xf32, #tpu.memory_space<smem>>
    %124 = vector.broadcast %123 : f32 to vector<18x18xf32>
    %125 = arith.mulf %10, %124 : vector<18x18xf32>
    %126 = arith.addf %122, %125 : vector<18x18xf32>
    %c49 = arith.constant 49 : index
    %127 = memref.load %arg2[%c49] : memref<308xf32, #tpu.memory_space<smem>>
    %128 = vector.broadcast %127 : f32 to vector<18x18xf32>
    %129 = arith.mulf %13, %128 : vector<18x18xf32>
    %130 = arith.addf %126, %129 : vector<18x18xf32>
    %c65 = arith.constant 65 : index
    %131 = memref.load %arg2[%c65] : memref<308xf32, #tpu.memory_space<smem>>
    %132 = vector.broadcast %131 : f32 to vector<18x18xf32>
    %133 = arith.addf %130, %132 : vector<18x18xf32>
    %cst_17 = arith.constant 0.000000e+00 : f32
    %134 = vector.broadcast %cst_17 : f32 to vector<18x18xf32>
    %135 = arith.maximumf %133, %134 : vector<18x18xf32>
    %136 = arith.minimumf %135, %31 : vector<18x18xf32>
    %137 = vector.extract_strided_slice %136 {offsets = [0, 0], sizes = [16, 16], strides = [1, 1]} : vector<18x18xf32> to vector<16x16xf32>
    %c81 = arith.constant 81 : index
    %138 = memref.load %arg2[%c81] : memref<308xf32, #tpu.memory_space<smem>>
    %139 = vector.broadcast %138 : f32 to vector<16x16xf32>
    %140 = arith.mulf %137, %139 : vector<16x16xf32>
    %141 = vector.extract_strided_slice %136 {offsets = [0, 1], sizes = [16, 16], strides = [1, 1]} : vector<18x18xf32> to vector<16x16xf32>
    %c97 = arith.constant 97 : index
    %142 = memref.load %arg2[%c97] : memref<308xf32, #tpu.memory_space<smem>>
    %143 = vector.broadcast %142 : f32 to vector<16x16xf32>
    %144 = arith.mulf %141, %143 : vector<16x16xf32>
    %145 = arith.addf %140, %144 : vector<16x16xf32>
    %146 = vector.extract_strided_slice %136 {offsets = [0, 2], sizes = [16, 16], strides = [1, 1]} : vector<18x18xf32> to vector<16x16xf32>
    %c113 = arith.constant 113 : index
    %147 = memref.load %arg2[%c113] : memref<308xf32, #tpu.memory_space<smem>>
    %148 = vector.broadcast %147 : f32 to vector<16x16xf32>
    %149 = arith.mulf %146, %148 : vector<16x16xf32>
    %150 = arith.addf %145, %149 : vector<16x16xf32>
    %151 = vector.extract_strided_slice %136 {offsets = [1, 0], sizes = [16, 16], strides = [1, 1]} : vector<18x18xf32> to vector<16x16xf32>
    %c129 = arith.constant 129 : index
    %152 = memref.load %arg2[%c129] : memref<308xf32, #tpu.memory_space<smem>>
    %153 = vector.broadcast %152 : f32 to vector<16x16xf32>
    %154 = arith.mulf %151, %153 : vector<16x16xf32>
    %155 = arith.addf %150, %154 : vector<16x16xf32>
    %156 = vector.extract_strided_slice %136 {offsets = [1, 1], sizes = [16, 16], strides = [1, 1]} : vector<18x18xf32> to vector<16x16xf32>
    %c145 = arith.constant 145 : index
    %157 = memref.load %arg2[%c145] : memref<308xf32, #tpu.memory_space<smem>>
    %158 = vector.broadcast %157 : f32 to vector<16x16xf32>
    %159 = arith.mulf %156, %158 : vector<16x16xf32>
    %160 = arith.addf %155, %159 : vector<16x16xf32>
    %161 = vector.extract_strided_slice %136 {offsets = [1, 2], sizes = [16, 16], strides = [1, 1]} : vector<18x18xf32> to vector<16x16xf32>
    %c161 = arith.constant 161 : index
    %162 = memref.load %arg2[%c161] : memref<308xf32, #tpu.memory_space<smem>>
    %163 = vector.broadcast %162 : f32 to vector<16x16xf32>
    %164 = arith.mulf %161, %163 : vector<16x16xf32>
    %165 = arith.addf %160, %164 : vector<16x16xf32>
    %166 = vector.extract_strided_slice %136 {offsets = [2, 0], sizes = [16, 16], strides = [1, 1]} : vector<18x18xf32> to vector<16x16xf32>
    %c177 = arith.constant 177 : index
    %167 = memref.load %arg2[%c177] : memref<308xf32, #tpu.memory_space<smem>>
    %168 = vector.broadcast %167 : f32 to vector<16x16xf32>
    %169 = arith.mulf %166, %168 : vector<16x16xf32>
    %170 = arith.addf %165, %169 : vector<16x16xf32>
    %171 = vector.extract_strided_slice %136 {offsets = [2, 1], sizes = [16, 16], strides = [1, 1]} : vector<18x18xf32> to vector<16x16xf32>
    %c193 = arith.constant 193 : index
    %172 = memref.load %arg2[%c193] : memref<308xf32, #tpu.memory_space<smem>>
    %173 = vector.broadcast %172 : f32 to vector<16x16xf32>
    %174 = arith.mulf %171, %173 : vector<16x16xf32>
    %175 = arith.addf %170, %174 : vector<16x16xf32>
    %176 = vector.extract_strided_slice %136 {offsets = [2, 2], sizes = [16, 16], strides = [1, 1]} : vector<18x18xf32> to vector<16x16xf32>
    %c209 = arith.constant 209 : index
    %177 = memref.load %arg2[%c209] : memref<308xf32, #tpu.memory_space<smem>>
    %178 = vector.broadcast %177 : f32 to vector<16x16xf32>
    %179 = arith.mulf %176, %178 : vector<16x16xf32>
    %180 = arith.addf %175, %179 : vector<16x16xf32>
    %c225 = arith.constant 225 : index
    %181 = memref.load %arg2[%c225] : memref<308xf32, #tpu.memory_space<smem>>
    %182 = vector.broadcast %181 : f32 to vector<16x16xf32>
    %183 = arith.addf %180, %182 : vector<16x16xf32>
    %cst_18 = arith.constant 0.000000e+00 : f32
    %184 = vector.broadcast %cst_18 : f32 to vector<16x16xf32>
    %185 = arith.maximumf %183, %184 : vector<16x16xf32>
    %cst_19 = arith.constant 6.000000e+00 : f32
    %186 = vector.broadcast %cst_19 : f32 to vector<16x16xf32>
    %187 = arith.minimumf %185, %186 : vector<16x16xf32>
    %c244 = arith.constant 244 : index
    %188 = memref.load %arg2[%c244] : memref<308xf32, #tpu.memory_space<smem>>
    %189 = vector.broadcast %188 : f32 to vector<16x16xf32>
    %190 = arith.mulf %187, %189 : vector<16x16xf32>
    %191 = arith.addf %106, %190 : vector<16x16xf32>
    %c245 = arith.constant 245 : index
    %192 = memref.load %arg2[%c245] : memref<308xf32, #tpu.memory_space<smem>>
    %193 = vector.broadcast %192 : f32 to vector<16x16xf32>
    %194 = arith.mulf %187, %193 : vector<16x16xf32>
    %195 = arith.addf %109, %194 : vector<16x16xf32>
    %c246 = arith.constant 246 : index
    %196 = memref.load %arg2[%c246] : memref<308xf32, #tpu.memory_space<smem>>
    %197 = vector.broadcast %196 : f32 to vector<16x16xf32>
    %198 = arith.mulf %187, %197 : vector<16x16xf32>
    %199 = arith.addf %112, %198 : vector<16x16xf32>
    %c247 = arith.constant 247 : index
    %200 = memref.load %arg2[%c247] : memref<308xf32, #tpu.memory_space<smem>>
    %201 = vector.broadcast %200 : f32 to vector<16x16xf32>
    %202 = arith.mulf %187, %201 : vector<16x16xf32>
    %203 = arith.addf %115, %202 : vector<16x16xf32>
    %c2_20 = arith.constant 2 : index
    %204 = memref.load %arg2[%c2_20] : memref<308xf32, #tpu.memory_space<smem>>
    %205 = vector.broadcast %204 : f32 to vector<18x18xf32>
    %206 = arith.mulf %4, %205 : vector<18x18xf32>
    %c18 = arith.constant 18 : index
    %207 = memref.load %arg2[%c18] : memref<308xf32, #tpu.memory_space<smem>>
    %208 = vector.broadcast %207 : f32 to vector<18x18xf32>
    %209 = arith.mulf %7, %208 : vector<18x18xf32>
    %210 = arith.addf %206, %209 : vector<18x18xf32>
    %c34 = arith.constant 34 : index
    %211 = memref.load %arg2[%c34] : memref<308xf32, #tpu.memory_space<smem>>
    %212 = vector.broadcast %211 : f32 to vector<18x18xf32>
    %213 = arith.mulf %10, %212 : vector<18x18xf32>
    %214 = arith.addf %210, %213 : vector<18x18xf32>
    %c50 = arith.constant 50 : index
    %215 = memref.load %arg2[%c50] : memref<308xf32, #tpu.memory_space<smem>>
    %216 = vector.broadcast %215 : f32 to vector<18x18xf32>
    %217 = arith.mulf %13, %216 : vector<18x18xf32>
    %218 = arith.addf %214, %217 : vector<18x18xf32>
    %c66 = arith.constant 66 : index
    %219 = memref.load %arg2[%c66] : memref<308xf32, #tpu.memory_space<smem>>
    %220 = vector.broadcast %219 : f32 to vector<18x18xf32>
    %221 = arith.addf %218, %220 : vector<18x18xf32>
    %cst_21 = arith.constant 0.000000e+00 : f32
    %222 = vector.broadcast %cst_21 : f32 to vector<18x18xf32>
    %223 = arith.maximumf %221, %222 : vector<18x18xf32>
    %224 = arith.minimumf %223, %31 : vector<18x18xf32>
    %225 = vector.extract_strided_slice %224 {offsets = [0, 0], sizes = [16, 16], strides = [1, 1]} : vector<18x18xf32> to vector<16x16xf32>
    %c82 = arith.constant 82 : index
    %226 = memref.load %arg2[%c82] : memref<308xf32, #tpu.memory_space<smem>>
    %227 = vector.broadcast %226 : f32 to vector<16x16xf32>
    %228 = arith.mulf %225, %227 : vector<16x16xf32>
    %229 = vector.extract_strided_slice %224 {offsets = [0, 1], sizes = [16, 16], strides = [1, 1]} : vector<18x18xf32> to vector<16x16xf32>
    %c98 = arith.constant 98 : index
    %230 = memref.load %arg2[%c98] : memref<308xf32, #tpu.memory_space<smem>>
    %231 = vector.broadcast %230 : f32 to vector<16x16xf32>
    %232 = arith.mulf %229, %231 : vector<16x16xf32>
    %233 = arith.addf %228, %232 : vector<16x16xf32>
    %234 = vector.extract_strided_slice %224 {offsets = [0, 2], sizes = [16, 16], strides = [1, 1]} : vector<18x18xf32> to vector<16x16xf32>
    %c114 = arith.constant 114 : index
    %235 = memref.load %arg2[%c114] : memref<308xf32, #tpu.memory_space<smem>>
    %236 = vector.broadcast %235 : f32 to vector<16x16xf32>
    %237 = arith.mulf %234, %236 : vector<16x16xf32>
    %238 = arith.addf %233, %237 : vector<16x16xf32>
    %239 = vector.extract_strided_slice %224 {offsets = [1, 0], sizes = [16, 16], strides = [1, 1]} : vector<18x18xf32> to vector<16x16xf32>
    %c130 = arith.constant 130 : index
    %240 = memref.load %arg2[%c130] : memref<308xf32, #tpu.memory_space<smem>>
    %241 = vector.broadcast %240 : f32 to vector<16x16xf32>
    %242 = arith.mulf %239, %241 : vector<16x16xf32>
    %243 = arith.addf %238, %242 : vector<16x16xf32>
    %244 = vector.extract_strided_slice %224 {offsets = [1, 1], sizes = [16, 16], strides = [1, 1]} : vector<18x18xf32> to vector<16x16xf32>
    %c146 = arith.constant 146 : index
    %245 = memref.load %arg2[%c146] : memref<308xf32, #tpu.memory_space<smem>>
    %246 = vector.broadcast %245 : f32 to vector<16x16xf32>
    %247 = arith.mulf %244, %246 : vector<16x16xf32>
    %248 = arith.addf %243, %247 : vector<16x16xf32>
    %249 = vector.extract_strided_slice %224 {offsets = [1, 2], sizes = [16, 16], strides = [1, 1]} : vector<18x18xf32> to vector<16x16xf32>
    %c162 = arith.constant 162 : index
    %250 = memref.load %arg2[%c162] : memref<308xf32, #tpu.memory_space<smem>>
    %251 = vector.broadcast %250 : f32 to vector<16x16xf32>
    %252 = arith.mulf %249, %251 : vector<16x16xf32>
    %253 = arith.addf %248, %252 : vector<16x16xf32>
    %254 = vector.extract_strided_slice %224 {offsets = [2, 0], sizes = [16, 16], strides = [1, 1]} : vector<18x18xf32> to vector<16x16xf32>
    %c178 = arith.constant 178 : index
    %255 = memref.load %arg2[%c178] : memref<308xf32, #tpu.memory_space<smem>>
    %256 = vector.broadcast %255 : f32 to vector<16x16xf32>
    %257 = arith.mulf %254, %256 : vector<16x16xf32>
    %258 = arith.addf %253, %257 : vector<16x16xf32>
    %259 = vector.extract_strided_slice %224 {offsets = [2, 1], sizes = [16, 16], strides = [1, 1]} : vector<18x18xf32> to vector<16x16xf32>
    %c194 = arith.constant 194 : index
    %260 = memref.load %arg2[%c194] : memref<308xf32, #tpu.memory_space<smem>>
    %261 = vector.broadcast %260 : f32 to vector<16x16xf32>
    %262 = arith.mulf %259, %261 : vector<16x16xf32>
    %263 = arith.addf %258, %262 : vector<16x16xf32>
    %264 = vector.extract_strided_slice %224 {offsets = [2, 2], sizes = [16, 16], strides = [1, 1]} : vector<18x18xf32> to vector<16x16xf32>
    %c210 = arith.constant 210 : index
    %265 = memref.load %arg2[%c210] : memref<308xf32, #tpu.memory_space<smem>>
    %266 = vector.broadcast %265 : f32 to vector<16x16xf32>
    %267 = arith.mulf %264, %266 : vector<16x16xf32>
    %268 = arith.addf %263, %267 : vector<16x16xf32>
    %c226 = arith.constant 226 : index
    %269 = memref.load %arg2[%c226] : memref<308xf32, #tpu.memory_space<smem>>
    %270 = vector.broadcast %269 : f32 to vector<16x16xf32>
    %271 = arith.addf %268, %270 : vector<16x16xf32>
    %cst_22 = arith.constant 0.000000e+00 : f32
    %272 = vector.broadcast %cst_22 : f32 to vector<16x16xf32>
    %273 = arith.maximumf %271, %272 : vector<16x16xf32>
    %cst_23 = arith.constant 6.000000e+00 : f32
    %274 = vector.broadcast %cst_23 : f32 to vector<16x16xf32>
    %275 = arith.minimumf %273, %274 : vector<16x16xf32>
    %c248 = arith.constant 248 : index
    %276 = memref.load %arg2[%c248] : memref<308xf32, #tpu.memory_space<smem>>
    %277 = vector.broadcast %276 : f32 to vector<16x16xf32>
    %278 = arith.mulf %275, %277 : vector<16x16xf32>
    %279 = arith.addf %191, %278 : vector<16x16xf32>
    %c249 = arith.constant 249 : index
    %280 = memref.load %arg2[%c249] : memref<308xf32, #tpu.memory_space<smem>>
    %281 = vector.broadcast %280 : f32 to vector<16x16xf32>
    %282 = arith.mulf %275, %281 : vector<16x16xf32>
    %283 = arith.addf %195, %282 : vector<16x16xf32>
    %c250 = arith.constant 250 : index
    %284 = memref.load %arg2[%c250] : memref<308xf32, #tpu.memory_space<smem>>
    %285 = vector.broadcast %284 : f32 to vector<16x16xf32>
    %286 = arith.mulf %275, %285 : vector<16x16xf32>
    %287 = arith.addf %199, %286 : vector<16x16xf32>
    %c251 = arith.constant 251 : index
    %288 = memref.load %arg2[%c251] : memref<308xf32, #tpu.memory_space<smem>>
    %289 = vector.broadcast %288 : f32 to vector<16x16xf32>
    %290 = arith.mulf %275, %289 : vector<16x16xf32>
    %291 = arith.addf %203, %290 : vector<16x16xf32>
    %c3_24 = arith.constant 3 : index
    %292 = memref.load %arg2[%c3_24] : memref<308xf32, #tpu.memory_space<smem>>
    %293 = vector.broadcast %292 : f32 to vector<18x18xf32>
    %294 = arith.mulf %4, %293 : vector<18x18xf32>
    %c19 = arith.constant 19 : index
    %295 = memref.load %arg2[%c19] : memref<308xf32, #tpu.memory_space<smem>>
    %296 = vector.broadcast %295 : f32 to vector<18x18xf32>
    %297 = arith.mulf %7, %296 : vector<18x18xf32>
    %298 = arith.addf %294, %297 : vector<18x18xf32>
    %c35 = arith.constant 35 : index
    %299 = memref.load %arg2[%c35] : memref<308xf32, #tpu.memory_space<smem>>
    %300 = vector.broadcast %299 : f32 to vector<18x18xf32>
    %301 = arith.mulf %10, %300 : vector<18x18xf32>
    %302 = arith.addf %298, %301 : vector<18x18xf32>
    %c51 = arith.constant 51 : index
    %303 = memref.load %arg2[%c51] : memref<308xf32, #tpu.memory_space<smem>>
    %304 = vector.broadcast %303 : f32 to vector<18x18xf32>
    %305 = arith.mulf %13, %304 : vector<18x18xf32>
    %306 = arith.addf %302, %305 : vector<18x18xf32>
    %c67 = arith.constant 67 : index
    %307 = memref.load %arg2[%c67] : memref<308xf32, #tpu.memory_space<smem>>
    %308 = vector.broadcast %307 : f32 to vector<18x18xf32>
    %309 = arith.addf %306, %308 : vector<18x18xf32>
    %cst_25 = arith.constant 0.000000e+00 : f32
    %310 = vector.broadcast %cst_25 : f32 to vector<18x18xf32>
    %311 = arith.maximumf %309, %310 : vector<18x18xf32>
    %312 = arith.minimumf %311, %31 : vector<18x18xf32>
    %313 = vector.extract_strided_slice %312 {offsets = [0, 0], sizes = [16, 16], strides = [1, 1]} : vector<18x18xf32> to vector<16x16xf32>
    %c83 = arith.constant 83 : index
    %314 = memref.load %arg2[%c83] : memref<308xf32, #tpu.memory_space<smem>>
    %315 = vector.broadcast %314 : f32 to vector<16x16xf32>
    %316 = arith.mulf %313, %315 : vector<16x16xf32>
    %317 = vector.extract_strided_slice %312 {offsets = [0, 1], sizes = [16, 16], strides = [1, 1]} : vector<18x18xf32> to vector<16x16xf32>
    %c99 = arith.constant 99 : index
    %318 = memref.load %arg2[%c99] : memref<308xf32, #tpu.memory_space<smem>>
    %319 = vector.broadcast %318 : f32 to vector<16x16xf32>
    %320 = arith.mulf %317, %319 : vector<16x16xf32>
    %321 = arith.addf %316, %320 : vector<16x16xf32>
    %322 = vector.extract_strided_slice %312 {offsets = [0, 2], sizes = [16, 16], strides = [1, 1]} : vector<18x18xf32> to vector<16x16xf32>
    %c115 = arith.constant 115 : index
    %323 = memref.load %arg2[%c115] : memref<308xf32, #tpu.memory_space<smem>>
    %324 = vector.broadcast %323 : f32 to vector<16x16xf32>
    %325 = arith.mulf %322, %324 : vector<16x16xf32>
    %326 = arith.addf %321, %325 : vector<16x16xf32>
    %327 = vector.extract_strided_slice %312 {offsets = [1, 0], sizes = [16, 16], strides = [1, 1]} : vector<18x18xf32> to vector<16x16xf32>
    %c131 = arith.constant 131 : index
    %328 = memref.load %arg2[%c131] : memref<308xf32, #tpu.memory_space<smem>>
    %329 = vector.broadcast %328 : f32 to vector<16x16xf32>
    %330 = arith.mulf %327, %329 : vector<16x16xf32>
    %331 = arith.addf %326, %330 : vector<16x16xf32>
    %332 = vector.extract_strided_slice %312 {offsets = [1, 1], sizes = [16, 16], strides = [1, 1]} : vector<18x18xf32> to vector<16x16xf32>
    %c147 = arith.constant 147 : index
    %333 = memref.load %arg2[%c147] : memref<308xf32, #tpu.memory_space<smem>>
    %334 = vector.broadcast %333 : f32 to vector<16x16xf32>
    %335 = arith.mulf %332, %334 : vector<16x16xf32>
    %336 = arith.addf %331, %335 : vector<16x16xf32>
    %337 = vector.extract_strided_slice %312 {offsets = [1, 2], sizes = [16, 16], strides = [1, 1]} : vector<18x18xf32> to vector<16x16xf32>
    %c163 = arith.constant 163 : index
    %338 = memref.load %arg2[%c163] : memref<308xf32, #tpu.memory_space<smem>>
    %339 = vector.broadcast %338 : f32 to vector<16x16xf32>
    %340 = arith.mulf %337, %339 : vector<16x16xf32>
    %341 = arith.addf %336, %340 : vector<16x16xf32>
    %342 = vector.extract_strided_slice %312 {offsets = [2, 0], sizes = [16, 16], strides = [1, 1]} : vector<18x18xf32> to vector<16x16xf32>
    %c179 = arith.constant 179 : index
    %343 = memref.load %arg2[%c179] : memref<308xf32, #tpu.memory_space<smem>>
    %344 = vector.broadcast %343 : f32 to vector<16x16xf32>
    %345 = arith.mulf %342, %344 : vector<16x16xf32>
    %346 = arith.addf %341, %345 : vector<16x16xf32>
    %347 = vector.extract_strided_slice %312 {offsets = [2, 1], sizes = [16, 16], strides = [1, 1]} : vector<18x18xf32> to vector<16x16xf32>
    %c195 = arith.constant 195 : index
    %348 = memref.load %arg2[%c195] : memref<308xf32, #tpu.memory_space<smem>>
    %349 = vector.broadcast %348 : f32 to vector<16x16xf32>
    %350 = arith.mulf %347, %349 : vector<16x16xf32>
    %351 = arith.addf %346, %350 : vector<16x16xf32>
    %352 = vector.extract_strided_slice %312 {offsets = [2, 2], sizes = [16, 16], strides = [1, 1]} : vector<18x18xf32> to vector<16x16xf32>
    %c211 = arith.constant 211 : index
    %353 = memref.load %arg2[%c211] : memref<308xf32, #tpu.memory_space<smem>>
    %354 = vector.broadcast %353 : f32 to vector<16x16xf32>
    %355 = arith.mulf %352, %354 : vector<16x16xf32>
    %356 = arith.addf %351, %355 : vector<16x16xf32>
    %c227 = arith.constant 227 : index
    %357 = memref.load %arg2[%c227] : memref<308xf32, #tpu.memory_space<smem>>
    %358 = vector.broadcast %357 : f32 to vector<16x16xf32>
    %359 = arith.addf %356, %358 : vector<16x16xf32>
    %cst_26 = arith.constant 0.000000e+00 : f32
    %360 = vector.broadcast %cst_26 : f32 to vector<16x16xf32>
    %361 = arith.maximumf %359, %360 : vector<16x16xf32>
    %cst_27 = arith.constant 6.000000e+00 : f32
    %362 = vector.broadcast %cst_27 : f32 to vector<16x16xf32>
    %363 = arith.minimumf %361, %362 : vector<16x16xf32>
    %c252 = arith.constant 252 : index
    %364 = memref.load %arg2[%c252] : memref<308xf32, #tpu.memory_space<smem>>
    %365 = vector.broadcast %364 : f32 to vector<16x16xf32>
    %366 = arith.mulf %363, %365 : vector<16x16xf32>
    %367 = arith.addf %279, %366 : vector<16x16xf32>
    %c253 = arith.constant 253 : index
    %368 = memref.load %arg2[%c253] : memref<308xf32, #tpu.memory_space<smem>>
    %369 = vector.broadcast %368 : f32 to vector<16x16xf32>
    %370 = arith.mulf %363, %369 : vector<16x16xf32>
    %371 = arith.addf %283, %370 : vector<16x16xf32>
    %c254 = arith.constant 254 : index
    %372 = memref.load %arg2[%c254] : memref<308xf32, #tpu.memory_space<smem>>
    %373 = vector.broadcast %372 : f32 to vector<16x16xf32>
    %374 = arith.mulf %363, %373 : vector<16x16xf32>
    %375 = arith.addf %287, %374 : vector<16x16xf32>
    %c255 = arith.constant 255 : index
    %376 = memref.load %arg2[%c255] : memref<308xf32, #tpu.memory_space<smem>>
    %377 = vector.broadcast %376 : f32 to vector<16x16xf32>
    %378 = arith.mulf %363, %377 : vector<16x16xf32>
    %379 = arith.addf %291, %378 : vector<16x16xf32>
    %c4 = arith.constant 4 : index
    %380 = memref.load %arg2[%c4] : memref<308xf32, #tpu.memory_space<smem>>
    %381 = vector.broadcast %380 : f32 to vector<18x18xf32>
    %382 = arith.mulf %4, %381 : vector<18x18xf32>
    %c20 = arith.constant 20 : index
    %383 = memref.load %arg2[%c20] : memref<308xf32, #tpu.memory_space<smem>>
    %384 = vector.broadcast %383 : f32 to vector<18x18xf32>
    %385 = arith.mulf %7, %384 : vector<18x18xf32>
    %386 = arith.addf %382, %385 : vector<18x18xf32>
    %c36 = arith.constant 36 : index
    %387 = memref.load %arg2[%c36] : memref<308xf32, #tpu.memory_space<smem>>
    %388 = vector.broadcast %387 : f32 to vector<18x18xf32>
    %389 = arith.mulf %10, %388 : vector<18x18xf32>
    %390 = arith.addf %386, %389 : vector<18x18xf32>
    %c52 = arith.constant 52 : index
    %391 = memref.load %arg2[%c52] : memref<308xf32, #tpu.memory_space<smem>>
    %392 = vector.broadcast %391 : f32 to vector<18x18xf32>
    %393 = arith.mulf %13, %392 : vector<18x18xf32>
    %394 = arith.addf %390, %393 : vector<18x18xf32>
    %c68 = arith.constant 68 : index
    %395 = memref.load %arg2[%c68] : memref<308xf32, #tpu.memory_space<smem>>
    %396 = vector.broadcast %395 : f32 to vector<18x18xf32>
    %397 = arith.addf %394, %396 : vector<18x18xf32>
    %cst_28 = arith.constant 0.000000e+00 : f32
    %398 = vector.broadcast %cst_28 : f32 to vector<18x18xf32>
    %399 = arith.maximumf %397, %398 : vector<18x18xf32>
    %400 = arith.minimumf %399, %31 : vector<18x18xf32>
    %401 = vector.extract_strided_slice %400 {offsets = [0, 0], sizes = [16, 16], strides = [1, 1]} : vector<18x18xf32> to vector<16x16xf32>
    %c84 = arith.constant 84 : index
    %402 = memref.load %arg2[%c84] : memref<308xf32, #tpu.memory_space<smem>>
    %403 = vector.broadcast %402 : f32 to vector<16x16xf32>
    %404 = arith.mulf %401, %403 : vector<16x16xf32>
    %405 = vector.extract_strided_slice %400 {offsets = [0, 1], sizes = [16, 16], strides = [1, 1]} : vector<18x18xf32> to vector<16x16xf32>
    %c100 = arith.constant 100 : index
    %406 = memref.load %arg2[%c100] : memref<308xf32, #tpu.memory_space<smem>>
    %407 = vector.broadcast %406 : f32 to vector<16x16xf32>
    %408 = arith.mulf %405, %407 : vector<16x16xf32>
    %409 = arith.addf %404, %408 : vector<16x16xf32>
    %410 = vector.extract_strided_slice %400 {offsets = [0, 2], sizes = [16, 16], strides = [1, 1]} : vector<18x18xf32> to vector<16x16xf32>
    %c116 = arith.constant 116 : index
    %411 = memref.load %arg2[%c116] : memref<308xf32, #tpu.memory_space<smem>>
    %412 = vector.broadcast %411 : f32 to vector<16x16xf32>
    %413 = arith.mulf %410, %412 : vector<16x16xf32>
    %414 = arith.addf %409, %413 : vector<16x16xf32>
    %415 = vector.extract_strided_slice %400 {offsets = [1, 0], sizes = [16, 16], strides = [1, 1]} : vector<18x18xf32> to vector<16x16xf32>
    %c132 = arith.constant 132 : index
    %416 = memref.load %arg2[%c132] : memref<308xf32, #tpu.memory_space<smem>>
    %417 = vector.broadcast %416 : f32 to vector<16x16xf32>
    %418 = arith.mulf %415, %417 : vector<16x16xf32>
    %419 = arith.addf %414, %418 : vector<16x16xf32>
    %420 = vector.extract_strided_slice %400 {offsets = [1, 1], sizes = [16, 16], strides = [1, 1]} : vector<18x18xf32> to vector<16x16xf32>
    %c148 = arith.constant 148 : index
    %421 = memref.load %arg2[%c148] : memref<308xf32, #tpu.memory_space<smem>>
    %422 = vector.broadcast %421 : f32 to vector<16x16xf32>
    %423 = arith.mulf %420, %422 : vector<16x16xf32>
    %424 = arith.addf %419, %423 : vector<16x16xf32>
    %425 = vector.extract_strided_slice %400 {offsets = [1, 2], sizes = [16, 16], strides = [1, 1]} : vector<18x18xf32> to vector<16x16xf32>
    %c164 = arith.constant 164 : index
    %426 = memref.load %arg2[%c164] : memref<308xf32, #tpu.memory_space<smem>>
    %427 = vector.broadcast %426 : f32 to vector<16x16xf32>
    %428 = arith.mulf %425, %427 : vector<16x16xf32>
    %429 = arith.addf %424, %428 : vector<16x16xf32>
    %430 = vector.extract_strided_slice %400 {offsets = [2, 0], sizes = [16, 16], strides = [1, 1]} : vector<18x18xf32> to vector<16x16xf32>
    %c180 = arith.constant 180 : index
    %431 = memref.load %arg2[%c180] : memref<308xf32, #tpu.memory_space<smem>>
    %432 = vector.broadcast %431 : f32 to vector<16x16xf32>
    %433 = arith.mulf %430, %432 : vector<16x16xf32>
    %434 = arith.addf %429, %433 : vector<16x16xf32>
    %435 = vector.extract_strided_slice %400 {offsets = [2, 1], sizes = [16, 16], strides = [1, 1]} : vector<18x18xf32> to vector<16x16xf32>
    %c196 = arith.constant 196 : index
    %436 = memref.load %arg2[%c196] : memref<308xf32, #tpu.memory_space<smem>>
    %437 = vector.broadcast %436 : f32 to vector<16x16xf32>
    %438 = arith.mulf %435, %437 : vector<16x16xf32>
    %439 = arith.addf %434, %438 : vector<16x16xf32>
    %440 = vector.extract_strided_slice %400 {offsets = [2, 2], sizes = [16, 16], strides = [1, 1]} : vector<18x18xf32> to vector<16x16xf32>
    %c212 = arith.constant 212 : index
    %441 = memref.load %arg2[%c212] : memref<308xf32, #tpu.memory_space<smem>>
    %442 = vector.broadcast %441 : f32 to vector<16x16xf32>
    %443 = arith.mulf %440, %442 : vector<16x16xf32>
    %444 = arith.addf %439, %443 : vector<16x16xf32>
    %c228 = arith.constant 228 : index
    %445 = memref.load %arg2[%c228] : memref<308xf32, #tpu.memory_space<smem>>
    %446 = vector.broadcast %445 : f32 to vector<16x16xf32>
    %447 = arith.addf %444, %446 : vector<16x16xf32>
    %cst_29 = arith.constant 0.000000e+00 : f32
    %448 = vector.broadcast %cst_29 : f32 to vector<16x16xf32>
    %449 = arith.maximumf %447, %448 : vector<16x16xf32>
    %cst_30 = arith.constant 6.000000e+00 : f32
    %450 = vector.broadcast %cst_30 : f32 to vector<16x16xf32>
    %451 = arith.minimumf %449, %450 : vector<16x16xf32>
    %c256 = arith.constant 256 : index
    %452 = memref.load %arg2[%c256] : memref<308xf32, #tpu.memory_space<smem>>
    %453 = vector.broadcast %452 : f32 to vector<16x16xf32>
    %454 = arith.mulf %451, %453 : vector<16x16xf32>
    %455 = arith.addf %367, %454 : vector<16x16xf32>
    %c257 = arith.constant 257 : index
    %456 = memref.load %arg2[%c257] : memref<308xf32, #tpu.memory_space<smem>>
    %457 = vector.broadcast %456 : f32 to vector<16x16xf32>
    %458 = arith.mulf %451, %457 : vector<16x16xf32>
    %459 = arith.addf %371, %458 : vector<16x16xf32>
    %c258 = arith.constant 258 : index
    %460 = memref.load %arg2[%c258] : memref<308xf32, #tpu.memory_space<smem>>
    %461 = vector.broadcast %460 : f32 to vector<16x16xf32>
    %462 = arith.mulf %451, %461 : vector<16x16xf32>
    %463 = arith.addf %375, %462 : vector<16x16xf32>
    %c259 = arith.constant 259 : index
    %464 = memref.load %arg2[%c259] : memref<308xf32, #tpu.memory_space<smem>>
    %465 = vector.broadcast %464 : f32 to vector<16x16xf32>
    %466 = arith.mulf %451, %465 : vector<16x16xf32>
    %467 = arith.addf %379, %466 : vector<16x16xf32>
    %c5 = arith.constant 5 : index
    %468 = memref.load %arg2[%c5] : memref<308xf32, #tpu.memory_space<smem>>
    %469 = vector.broadcast %468 : f32 to vector<18x18xf32>
    %470 = arith.mulf %4, %469 : vector<18x18xf32>
    %c21 = arith.constant 21 : index
    %471 = memref.load %arg2[%c21] : memref<308xf32, #tpu.memory_space<smem>>
    %472 = vector.broadcast %471 : f32 to vector<18x18xf32>
    %473 = arith.mulf %7, %472 : vector<18x18xf32>
    %474 = arith.addf %470, %473 : vector<18x18xf32>
    %c37 = arith.constant 37 : index
    %475 = memref.load %arg2[%c37] : memref<308xf32, #tpu.memory_space<smem>>
    %476 = vector.broadcast %475 : f32 to vector<18x18xf32>
    %477 = arith.mulf %10, %476 : vector<18x18xf32>
    %478 = arith.addf %474, %477 : vector<18x18xf32>
    %c53 = arith.constant 53 : index
    %479 = memref.load %arg2[%c53] : memref<308xf32, #tpu.memory_space<smem>>
    %480 = vector.broadcast %479 : f32 to vector<18x18xf32>
    %481 = arith.mulf %13, %480 : vector<18x18xf32>
    %482 = arith.addf %478, %481 : vector<18x18xf32>
    %c69 = arith.constant 69 : index
    %483 = memref.load %arg2[%c69] : memref<308xf32, #tpu.memory_space<smem>>
    %484 = vector.broadcast %483 : f32 to vector<18x18xf32>
    %485 = arith.addf %482, %484 : vector<18x18xf32>
    %cst_31 = arith.constant 0.000000e+00 : f32
    %486 = vector.broadcast %cst_31 : f32 to vector<18x18xf32>
    %487 = arith.maximumf %485, %486 : vector<18x18xf32>
    %488 = arith.minimumf %487, %31 : vector<18x18xf32>
    %489 = vector.extract_strided_slice %488 {offsets = [0, 0], sizes = [16, 16], strides = [1, 1]} : vector<18x18xf32> to vector<16x16xf32>
    %c85 = arith.constant 85 : index
    %490 = memref.load %arg2[%c85] : memref<308xf32, #tpu.memory_space<smem>>
    %491 = vector.broadcast %490 : f32 to vector<16x16xf32>
    %492 = arith.mulf %489, %491 : vector<16x16xf32>
    %493 = vector.extract_strided_slice %488 {offsets = [0, 1], sizes = [16, 16], strides = [1, 1]} : vector<18x18xf32> to vector<16x16xf32>
    %c101 = arith.constant 101 : index
    %494 = memref.load %arg2[%c101] : memref<308xf32, #tpu.memory_space<smem>>
    %495 = vector.broadcast %494 : f32 to vector<16x16xf32>
    %496 = arith.mulf %493, %495 : vector<16x16xf32>
    %497 = arith.addf %492, %496 : vector<16x16xf32>
    %498 = vector.extract_strided_slice %488 {offsets = [0, 2], sizes = [16, 16], strides = [1, 1]} : vector<18x18xf32> to vector<16x16xf32>
    %c117 = arith.constant 117 : index
    %499 = memref.load %arg2[%c117] : memref<308xf32, #tpu.memory_space<smem>>
    %500 = vector.broadcast %499 : f32 to vector<16x16xf32>
    %501 = arith.mulf %498, %500 : vector<16x16xf32>
    %502 = arith.addf %497, %501 : vector<16x16xf32>
    %503 = vector.extract_strided_slice %488 {offsets = [1, 0], sizes = [16, 16], strides = [1, 1]} : vector<18x18xf32> to vector<16x16xf32>
    %c133 = arith.constant 133 : index
    %504 = memref.load %arg2[%c133] : memref<308xf32, #tpu.memory_space<smem>>
    %505 = vector.broadcast %504 : f32 to vector<16x16xf32>
    %506 = arith.mulf %503, %505 : vector<16x16xf32>
    %507 = arith.addf %502, %506 : vector<16x16xf32>
    %508 = vector.extract_strided_slice %488 {offsets = [1, 1], sizes = [16, 16], strides = [1, 1]} : vector<18x18xf32> to vector<16x16xf32>
    %c149 = arith.constant 149 : index
    %509 = memref.load %arg2[%c149] : memref<308xf32, #tpu.memory_space<smem>>
    %510 = vector.broadcast %509 : f32 to vector<16x16xf32>
    %511 = arith.mulf %508, %510 : vector<16x16xf32>
    %512 = arith.addf %507, %511 : vector<16x16xf32>
    %513 = vector.extract_strided_slice %488 {offsets = [1, 2], sizes = [16, 16], strides = [1, 1]} : vector<18x18xf32> to vector<16x16xf32>
    %c165 = arith.constant 165 : index
    %514 = memref.load %arg2[%c165] : memref<308xf32, #tpu.memory_space<smem>>
    %515 = vector.broadcast %514 : f32 to vector<16x16xf32>
    %516 = arith.mulf %513, %515 : vector<16x16xf32>
    %517 = arith.addf %512, %516 : vector<16x16xf32>
    %518 = vector.extract_strided_slice %488 {offsets = [2, 0], sizes = [16, 16], strides = [1, 1]} : vector<18x18xf32> to vector<16x16xf32>
    %c181 = arith.constant 181 : index
    %519 = memref.load %arg2[%c181] : memref<308xf32, #tpu.memory_space<smem>>
    %520 = vector.broadcast %519 : f32 to vector<16x16xf32>
    %521 = arith.mulf %518, %520 : vector<16x16xf32>
    %522 = arith.addf %517, %521 : vector<16x16xf32>
    %523 = vector.extract_strided_slice %488 {offsets = [2, 1], sizes = [16, 16], strides = [1, 1]} : vector<18x18xf32> to vector<16x16xf32>
    %c197 = arith.constant 197 : index
    %524 = memref.load %arg2[%c197] : memref<308xf32, #tpu.memory_space<smem>>
    %525 = vector.broadcast %524 : f32 to vector<16x16xf32>
    %526 = arith.mulf %523, %525 : vector<16x16xf32>
    %527 = arith.addf %522, %526 : vector<16x16xf32>
    %528 = vector.extract_strided_slice %488 {offsets = [2, 2], sizes = [16, 16], strides = [1, 1]} : vector<18x18xf32> to vector<16x16xf32>
    %c213 = arith.constant 213 : index
    %529 = memref.load %arg2[%c213] : memref<308xf32, #tpu.memory_space<smem>>
    %530 = vector.broadcast %529 : f32 to vector<16x16xf32>
    %531 = arith.mulf %528, %530 : vector<16x16xf32>
    %532 = arith.addf %527, %531 : vector<16x16xf32>
    %c229 = arith.constant 229 : index
    %533 = memref.load %arg2[%c229] : memref<308xf32, #tpu.memory_space<smem>>
    %534 = vector.broadcast %533 : f32 to vector<16x16xf32>
    %535 = arith.addf %532, %534 : vector<16x16xf32>
    %cst_32 = arith.constant 0.000000e+00 : f32
    %536 = vector.broadcast %cst_32 : f32 to vector<16x16xf32>
    %537 = arith.maximumf %535, %536 : vector<16x16xf32>
    %cst_33 = arith.constant 6.000000e+00 : f32
    %538 = vector.broadcast %cst_33 : f32 to vector<16x16xf32>
    %539 = arith.minimumf %537, %538 : vector<16x16xf32>
    %c260 = arith.constant 260 : index
    %540 = memref.load %arg2[%c260] : memref<308xf32, #tpu.memory_space<smem>>
    %541 = vector.broadcast %540 : f32 to vector<16x16xf32>
    %542 = arith.mulf %539, %541 : vector<16x16xf32>
    %543 = arith.addf %455, %542 : vector<16x16xf32>
    %c261 = arith.constant 261 : index
    %544 = memref.load %arg2[%c261] : memref<308xf32, #tpu.memory_space<smem>>
    %545 = vector.broadcast %544 : f32 to vector<16x16xf32>
    %546 = arith.mulf %539, %545 : vector<16x16xf32>
    %547 = arith.addf %459, %546 : vector<16x16xf32>
    %c262 = arith.constant 262 : index
    %548 = memref.load %arg2[%c262] : memref<308xf32, #tpu.memory_space<smem>>
    %549 = vector.broadcast %548 : f32 to vector<16x16xf32>
    %550 = arith.mulf %539, %549 : vector<16x16xf32>
    %551 = arith.addf %463, %550 : vector<16x16xf32>
    %c263 = arith.constant 263 : index
    %552 = memref.load %arg2[%c263] : memref<308xf32, #tpu.memory_space<smem>>
    %553 = vector.broadcast %552 : f32 to vector<16x16xf32>
    %554 = arith.mulf %539, %553 : vector<16x16xf32>
    %555 = arith.addf %467, %554 : vector<16x16xf32>
    %c6 = arith.constant 6 : index
    %556 = memref.load %arg2[%c6] : memref<308xf32, #tpu.memory_space<smem>>
    %557 = vector.broadcast %556 : f32 to vector<18x18xf32>
    %558 = arith.mulf %4, %557 : vector<18x18xf32>
    %c22 = arith.constant 22 : index
    %559 = memref.load %arg2[%c22] : memref<308xf32, #tpu.memory_space<smem>>
    %560 = vector.broadcast %559 : f32 to vector<18x18xf32>
    %561 = arith.mulf %7, %560 : vector<18x18xf32>
    %562 = arith.addf %558, %561 : vector<18x18xf32>
    %c38 = arith.constant 38 : index
    %563 = memref.load %arg2[%c38] : memref<308xf32, #tpu.memory_space<smem>>
    %564 = vector.broadcast %563 : f32 to vector<18x18xf32>
    %565 = arith.mulf %10, %564 : vector<18x18xf32>
    %566 = arith.addf %562, %565 : vector<18x18xf32>
    %c54 = arith.constant 54 : index
    %567 = memref.load %arg2[%c54] : memref<308xf32, #tpu.memory_space<smem>>
    %568 = vector.broadcast %567 : f32 to vector<18x18xf32>
    %569 = arith.mulf %13, %568 : vector<18x18xf32>
    %570 = arith.addf %566, %569 : vector<18x18xf32>
    %c70 = arith.constant 70 : index
    %571 = memref.load %arg2[%c70] : memref<308xf32, #tpu.memory_space<smem>>
    %572 = vector.broadcast %571 : f32 to vector<18x18xf32>
    %573 = arith.addf %570, %572 : vector<18x18xf32>
    %cst_34 = arith.constant 0.000000e+00 : f32
    %574 = vector.broadcast %cst_34 : f32 to vector<18x18xf32>
    %575 = arith.maximumf %573, %574 : vector<18x18xf32>
    %576 = arith.minimumf %575, %31 : vector<18x18xf32>
    %577 = vector.extract_strided_slice %576 {offsets = [0, 0], sizes = [16, 16], strides = [1, 1]} : vector<18x18xf32> to vector<16x16xf32>
    %c86 = arith.constant 86 : index
    %578 = memref.load %arg2[%c86] : memref<308xf32, #tpu.memory_space<smem>>
    %579 = vector.broadcast %578 : f32 to vector<16x16xf32>
    %580 = arith.mulf %577, %579 : vector<16x16xf32>
    %581 = vector.extract_strided_slice %576 {offsets = [0, 1], sizes = [16, 16], strides = [1, 1]} : vector<18x18xf32> to vector<16x16xf32>
    %c102 = arith.constant 102 : index
    %582 = memref.load %arg2[%c102] : memref<308xf32, #tpu.memory_space<smem>>
    %583 = vector.broadcast %582 : f32 to vector<16x16xf32>
    %584 = arith.mulf %581, %583 : vector<16x16xf32>
    %585 = arith.addf %580, %584 : vector<16x16xf32>
    %586 = vector.extract_strided_slice %576 {offsets = [0, 2], sizes = [16, 16], strides = [1, 1]} : vector<18x18xf32> to vector<16x16xf32>
    %c118 = arith.constant 118 : index
    %587 = memref.load %arg2[%c118] : memref<308xf32, #tpu.memory_space<smem>>
    %588 = vector.broadcast %587 : f32 to vector<16x16xf32>
    %589 = arith.mulf %586, %588 : vector<16x16xf32>
    %590 = arith.addf %585, %589 : vector<16x16xf32>
    %591 = vector.extract_strided_slice %576 {offsets = [1, 0], sizes = [16, 16], strides = [1, 1]} : vector<18x18xf32> to vector<16x16xf32>
    %c134 = arith.constant 134 : index
    %592 = memref.load %arg2[%c134] : memref<308xf32, #tpu.memory_space<smem>>
    %593 = vector.broadcast %592 : f32 to vector<16x16xf32>
    %594 = arith.mulf %591, %593 : vector<16x16xf32>
    %595 = arith.addf %590, %594 : vector<16x16xf32>
    %596 = vector.extract_strided_slice %576 {offsets = [1, 1], sizes = [16, 16], strides = [1, 1]} : vector<18x18xf32> to vector<16x16xf32>
    %c150 = arith.constant 150 : index
    %597 = memref.load %arg2[%c150] : memref<308xf32, #tpu.memory_space<smem>>
    %598 = vector.broadcast %597 : f32 to vector<16x16xf32>
    %599 = arith.mulf %596, %598 : vector<16x16xf32>
    %600 = arith.addf %595, %599 : vector<16x16xf32>
    %601 = vector.extract_strided_slice %576 {offsets = [1, 2], sizes = [16, 16], strides = [1, 1]} : vector<18x18xf32> to vector<16x16xf32>
    %c166 = arith.constant 166 : index
    %602 = memref.load %arg2[%c166] : memref<308xf32, #tpu.memory_space<smem>>
    %603 = vector.broadcast %602 : f32 to vector<16x16xf32>
    %604 = arith.mulf %601, %603 : vector<16x16xf32>
    %605 = arith.addf %600, %604 : vector<16x16xf32>
    %606 = vector.extract_strided_slice %576 {offsets = [2, 0], sizes = [16, 16], strides = [1, 1]} : vector<18x18xf32> to vector<16x16xf32>
    %c182 = arith.constant 182 : index
    %607 = memref.load %arg2[%c182] : memref<308xf32, #tpu.memory_space<smem>>
    %608 = vector.broadcast %607 : f32 to vector<16x16xf32>
    %609 = arith.mulf %606, %608 : vector<16x16xf32>
    %610 = arith.addf %605, %609 : vector<16x16xf32>
    %611 = vector.extract_strided_slice %576 {offsets = [2, 1], sizes = [16, 16], strides = [1, 1]} : vector<18x18xf32> to vector<16x16xf32>
    %c198 = arith.constant 198 : index
    %612 = memref.load %arg2[%c198] : memref<308xf32, #tpu.memory_space<smem>>
    %613 = vector.broadcast %612 : f32 to vector<16x16xf32>
    %614 = arith.mulf %611, %613 : vector<16x16xf32>
    %615 = arith.addf %610, %614 : vector<16x16xf32>
    %616 = vector.extract_strided_slice %576 {offsets = [2, 2], sizes = [16, 16], strides = [1, 1]} : vector<18x18xf32> to vector<16x16xf32>
    %c214 = arith.constant 214 : index
    %617 = memref.load %arg2[%c214] : memref<308xf32, #tpu.memory_space<smem>>
    %618 = vector.broadcast %617 : f32 to vector<16x16xf32>
    %619 = arith.mulf %616, %618 : vector<16x16xf32>
    %620 = arith.addf %615, %619 : vector<16x16xf32>
    %c230 = arith.constant 230 : index
    %621 = memref.load %arg2[%c230] : memref<308xf32, #tpu.memory_space<smem>>
    %622 = vector.broadcast %621 : f32 to vector<16x16xf32>
    %623 = arith.addf %620, %622 : vector<16x16xf32>
    %cst_35 = arith.constant 0.000000e+00 : f32
    %624 = vector.broadcast %cst_35 : f32 to vector<16x16xf32>
    %625 = arith.maximumf %623, %624 : vector<16x16xf32>
    %cst_36 = arith.constant 6.000000e+00 : f32
    %626 = vector.broadcast %cst_36 : f32 to vector<16x16xf32>
    %627 = arith.minimumf %625, %626 : vector<16x16xf32>
    %c264 = arith.constant 264 : index
    %628 = memref.load %arg2[%c264] : memref<308xf32, #tpu.memory_space<smem>>
    %629 = vector.broadcast %628 : f32 to vector<16x16xf32>
    %630 = arith.mulf %627, %629 : vector<16x16xf32>
    %631 = arith.addf %543, %630 : vector<16x16xf32>
    %c265 = arith.constant 265 : index
    %632 = memref.load %arg2[%c265] : memref<308xf32, #tpu.memory_space<smem>>
    %633 = vector.broadcast %632 : f32 to vector<16x16xf32>
    %634 = arith.mulf %627, %633 : vector<16x16xf32>
    %635 = arith.addf %547, %634 : vector<16x16xf32>
    %c266 = arith.constant 266 : index
    %636 = memref.load %arg2[%c266] : memref<308xf32, #tpu.memory_space<smem>>
    %637 = vector.broadcast %636 : f32 to vector<16x16xf32>
    %638 = arith.mulf %627, %637 : vector<16x16xf32>
    %639 = arith.addf %551, %638 : vector<16x16xf32>
    %c267 = arith.constant 267 : index
    %640 = memref.load %arg2[%c267] : memref<308xf32, #tpu.memory_space<smem>>
    %641 = vector.broadcast %640 : f32 to vector<16x16xf32>
    %642 = arith.mulf %627, %641 : vector<16x16xf32>
    %643 = arith.addf %555, %642 : vector<16x16xf32>
    %c7 = arith.constant 7 : index
    %644 = memref.load %arg2[%c7] : memref<308xf32, #tpu.memory_space<smem>>
    %645 = vector.broadcast %644 : f32 to vector<18x18xf32>
    %646 = arith.mulf %4, %645 : vector<18x18xf32>
    %c23 = arith.constant 23 : index
    %647 = memref.load %arg2[%c23] : memref<308xf32, #tpu.memory_space<smem>>
    %648 = vector.broadcast %647 : f32 to vector<18x18xf32>
    %649 = arith.mulf %7, %648 : vector<18x18xf32>
    %650 = arith.addf %646, %649 : vector<18x18xf32>
    %c39 = arith.constant 39 : index
    %651 = memref.load %arg2[%c39] : memref<308xf32, #tpu.memory_space<smem>>
    %652 = vector.broadcast %651 : f32 to vector<18x18xf32>
    %653 = arith.mulf %10, %652 : vector<18x18xf32>
    %654 = arith.addf %650, %653 : vector<18x18xf32>
    %c55 = arith.constant 55 : index
    %655 = memref.load %arg2[%c55] : memref<308xf32, #tpu.memory_space<smem>>
    %656 = vector.broadcast %655 : f32 to vector<18x18xf32>
    %657 = arith.mulf %13, %656 : vector<18x18xf32>
    %658 = arith.addf %654, %657 : vector<18x18xf32>
    %c71 = arith.constant 71 : index
    %659 = memref.load %arg2[%c71] : memref<308xf32, #tpu.memory_space<smem>>
    %660 = vector.broadcast %659 : f32 to vector<18x18xf32>
    %661 = arith.addf %658, %660 : vector<18x18xf32>
    %cst_37 = arith.constant 0.000000e+00 : f32
    %662 = vector.broadcast %cst_37 : f32 to vector<18x18xf32>
    %663 = arith.maximumf %661, %662 : vector<18x18xf32>
    %664 = arith.minimumf %663, %31 : vector<18x18xf32>
    %665 = vector.extract_strided_slice %664 {offsets = [0, 0], sizes = [16, 16], strides = [1, 1]} : vector<18x18xf32> to vector<16x16xf32>
    %c87 = arith.constant 87 : index
    %666 = memref.load %arg2[%c87] : memref<308xf32, #tpu.memory_space<smem>>
    %667 = vector.broadcast %666 : f32 to vector<16x16xf32>
    %668 = arith.mulf %665, %667 : vector<16x16xf32>
    %669 = vector.extract_strided_slice %664 {offsets = [0, 1], sizes = [16, 16], strides = [1, 1]} : vector<18x18xf32> to vector<16x16xf32>
    %c103 = arith.constant 103 : index
    %670 = memref.load %arg2[%c103] : memref<308xf32, #tpu.memory_space<smem>>
    %671 = vector.broadcast %670 : f32 to vector<16x16xf32>
    %672 = arith.mulf %669, %671 : vector<16x16xf32>
    %673 = arith.addf %668, %672 : vector<16x16xf32>
    %674 = vector.extract_strided_slice %664 {offsets = [0, 2], sizes = [16, 16], strides = [1, 1]} : vector<18x18xf32> to vector<16x16xf32>
    %c119 = arith.constant 119 : index
    %675 = memref.load %arg2[%c119] : memref<308xf32, #tpu.memory_space<smem>>
    %676 = vector.broadcast %675 : f32 to vector<16x16xf32>
    %677 = arith.mulf %674, %676 : vector<16x16xf32>
    %678 = arith.addf %673, %677 : vector<16x16xf32>
    %679 = vector.extract_strided_slice %664 {offsets = [1, 0], sizes = [16, 16], strides = [1, 1]} : vector<18x18xf32> to vector<16x16xf32>
    %c135 = arith.constant 135 : index
    %680 = memref.load %arg2[%c135] : memref<308xf32, #tpu.memory_space<smem>>
    %681 = vector.broadcast %680 : f32 to vector<16x16xf32>
    %682 = arith.mulf %679, %681 : vector<16x16xf32>
    %683 = arith.addf %678, %682 : vector<16x16xf32>
    %684 = vector.extract_strided_slice %664 {offsets = [1, 1], sizes = [16, 16], strides = [1, 1]} : vector<18x18xf32> to vector<16x16xf32>
    %c151 = arith.constant 151 : index
    %685 = memref.load %arg2[%c151] : memref<308xf32, #tpu.memory_space<smem>>
    %686 = vector.broadcast %685 : f32 to vector<16x16xf32>
    %687 = arith.mulf %684, %686 : vector<16x16xf32>
    %688 = arith.addf %683, %687 : vector<16x16xf32>
    %689 = vector.extract_strided_slice %664 {offsets = [1, 2], sizes = [16, 16], strides = [1, 1]} : vector<18x18xf32> to vector<16x16xf32>
    %c167 = arith.constant 167 : index
    %690 = memref.load %arg2[%c167] : memref<308xf32, #tpu.memory_space<smem>>
    %691 = vector.broadcast %690 : f32 to vector<16x16xf32>
    %692 = arith.mulf %689, %691 : vector<16x16xf32>
    %693 = arith.addf %688, %692 : vector<16x16xf32>
    %694 = vector.extract_strided_slice %664 {offsets = [2, 0], sizes = [16, 16], strides = [1, 1]} : vector<18x18xf32> to vector<16x16xf32>
    %c183 = arith.constant 183 : index
    %695 = memref.load %arg2[%c183] : memref<308xf32, #tpu.memory_space<smem>>
    %696 = vector.broadcast %695 : f32 to vector<16x16xf32>
    %697 = arith.mulf %694, %696 : vector<16x16xf32>
    %698 = arith.addf %693, %697 : vector<16x16xf32>
    %699 = vector.extract_strided_slice %664 {offsets = [2, 1], sizes = [16, 16], strides = [1, 1]} : vector<18x18xf32> to vector<16x16xf32>
    %c199 = arith.constant 199 : index
    %700 = memref.load %arg2[%c199] : memref<308xf32, #tpu.memory_space<smem>>
    %701 = vector.broadcast %700 : f32 to vector<16x16xf32>
    %702 = arith.mulf %699, %701 : vector<16x16xf32>
    %703 = arith.addf %698, %702 : vector<16x16xf32>
    %704 = vector.extract_strided_slice %664 {offsets = [2, 2], sizes = [16, 16], strides = [1, 1]} : vector<18x18xf32> to vector<16x16xf32>
    %c215 = arith.constant 215 : index
    %705 = memref.load %arg2[%c215] : memref<308xf32, #tpu.memory_space<smem>>
    %706 = vector.broadcast %705 : f32 to vector<16x16xf32>
    %707 = arith.mulf %704, %706 : vector<16x16xf32>
    %708 = arith.addf %703, %707 : vector<16x16xf32>
    %c231 = arith.constant 231 : index
    %709 = memref.load %arg2[%c231] : memref<308xf32, #tpu.memory_space<smem>>
    %710 = vector.broadcast %709 : f32 to vector<16x16xf32>
    %711 = arith.addf %708, %710 : vector<16x16xf32>
    %cst_38 = arith.constant 0.000000e+00 : f32
    %712 = vector.broadcast %cst_38 : f32 to vector<16x16xf32>
    %713 = arith.maximumf %711, %712 : vector<16x16xf32>
    %cst_39 = arith.constant 6.000000e+00 : f32
    %714 = vector.broadcast %cst_39 : f32 to vector<16x16xf32>
    %715 = arith.minimumf %713, %714 : vector<16x16xf32>
    %c268 = arith.constant 268 : index
    %716 = memref.load %arg2[%c268] : memref<308xf32, #tpu.memory_space<smem>>
    %717 = vector.broadcast %716 : f32 to vector<16x16xf32>
    %718 = arith.mulf %715, %717 : vector<16x16xf32>
    %719 = arith.addf %631, %718 : vector<16x16xf32>
    %c269 = arith.constant 269 : index
    %720 = memref.load %arg2[%c269] : memref<308xf32, #tpu.memory_space<smem>>
    %721 = vector.broadcast %720 : f32 to vector<16x16xf32>
    %722 = arith.mulf %715, %721 : vector<16x16xf32>
    %723 = arith.addf %635, %722 : vector<16x16xf32>
    %c270 = arith.constant 270 : index
    %724 = memref.load %arg2[%c270] : memref<308xf32, #tpu.memory_space<smem>>
    %725 = vector.broadcast %724 : f32 to vector<16x16xf32>
    %726 = arith.mulf %715, %725 : vector<16x16xf32>
    %727 = arith.addf %639, %726 : vector<16x16xf32>
    %c271 = arith.constant 271 : index
    %728 = memref.load %arg2[%c271] : memref<308xf32, #tpu.memory_space<smem>>
    %729 = vector.broadcast %728 : f32 to vector<16x16xf32>
    %730 = arith.mulf %715, %729 : vector<16x16xf32>
    %731 = arith.addf %643, %730 : vector<16x16xf32>
    %c8 = arith.constant 8 : index
    %732 = memref.load %arg2[%c8] : memref<308xf32, #tpu.memory_space<smem>>
    %733 = vector.broadcast %732 : f32 to vector<18x18xf32>
    %734 = arith.mulf %4, %733 : vector<18x18xf32>
    %c24 = arith.constant 24 : index
    %735 = memref.load %arg2[%c24] : memref<308xf32, #tpu.memory_space<smem>>
    %736 = vector.broadcast %735 : f32 to vector<18x18xf32>
    %737 = arith.mulf %7, %736 : vector<18x18xf32>
    %738 = arith.addf %734, %737 : vector<18x18xf32>
    %c40 = arith.constant 40 : index
    %739 = memref.load %arg2[%c40] : memref<308xf32, #tpu.memory_space<smem>>
    %740 = vector.broadcast %739 : f32 to vector<18x18xf32>
    %741 = arith.mulf %10, %740 : vector<18x18xf32>
    %742 = arith.addf %738, %741 : vector<18x18xf32>
    %c56 = arith.constant 56 : index
    %743 = memref.load %arg2[%c56] : memref<308xf32, #tpu.memory_space<smem>>
    %744 = vector.broadcast %743 : f32 to vector<18x18xf32>
    %745 = arith.mulf %13, %744 : vector<18x18xf32>
    %746 = arith.addf %742, %745 : vector<18x18xf32>
    %c72 = arith.constant 72 : index
    %747 = memref.load %arg2[%c72] : memref<308xf32, #tpu.memory_space<smem>>
    %748 = vector.broadcast %747 : f32 to vector<18x18xf32>
    %749 = arith.addf %746, %748 : vector<18x18xf32>
    %cst_40 = arith.constant 0.000000e+00 : f32
    %750 = vector.broadcast %cst_40 : f32 to vector<18x18xf32>
    %751 = arith.maximumf %749, %750 : vector<18x18xf32>
    %752 = arith.minimumf %751, %31 : vector<18x18xf32>
    %753 = vector.extract_strided_slice %752 {offsets = [0, 0], sizes = [16, 16], strides = [1, 1]} : vector<18x18xf32> to vector<16x16xf32>
    %c88 = arith.constant 88 : index
    %754 = memref.load %arg2[%c88] : memref<308xf32, #tpu.memory_space<smem>>
    %755 = vector.broadcast %754 : f32 to vector<16x16xf32>
    %756 = arith.mulf %753, %755 : vector<16x16xf32>
    %757 = vector.extract_strided_slice %752 {offsets = [0, 1], sizes = [16, 16], strides = [1, 1]} : vector<18x18xf32> to vector<16x16xf32>
    %c104 = arith.constant 104 : index
    %758 = memref.load %arg2[%c104] : memref<308xf32, #tpu.memory_space<smem>>
    %759 = vector.broadcast %758 : f32 to vector<16x16xf32>
    %760 = arith.mulf %757, %759 : vector<16x16xf32>
    %761 = arith.addf %756, %760 : vector<16x16xf32>
    %762 = vector.extract_strided_slice %752 {offsets = [0, 2], sizes = [16, 16], strides = [1, 1]} : vector<18x18xf32> to vector<16x16xf32>
    %c120 = arith.constant 120 : index
    %763 = memref.load %arg2[%c120] : memref<308xf32, #tpu.memory_space<smem>>
    %764 = vector.broadcast %763 : f32 to vector<16x16xf32>
    %765 = arith.mulf %762, %764 : vector<16x16xf32>
    %766 = arith.addf %761, %765 : vector<16x16xf32>
    %767 = vector.extract_strided_slice %752 {offsets = [1, 0], sizes = [16, 16], strides = [1, 1]} : vector<18x18xf32> to vector<16x16xf32>
    %c136 = arith.constant 136 : index
    %768 = memref.load %arg2[%c136] : memref<308xf32, #tpu.memory_space<smem>>
    %769 = vector.broadcast %768 : f32 to vector<16x16xf32>
    %770 = arith.mulf %767, %769 : vector<16x16xf32>
    %771 = arith.addf %766, %770 : vector<16x16xf32>
    %772 = vector.extract_strided_slice %752 {offsets = [1, 1], sizes = [16, 16], strides = [1, 1]} : vector<18x18xf32> to vector<16x16xf32>
    %c152 = arith.constant 152 : index
    %773 = memref.load %arg2[%c152] : memref<308xf32, #tpu.memory_space<smem>>
    %774 = vector.broadcast %773 : f32 to vector<16x16xf32>
    %775 = arith.mulf %772, %774 : vector<16x16xf32>
    %776 = arith.addf %771, %775 : vector<16x16xf32>
    %777 = vector.extract_strided_slice %752 {offsets = [1, 2], sizes = [16, 16], strides = [1, 1]} : vector<18x18xf32> to vector<16x16xf32>
    %c168 = arith.constant 168 : index
    %778 = memref.load %arg2[%c168] : memref<308xf32, #tpu.memory_space<smem>>
    %779 = vector.broadcast %778 : f32 to vector<16x16xf32>
    %780 = arith.mulf %777, %779 : vector<16x16xf32>
    %781 = arith.addf %776, %780 : vector<16x16xf32>
    %782 = vector.extract_strided_slice %752 {offsets = [2, 0], sizes = [16, 16], strides = [1, 1]} : vector<18x18xf32> to vector<16x16xf32>
    %c184 = arith.constant 184 : index
    %783 = memref.load %arg2[%c184] : memref<308xf32, #tpu.memory_space<smem>>
    %784 = vector.broadcast %783 : f32 to vector<16x16xf32>
    %785 = arith.mulf %782, %784 : vector<16x16xf32>
    %786 = arith.addf %781, %785 : vector<16x16xf32>
    %787 = vector.extract_strided_slice %752 {offsets = [2, 1], sizes = [16, 16], strides = [1, 1]} : vector<18x18xf32> to vector<16x16xf32>
    %c200 = arith.constant 200 : index
    %788 = memref.load %arg2[%c200] : memref<308xf32, #tpu.memory_space<smem>>
    %789 = vector.broadcast %788 : f32 to vector<16x16xf32>
    %790 = arith.mulf %787, %789 : vector<16x16xf32>
    %791 = arith.addf %786, %790 : vector<16x16xf32>
    %792 = vector.extract_strided_slice %752 {offsets = [2, 2], sizes = [16, 16], strides = [1, 1]} : vector<18x18xf32> to vector<16x16xf32>
    %c216 = arith.constant 216 : index
    %793 = memref.load %arg2[%c216] : memref<308xf32, #tpu.memory_space<smem>>
    %794 = vector.broadcast %793 : f32 to vector<16x16xf32>
    %795 = arith.mulf %792, %794 : vector<16x16xf32>
    %796 = arith.addf %791, %795 : vector<16x16xf32>
    %c232 = arith.constant 232 : index
    %797 = memref.load %arg2[%c232] : memref<308xf32, #tpu.memory_space<smem>>
    %798 = vector.broadcast %797 : f32 to vector<16x16xf32>
    %799 = arith.addf %796, %798 : vector<16x16xf32>
    %cst_41 = arith.constant 0.000000e+00 : f32
    %800 = vector.broadcast %cst_41 : f32 to vector<16x16xf32>
    %801 = arith.maximumf %799, %800 : vector<16x16xf32>
    %cst_42 = arith.constant 6.000000e+00 : f32
    %802 = vector.broadcast %cst_42 : f32 to vector<16x16xf32>
    %803 = arith.minimumf %801, %802 : vector<16x16xf32>
    %c272 = arith.constant 272 : index
    %804 = memref.load %arg2[%c272] : memref<308xf32, #tpu.memory_space<smem>>
    %805 = vector.broadcast %804 : f32 to vector<16x16xf32>
    %806 = arith.mulf %803, %805 : vector<16x16xf32>
    %807 = arith.addf %719, %806 : vector<16x16xf32>
    %c273 = arith.constant 273 : index
    %808 = memref.load %arg2[%c273] : memref<308xf32, #tpu.memory_space<smem>>
    %809 = vector.broadcast %808 : f32 to vector<16x16xf32>
    %810 = arith.mulf %803, %809 : vector<16x16xf32>
    %811 = arith.addf %723, %810 : vector<16x16xf32>
    %c274 = arith.constant 274 : index
    %812 = memref.load %arg2[%c274] : memref<308xf32, #tpu.memory_space<smem>>
    %813 = vector.broadcast %812 : f32 to vector<16x16xf32>
    %814 = arith.mulf %803, %813 : vector<16x16xf32>
    %815 = arith.addf %727, %814 : vector<16x16xf32>
    %c275 = arith.constant 275 : index
    %816 = memref.load %arg2[%c275] : memref<308xf32, #tpu.memory_space<smem>>
    %817 = vector.broadcast %816 : f32 to vector<16x16xf32>
    %818 = arith.mulf %803, %817 : vector<16x16xf32>
    %819 = arith.addf %731, %818 : vector<16x16xf32>
    %c9 = arith.constant 9 : index
    %820 = memref.load %arg2[%c9] : memref<308xf32, #tpu.memory_space<smem>>
    %821 = vector.broadcast %820 : f32 to vector<18x18xf32>
    %822 = arith.mulf %4, %821 : vector<18x18xf32>
    %c25 = arith.constant 25 : index
    %823 = memref.load %arg2[%c25] : memref<308xf32, #tpu.memory_space<smem>>
    %824 = vector.broadcast %823 : f32 to vector<18x18xf32>
    %825 = arith.mulf %7, %824 : vector<18x18xf32>
    %826 = arith.addf %822, %825 : vector<18x18xf32>
    %c41 = arith.constant 41 : index
    %827 = memref.load %arg2[%c41] : memref<308xf32, #tpu.memory_space<smem>>
    %828 = vector.broadcast %827 : f32 to vector<18x18xf32>
    %829 = arith.mulf %10, %828 : vector<18x18xf32>
    %830 = arith.addf %826, %829 : vector<18x18xf32>
    %c57 = arith.constant 57 : index
    %831 = memref.load %arg2[%c57] : memref<308xf32, #tpu.memory_space<smem>>
    %832 = vector.broadcast %831 : f32 to vector<18x18xf32>
    %833 = arith.mulf %13, %832 : vector<18x18xf32>
    %834 = arith.addf %830, %833 : vector<18x18xf32>
    %c73 = arith.constant 73 : index
    %835 = memref.load %arg2[%c73] : memref<308xf32, #tpu.memory_space<smem>>
    %836 = vector.broadcast %835 : f32 to vector<18x18xf32>
    %837 = arith.addf %834, %836 : vector<18x18xf32>
    %cst_43 = arith.constant 0.000000e+00 : f32
    %838 = vector.broadcast %cst_43 : f32 to vector<18x18xf32>
    %839 = arith.maximumf %837, %838 : vector<18x18xf32>
    %840 = arith.minimumf %839, %31 : vector<18x18xf32>
    %841 = vector.extract_strided_slice %840 {offsets = [0, 0], sizes = [16, 16], strides = [1, 1]} : vector<18x18xf32> to vector<16x16xf32>
    %c89 = arith.constant 89 : index
    %842 = memref.load %arg2[%c89] : memref<308xf32, #tpu.memory_space<smem>>
    %843 = vector.broadcast %842 : f32 to vector<16x16xf32>
    %844 = arith.mulf %841, %843 : vector<16x16xf32>
    %845 = vector.extract_strided_slice %840 {offsets = [0, 1], sizes = [16, 16], strides = [1, 1]} : vector<18x18xf32> to vector<16x16xf32>
    %c105 = arith.constant 105 : index
    %846 = memref.load %arg2[%c105] : memref<308xf32, #tpu.memory_space<smem>>
    %847 = vector.broadcast %846 : f32 to vector<16x16xf32>
    %848 = arith.mulf %845, %847 : vector<16x16xf32>
    %849 = arith.addf %844, %848 : vector<16x16xf32>
    %850 = vector.extract_strided_slice %840 {offsets = [0, 2], sizes = [16, 16], strides = [1, 1]} : vector<18x18xf32> to vector<16x16xf32>
    %c121 = arith.constant 121 : index
    %851 = memref.load %arg2[%c121] : memref<308xf32, #tpu.memory_space<smem>>
    %852 = vector.broadcast %851 : f32 to vector<16x16xf32>
    %853 = arith.mulf %850, %852 : vector<16x16xf32>
    %854 = arith.addf %849, %853 : vector<16x16xf32>
    %855 = vector.extract_strided_slice %840 {offsets = [1, 0], sizes = [16, 16], strides = [1, 1]} : vector<18x18xf32> to vector<16x16xf32>
    %c137 = arith.constant 137 : index
    %856 = memref.load %arg2[%c137] : memref<308xf32, #tpu.memory_space<smem>>
    %857 = vector.broadcast %856 : f32 to vector<16x16xf32>
    %858 = arith.mulf %855, %857 : vector<16x16xf32>
    %859 = arith.addf %854, %858 : vector<16x16xf32>
    %860 = vector.extract_strided_slice %840 {offsets = [1, 1], sizes = [16, 16], strides = [1, 1]} : vector<18x18xf32> to vector<16x16xf32>
    %c153 = arith.constant 153 : index
    %861 = memref.load %arg2[%c153] : memref<308xf32, #tpu.memory_space<smem>>
    %862 = vector.broadcast %861 : f32 to vector<16x16xf32>
    %863 = arith.mulf %860, %862 : vector<16x16xf32>
    %864 = arith.addf %859, %863 : vector<16x16xf32>
    %865 = vector.extract_strided_slice %840 {offsets = [1, 2], sizes = [16, 16], strides = [1, 1]} : vector<18x18xf32> to vector<16x16xf32>
    %c169 = arith.constant 169 : index
    %866 = memref.load %arg2[%c169] : memref<308xf32, #tpu.memory_space<smem>>
    %867 = vector.broadcast %866 : f32 to vector<16x16xf32>
    %868 = arith.mulf %865, %867 : vector<16x16xf32>
    %869 = arith.addf %864, %868 : vector<16x16xf32>
    %870 = vector.extract_strided_slice %840 {offsets = [2, 0], sizes = [16, 16], strides = [1, 1]} : vector<18x18xf32> to vector<16x16xf32>
    %c185 = arith.constant 185 : index
    %871 = memref.load %arg2[%c185] : memref<308xf32, #tpu.memory_space<smem>>
    %872 = vector.broadcast %871 : f32 to vector<16x16xf32>
    %873 = arith.mulf %870, %872 : vector<16x16xf32>
    %874 = arith.addf %869, %873 : vector<16x16xf32>
    %875 = vector.extract_strided_slice %840 {offsets = [2, 1], sizes = [16, 16], strides = [1, 1]} : vector<18x18xf32> to vector<16x16xf32>
    %c201 = arith.constant 201 : index
    %876 = memref.load %arg2[%c201] : memref<308xf32, #tpu.memory_space<smem>>
    %877 = vector.broadcast %876 : f32 to vector<16x16xf32>
    %878 = arith.mulf %875, %877 : vector<16x16xf32>
    %879 = arith.addf %874, %878 : vector<16x16xf32>
    %880 = vector.extract_strided_slice %840 {offsets = [2, 2], sizes = [16, 16], strides = [1, 1]} : vector<18x18xf32> to vector<16x16xf32>
    %c217 = arith.constant 217 : index
    %881 = memref.load %arg2[%c217] : memref<308xf32, #tpu.memory_space<smem>>
    %882 = vector.broadcast %881 : f32 to vector<16x16xf32>
    %883 = arith.mulf %880, %882 : vector<16x16xf32>
    %884 = arith.addf %879, %883 : vector<16x16xf32>
    %c233 = arith.constant 233 : index
    %885 = memref.load %arg2[%c233] : memref<308xf32, #tpu.memory_space<smem>>
    %886 = vector.broadcast %885 : f32 to vector<16x16xf32>
    %887 = arith.addf %884, %886 : vector<16x16xf32>
    %cst_44 = arith.constant 0.000000e+00 : f32
    %888 = vector.broadcast %cst_44 : f32 to vector<16x16xf32>
    %889 = arith.maximumf %887, %888 : vector<16x16xf32>
    %cst_45 = arith.constant 6.000000e+00 : f32
    %890 = vector.broadcast %cst_45 : f32 to vector<16x16xf32>
    %891 = arith.minimumf %889, %890 : vector<16x16xf32>
    %c276 = arith.constant 276 : index
    %892 = memref.load %arg2[%c276] : memref<308xf32, #tpu.memory_space<smem>>
    %893 = vector.broadcast %892 : f32 to vector<16x16xf32>
    %894 = arith.mulf %891, %893 : vector<16x16xf32>
    %895 = arith.addf %807, %894 : vector<16x16xf32>
    %c277 = arith.constant 277 : index
    %896 = memref.load %arg2[%c277] : memref<308xf32, #tpu.memory_space<smem>>
    %897 = vector.broadcast %896 : f32 to vector<16x16xf32>
    %898 = arith.mulf %891, %897 : vector<16x16xf32>
    %899 = arith.addf %811, %898 : vector<16x16xf32>
    %c278 = arith.constant 278 : index
    %900 = memref.load %arg2[%c278] : memref<308xf32, #tpu.memory_space<smem>>
    %901 = vector.broadcast %900 : f32 to vector<16x16xf32>
    %902 = arith.mulf %891, %901 : vector<16x16xf32>
    %903 = arith.addf %815, %902 : vector<16x16xf32>
    %c279 = arith.constant 279 : index
    %904 = memref.load %arg2[%c279] : memref<308xf32, #tpu.memory_space<smem>>
    %905 = vector.broadcast %904 : f32 to vector<16x16xf32>
    %906 = arith.mulf %891, %905 : vector<16x16xf32>
    %907 = arith.addf %819, %906 : vector<16x16xf32>
    %c10 = arith.constant 10 : index
    %908 = memref.load %arg2[%c10] : memref<308xf32, #tpu.memory_space<smem>>
    %909 = vector.broadcast %908 : f32 to vector<18x18xf32>
    %910 = arith.mulf %4, %909 : vector<18x18xf32>
    %c26 = arith.constant 26 : index
    %911 = memref.load %arg2[%c26] : memref<308xf32, #tpu.memory_space<smem>>
    %912 = vector.broadcast %911 : f32 to vector<18x18xf32>
    %913 = arith.mulf %7, %912 : vector<18x18xf32>
    %914 = arith.addf %910, %913 : vector<18x18xf32>
    %c42 = arith.constant 42 : index
    %915 = memref.load %arg2[%c42] : memref<308xf32, #tpu.memory_space<smem>>
    %916 = vector.broadcast %915 : f32 to vector<18x18xf32>
    %917 = arith.mulf %10, %916 : vector<18x18xf32>
    %918 = arith.addf %914, %917 : vector<18x18xf32>
    %c58 = arith.constant 58 : index
    %919 = memref.load %arg2[%c58] : memref<308xf32, #tpu.memory_space<smem>>
    %920 = vector.broadcast %919 : f32 to vector<18x18xf32>
    %921 = arith.mulf %13, %920 : vector<18x18xf32>
    %922 = arith.addf %918, %921 : vector<18x18xf32>
    %c74 = arith.constant 74 : index
    %923 = memref.load %arg2[%c74] : memref<308xf32, #tpu.memory_space<smem>>
    %924 = vector.broadcast %923 : f32 to vector<18x18xf32>
    %925 = arith.addf %922, %924 : vector<18x18xf32>
    %cst_46 = arith.constant 0.000000e+00 : f32
    %926 = vector.broadcast %cst_46 : f32 to vector<18x18xf32>
    %927 = arith.maximumf %925, %926 : vector<18x18xf32>
    %928 = arith.minimumf %927, %31 : vector<18x18xf32>
    %929 = vector.extract_strided_slice %928 {offsets = [0, 0], sizes = [16, 16], strides = [1, 1]} : vector<18x18xf32> to vector<16x16xf32>
    %c90 = arith.constant 90 : index
    %930 = memref.load %arg2[%c90] : memref<308xf32, #tpu.memory_space<smem>>
    %931 = vector.broadcast %930 : f32 to vector<16x16xf32>
    %932 = arith.mulf %929, %931 : vector<16x16xf32>
    %933 = vector.extract_strided_slice %928 {offsets = [0, 1], sizes = [16, 16], strides = [1, 1]} : vector<18x18xf32> to vector<16x16xf32>
    %c106 = arith.constant 106 : index
    %934 = memref.load %arg2[%c106] : memref<308xf32, #tpu.memory_space<smem>>
    %935 = vector.broadcast %934 : f32 to vector<16x16xf32>
    %936 = arith.mulf %933, %935 : vector<16x16xf32>
    %937 = arith.addf %932, %936 : vector<16x16xf32>
    %938 = vector.extract_strided_slice %928 {offsets = [0, 2], sizes = [16, 16], strides = [1, 1]} : vector<18x18xf32> to vector<16x16xf32>
    %c122 = arith.constant 122 : index
    %939 = memref.load %arg2[%c122] : memref<308xf32, #tpu.memory_space<smem>>
    %940 = vector.broadcast %939 : f32 to vector<16x16xf32>
    %941 = arith.mulf %938, %940 : vector<16x16xf32>
    %942 = arith.addf %937, %941 : vector<16x16xf32>
    %943 = vector.extract_strided_slice %928 {offsets = [1, 0], sizes = [16, 16], strides = [1, 1]} : vector<18x18xf32> to vector<16x16xf32>
    %c138 = arith.constant 138 : index
    %944 = memref.load %arg2[%c138] : memref<308xf32, #tpu.memory_space<smem>>
    %945 = vector.broadcast %944 : f32 to vector<16x16xf32>
    %946 = arith.mulf %943, %945 : vector<16x16xf32>
    %947 = arith.addf %942, %946 : vector<16x16xf32>
    %948 = vector.extract_strided_slice %928 {offsets = [1, 1], sizes = [16, 16], strides = [1, 1]} : vector<18x18xf32> to vector<16x16xf32>
    %c154 = arith.constant 154 : index
    %949 = memref.load %arg2[%c154] : memref<308xf32, #tpu.memory_space<smem>>
    %950 = vector.broadcast %949 : f32 to vector<16x16xf32>
    %951 = arith.mulf %948, %950 : vector<16x16xf32>
    %952 = arith.addf %947, %951 : vector<16x16xf32>
    %953 = vector.extract_strided_slice %928 {offsets = [1, 2], sizes = [16, 16], strides = [1, 1]} : vector<18x18xf32> to vector<16x16xf32>
    %c170 = arith.constant 170 : index
    %954 = memref.load %arg2[%c170] : memref<308xf32, #tpu.memory_space<smem>>
    %955 = vector.broadcast %954 : f32 to vector<16x16xf32>
    %956 = arith.mulf %953, %955 : vector<16x16xf32>
    %957 = arith.addf %952, %956 : vector<16x16xf32>
    %958 = vector.extract_strided_slice %928 {offsets = [2, 0], sizes = [16, 16], strides = [1, 1]} : vector<18x18xf32> to vector<16x16xf32>
    %c186 = arith.constant 186 : index
    %959 = memref.load %arg2[%c186] : memref<308xf32, #tpu.memory_space<smem>>
    %960 = vector.broadcast %959 : f32 to vector<16x16xf32>
    %961 = arith.mulf %958, %960 : vector<16x16xf32>
    %962 = arith.addf %957, %961 : vector<16x16xf32>
    %963 = vector.extract_strided_slice %928 {offsets = [2, 1], sizes = [16, 16], strides = [1, 1]} : vector<18x18xf32> to vector<16x16xf32>
    %c202 = arith.constant 202 : index
    %964 = memref.load %arg2[%c202] : memref<308xf32, #tpu.memory_space<smem>>
    %965 = vector.broadcast %964 : f32 to vector<16x16xf32>
    %966 = arith.mulf %963, %965 : vector<16x16xf32>
    %967 = arith.addf %962, %966 : vector<16x16xf32>
    %968 = vector.extract_strided_slice %928 {offsets = [2, 2], sizes = [16, 16], strides = [1, 1]} : vector<18x18xf32> to vector<16x16xf32>
    %c218 = arith.constant 218 : index
    %969 = memref.load %arg2[%c218] : memref<308xf32, #tpu.memory_space<smem>>
    %970 = vector.broadcast %969 : f32 to vector<16x16xf32>
    %971 = arith.mulf %968, %970 : vector<16x16xf32>
    %972 = arith.addf %967, %971 : vector<16x16xf32>
    %c234 = arith.constant 234 : index
    %973 = memref.load %arg2[%c234] : memref<308xf32, #tpu.memory_space<smem>>
    %974 = vector.broadcast %973 : f32 to vector<16x16xf32>
    %975 = arith.addf %972, %974 : vector<16x16xf32>
    %cst_47 = arith.constant 0.000000e+00 : f32
    %976 = vector.broadcast %cst_47 : f32 to vector<16x16xf32>
    %977 = arith.maximumf %975, %976 : vector<16x16xf32>
    %cst_48 = arith.constant 6.000000e+00 : f32
    %978 = vector.broadcast %cst_48 : f32 to vector<16x16xf32>
    %979 = arith.minimumf %977, %978 : vector<16x16xf32>
    %c280 = arith.constant 280 : index
    %980 = memref.load %arg2[%c280] : memref<308xf32, #tpu.memory_space<smem>>
    %981 = vector.broadcast %980 : f32 to vector<16x16xf32>
    %982 = arith.mulf %979, %981 : vector<16x16xf32>
    %983 = arith.addf %895, %982 : vector<16x16xf32>
    %c281 = arith.constant 281 : index
    %984 = memref.load %arg2[%c281] : memref<308xf32, #tpu.memory_space<smem>>
    %985 = vector.broadcast %984 : f32 to vector<16x16xf32>
    %986 = arith.mulf %979, %985 : vector<16x16xf32>
    %987 = arith.addf %899, %986 : vector<16x16xf32>
    %c282 = arith.constant 282 : index
    %988 = memref.load %arg2[%c282] : memref<308xf32, #tpu.memory_space<smem>>
    %989 = vector.broadcast %988 : f32 to vector<16x16xf32>
    %990 = arith.mulf %979, %989 : vector<16x16xf32>
    %991 = arith.addf %903, %990 : vector<16x16xf32>
    %c283 = arith.constant 283 : index
    %992 = memref.load %arg2[%c283] : memref<308xf32, #tpu.memory_space<smem>>
    %993 = vector.broadcast %992 : f32 to vector<16x16xf32>
    %994 = arith.mulf %979, %993 : vector<16x16xf32>
    %995 = arith.addf %907, %994 : vector<16x16xf32>
    %c11 = arith.constant 11 : index
    %996 = memref.load %arg2[%c11] : memref<308xf32, #tpu.memory_space<smem>>
    %997 = vector.broadcast %996 : f32 to vector<18x18xf32>
    %998 = arith.mulf %4, %997 : vector<18x18xf32>
    %c27 = arith.constant 27 : index
    %999 = memref.load %arg2[%c27] : memref<308xf32, #tpu.memory_space<smem>>
    %1000 = vector.broadcast %999 : f32 to vector<18x18xf32>
    %1001 = arith.mulf %7, %1000 : vector<18x18xf32>
    %1002 = arith.addf %998, %1001 : vector<18x18xf32>
    %c43 = arith.constant 43 : index
    %1003 = memref.load %arg2[%c43] : memref<308xf32, #tpu.memory_space<smem>>
    %1004 = vector.broadcast %1003 : f32 to vector<18x18xf32>
    %1005 = arith.mulf %10, %1004 : vector<18x18xf32>
    %1006 = arith.addf %1002, %1005 : vector<18x18xf32>
    %c59 = arith.constant 59 : index
    %1007 = memref.load %arg2[%c59] : memref<308xf32, #tpu.memory_space<smem>>
    %1008 = vector.broadcast %1007 : f32 to vector<18x18xf32>
    %1009 = arith.mulf %13, %1008 : vector<18x18xf32>
    %1010 = arith.addf %1006, %1009 : vector<18x18xf32>
    %c75 = arith.constant 75 : index
    %1011 = memref.load %arg2[%c75] : memref<308xf32, #tpu.memory_space<smem>>
    %1012 = vector.broadcast %1011 : f32 to vector<18x18xf32>
    %1013 = arith.addf %1010, %1012 : vector<18x18xf32>
    %cst_49 = arith.constant 0.000000e+00 : f32
    %1014 = vector.broadcast %cst_49 : f32 to vector<18x18xf32>
    %1015 = arith.maximumf %1013, %1014 : vector<18x18xf32>
    %1016 = arith.minimumf %1015, %31 : vector<18x18xf32>
    %1017 = vector.extract_strided_slice %1016 {offsets = [0, 0], sizes = [16, 16], strides = [1, 1]} : vector<18x18xf32> to vector<16x16xf32>
    %c91 = arith.constant 91 : index
    %1018 = memref.load %arg2[%c91] : memref<308xf32, #tpu.memory_space<smem>>
    %1019 = vector.broadcast %1018 : f32 to vector<16x16xf32>
    %1020 = arith.mulf %1017, %1019 : vector<16x16xf32>
    %1021 = vector.extract_strided_slice %1016 {offsets = [0, 1], sizes = [16, 16], strides = [1, 1]} : vector<18x18xf32> to vector<16x16xf32>
    %c107 = arith.constant 107 : index
    %1022 = memref.load %arg2[%c107] : memref<308xf32, #tpu.memory_space<smem>>
    %1023 = vector.broadcast %1022 : f32 to vector<16x16xf32>
    %1024 = arith.mulf %1021, %1023 : vector<16x16xf32>
    %1025 = arith.addf %1020, %1024 : vector<16x16xf32>
    %1026 = vector.extract_strided_slice %1016 {offsets = [0, 2], sizes = [16, 16], strides = [1, 1]} : vector<18x18xf32> to vector<16x16xf32>
    %c123 = arith.constant 123 : index
    %1027 = memref.load %arg2[%c123] : memref<308xf32, #tpu.memory_space<smem>>
    %1028 = vector.broadcast %1027 : f32 to vector<16x16xf32>
    %1029 = arith.mulf %1026, %1028 : vector<16x16xf32>
    %1030 = arith.addf %1025, %1029 : vector<16x16xf32>
    %1031 = vector.extract_strided_slice %1016 {offsets = [1, 0], sizes = [16, 16], strides = [1, 1]} : vector<18x18xf32> to vector<16x16xf32>
    %c139 = arith.constant 139 : index
    %1032 = memref.load %arg2[%c139] : memref<308xf32, #tpu.memory_space<smem>>
    %1033 = vector.broadcast %1032 : f32 to vector<16x16xf32>
    %1034 = arith.mulf %1031, %1033 : vector<16x16xf32>
    %1035 = arith.addf %1030, %1034 : vector<16x16xf32>
    %1036 = vector.extract_strided_slice %1016 {offsets = [1, 1], sizes = [16, 16], strides = [1, 1]} : vector<18x18xf32> to vector<16x16xf32>
    %c155 = arith.constant 155 : index
    %1037 = memref.load %arg2[%c155] : memref<308xf32, #tpu.memory_space<smem>>
    %1038 = vector.broadcast %1037 : f32 to vector<16x16xf32>
    %1039 = arith.mulf %1036, %1038 : vector<16x16xf32>
    %1040 = arith.addf %1035, %1039 : vector<16x16xf32>
    %1041 = vector.extract_strided_slice %1016 {offsets = [1, 2], sizes = [16, 16], strides = [1, 1]} : vector<18x18xf32> to vector<16x16xf32>
    %c171 = arith.constant 171 : index
    %1042 = memref.load %arg2[%c171] : memref<308xf32, #tpu.memory_space<smem>>
    %1043 = vector.broadcast %1042 : f32 to vector<16x16xf32>
    %1044 = arith.mulf %1041, %1043 : vector<16x16xf32>
    %1045 = arith.addf %1040, %1044 : vector<16x16xf32>
    %1046 = vector.extract_strided_slice %1016 {offsets = [2, 0], sizes = [16, 16], strides = [1, 1]} : vector<18x18xf32> to vector<16x16xf32>
    %c187 = arith.constant 187 : index
    %1047 = memref.load %arg2[%c187] : memref<308xf32, #tpu.memory_space<smem>>
    %1048 = vector.broadcast %1047 : f32 to vector<16x16xf32>
    %1049 = arith.mulf %1046, %1048 : vector<16x16xf32>
    %1050 = arith.addf %1045, %1049 : vector<16x16xf32>
    %1051 = vector.extract_strided_slice %1016 {offsets = [2, 1], sizes = [16, 16], strides = [1, 1]} : vector<18x18xf32> to vector<16x16xf32>
    %c203 = arith.constant 203 : index
    %1052 = memref.load %arg2[%c203] : memref<308xf32, #tpu.memory_space<smem>>
    %1053 = vector.broadcast %1052 : f32 to vector<16x16xf32>
    %1054 = arith.mulf %1051, %1053 : vector<16x16xf32>
    %1055 = arith.addf %1050, %1054 : vector<16x16xf32>
    %1056 = vector.extract_strided_slice %1016 {offsets = [2, 2], sizes = [16, 16], strides = [1, 1]} : vector<18x18xf32> to vector<16x16xf32>
    %c219 = arith.constant 219 : index
    %1057 = memref.load %arg2[%c219] : memref<308xf32, #tpu.memory_space<smem>>
    %1058 = vector.broadcast %1057 : f32 to vector<16x16xf32>
    %1059 = arith.mulf %1056, %1058 : vector<16x16xf32>
    %1060 = arith.addf %1055, %1059 : vector<16x16xf32>
    %c235 = arith.constant 235 : index
    %1061 = memref.load %arg2[%c235] : memref<308xf32, #tpu.memory_space<smem>>
    %1062 = vector.broadcast %1061 : f32 to vector<16x16xf32>
    %1063 = arith.addf %1060, %1062 : vector<16x16xf32>
    %cst_50 = arith.constant 0.000000e+00 : f32
    %1064 = vector.broadcast %cst_50 : f32 to vector<16x16xf32>
    %1065 = arith.maximumf %1063, %1064 : vector<16x16xf32>
    %cst_51 = arith.constant 6.000000e+00 : f32
    %1066 = vector.broadcast %cst_51 : f32 to vector<16x16xf32>
    %1067 = arith.minimumf %1065, %1066 : vector<16x16xf32>
    %c284 = arith.constant 284 : index
    %1068 = memref.load %arg2[%c284] : memref<308xf32, #tpu.memory_space<smem>>
    %1069 = vector.broadcast %1068 : f32 to vector<16x16xf32>
    %1070 = arith.mulf %1067, %1069 : vector<16x16xf32>
    %1071 = arith.addf %983, %1070 : vector<16x16xf32>
    %c285 = arith.constant 285 : index
    %1072 = memref.load %arg2[%c285] : memref<308xf32, #tpu.memory_space<smem>>
    %1073 = vector.broadcast %1072 : f32 to vector<16x16xf32>
    %1074 = arith.mulf %1067, %1073 : vector<16x16xf32>
    %1075 = arith.addf %987, %1074 : vector<16x16xf32>
    %c286 = arith.constant 286 : index
    %1076 = memref.load %arg2[%c286] : memref<308xf32, #tpu.memory_space<smem>>
    %1077 = vector.broadcast %1076 : f32 to vector<16x16xf32>
    %1078 = arith.mulf %1067, %1077 : vector<16x16xf32>
    %1079 = arith.addf %991, %1078 : vector<16x16xf32>
    %c287 = arith.constant 287 : index
    %1080 = memref.load %arg2[%c287] : memref<308xf32, #tpu.memory_space<smem>>
    %1081 = vector.broadcast %1080 : f32 to vector<16x16xf32>
    %1082 = arith.mulf %1067, %1081 : vector<16x16xf32>
    %1083 = arith.addf %995, %1082 : vector<16x16xf32>
    %c12 = arith.constant 12 : index
    %1084 = memref.load %arg2[%c12] : memref<308xf32, #tpu.memory_space<smem>>
    %1085 = vector.broadcast %1084 : f32 to vector<18x18xf32>
    %1086 = arith.mulf %4, %1085 : vector<18x18xf32>
    %c28 = arith.constant 28 : index
    %1087 = memref.load %arg2[%c28] : memref<308xf32, #tpu.memory_space<smem>>
    %1088 = vector.broadcast %1087 : f32 to vector<18x18xf32>
    %1089 = arith.mulf %7, %1088 : vector<18x18xf32>
    %1090 = arith.addf %1086, %1089 : vector<18x18xf32>
    %c44 = arith.constant 44 : index
    %1091 = memref.load %arg2[%c44] : memref<308xf32, #tpu.memory_space<smem>>
    %1092 = vector.broadcast %1091 : f32 to vector<18x18xf32>
    %1093 = arith.mulf %10, %1092 : vector<18x18xf32>
    %1094 = arith.addf %1090, %1093 : vector<18x18xf32>
    %c60 = arith.constant 60 : index
    %1095 = memref.load %arg2[%c60] : memref<308xf32, #tpu.memory_space<smem>>
    %1096 = vector.broadcast %1095 : f32 to vector<18x18xf32>
    %1097 = arith.mulf %13, %1096 : vector<18x18xf32>
    %1098 = arith.addf %1094, %1097 : vector<18x18xf32>
    %c76 = arith.constant 76 : index
    %1099 = memref.load %arg2[%c76] : memref<308xf32, #tpu.memory_space<smem>>
    %1100 = vector.broadcast %1099 : f32 to vector<18x18xf32>
    %1101 = arith.addf %1098, %1100 : vector<18x18xf32>
    %cst_52 = arith.constant 0.000000e+00 : f32
    %1102 = vector.broadcast %cst_52 : f32 to vector<18x18xf32>
    %1103 = arith.maximumf %1101, %1102 : vector<18x18xf32>
    %1104 = arith.minimumf %1103, %31 : vector<18x18xf32>
    %1105 = vector.extract_strided_slice %1104 {offsets = [0, 0], sizes = [16, 16], strides = [1, 1]} : vector<18x18xf32> to vector<16x16xf32>
    %c92 = arith.constant 92 : index
    %1106 = memref.load %arg2[%c92] : memref<308xf32, #tpu.memory_space<smem>>
    %1107 = vector.broadcast %1106 : f32 to vector<16x16xf32>
    %1108 = arith.mulf %1105, %1107 : vector<16x16xf32>
    %1109 = vector.extract_strided_slice %1104 {offsets = [0, 1], sizes = [16, 16], strides = [1, 1]} : vector<18x18xf32> to vector<16x16xf32>
    %c108 = arith.constant 108 : index
    %1110 = memref.load %arg2[%c108] : memref<308xf32, #tpu.memory_space<smem>>
    %1111 = vector.broadcast %1110 : f32 to vector<16x16xf32>
    %1112 = arith.mulf %1109, %1111 : vector<16x16xf32>
    %1113 = arith.addf %1108, %1112 : vector<16x16xf32>
    %1114 = vector.extract_strided_slice %1104 {offsets = [0, 2], sizes = [16, 16], strides = [1, 1]} : vector<18x18xf32> to vector<16x16xf32>
    %c124 = arith.constant 124 : index
    %1115 = memref.load %arg2[%c124] : memref<308xf32, #tpu.memory_space<smem>>
    %1116 = vector.broadcast %1115 : f32 to vector<16x16xf32>
    %1117 = arith.mulf %1114, %1116 : vector<16x16xf32>
    %1118 = arith.addf %1113, %1117 : vector<16x16xf32>
    %1119 = vector.extract_strided_slice %1104 {offsets = [1, 0], sizes = [16, 16], strides = [1, 1]} : vector<18x18xf32> to vector<16x16xf32>
    %c140 = arith.constant 140 : index
    %1120 = memref.load %arg2[%c140] : memref<308xf32, #tpu.memory_space<smem>>
    %1121 = vector.broadcast %1120 : f32 to vector<16x16xf32>
    %1122 = arith.mulf %1119, %1121 : vector<16x16xf32>
    %1123 = arith.addf %1118, %1122 : vector<16x16xf32>
    %1124 = vector.extract_strided_slice %1104 {offsets = [1, 1], sizes = [16, 16], strides = [1, 1]} : vector<18x18xf32> to vector<16x16xf32>
    %c156 = arith.constant 156 : index
    %1125 = memref.load %arg2[%c156] : memref<308xf32, #tpu.memory_space<smem>>
    %1126 = vector.broadcast %1125 : f32 to vector<16x16xf32>
    %1127 = arith.mulf %1124, %1126 : vector<16x16xf32>
    %1128 = arith.addf %1123, %1127 : vector<16x16xf32>
    %1129 = vector.extract_strided_slice %1104 {offsets = [1, 2], sizes = [16, 16], strides = [1, 1]} : vector<18x18xf32> to vector<16x16xf32>
    %c172 = arith.constant 172 : index
    %1130 = memref.load %arg2[%c172] : memref<308xf32, #tpu.memory_space<smem>>
    %1131 = vector.broadcast %1130 : f32 to vector<16x16xf32>
    %1132 = arith.mulf %1129, %1131 : vector<16x16xf32>
    %1133 = arith.addf %1128, %1132 : vector<16x16xf32>
    %1134 = vector.extract_strided_slice %1104 {offsets = [2, 0], sizes = [16, 16], strides = [1, 1]} : vector<18x18xf32> to vector<16x16xf32>
    %c188 = arith.constant 188 : index
    %1135 = memref.load %arg2[%c188] : memref<308xf32, #tpu.memory_space<smem>>
    %1136 = vector.broadcast %1135 : f32 to vector<16x16xf32>
    %1137 = arith.mulf %1134, %1136 : vector<16x16xf32>
    %1138 = arith.addf %1133, %1137 : vector<16x16xf32>
    %1139 = vector.extract_strided_slice %1104 {offsets = [2, 1], sizes = [16, 16], strides = [1, 1]} : vector<18x18xf32> to vector<16x16xf32>
    %c204 = arith.constant 204 : index
    %1140 = memref.load %arg2[%c204] : memref<308xf32, #tpu.memory_space<smem>>
    %1141 = vector.broadcast %1140 : f32 to vector<16x16xf32>
    %1142 = arith.mulf %1139, %1141 : vector<16x16xf32>
    %1143 = arith.addf %1138, %1142 : vector<16x16xf32>
    %1144 = vector.extract_strided_slice %1104 {offsets = [2, 2], sizes = [16, 16], strides = [1, 1]} : vector<18x18xf32> to vector<16x16xf32>
    %c220 = arith.constant 220 : index
    %1145 = memref.load %arg2[%c220] : memref<308xf32, #tpu.memory_space<smem>>
    %1146 = vector.broadcast %1145 : f32 to vector<16x16xf32>
    %1147 = arith.mulf %1144, %1146 : vector<16x16xf32>
    %1148 = arith.addf %1143, %1147 : vector<16x16xf32>
    %c236 = arith.constant 236 : index
    %1149 = memref.load %arg2[%c236] : memref<308xf32, #tpu.memory_space<smem>>
    %1150 = vector.broadcast %1149 : f32 to vector<16x16xf32>
    %1151 = arith.addf %1148, %1150 : vector<16x16xf32>
    %cst_53 = arith.constant 0.000000e+00 : f32
    %1152 = vector.broadcast %cst_53 : f32 to vector<16x16xf32>
    %1153 = arith.maximumf %1151, %1152 : vector<16x16xf32>
    %cst_54 = arith.constant 6.000000e+00 : f32
    %1154 = vector.broadcast %cst_54 : f32 to vector<16x16xf32>
    %1155 = arith.minimumf %1153, %1154 : vector<16x16xf32>
    %c288 = arith.constant 288 : index
    %1156 = memref.load %arg2[%c288] : memref<308xf32, #tpu.memory_space<smem>>
    %1157 = vector.broadcast %1156 : f32 to vector<16x16xf32>
    %1158 = arith.mulf %1155, %1157 : vector<16x16xf32>
    %1159 = arith.addf %1071, %1158 : vector<16x16xf32>
    %c289 = arith.constant 289 : index
    %1160 = memref.load %arg2[%c289] : memref<308xf32, #tpu.memory_space<smem>>
    %1161 = vector.broadcast %1160 : f32 to vector<16x16xf32>
    %1162 = arith.mulf %1155, %1161 : vector<16x16xf32>
    %1163 = arith.addf %1075, %1162 : vector<16x16xf32>
    %c290 = arith.constant 290 : index
    %1164 = memref.load %arg2[%c290] : memref<308xf32, #tpu.memory_space<smem>>
    %1165 = vector.broadcast %1164 : f32 to vector<16x16xf32>
    %1166 = arith.mulf %1155, %1165 : vector<16x16xf32>
    %1167 = arith.addf %1079, %1166 : vector<16x16xf32>
    %c291 = arith.constant 291 : index
    %1168 = memref.load %arg2[%c291] : memref<308xf32, #tpu.memory_space<smem>>
    %1169 = vector.broadcast %1168 : f32 to vector<16x16xf32>
    %1170 = arith.mulf %1155, %1169 : vector<16x16xf32>
    %1171 = arith.addf %1083, %1170 : vector<16x16xf32>
    %c13 = arith.constant 13 : index
    %1172 = memref.load %arg2[%c13] : memref<308xf32, #tpu.memory_space<smem>>
    %1173 = vector.broadcast %1172 : f32 to vector<18x18xf32>
    %1174 = arith.mulf %4, %1173 : vector<18x18xf32>
    %c29 = arith.constant 29 : index
    %1175 = memref.load %arg2[%c29] : memref<308xf32, #tpu.memory_space<smem>>
    %1176 = vector.broadcast %1175 : f32 to vector<18x18xf32>
    %1177 = arith.mulf %7, %1176 : vector<18x18xf32>
    %1178 = arith.addf %1174, %1177 : vector<18x18xf32>
    %c45 = arith.constant 45 : index
    %1179 = memref.load %arg2[%c45] : memref<308xf32, #tpu.memory_space<smem>>
    %1180 = vector.broadcast %1179 : f32 to vector<18x18xf32>
    %1181 = arith.mulf %10, %1180 : vector<18x18xf32>
    %1182 = arith.addf %1178, %1181 : vector<18x18xf32>
    %c61 = arith.constant 61 : index
    %1183 = memref.load %arg2[%c61] : memref<308xf32, #tpu.memory_space<smem>>
    %1184 = vector.broadcast %1183 : f32 to vector<18x18xf32>
    %1185 = arith.mulf %13, %1184 : vector<18x18xf32>
    %1186 = arith.addf %1182, %1185 : vector<18x18xf32>
    %c77 = arith.constant 77 : index
    %1187 = memref.load %arg2[%c77] : memref<308xf32, #tpu.memory_space<smem>>
    %1188 = vector.broadcast %1187 : f32 to vector<18x18xf32>
    %1189 = arith.addf %1186, %1188 : vector<18x18xf32>
    %cst_55 = arith.constant 0.000000e+00 : f32
    %1190 = vector.broadcast %cst_55 : f32 to vector<18x18xf32>
    %1191 = arith.maximumf %1189, %1190 : vector<18x18xf32>
    %1192 = arith.minimumf %1191, %31 : vector<18x18xf32>
    %1193 = vector.extract_strided_slice %1192 {offsets = [0, 0], sizes = [16, 16], strides = [1, 1]} : vector<18x18xf32> to vector<16x16xf32>
    %c93 = arith.constant 93 : index
    %1194 = memref.load %arg2[%c93] : memref<308xf32, #tpu.memory_space<smem>>
    %1195 = vector.broadcast %1194 : f32 to vector<16x16xf32>
    %1196 = arith.mulf %1193, %1195 : vector<16x16xf32>
    %1197 = vector.extract_strided_slice %1192 {offsets = [0, 1], sizes = [16, 16], strides = [1, 1]} : vector<18x18xf32> to vector<16x16xf32>
    %c109 = arith.constant 109 : index
    %1198 = memref.load %arg2[%c109] : memref<308xf32, #tpu.memory_space<smem>>
    %1199 = vector.broadcast %1198 : f32 to vector<16x16xf32>
    %1200 = arith.mulf %1197, %1199 : vector<16x16xf32>
    %1201 = arith.addf %1196, %1200 : vector<16x16xf32>
    %1202 = vector.extract_strided_slice %1192 {offsets = [0, 2], sizes = [16, 16], strides = [1, 1]} : vector<18x18xf32> to vector<16x16xf32>
    %c125 = arith.constant 125 : index
    %1203 = memref.load %arg2[%c125] : memref<308xf32, #tpu.memory_space<smem>>
    %1204 = vector.broadcast %1203 : f32 to vector<16x16xf32>
    %1205 = arith.mulf %1202, %1204 : vector<16x16xf32>
    %1206 = arith.addf %1201, %1205 : vector<16x16xf32>
    %1207 = vector.extract_strided_slice %1192 {offsets = [1, 0], sizes = [16, 16], strides = [1, 1]} : vector<18x18xf32> to vector<16x16xf32>
    %c141 = arith.constant 141 : index
    %1208 = memref.load %arg2[%c141] : memref<308xf32, #tpu.memory_space<smem>>
    %1209 = vector.broadcast %1208 : f32 to vector<16x16xf32>
    %1210 = arith.mulf %1207, %1209 : vector<16x16xf32>
    %1211 = arith.addf %1206, %1210 : vector<16x16xf32>
    %1212 = vector.extract_strided_slice %1192 {offsets = [1, 1], sizes = [16, 16], strides = [1, 1]} : vector<18x18xf32> to vector<16x16xf32>
    %c157 = arith.constant 157 : index
    %1213 = memref.load %arg2[%c157] : memref<308xf32, #tpu.memory_space<smem>>
    %1214 = vector.broadcast %1213 : f32 to vector<16x16xf32>
    %1215 = arith.mulf %1212, %1214 : vector<16x16xf32>
    %1216 = arith.addf %1211, %1215 : vector<16x16xf32>
    %1217 = vector.extract_strided_slice %1192 {offsets = [1, 2], sizes = [16, 16], strides = [1, 1]} : vector<18x18xf32> to vector<16x16xf32>
    %c173 = arith.constant 173 : index
    %1218 = memref.load %arg2[%c173] : memref<308xf32, #tpu.memory_space<smem>>
    %1219 = vector.broadcast %1218 : f32 to vector<16x16xf32>
    %1220 = arith.mulf %1217, %1219 : vector<16x16xf32>
    %1221 = arith.addf %1216, %1220 : vector<16x16xf32>
    %1222 = vector.extract_strided_slice %1192 {offsets = [2, 0], sizes = [16, 16], strides = [1, 1]} : vector<18x18xf32> to vector<16x16xf32>
    %c189 = arith.constant 189 : index
    %1223 = memref.load %arg2[%c189] : memref<308xf32, #tpu.memory_space<smem>>
    %1224 = vector.broadcast %1223 : f32 to vector<16x16xf32>
    %1225 = arith.mulf %1222, %1224 : vector<16x16xf32>
    %1226 = arith.addf %1221, %1225 : vector<16x16xf32>
    %1227 = vector.extract_strided_slice %1192 {offsets = [2, 1], sizes = [16, 16], strides = [1, 1]} : vector<18x18xf32> to vector<16x16xf32>
    %c205 = arith.constant 205 : index
    %1228 = memref.load %arg2[%c205] : memref<308xf32, #tpu.memory_space<smem>>
    %1229 = vector.broadcast %1228 : f32 to vector<16x16xf32>
    %1230 = arith.mulf %1227, %1229 : vector<16x16xf32>
    %1231 = arith.addf %1226, %1230 : vector<16x16xf32>
    %1232 = vector.extract_strided_slice %1192 {offsets = [2, 2], sizes = [16, 16], strides = [1, 1]} : vector<18x18xf32> to vector<16x16xf32>
    %c221 = arith.constant 221 : index
    %1233 = memref.load %arg2[%c221] : memref<308xf32, #tpu.memory_space<smem>>
    %1234 = vector.broadcast %1233 : f32 to vector<16x16xf32>
    %1235 = arith.mulf %1232, %1234 : vector<16x16xf32>
    %1236 = arith.addf %1231, %1235 : vector<16x16xf32>
    %c237 = arith.constant 237 : index
    %1237 = memref.load %arg2[%c237] : memref<308xf32, #tpu.memory_space<smem>>
    %1238 = vector.broadcast %1237 : f32 to vector<16x16xf32>
    %1239 = arith.addf %1236, %1238 : vector<16x16xf32>
    %cst_56 = arith.constant 0.000000e+00 : f32
    %1240 = vector.broadcast %cst_56 : f32 to vector<16x16xf32>
    %1241 = arith.maximumf %1239, %1240 : vector<16x16xf32>
    %cst_57 = arith.constant 6.000000e+00 : f32
    %1242 = vector.broadcast %cst_57 : f32 to vector<16x16xf32>
    %1243 = arith.minimumf %1241, %1242 : vector<16x16xf32>
    %c292 = arith.constant 292 : index
    %1244 = memref.load %arg2[%c292] : memref<308xf32, #tpu.memory_space<smem>>
    %1245 = vector.broadcast %1244 : f32 to vector<16x16xf32>
    %1246 = arith.mulf %1243, %1245 : vector<16x16xf32>
    %1247 = arith.addf %1159, %1246 : vector<16x16xf32>
    %c293 = arith.constant 293 : index
    %1248 = memref.load %arg2[%c293] : memref<308xf32, #tpu.memory_space<smem>>
    %1249 = vector.broadcast %1248 : f32 to vector<16x16xf32>
    %1250 = arith.mulf %1243, %1249 : vector<16x16xf32>
    %1251 = arith.addf %1163, %1250 : vector<16x16xf32>
    %c294 = arith.constant 294 : index
    %1252 = memref.load %arg2[%c294] : memref<308xf32, #tpu.memory_space<smem>>
    %1253 = vector.broadcast %1252 : f32 to vector<16x16xf32>
    %1254 = arith.mulf %1243, %1253 : vector<16x16xf32>
    %1255 = arith.addf %1167, %1254 : vector<16x16xf32>
    %c295 = arith.constant 295 : index
    %1256 = memref.load %arg2[%c295] : memref<308xf32, #tpu.memory_space<smem>>
    %1257 = vector.broadcast %1256 : f32 to vector<16x16xf32>
    %1258 = arith.mulf %1243, %1257 : vector<16x16xf32>
    %1259 = arith.addf %1171, %1258 : vector<16x16xf32>
    %c14 = arith.constant 14 : index
    %1260 = memref.load %arg2[%c14] : memref<308xf32, #tpu.memory_space<smem>>
    %1261 = vector.broadcast %1260 : f32 to vector<18x18xf32>
    %1262 = arith.mulf %4, %1261 : vector<18x18xf32>
    %c30 = arith.constant 30 : index
    %1263 = memref.load %arg2[%c30] : memref<308xf32, #tpu.memory_space<smem>>
    %1264 = vector.broadcast %1263 : f32 to vector<18x18xf32>
    %1265 = arith.mulf %7, %1264 : vector<18x18xf32>
    %1266 = arith.addf %1262, %1265 : vector<18x18xf32>
    %c46 = arith.constant 46 : index
    %1267 = memref.load %arg2[%c46] : memref<308xf32, #tpu.memory_space<smem>>
    %1268 = vector.broadcast %1267 : f32 to vector<18x18xf32>
    %1269 = arith.mulf %10, %1268 : vector<18x18xf32>
    %1270 = arith.addf %1266, %1269 : vector<18x18xf32>
    %c62 = arith.constant 62 : index
    %1271 = memref.load %arg2[%c62] : memref<308xf32, #tpu.memory_space<smem>>
    %1272 = vector.broadcast %1271 : f32 to vector<18x18xf32>
    %1273 = arith.mulf %13, %1272 : vector<18x18xf32>
    %1274 = arith.addf %1270, %1273 : vector<18x18xf32>
    %c78 = arith.constant 78 : index
    %1275 = memref.load %arg2[%c78] : memref<308xf32, #tpu.memory_space<smem>>
    %1276 = vector.broadcast %1275 : f32 to vector<18x18xf32>
    %1277 = arith.addf %1274, %1276 : vector<18x18xf32>
    %cst_58 = arith.constant 0.000000e+00 : f32
    %1278 = vector.broadcast %cst_58 : f32 to vector<18x18xf32>
    %1279 = arith.maximumf %1277, %1278 : vector<18x18xf32>
    %1280 = arith.minimumf %1279, %31 : vector<18x18xf32>
    %1281 = vector.extract_strided_slice %1280 {offsets = [0, 0], sizes = [16, 16], strides = [1, 1]} : vector<18x18xf32> to vector<16x16xf32>
    %c94 = arith.constant 94 : index
    %1282 = memref.load %arg2[%c94] : memref<308xf32, #tpu.memory_space<smem>>
    %1283 = vector.broadcast %1282 : f32 to vector<16x16xf32>
    %1284 = arith.mulf %1281, %1283 : vector<16x16xf32>
    %1285 = vector.extract_strided_slice %1280 {offsets = [0, 1], sizes = [16, 16], strides = [1, 1]} : vector<18x18xf32> to vector<16x16xf32>
    %c110 = arith.constant 110 : index
    %1286 = memref.load %arg2[%c110] : memref<308xf32, #tpu.memory_space<smem>>
    %1287 = vector.broadcast %1286 : f32 to vector<16x16xf32>
    %1288 = arith.mulf %1285, %1287 : vector<16x16xf32>
    %1289 = arith.addf %1284, %1288 : vector<16x16xf32>
    %1290 = vector.extract_strided_slice %1280 {offsets = [0, 2], sizes = [16, 16], strides = [1, 1]} : vector<18x18xf32> to vector<16x16xf32>
    %c126 = arith.constant 126 : index
    %1291 = memref.load %arg2[%c126] : memref<308xf32, #tpu.memory_space<smem>>
    %1292 = vector.broadcast %1291 : f32 to vector<16x16xf32>
    %1293 = arith.mulf %1290, %1292 : vector<16x16xf32>
    %1294 = arith.addf %1289, %1293 : vector<16x16xf32>
    %1295 = vector.extract_strided_slice %1280 {offsets = [1, 0], sizes = [16, 16], strides = [1, 1]} : vector<18x18xf32> to vector<16x16xf32>
    %c142 = arith.constant 142 : index
    %1296 = memref.load %arg2[%c142] : memref<308xf32, #tpu.memory_space<smem>>
    %1297 = vector.broadcast %1296 : f32 to vector<16x16xf32>
    %1298 = arith.mulf %1295, %1297 : vector<16x16xf32>
    %1299 = arith.addf %1294, %1298 : vector<16x16xf32>
    %1300 = vector.extract_strided_slice %1280 {offsets = [1, 1], sizes = [16, 16], strides = [1, 1]} : vector<18x18xf32> to vector<16x16xf32>
    %c158 = arith.constant 158 : index
    %1301 = memref.load %arg2[%c158] : memref<308xf32, #tpu.memory_space<smem>>
    %1302 = vector.broadcast %1301 : f32 to vector<16x16xf32>
    %1303 = arith.mulf %1300, %1302 : vector<16x16xf32>
    %1304 = arith.addf %1299, %1303 : vector<16x16xf32>
    %1305 = vector.extract_strided_slice %1280 {offsets = [1, 2], sizes = [16, 16], strides = [1, 1]} : vector<18x18xf32> to vector<16x16xf32>
    %c174 = arith.constant 174 : index
    %1306 = memref.load %arg2[%c174] : memref<308xf32, #tpu.memory_space<smem>>
    %1307 = vector.broadcast %1306 : f32 to vector<16x16xf32>
    %1308 = arith.mulf %1305, %1307 : vector<16x16xf32>
    %1309 = arith.addf %1304, %1308 : vector<16x16xf32>
    %1310 = vector.extract_strided_slice %1280 {offsets = [2, 0], sizes = [16, 16], strides = [1, 1]} : vector<18x18xf32> to vector<16x16xf32>
    %c190 = arith.constant 190 : index
    %1311 = memref.load %arg2[%c190] : memref<308xf32, #tpu.memory_space<smem>>
    %1312 = vector.broadcast %1311 : f32 to vector<16x16xf32>
    %1313 = arith.mulf %1310, %1312 : vector<16x16xf32>
    %1314 = arith.addf %1309, %1313 : vector<16x16xf32>
    %1315 = vector.extract_strided_slice %1280 {offsets = [2, 1], sizes = [16, 16], strides = [1, 1]} : vector<18x18xf32> to vector<16x16xf32>
    %c206 = arith.constant 206 : index
    %1316 = memref.load %arg2[%c206] : memref<308xf32, #tpu.memory_space<smem>>
    %1317 = vector.broadcast %1316 : f32 to vector<16x16xf32>
    %1318 = arith.mulf %1315, %1317 : vector<16x16xf32>
    %1319 = arith.addf %1314, %1318 : vector<16x16xf32>
    %1320 = vector.extract_strided_slice %1280 {offsets = [2, 2], sizes = [16, 16], strides = [1, 1]} : vector<18x18xf32> to vector<16x16xf32>
    %c222 = arith.constant 222 : index
    %1321 = memref.load %arg2[%c222] : memref<308xf32, #tpu.memory_space<smem>>
    %1322 = vector.broadcast %1321 : f32 to vector<16x16xf32>
    %1323 = arith.mulf %1320, %1322 : vector<16x16xf32>
    %1324 = arith.addf %1319, %1323 : vector<16x16xf32>
    %c238 = arith.constant 238 : index
    %1325 = memref.load %arg2[%c238] : memref<308xf32, #tpu.memory_space<smem>>
    %1326 = vector.broadcast %1325 : f32 to vector<16x16xf32>
    %1327 = arith.addf %1324, %1326 : vector<16x16xf32>
    %cst_59 = arith.constant 0.000000e+00 : f32
    %1328 = vector.broadcast %cst_59 : f32 to vector<16x16xf32>
    %1329 = arith.maximumf %1327, %1328 : vector<16x16xf32>
    %cst_60 = arith.constant 6.000000e+00 : f32
    %1330 = vector.broadcast %cst_60 : f32 to vector<16x16xf32>
    %1331 = arith.minimumf %1329, %1330 : vector<16x16xf32>
    %c296 = arith.constant 296 : index
    %1332 = memref.load %arg2[%c296] : memref<308xf32, #tpu.memory_space<smem>>
    %1333 = vector.broadcast %1332 : f32 to vector<16x16xf32>
    %1334 = arith.mulf %1331, %1333 : vector<16x16xf32>
    %1335 = arith.addf %1247, %1334 : vector<16x16xf32>
    %c297 = arith.constant 297 : index
    %1336 = memref.load %arg2[%c297] : memref<308xf32, #tpu.memory_space<smem>>
    %1337 = vector.broadcast %1336 : f32 to vector<16x16xf32>
    %1338 = arith.mulf %1331, %1337 : vector<16x16xf32>
    %1339 = arith.addf %1251, %1338 : vector<16x16xf32>
    %c298 = arith.constant 298 : index
    %1340 = memref.load %arg2[%c298] : memref<308xf32, #tpu.memory_space<smem>>
    %1341 = vector.broadcast %1340 : f32 to vector<16x16xf32>
    %1342 = arith.mulf %1331, %1341 : vector<16x16xf32>
    %1343 = arith.addf %1255, %1342 : vector<16x16xf32>
    %c299 = arith.constant 299 : index
    %1344 = memref.load %arg2[%c299] : memref<308xf32, #tpu.memory_space<smem>>
    %1345 = vector.broadcast %1344 : f32 to vector<16x16xf32>
    %1346 = arith.mulf %1331, %1345 : vector<16x16xf32>
    %1347 = arith.addf %1259, %1346 : vector<16x16xf32>
    %c15 = arith.constant 15 : index
    %1348 = memref.load %arg2[%c15] : memref<308xf32, #tpu.memory_space<smem>>
    %1349 = vector.broadcast %1348 : f32 to vector<18x18xf32>
    %1350 = arith.mulf %4, %1349 : vector<18x18xf32>
    %c31 = arith.constant 31 : index
    %1351 = memref.load %arg2[%c31] : memref<308xf32, #tpu.memory_space<smem>>
    %1352 = vector.broadcast %1351 : f32 to vector<18x18xf32>
    %1353 = arith.mulf %7, %1352 : vector<18x18xf32>
    %1354 = arith.addf %1350, %1353 : vector<18x18xf32>
    %c47 = arith.constant 47 : index
    %1355 = memref.load %arg2[%c47] : memref<308xf32, #tpu.memory_space<smem>>
    %1356 = vector.broadcast %1355 : f32 to vector<18x18xf32>
    %1357 = arith.mulf %10, %1356 : vector<18x18xf32>
    %1358 = arith.addf %1354, %1357 : vector<18x18xf32>
    %c63 = arith.constant 63 : index
    %1359 = memref.load %arg2[%c63] : memref<308xf32, #tpu.memory_space<smem>>
    %1360 = vector.broadcast %1359 : f32 to vector<18x18xf32>
    %1361 = arith.mulf %13, %1360 : vector<18x18xf32>
    %1362 = arith.addf %1358, %1361 : vector<18x18xf32>
    %c79 = arith.constant 79 : index
    %1363 = memref.load %arg2[%c79] : memref<308xf32, #tpu.memory_space<smem>>
    %1364 = vector.broadcast %1363 : f32 to vector<18x18xf32>
    %1365 = arith.addf %1362, %1364 : vector<18x18xf32>
    %cst_61 = arith.constant 0.000000e+00 : f32
    %1366 = vector.broadcast %cst_61 : f32 to vector<18x18xf32>
    %1367 = arith.maximumf %1365, %1366 : vector<18x18xf32>
    %1368 = arith.minimumf %1367, %31 : vector<18x18xf32>
    %1369 = vector.extract_strided_slice %1368 {offsets = [0, 0], sizes = [16, 16], strides = [1, 1]} : vector<18x18xf32> to vector<16x16xf32>
    %c95 = arith.constant 95 : index
    %1370 = memref.load %arg2[%c95] : memref<308xf32, #tpu.memory_space<smem>>
    %1371 = vector.broadcast %1370 : f32 to vector<16x16xf32>
    %1372 = arith.mulf %1369, %1371 : vector<16x16xf32>
    %1373 = vector.extract_strided_slice %1368 {offsets = [0, 1], sizes = [16, 16], strides = [1, 1]} : vector<18x18xf32> to vector<16x16xf32>
    %c111 = arith.constant 111 : index
    %1374 = memref.load %arg2[%c111] : memref<308xf32, #tpu.memory_space<smem>>
    %1375 = vector.broadcast %1374 : f32 to vector<16x16xf32>
    %1376 = arith.mulf %1373, %1375 : vector<16x16xf32>
    %1377 = arith.addf %1372, %1376 : vector<16x16xf32>
    %1378 = vector.extract_strided_slice %1368 {offsets = [0, 2], sizes = [16, 16], strides = [1, 1]} : vector<18x18xf32> to vector<16x16xf32>
    %c127 = arith.constant 127 : index
    %1379 = memref.load %arg2[%c127] : memref<308xf32, #tpu.memory_space<smem>>
    %1380 = vector.broadcast %1379 : f32 to vector<16x16xf32>
    %1381 = arith.mulf %1378, %1380 : vector<16x16xf32>
    %1382 = arith.addf %1377, %1381 : vector<16x16xf32>
    %1383 = vector.extract_strided_slice %1368 {offsets = [1, 0], sizes = [16, 16], strides = [1, 1]} : vector<18x18xf32> to vector<16x16xf32>
    %c143 = arith.constant 143 : index
    %1384 = memref.load %arg2[%c143] : memref<308xf32, #tpu.memory_space<smem>>
    %1385 = vector.broadcast %1384 : f32 to vector<16x16xf32>
    %1386 = arith.mulf %1383, %1385 : vector<16x16xf32>
    %1387 = arith.addf %1382, %1386 : vector<16x16xf32>
    %1388 = vector.extract_strided_slice %1368 {offsets = [1, 1], sizes = [16, 16], strides = [1, 1]} : vector<18x18xf32> to vector<16x16xf32>
    %c159 = arith.constant 159 : index
    %1389 = memref.load %arg2[%c159] : memref<308xf32, #tpu.memory_space<smem>>
    %1390 = vector.broadcast %1389 : f32 to vector<16x16xf32>
    %1391 = arith.mulf %1388, %1390 : vector<16x16xf32>
    %1392 = arith.addf %1387, %1391 : vector<16x16xf32>
    %1393 = vector.extract_strided_slice %1368 {offsets = [1, 2], sizes = [16, 16], strides = [1, 1]} : vector<18x18xf32> to vector<16x16xf32>
    %c175 = arith.constant 175 : index
    %1394 = memref.load %arg2[%c175] : memref<308xf32, #tpu.memory_space<smem>>
    %1395 = vector.broadcast %1394 : f32 to vector<16x16xf32>
    %1396 = arith.mulf %1393, %1395 : vector<16x16xf32>
    %1397 = arith.addf %1392, %1396 : vector<16x16xf32>
    %1398 = vector.extract_strided_slice %1368 {offsets = [2, 0], sizes = [16, 16], strides = [1, 1]} : vector<18x18xf32> to vector<16x16xf32>
    %c191 = arith.constant 191 : index
    %1399 = memref.load %arg2[%c191] : memref<308xf32, #tpu.memory_space<smem>>
    %1400 = vector.broadcast %1399 : f32 to vector<16x16xf32>
    %1401 = arith.mulf %1398, %1400 : vector<16x16xf32>
    %1402 = arith.addf %1397, %1401 : vector<16x16xf32>
    %1403 = vector.extract_strided_slice %1368 {offsets = [2, 1], sizes = [16, 16], strides = [1, 1]} : vector<18x18xf32> to vector<16x16xf32>
    %c207 = arith.constant 207 : index
    %1404 = memref.load %arg2[%c207] : memref<308xf32, #tpu.memory_space<smem>>
    %1405 = vector.broadcast %1404 : f32 to vector<16x16xf32>
    %1406 = arith.mulf %1403, %1405 : vector<16x16xf32>
    %1407 = arith.addf %1402, %1406 : vector<16x16xf32>
    %1408 = vector.extract_strided_slice %1368 {offsets = [2, 2], sizes = [16, 16], strides = [1, 1]} : vector<18x18xf32> to vector<16x16xf32>
    %c223 = arith.constant 223 : index
    %1409 = memref.load %arg2[%c223] : memref<308xf32, #tpu.memory_space<smem>>
    %1410 = vector.broadcast %1409 : f32 to vector<16x16xf32>
    %1411 = arith.mulf %1408, %1410 : vector<16x16xf32>
    %1412 = arith.addf %1407, %1411 : vector<16x16xf32>
    %c239 = arith.constant 239 : index
    %1413 = memref.load %arg2[%c239] : memref<308xf32, #tpu.memory_space<smem>>
    %1414 = vector.broadcast %1413 : f32 to vector<16x16xf32>
    %1415 = arith.addf %1412, %1414 : vector<16x16xf32>
    %cst_62 = arith.constant 0.000000e+00 : f32
    %1416 = vector.broadcast %cst_62 : f32 to vector<16x16xf32>
    %1417 = arith.maximumf %1415, %1416 : vector<16x16xf32>
    %cst_63 = arith.constant 6.000000e+00 : f32
    %1418 = vector.broadcast %cst_63 : f32 to vector<16x16xf32>
    %1419 = arith.minimumf %1417, %1418 : vector<16x16xf32>
    %c300 = arith.constant 300 : index
    %1420 = memref.load %arg2[%c300] : memref<308xf32, #tpu.memory_space<smem>>
    %1421 = vector.broadcast %1420 : f32 to vector<16x16xf32>
    %1422 = arith.mulf %1419, %1421 : vector<16x16xf32>
    %1423 = arith.addf %1335, %1422 : vector<16x16xf32>
    %c301 = arith.constant 301 : index
    %1424 = memref.load %arg2[%c301] : memref<308xf32, #tpu.memory_space<smem>>
    %1425 = vector.broadcast %1424 : f32 to vector<16x16xf32>
    %1426 = arith.mulf %1419, %1425 : vector<16x16xf32>
    %1427 = arith.addf %1339, %1426 : vector<16x16xf32>
    %c302 = arith.constant 302 : index
    %1428 = memref.load %arg2[%c302] : memref<308xf32, #tpu.memory_space<smem>>
    %1429 = vector.broadcast %1428 : f32 to vector<16x16xf32>
    %1430 = arith.mulf %1419, %1429 : vector<16x16xf32>
    %1431 = arith.addf %1343, %1430 : vector<16x16xf32>
    %c303 = arith.constant 303 : index
    %1432 = memref.load %arg2[%c303] : memref<308xf32, #tpu.memory_space<smem>>
    %1433 = vector.broadcast %1432 : f32 to vector<16x16xf32>
    %1434 = arith.mulf %1419, %1433 : vector<16x16xf32>
    %1435 = arith.addf %1347, %1434 : vector<16x16xf32>
    %c304 = arith.constant 304 : index
    %1436 = memref.load %arg2[%c304] : memref<308xf32, #tpu.memory_space<smem>>
    %1437 = vector.broadcast %1436 : f32 to vector<16x16xf32>
    %1438 = arith.addf %1423, %1437 : vector<16x16xf32>
    %cst_64 = arith.constant 0.000000e+00 : f32
    %1439 = vector.broadcast %cst_64 : f32 to vector<16x16xf32>
    %1440 = arith.maximumf %1438, %1439 : vector<16x16xf32>
    %cst_65 = arith.constant 6.000000e+00 : f32
    %1441 = vector.broadcast %cst_65 : f32 to vector<16x16xf32>
    %1442 = arith.minimumf %1440, %1441 : vector<16x16xf32>
    %c0_66 = arith.constant 0 : index
    %c0_67 = arith.constant 0 : index
    %c0_68 = arith.constant 0 : index
    %c0_69 = arith.constant 0 : index
    %1443 = vector.load %arg4[%c0_66, %c0_67, %c0_68, %c0_69] : memref<1x4x16x16xf32, #tpu.memory_space<vmem>>, vector<1x1x16x16xf32>
    %1444 = vector.shape_cast %1443 : vector<1x1x16x16xf32> to vector<16x16xf32>
    %1445 = vector.shape_cast %1442 : vector<16x16xf32> to vector<1x1x16x16xf32>
    tpu.vector_store %arg4[%c0_66, %c0_67, %c0_68, %c0_69], %1445 {strides = array<i32>} : memref<1x4x16x16xf32, #tpu.memory_space<vmem>>, vector<1x1x16x16xf32>,
    %c305 = arith.constant 305 : index
    %1446 = memref.load %arg2[%c305] : memref<308xf32, #tpu.memory_space<smem>>
    %1447 = vector.broadcast %1446 : f32 to vector<16x16xf32>
    %1448 = arith.addf %1427, %1447 : vector<16x16xf32>
    %cst_70 = arith.constant 0.000000e+00 : f32
    %1449 = vector.broadcast %cst_70 : f32 to vector<16x16xf32>
    %1450 = arith.maximumf %1448, %1449 : vector<16x16xf32>
    %cst_71 = arith.constant 6.000000e+00 : f32
    %1451 = vector.broadcast %cst_71 : f32 to vector<16x16xf32>
    %1452 = arith.minimumf %1450, %1451 : vector<16x16xf32>
    %c0_72 = arith.constant 0 : index
    %c1_73 = arith.constant 1 : index
    %c0_74 = arith.constant 0 : index
    %c0_75 = arith.constant 0 : index
    %1453 = vector.load %arg4[%c0_72, %c1_73, %c0_74, %c0_75] : memref<1x4x16x16xf32, #tpu.memory_space<vmem>>, vector<1x1x16x16xf32>
    %1454 = vector.shape_cast %1453 : vector<1x1x16x16xf32> to vector<16x16xf32>
    %1455 = vector.shape_cast %1452 : vector<16x16xf32> to vector<1x1x16x16xf32>
    tpu.vector_store %arg4[%c0_72, %c1_73, %c0_74, %c0_75], %1455 {strides = array<i32>} : memref<1x4x16x16xf32, #tpu.memory_space<vmem>>, vector<1x1x16x16xf32>,
    %c306 = arith.constant 306 : index
    %1456 = memref.load %arg2[%c306] : memref<308xf32, #tpu.memory_space<smem>>
    %1457 = vector.broadcast %1456 : f32 to vector<16x16xf32>
    %1458 = arith.addf %1431, %1457 : vector<16x16xf32>
    %cst_76 = arith.constant 0.000000e+00 : f32
    %1459 = vector.broadcast %cst_76 : f32 to vector<16x16xf32>
    %1460 = arith.maximumf %1458, %1459 : vector<16x16xf32>
    %cst_77 = arith.constant 6.000000e+00 : f32
    %1461 = vector.broadcast %cst_77 : f32 to vector<16x16xf32>
    %1462 = arith.minimumf %1460, %1461 : vector<16x16xf32>
    %c0_78 = arith.constant 0 : index
    %c2_79 = arith.constant 2 : index
    %c0_80 = arith.constant 0 : index
    %c0_81 = arith.constant 0 : index
    %1463 = vector.load %arg4[%c0_78, %c2_79, %c0_80, %c0_81] : memref<1x4x16x16xf32, #tpu.memory_space<vmem>>, vector<1x1x16x16xf32>
    %1464 = vector.shape_cast %1463 : vector<1x1x16x16xf32> to vector<16x16xf32>
    %1465 = vector.shape_cast %1462 : vector<16x16xf32> to vector<1x1x16x16xf32>
    tpu.vector_store %arg4[%c0_78, %c2_79, %c0_80, %c0_81], %1465 {strides = array<i32>} : memref<1x4x16x16xf32, #tpu.memory_space<vmem>>, vector<1x1x16x16xf32>,
    %c307 = arith.constant 307 : index
    %1466 = memref.load %arg2[%c307] : memref<308xf32, #tpu.memory_space<smem>>
    %1467 = vector.broadcast %1466 : f32 to vector<16x16xf32>
    %1468 = arith.addf %1435, %1467 : vector<16x16xf32>
    %cst_82 = arith.constant 0.000000e+00 : f32
    %1469 = vector.broadcast %cst_82 : f32 to vector<16x16xf32>
    %1470 = arith.maximumf %1468, %1469 : vector<16x16xf32>
    %cst_83 = arith.constant 6.000000e+00 : f32
    %1471 = vector.broadcast %cst_83 : f32 to vector<16x16xf32>
    %1472 = arith.minimumf %1470, %1471 : vector<16x16xf32>
    %c0_84 = arith.constant 0 : index
    %c3_85 = arith.constant 3 : index
    %c0_86 = arith.constant 0 : index
    %c0_87 = arith.constant 0 : index
    %1473 = vector.load %arg4[%c0_84, %c3_85, %c0_86, %c0_87] : memref<1x4x16x16xf32, #tpu.memory_space<vmem>>, vector<1x1x16x16xf32>
    %1474 = vector.shape_cast %1473 : vector<1x1x16x16xf32> to vector<16x16xf32>
    %1475 = vector.shape_cast %1472 : vector<16x16xf32> to vector<1x1x16x16xf32>
    tpu.vector_store %arg4[%c0_84, %c3_85, %c0_86, %c0_87], %1475 {strides = array<i32>} : memref<1x4x16x16xf32, #tpu.memory_space<vmem>>, vector<1x1x16x16xf32>,
    return
  }
  func.func @transform_0(%arg0: i32, %arg1: i32, %arg2: memref<308xf32, #tpu.memory_space<smem>>) -> (i32, i32, i32, i32) {
    %c0_i32 = arith.constant 0 : i32
    %c0_i32_0 = arith.constant 0 : i32
    %c0_i32_1 = arith.constant 0 : i32
    %c0_i32_2 = arith.constant 0 : i32
    return %arg0, %c0_i32, %c0_i32_0, %c0_i32_1 : i32, i32, i32, i32
  }
  func.func @transform_1(%arg0: i32, %arg1: i32, %arg2: memref<308xf32, #tpu.memory_space<smem>>) -> (i32, i32, i32, i32) {
    %c0_i32 = arith.constant 0 : i32
    %c0_i32_0 = arith.constant 0 : i32
    %c0_i32_1 = arith.constant 0 : i32
    return %arg0, %c0_i32, %arg1, %c0_i32_0 : i32, i32, i32, i32
  }
}

</mosaic_0001>

<bundles_post_ra>
// kernel: thin_block_forward.1
= control target key start
LH: loop header
LB: loop body
LE: loop exit
PB: predicated region body
PF: predicated region fallthrough
CT: control target
= control target key end

     0   :  { %s4420_s12 = smov [#allocation3]   ;;  %s8473_s0 = inlined_call_operand.vmem [shape: f32[308], index: 0, kind: input, shape index: {}]   ;;  %s8474_s1 = inlined_call_operand.vmem [shape: f32[2,4,18,18], index: 1, kind: input, shape index: {}]   ;;  %s8475_s2 = inlined_call_operand.hbm [shape: f32[2,4,16,16], index: 2, kind: output, shape index: {}]  }
   0x1   :  { %s8_s11 = sshll.u32 %s8473_s0, 4  ;;  %s9_s11 = int_to_ptr.vmem [resolvable:$true] %s8_s11 }
   0x2   :  { %11 = dma.vmem_to_smem %s9_s11, 48, %s4420_s12, [#allocation2] }
   0x3   :  { %4390 = dma.done.wait [#allocation2], 48 }
   0x4   :  { %4391 = vsyncadd [#allocation2], 4294967248 }
   0x5   :  { %14 = sfence }
   0x6   :  { %15 = vsyncpa [#allocation5], 0 }
   0x7   :  { %17 = vsyncpa [#allocation5 + $0x1], 0  ;;  %s4444_s13 = smov 0   ;;  %s4446_s14 = smov 0  }
   0x8   :  { %s4448_s15 = smov 0   ;;  %s4450_s16 = smov 0  }
   0x9   :  { %s4452_s17 = smov 0   ;;  %s4454_s18 = smov 0  }
   0xa LB: > { %s3881_s0 = sadd.s32 4294967295, %s4418_s18   ;;  %s3882_s19 = sadd.s32 4294967294, %s4418_s18   ;;  %s4418_s18 = sphi %s4454_s18, %s23_s18   ;;  %s4414_s17 = sphi %s4452_s17, %s8745_s17   ;;  %s4410_s16 = sphi %s4450_s16, %s8744_s16   ;;  %s4406_s15 = sphi %s4448_s15, %s8743_s15   ;;  %s4402_s14 = sphi %s4446_s14, %s8742_s14   ;;  %s4398_s13 = sphi %s4444_s13, %s8741_s13  }
   0xb   : > { %s35_s20 = sadd.s32 1, %s4414_s17  ;;  %s70_s21 = sadd.s32 1, %s4406_s15 }
   0xc   : > { %p37_p0 = scmp.ge.s32.totalorder %s35_s20, 2  ;;  %p80_p1 = scmp.ne.s32.totalorder %s4406_s15, %s4402_s14 }
   0xd   : > { %p81_p2 = scmp.eq.s32.totalorder %s3881_s0, 1  ;;  %p86_p3 = scmp.ne.s32.totalorder %s4402_s14, %s4398_s13 }
   0xe   : > { %s8747_s20 = smov (%p37_p0, %s35_s20), 0  ;;  %p87_p5 = scmp.eq.s32.totalorder %s3882_s19, 1 }
   0xf   : > { %p4484_p4 = por %p81_p2, %p80_p1  ;;  %s65_s23 = ssub.s32 %s4414_s17, %s8747_s20 }
  0x10   : > { %p3885_p6 = scmp.ge.s32.totalorder %s4418_s18, 1  ;;  %p68_p7 = scmp.eq.s32.totalorder %s65_s23, 0 }
  0x11   : > { %p4491_p8 = por %p87_p5, %p86_p3  ;;  %p113_p9 = scmp.lt.s32.totalorder %s4418_s18, 3 }
  0x12   : > { %s4497_s25 = scalar_select %p68_p7, %s4406_s15, %s70_s21  }
  0x13   : > { %p114_p10 = pnand %p3885_p6, %p113_p9 }
  0x15   : > { %117 = sbr.rel (%p114_p10) target bundleno = 738 (0x2e2), region = 24 }
  0x1a   : > { %p133_p11 = scmp.lt.s32.totalorder %s4410_s16, 1  ;;  %v159_v0 = vlaneseq  ;;  %s189_s26 = sld [smem:[#allocation3]]  ;;  %v4421_v42 = vmov 0.0   ;;  %vm269_vm9 = vcmask 1046528   ;;  %vm329_vm10 = vcmask 1045504  }
  0x1b   : > { %s3897_s27 = sld [smem:[#allocation3 + $0x10]]  ;;  %vm3743_vm11 = vcmask 130048  }
  0x1c   : > { %s134_s28 = scalar_select %p133_p11, %s4410_s16, 1  ;;  %v160_v1 = vshrl.u32 %v159_v0, 7  ;;  %v4501_v2 = vand.u32 127, %v159_v0 }
  0x1d   : > { %s3898_s29 = sld [smem:[#allocation3 + $0x20]] }
  0x1e   : > { %s4216_s30 = smul.u32 96, %s134_s28  ;;  %s4503_s3 = sld [smem:[#allocation3 + $0x30]]  ;;  %vm169_vm0 = vcmp.ge.s32.totalorder %v160_v1, 1  ;;  %vm178_vm1 = vcmp.ge.s32.totalorder %v4501_v2, 1  ;;  %v162_v18 = vadd.s32 16, %v160_v1  ;;  %vm182_vm3 = vcmp.le.s32.totalorder %v4501_v2, 16 }
  0x1f   : > { %s4505_s4 = sld [smem:[#allocation3 + $0x40]]  ;;  %vm4556_vm2 = vmand %vm169_vm0, %vm178_vm1  ;;  %s8493_s28 = smov 127  }
  0x20   : > { %s4510_s7 = scalar_lea.vmem %s8474_s1, %s4216_s30  ;;  %v190_v3 = vstv %s189_s26  ;;  %s4541_s8 = sld [smem:[#allocation3 + $0x70]]  ;;  %vm174_vm4 = vcmp.le.s32.totalorder %v162_v18, 16  ;;  %vm183_vm5 = vmand %vm4556_vm2, %vm182_vm3 }
  0x21   : > { %v4513_v4 = vld [vmem:[%s4510_s7] sm:$0xff]  ;;  %v4516_v5 = vld [vmem:[%s4510_s7 + $0x8] sm:$0xff]  ;;  %v4519_v6 = vld [vmem:[%s4510_s7 + $0x18] sm:$0xff]  ;;  %v195_v7 = vstv %s3897_s27  ;;  %s4545_s9 = sld [smem:[#allocation3 + $0x60]]  ;;  %v4589_v43 = vsel %vm183_vm5, 6.0, %v4421_v42  ;;  %s4422_s27 = smov 126  }
  0x22   : > { %v4522_v8 = vld [vmem:[%s4510_s7 + $0x20] sm:$0xff]  ;;  %v4525_v9 = vld [vmem:[%s4510_s7 + $0x30] sm:$0xff]  ;;  %v4528_v10 = vld [vmem:[%s4510_s7 + $0x38] sm:$0xff]  ;;  %v191_v11 = vmul.f32 %v190_v3, %v4513_v4  ;;  %v192_v12 = vmul.f32 %v190_v3, %v4516_v5  ;;  %v196_v13 = vmul.f32 %v4519_v6, %v195_v7  ;;  %s4562_s10 = sld [smem:[#allocation3 + $0x90]] }
  0x23   : > { %v4535_v14 = vld [vmem:[%s4510_s7 + $0x48] sm:$0xff]  ;;  %v4538_v15 = vld [vmem:[%s4510_s7 + $0x50] sm:$0xff]  ;;  %v197_v16 = vmul.f32 %v4522_v8, %v195_v7  ;;  %v203_v17 = vstv %s3898_s29  ;;  %v4565_v27 = vld [vmem:[%s4510_s7 + $0x40] sm:$0x3]  ;;  %s3915_s11 = sld [smem:[#allocation3 + $0x1]] }
  0x24   : > { %v199_v19 = vadd.f32 %v196_v13, %v191_v11  ;;  %v204_v20 = vmul.f32 %v4525_v9, %v203_v17  ;;  %v205_v21 = vmul.f32 %v4528_v10, %v203_v17  ;;  %v4548_v22 = vld [vmem:[%s4510_s7 + $0x10] sm:$0x3]  ;;  %v4551_v23 = vld [vmem:[%s4510_s7 + $0x28] sm:$0x3]  ;;  %v211_v26 = vstv %s4503_s3  ;;  %v4571_v32 = vld [vmem:[%s4510_s7 + $0x58] sm:$0x3] }
  0x25   : > { %v200_v25 = vadd.f32 %v197_v16, %v192_v12  ;;  %v193_v28 = vmul.f32 %v190_v3, %v4548_v22  ;;  %v212_v30 = vmul.f32 %v4535_v14, %v211_v26  ;;  %v213_v31 = vmul.f32 %v4538_v15, %v211_v26  ;;  %s3916_s12 = sld [smem:[#allocation3 + $0x11]]  ;;  %vm184_vm6 = vmand %vm178_vm1, %vm182_vm3 }
  0x26   : > { %v207_v29 = vadd.f32 %v204_v20, %v199_v19  ;;  %v219_v34 = vstv %s4505_s4  ;;  %v198_v35 = vmul.f32 %v4551_v23, %v195_v7  ;;  %v206_v37 = vmul.f32 %v4565_v27, %v203_v17  ;;  %vm181_vm7 = vmand %vm174_vm4, %vm178_vm1  ;;  %s4587_s0 = sld [smem:[#allocation3 + $0xa0]] }
  0x27   : > { %v208_v33 = vadd.f32 %v205_v21, %v200_v25  ;;  %v214_v40 = vmul.f32 %v4571_v32, %v211_v26  ;;  %v4591_v46 = vsel %vm184_vm6, 6.0, %v4421_v42  ;;  %v248_v48 = vstv %s4541_s8  ;;  %s4594_s19 = sld [smem:[#allocation3 + $0x21]]  ;;  %vm185_vm8 = vmand %vm181_vm7, %vm182_vm3 }
  0x28   : > { %v215_v36 = vadd.f32 %v212_v30, %v207_v29  ;;  %v201_v39 = vadd.f32 %v198_v35, %v193_v28  ;;  %v234_v50 = vstv %s4545_s9  ;;  %v280_v51 = vstv %s4562_s10  ;;  %s4606_s21 = sld [smem:[#allocation3 + $0xd0]] }
  0x29   : > { %v216_v38 = vadd.f32 %v213_v31, %v208_v33  ;;  %v406_v54 = vstv %s3915_s11  ;;  %v4611_v61 = vsel %vm185_vm8, 6.0, %v4421_v42  ;;  %s3918_s23 = sld [smem:[#allocation3 + $0x31]] }
  0x2a   : > { %v220_v41 = vadd.f32 %v219_v34, %v215_v36  ;;  %v209_v45 = vadd.f32 %v206_v37, %v201_v39  ;;  %8563 = vst [vmem:[#allocation8_spill] sm:$0xff] %v4611_v61  ;;  %s3908_s26 = sld [smem:[#allocation3 + $0xc0]]  ;;  %v408_v0 = vmul.f32 %v406_v54, %v4516_v5  ;;  %v407_v29 = vmul.f32 %v406_v54, %v4513_v4 }
  0x2b   : > { %v221_v44 = vadd.f32 %v219_v34, %v216_v38  ;;  %v411_v55 = vstv %s3916_s12  ;;  %s4632_s29 = sld [smem:[#allocation3 + $0x41]] }
  0x2c   : > { %v223_v47 = vmax.f32 %v220_v41, 0.0  ;;  %v217_v52 = vadd.f32 %v214_v40, %v209_v45  ;;  %v413_v1 = vmul.f32 %v4522_v8, %v411_v55  ;;  %v301_v3 = vstv %s4587_s0  ;;  %s3921_s30 = sld [smem:[#allocation3 + $0x61]] }
  0x2d   : > { %v224_v49 = vmax.f32 %v221_v44, 0.0  ;;  %v419_v12 = vstv %s4594_s19  ;;  %v412_v37 = vmul.f32 %v4519_v6, %v411_v55  ;;  %v409_v45 = vmul.f32 %v406_v54, %v4548_v22  ;;  %s3924_s3 = sld [smem:[#allocation3 + $0x91]] }
  0x2e   : > { %v4601_v53 = vmin.f32 %v223_v47, %v4589_v43  ;;  %v222_v57 = vadd.f32 %v219_v34, %v217_v52  ;;  %v416_v18 = vadd.f32 %v413_v1, %v408_v0  ;;  %v421_v26 = vmul.f32 %v4528_v10, %v419_v12  ;;  %s3934_s4 = sld [smem:[#allocation3 + $0x2]] }
  0x2f   : > { %v4604_v56 = vmin.f32 %v224_v49, %v4591_v46  ;;  %v427_v28 = vstv %s3918_s23  ;;  %v361_v31 = vstv %s4606_s21  ;;  %v420_v38 = vmul.f32 %v4525_v9, %v419_v12  ;;  %s3935_s5 = sld [smem:[#allocation3 + $0x12]] }
  0x30   : > { %v249_v58 = vmul.f32 %v248_v48, %v4601_v53  ;;  %v235_v59 = vmul.f32 %v234_v50, %v4601_v53  ;;  %v281_v60 = vmul.f32 %v280_v51, %v4601_v53  ;;  %v225_v63 = vmax.f32 %v222_v57, 0.0  ;;  %s4663_s6 = sld [smem:[#allocation3 + $0x71]] }
  0x31   : > { %v282_v62 = vmul.f32 %v280_v51, %v4604_v56  ;;  %v302_v16 = vmul.f32 %v301_v3, %v4601_v53  ;;  %v250_v19 = vmul.f32 %v248_v48, %v4604_v56  ;;  %v236_v20 = vmul.f32 %v234_v50, %v4604_v56  ;;  %s3936_s8 = sld [smem:[#allocation3 + $0x22]] }
  0x32   : > { %253 = vrot.lane.b32.xlu1 %v249_v58, %s4422_s27  ;;  %239 = vrot.lane.b32.xlu0 %v235_v59, %s8493_s28  ;;  %v287_v2 = vrot.slane %v281_v60, 1  ;;  %v4620_v11 = vmin.f32 %v225_v63, %v4611_v61  ;;  %v303_v21 = vmul.f32 %v301_v3, %v4604_v56  ;;  %v340_v33 = vstv %s3908_s26  ;;  %s3925_s9 = sld [smem:[#allocation3 + $0xa1]] }
  0x33   : > { %v288_v7 = vrot.slane %v282_v62, 1  ;;  %v308_v30 = vrot.slane %v302_v16, 1  ;;  %v424_v34 = vadd.f32 %v421_v26, %v416_v18  ;;  %v429_v36 = vmul.f32 %v4538_v15, %v427_v28  ;;  %s3937_s10 = sld [smem:[#allocation3 + $0x32]] }
  0x34   : > { %v283_v17 = vmul.f32 %v280_v51, %v4620_v11  ;;  %v304_v24 = vmul.f32 %v301_v3, %v4620_v11  ;;  %v309_v35 = vrot.slane %v303_v21, 1  ;;  %v341_v41 = vmul.f32 %v340_v33, %v4601_v53  ;;  %s3928_s11 = sld [smem:[#allocation3 + $0xd1]] }
  0x35   : > { %v289_v13 = vsel %vm269_vm9, %v287_v2, %v288_v7  ;;  %v415_v42 = vadd.f32 %v412_v37, %v407_v29  ;;  %v428_v44 = vmul.f32 %v4535_v14, %v427_v28  ;;  %v414_v47 = vmul.f32 %v4551_v23, %v411_v55  ;;  %s3927_s12 = sld [smem:[#allocation3 + $0xc1]] }
  0x36   : > { %292 = vrot.lane.b32.xlu2 %v289_v13, %s8493_s28  ;;  %v290_v25 = vrot.slane %v283_v17, 1  ;;  %v311_v39 = vrot.slane %v304_v24, 1  ;;  %v362_v48 = vmul.f32 %v361_v31, %v4601_v53  ;;  %v363_v49 = vmul.f32 %v361_v31, %v4604_v56  ;;  %s3938_s0 = sld [smem:[#allocation3 + $0x42]] }
  0x37   : > { %v342_v50 = vmul.f32 %v340_v33, %v4604_v56  ;;  %v422_v51 = vmul.f32 %v4565_v27, %v419_v12  ;;  %v310_v52 = vsel %vm269_vm9, %v308_v30, %v309_v35  ;;  %v432_v57 = vadd.f32 %v429_v36, %v424_v34  ;;  %s4718_s19 = sld [smem:[#allocation3 + $0x62]] }
  0x38   : > { %v291_v40 = vsel %vm269_vm9, %v288_v7, %v290_v25  ;;  %v423_v58 = vadd.f32 %v420_v38, %v415_v42  ;;  %v417_v59 = vadd.f32 %v414_v47, %v409_v45  ;;  %v312_v60 = vsel %vm269_vm9, %v309_v35, %v311_v39  ;;  %s3943_s21 = sld [smem:[#allocation3 + $0x92]] }
  0x39   : > { %v343_v54 = vmul.f32 %v340_v33, %v4620_v11  ;;  %v347_v55 = vrot.slane %v341_v41, 2  ;;  %v435_v62 = vstv %s4632_s29  ;;  %v348_v0 = vrot.slane %v342_v50, 2  ;;  %s3953_s23 = sld [smem:[#allocation3 + $0x3]] }
  0x3a   : > { %255 = vrot.lane.b32.xlu1 %v250_v19, %s4422_s27  ;;  %241 = vrot.lane.b32.xlu0 %v236_v20, %s8493_s28  ;;  %v431_v63 = vadd.f32 %v428_v44, %v423_v58  ;;  %v425_v1 = vadd.f32 %v422_v51, %v417_v59  ;;  %v430_v2 = vmul.f32 %v4571_v32, %v427_v28  ;;  %v368_v3 = vrot.slane %v362_v48, 2  ;;  %s3954_s26 = sld [smem:[#allocation3 + $0x13]] }
  0x3b   : > { %v437_v7 = vadd.f32 %v435_v62, %v432_v57  ;;  %v369_v13 = vrot.slane %v363_v49, 2  ;;  %v350_v16 = vrot.slane %v343_v54, 2  ;;  %v349_v17 = vsel %vm329_vm10, %v347_v55, %v348_v0  ;;  %s4725_s29 = sld [smem:[#allocation3 + $0x72]] }
  0x3c   : > { %v436_v12 = vadd.f32 %v435_v62, %v431_v63  ;;  %v364_v18 = vmul.f32 %v361_v31, %v4620_v11  ;;  %v433_v19 = vadd.f32 %v430_v2, %v425_v1  ;;  %v450_v31 = vstv %s3921_s30  ;;  %s3955_s30 = sld [smem:[#allocation3 + $0x23]] }
  0x3d   : > { %v440_v20 = vmax.f32 %v437_v7, 0.0  ;;  %v370_v24 = vsel %vm329_vm10, %v368_v3, %v369_v13  ;;  %v351_v25 = vsel %vm329_vm10, %v348_v0, %v350_v16  ;;  %v495_v34 = vstv %s3924_s3  ;;  %s3944_s3 = sld [smem:[#allocation3 + $0xa2]] }
  0x3e   : > { %294 = vrot.lane.b32.xlu2 %v291_v40, %s8493_s28  ;;  %v439_v21 = vmax.f32 %v436_v12, 0.0  ;;  %v371_v26 = vrot.slane %v364_v18, 2  ;;  %v438_v28 = vadd.f32 %v435_v62, %v433_v19  ;;  %v628_v38 = vstv %s3934_s4  ;;  %s4737_s4 = sld [smem:[#allocation3 + $0x33]] }
  0x3f   : > { %v4668_v29 = vmin.f32 %v440_v20, %v4591_v46  ;;  %v633_v39 = vstv %s3935_s5  ;;  %v464_v42 = vstv %s4663_s6  ;;  %v630_v45 = vmul.f32 %v628_v38, %v4516_v5  ;;  %s4744_s5 = sld [smem:[#allocation3 + $0xc2]] }
  0x40   : > { %v4671_v30 = vmin.f32 %v439_v21, %v4589_v43  ;;  %v372_v33 = vsel %vm329_vm10, %v369_v13, %v371_v26  ;;  %v441_v35 = vmax.f32 %v438_v28, 0.0  ;;  %v635_v47 = vmul.f32 %v4522_v8, %v633_v39  ;;  %s4756_s6 = sld [smem:[#allocation3 + $0xd2]] }
  0x41   : > { %v452_v36 = vmul.f32 %v450_v31, %v4668_v29  ;;  %v497_v41 = vmul.f32 %v495_v34, %v4668_v29  ;;  %v641_v49 = vstv %s3936_s8  ;;  %v629_v50 = vmul.f32 %v628_v38, %v4513_v4  ;;  %s4767_s8 = sld [smem:[#allocation3 + $0x43]] }
  0x42   : > { %315 = vrot.lane.b32.xlu1 %v312_v60, %s4422_s27  ;;  %313 = vrot.lane.b32.xlu0 %v310_v52, %s4422_s27  ;;  %v451_v37 = vmul.f32 %v450_v31, %v4671_v30  ;;  %v496_v40 = vmul.f32 %v495_v34, %v4671_v30  ;;  %v4681_v44 = vmin.f32 %v441_v35, %v4611_v61  ;;  %v516_v58 = vstv %s3925_s9  ;;  %s4778_s9 = sld [smem:[#allocation3 + $0x4]] }
  0x43   : > { %v465_v48 = vmul.f32 %v464_v42, %v4671_v30  ;;  %v634_v51 = vmul.f32 %v4519_v6, %v633_v39  ;;  %v503_v57 = vrot.slane %v497_v41, 1  ;;  %v466_v60 = vmul.f32 %v464_v42, %v4668_v29 }
  0x44   : > { %v502_v52 = vrot.slane %v496_v40, 1  ;;  %v498_v59 = vmul.f32 %v495_v34, %v4681_v44  ;;  %v638_v54 = vadd.f32 %v635_v47, %v630_v45  ;;  %v643_v55 = vmul.f32 %v4528_v10, %v641_v49 }
  0x45   : > { %v518_v62 = vmul.f32 %v516_v58, %v4668_v29  ;;  %v649_v63 = vstv %s3937_s10  ;;  %v637_v0 = vadd.f32 %v634_v51, %v629_v50  ;;  %v642_v1 = vmul.f32 %v4525_v9, %v641_v49  ;;  %s4782_s10 = sld [smem:[#allocation3 + $0x14]] }
  0x46   : > { %352 = vrot.lane.b32.xlu2 %v349_v17, %s8493_s28  ;;  %v504_v2 = vsel %vm269_vm9, %v502_v52, %v503_v57  ;;  %v519_v3 = vmul.f32 %v516_v58, %v4681_v44  ;;  %v517_v7 = vmul.f32 %v516_v58, %v4671_v30  ;;  %v505_v12 = vrot.slane %v498_v59, 1 }
  0x47   : > { %v575_v13 = vstv %s3928_s11  ;;  %v554_v16 = vstv %s3927_s12  ;;  %v646_v17 = vadd.f32 %v643_v55, %v638_v54  ;;  %v631_v18 = vmul.f32 %v628_v38, %v4548_v22  ;;  %s4788_s11 = sld [smem:[#allocation3 + $0x24]] }
  0x48   : > { %v636_v19 = vmul.f32 %v4551_v23, %v633_v39  ;;  %v524_v20 = vrot.slane %v518_v62, 1  ;;  %v651_v21 = vmul.f32 %v4538_v15, %v649_v63  ;;  %v526_v26 = vrot.slane %v519_v3, 1  ;;  %s4795_s12 = sld [smem:[#allocation3 + $0x34]] }
  0x49   : > { %v523_v28 = vrot.slane %v517_v7, 1  ;;  %v506_v31 = vsel %vm269_vm9, %v503_v57, %v505_v12  ;;  %v577_v34 = vmul.f32 %v575_v13, %v4668_v29  ;;  %v556_v35 = vmul.f32 %v554_v16, %v4668_v29 }
  0x4a   : > { %373 = vrot.lane.b32.xlu1 %v370_v24, %s4422_s27  ;;  %354 = vrot.lane.b32.xlu0 %v351_v25, %s8493_s28  ;;  %v645_v24 = vadd.f32 %v642_v1, %v637_v0  ;;  %v650_v25 = vmul.f32 %v4535_v14, %v649_v63  ;;  %v576_v38 = vmul.f32 %v575_v13, %v4671_v30 }
  0x4b   : > { %v557_v39 = vmul.f32 %v554_v16, %v4681_v44  ;;  %v654_v40 = vadd.f32 %v651_v21, %v646_v17  ;;  %v527_v42 = vsel %vm269_vm9, %v524_v20, %v526_v26  ;;  %v525_v45 = vsel %vm269_vm9, %v523_v28, %v524_v20 }
  0x4c   : > { %v653_v41 = vadd.f32 %v650_v25, %v645_v24  ;;  %v562_v50 = vrot.slane %v556_v35, 2  ;;  %v652_v52 = vmul.f32 %v4571_v32, %v649_v63  ;;  %v582_v59 = vrot.slane %v576_v38, 2 }
  0x4d   : > { %v578_v55 = vmul.f32 %v575_v13, %v4681_v44  ;;  %v850_v20 = vstv %s3953_s23  ;;  %v855_v21 = vstv %s3954_s26  ;;  %v686_v38 = vstv %s4725_s29  ;;  %s4826_s23 = sld [smem:[#allocation3 + $0x73]] }
  0x4e   : > { %375 = vrot.lane.b32.xlu2 %v372_v33, %s4422_s27  ;;  %v555_v33 = vmul.f32 %v554_v16, %v4671_v30  ;;  %v672_v16 = vstv %s4718_s19  ;;  %v857_v35 = vmul.f32 %v4522_v8, %v855_v21  ;;  %s4801_s19 = sld [smem:[#allocation3 + $0xa3]] }
  0x4f   : > { %v585_v3 = vrot.slane %v578_v55, 2  ;;  %s4828_s26 = sld [smem:[#allocation3 + $0x50]] }
  0x50   : > { %v561_v47 = vrot.slane %v555_v33, 2  ;;  %v858_v33 = vmul.f32 %v4551_v23, %v855_v21  ;;  %s4837_s29 = sld [smem:[#allocation3 + $0x44]] }
  0x52   : > { %457 = vrot.lane.b32.xlu1 %v452_v36, %s8493_s28  ;;  %455 = vrot.lane.b32.xlu0 %v451_v37, %s8493_s28  ;;  %v639_v36 = vadd.f32 %v636_v19, %v631_v18  ;;  %v644_v37 = vmul.f32 %v4565_v27, %v641_v49  ;;  %v583_v49 = vrot.slane %v577_v34, 2  ;;  %v563_v54 = vsel %vm329_vm10, %v561_v47, %v562_v50 }
  0x53   : > { %v717_v18 = vstv %s3943_s21  ;;  %v852_v34 = vmul.f32 %v850_v20, %v4516_v5  ;;  %v738_v47 = vstv %s3944_s3  ;;  %s4812_s21 = sld [smem:[#allocation3 + $0x63]] }
  0x54   : > { %v647_v51 = vadd.f32 %v644_v37, %v639_v36  ;;  %v584_v1 = vsel %vm329_vm10, %v582_v59, %v583_v49  ;;  %v586_v17 = vsel %vm329_vm10, %v583_v49, %v585_v3  ;;  %v851_v36 = vmul.f32 %v850_v20, %v4513_v4  ;;  %s4853_s3 = sld [smem:[#allocation3 + $0xc3]] }
  0x55   : > { %v856_v37 = vmul.f32 %v4519_v6, %v855_v21 }
  0x56   : > { %469 = vrot.lane.b32.xlu2 %v465_v48, %s4422_s27  ;;  %v657_v48 = vstv %s3938_s0  ;;  %v655_v62 = vadd.f32 %v652_v52, %v647_v51  ;;  %v860_v52 = vadd.f32 %v857_v35, %v852_v34  ;;  %s4799_s0 = sld [smem:[#allocation3 + $0x93]] }
  0x57   : > { %v659_v57 = vadd.f32 %v657_v48, %v654_v40  ;;  %v658_v58 = vadd.f32 %v657_v48, %v653_v41  ;;  %v863_v40 = vstv %s3955_s30  ;;  %s4844_s30 = sld [smem:[#allocation3 + $0xd3]] }
  0x58   : > { %v660_v7 = vadd.f32 %v657_v48, %v655_v62  ;;  %v866_v51 = vmul.f32 %v4565_v27, %v863_v40  ;;  %v865_v49 = vmul.f32 %v4528_v10, %v863_v40 }
  0x59   : > { %v662_v63 = vmax.f32 %v659_v57, 0.0  ;;  %v661_v0 = vmax.f32 %v658_v58, 0.0  ;;  %v859_v57 = vadd.f32 %v856_v37, %v851_v36  ;;  %v864_v58 = vmul.f32 %v4525_v9, %v863_v40 }
  0x5a   : > { %507 = vrot.lane.b32.xlu1 %v504_v2, %s8493_s28  ;;  %471 = vrot.lane.b32.xlu0 %v466_v60, %s4422_s27  ;;  %v564_v60 = vrot.slane %v557_v39, 2  ;;  %v663_v19 = vmax.f32 %v660_v7, 0.0  ;;  %v868_v7 = vadd.f32 %v865_v49, %v860_v52 }
  0x5b   : > { %v4730_v12 = vmin.f32 %v662_v63, %v4591_v46  ;;  %v4733_v13 = vmin.f32 %v661_v0, %v4589_v43 }
  0x5c   : > { %v565_v2 = vsel %vm329_vm10, %v562_v50, %v564_v60  ;;  %v4754_v39 = vmin.f32 %v663_v19, %v4611_v61  ;;  %v871_v60 = vstv %s4737_s4  ;;  %v797_v19 = vstv %s4756_s6  ;;  %s4871_s4 = sld [smem:[#allocation3 + $0x80]] }
  0x5d   : > { %v674_v24 = vmul.f32 %v672_v16, %v4730_v12  ;;  %v673_v25 = vmul.f32 %v672_v16, %v4733_v13  ;;  %v718_v26 = vmul.f32 %v717_v18, %v4733_v13  ;;  %v719_v28 = vmul.f32 %v717_v18, %v4730_v12  ;;  %s4886_s6 = sld [smem:[#allocation3 + $0x94]] }
  0x5e   : > { %509 = vrot.lane.b32.xlu2 %v506_v31, %s8493_s28  ;;  %v853_v31 = vmul.f32 %v850_v20, %v4548_v22  ;;  %v720_v48 = vmul.f32 %v717_v18, %v4754_v39  ;;  %v688_v59 = vmul.f32 %v686_v38, %v4730_v12  ;;  %v740_v55 = vmul.f32 %v738_v47, %v4730_v12 }
  0x5f   : > { %v724_v41 = vrot.slane %v718_v26, 1  ;;  %v741_v62 = vmul.f32 %v738_v47, %v4754_v39  ;;  %v739_v63 = vmul.f32 %v738_v47, %v4733_v13  ;;  %v874_v3 = vmul.f32 %v4571_v32, %v871_v60 }
  0x60   : > { %v861_v50 = vadd.f32 %v858_v33, %v853_v31  ;;  %v727_v0 = vrot.slane %v720_v48, 1  ;;  %v873_v16 = vmul.f32 %v4538_v15, %v871_v60  ;;  %v872_v18 = vmul.f32 %v4535_v14, %v871_v60 }
  0x61   : > { %v746_v21 = vrot.slane %v740_v55, 1  ;;  %v798_v33 = vmul.f32 %v797_v19, %v4733_v13  ;;  %v799_v36 = vmul.f32 %v797_v19, %v4730_v12 }
  0x62   : > { %530 = vrot.lane.b32.xlu1 %v527_v42, %s4422_s27  ;;  %528 = vrot.lane.b32.xlu0 %v525_v45, %s4422_s27  ;;  %v725_v42 = vrot.slane %v719_v28, 1  ;;  %v687_v45 = vmul.f32 %v686_v38, %v4733_v13  ;;  %v876_v34 = vadd.f32 %v873_v16, %v868_v7  ;;  %v879_v38 = vstv %s4767_s8  ;;  %s4914_s8 = sld [smem:[#allocation3 + $0x64]] }
  0x63   : > { %v804_v48 = vrot.slane %v798_v33, 2  ;;  %v805_v52 = vrot.slane %v799_v36, 2  ;;  %v4835_v7 = vstv %s4795_s12  ;;  %s4942_s12 = sld [smem:[#allocation3 + $0xf0]] }
  0x64   : > { %v728_v26 = vsel %vm269_vm9, %v725_v42, %v727_v0  ;;  %v4822_v0 = vstv %s4788_s11  ;;  %s4933_s11 = sld [smem:[#allocation3 + $0xe0]] }
  0x66   : > { %566 = vrot.lane.b32.xlu2 %v563_v54, %s8493_s28  ;;  %v726_v54 = vsel %vm269_vm9, %v724_v41, %v725_v42 }
  0x6a   : > { %587 = vrot.lane.b32.xlu1 %v584_v1, %s4422_s27  ;;  %568 = vrot.lane.b32.xlu0 %v565_v2, %s8493_s28  ;;  %v776_v1 = vstv %s4744_s5  ;;  %v869_v2 = vadd.f32 %v866_v51, %v861_v50  ;;  %v881_v50 = vadd.f32 %v879_v38, %v876_v34  ;;  %s4878_s5 = sld [smem:[#allocation3 + $0xb0]] }
  0x6b   : > { %v777_v20 = vmul.f32 %v776_v1, %v4733_v13  ;;  %v778_v28 = vmul.f32 %v776_v1, %v4730_v12  ;;  %v779_v40 = vmul.f32 %v776_v1, %v4754_v39 }
  0x6c   : > { %v877_v31 = vadd.f32 %v874_v3, %v869_v2  ;;  %v884_v2 = vmax.f32 %v881_v50, 0.0  ;;  %v1101_v50 = vstv %s4837_s29  ;;  %s4979_s29 = sld [smem:[#allocation3 + $0xd4]] }
  0x6d   : > { %v783_v37 = vrot.slane %v777_v20, 2 }
  0x6e   : > { %589 = vrot.lane.b32.xlu2 %v586_v17, %s4422_s27  ;;  %v867_v17 = vadd.f32 %v864_v58, %v859_v57  ;;  %v882_v47 = vadd.f32 %v879_v38, %v877_v31  ;;  %v4805_v57 = vstv %s4778_s9  ;;  %v4808_v58 = vstv %s4782_s10  ;;  %s4921_s9 = sld [smem:[#allocation3 + $0x74]] }
  0x6f   : > { %v1074_v60 = vmul.f32 %v4805_v57, %v4516_v5  ;;  %v1073_v55 = vmul.f32 %v4805_v57, %v4513_v4  ;;  %v1078_v1 = vmul.f32 %v4519_v6, %v4808_v58  ;;  %v1087_v4 = vmul.f32 %v4528_v10, %v4822_v0  ;;  %s4927_s10 = sld [smem:[#allocation3 + $0xa4]] }
  0x70   : > { %v875_v35 = vadd.f32 %v872_v18, %v867_v17  ;;  %v939_v18 = vstv %s4799_s0  ;;  %v4847_v10 = vmin.f32 %v884_v2, %v4591_v46  ;;  %v894_v31 = vstv %s4812_s21  ;;  %s4951_s0 = sld [smem:[#allocation3 + $0xf1]] }
  0x71   : > { %v1081_v6 = vadd.f32 %v1078_v1, %v1073_v55  ;;  %v230_v55 = vstv %s4828_s26  ;;  %s4966_s21 = sld [smem:[#allocation3 + $0x15]] }
  0x72   : > { %679 = vrot.lane.b32.xlu1 %v674_v24, %s8493_s28  ;;  %677 = vrot.lane.b32.xlu0 %v673_v25, %s8493_s28  ;;  %v745_v24 = vrot.slane %v739_v63, 1  ;;  %v748_v25 = vrot.slane %v741_v62, 1  ;;  %v880_v51 = vadd.f32 %v879_v38, %v875_v35  ;;  %v800_v62 = vmul.f32 %v797_v19, %v4754_v39  ;;  %8565 = vst [vmem:[#allocation10_spill] sm:$0xff] %v4847_v10  ;;  %s5006_s26 = sld [smem:[#allocation3 + $0x25]] }
  0x73   : > { %v885_v63 = vmax.f32 %v882_v47, 0.0  ;;  %v941_v34 = vmul.f32 %v939_v18, %v4847_v10  ;;  %v896_v38 = vmul.f32 %v894_v31, %v4847_v10 }
  0x74   : > { %v749_v41 = vsel %vm269_vm9, %v746_v21, %v748_v25  ;;  %v747_v42 = vsel %vm269_vm9, %v745_v24, %v746_v21  ;;  %v883_v3 = vmax.f32 %v880_v51, 0.0  ;;  %v807_v17 = vrot.slane %v800_v62, 2 }
  0x75   : > { %v4842_v19 = vmin.f32 %v885_v63, %v4611_v61  ;;  %v960_v21 = vstv %s4801_s19  ;;  %v1086_v24 = vmul.f32 %v4525_v9, %v4822_v0  ;;  %v998_v62 = vstv %s4853_s3  ;;  %s4957_s19 = sld [smem:[#allocation3 + $0x5]] }
  0x76   : > { %691 = vrot.lane.b32.xlu2 %v687_v45, %s4422_s27  ;;  %v784_v45 = vrot.slane %v778_v28, 2  ;;  %v4850_v20 = vmin.f32 %v883_v3, %v4589_v43  ;;  %v1094_v28 = vmul.f32 %v4535_v14, %v4835_v7  ;;  %v808_v9 = vsel %vm329_vm10, %v805_v52, %v807_v17  ;;  %s4994_s3 = sld [smem:[#allocation3 + $0x81]] }
  0x77   : > { %8564 = vst [vmem:[#allocation9_spill] sm:$0xff] %v4842_v19  ;;  %v1089_v35 = vadd.f32 %v1086_v24, %v1081_v6  ;;  %v962_v36 = vmul.f32 %v960_v21, %v4847_v10  ;;  %v1075_v63 = vmul.f32 %v4805_v57, %v4548_v22  ;;  %v4904_v57 = vmul.f32 %v998_v62, %v4847_v10 }
  0x78   : > { %v785_v49 = vsel %vm329_vm10, %v783_v37, %v784_v45  ;;  %8566 = vst [vmem:[#allocation11_spill] sm:$0xff] %v4850_v20  ;;  %v940_v33 = vmul.f32 %v939_v18, %v4850_v20  ;;  %v908_v37 = vstv %s4826_s23  ;;  %v961_v14 = vmul.f32 %v960_v21, %v4850_v20  ;;  %s4968_s23 = sld [smem:[#allocation3 + $0x51]] }
  0x79   : > { %v910_v51 = vmul.f32 %v908_v37, %v4847_v10  ;;  %v4912_v17 = vmul.f32 %v230_v55, %v4601_v53 }
  0x7a   : > { %729 = vrot.lane.b32.xlu1 %v726_v54, %s8493_s28  ;;  %693 = vrot.lane.b32.xlu0 %v688_v59, %s4422_s27  ;;  %v786_v59 = vrot.slane %v779_v40, 2  ;;  %v1079_v54 = vmul.f32 %v4522_v8, %v4808_v58  ;;  %v806_v8 = vsel %vm329_vm10, %v804_v48, %v805_v52  ;;  %v942_v40 = vmul.f32 %v939_v18, %v4842_v19 }
  0x7b   : > { %v946_v47 = vrot.slane %v940_v33, 1  ;;  %v947_v48 = vrot.slane %v941_v34, 1  ;;  %v968_v52 = vrot.slane %v962_v36, 1  ;;  %v262_v18 = vstv %s4871_s4  ;;  %s5025_s4 = sld [smem:[#allocation3 + $0xf2]] }
  0x7c   : > { %v1082_v5 = vadd.f32 %v1079_v54, %v1074_v60  ;;  %v787_v16 = vsel %vm329_vm10, %v784_v45, %v786_v59  ;;  %v895_v45 = vmul.f32 %v894_v31, %v4850_v20  ;;  %v1019_v59 = vstv %s4844_s30  ;;  %s4986_s30 = sld [smem:[#allocation3 + $0xc4]] }
  0x7d   : > { %v967_v54 = vrot.slane %v961_v14, 1  ;;  %v949_v1 = vrot.slane %v942_v40, 1  ;;  %v1020_v6 = vmul.f32 %v1019_v59, %v4850_v20  ;;  %v4901_v22 = vmul.f32 %v1019_v59, %v4847_v10 }
  0x7e   : > { %731 = vrot.lane.b32.xlu2 %v728_v26, %s8493_s28  ;;  %v1090_v25 = vadd.f32 %v1087_v4, %v1082_v5  ;;  %v1095_v26 = vmul.f32 %v4538_v15, %v4835_v7  ;;  %v963_v15 = vmul.f32 %v960_v21, %v4842_v19  ;;  %v1080_v5 = vmul.f32 %v4551_v23, %v4808_v58 }
  0x7f   : > { %v948_v4 = vsel %vm269_vm9, %v946_v47, %v947_v48  ;;  %v4907_v58 = vsel %vm269_vm9, %v967_v54, %v968_v52  ;;  %v1088_v21 = vmul.f32 %v4565_v27, %v4822_v0  ;;  %v950_v24 = vsel %vm269_vm9, %v947_v48, %v949_v1 }
  0x80   : > { %v1083_v23 = vadd.f32 %v1080_v5, %v1075_v63  ;;  %v1026_v31 = vrot.slane %v1020_v6, 2  ;;  %v322_v33 = vstv %s4878_s5  ;;  %v1027_v27 = vrot.slane %v4901_v22, 2  ;;  %s5041_s5 = sld [smem:[#allocation3 + $0x35]] }
  0x81   : > { %v1006_v0 = vrot.slane %v4904_v57, 2  ;;  %v264_v36 = vmul.f32 %v262_v18, %v4604_v56  ;;  %v263_v14 = vmul.f32 %v262_v18, %v4601_v53  ;;  %v1022_v47 = vmul.f32 %v1019_v59, %v4842_v19 }
  0x82   : > { %752 = vrot.lane.b32.xlu1 %v749_v41, %s4422_s27  ;;  %750 = vrot.lane.b32.xlu0 %v747_v42, %s4422_s27  ;;  %v1098_v41 = vadd.f32 %v1095_v26, %v1090_v25  ;;  %v1097_v42 = vadd.f32 %v1094_v28, %v1089_v35  ;;  %v1001_v25 = vmul.f32 %v998_v62, %v4842_v19 }
  0x83   : > { %v1091_v34 = vadd.f32 %v1088_v21, %v1083_v23  ;;  %v1096_v35 = vmul.f32 %v4571_v32, %v4835_v7  ;;  %v325_v54 = vmul.f32 %v322_v33, %v4620_v11  ;;  %v270_v59 = vrot.slane %v263_v14, 1 }
  0x84   : > { %v1103_v2 = vadd.f32 %v1101_v50, %v1098_v41  ;;  %v1102_v3 = vadd.f32 %v1101_v50, %v1097_v42  ;;  %v1008_v7 = vrot.slane %v1001_v25, 2  ;;  %v323_v42 = vmul.f32 %v322_v33, %v4601_v53 }
  0x85   : > { %v1099_v32 = vadd.f32 %v1096_v35, %v1091_v34  ;;  %v4973_v63 = vsel %vm329_vm10, %v1026_v31, %v1027_v27  ;;  %v1029_v5 = vrot.slane %v1022_v47, 2  ;;  %v4991_v6 = vmul.f32 %v230_v55, %v4604_v56 }
  0x86   : > { %788 = vrot.lane.b32.xlu2 %v785_v49, %s8493_s28  ;;  %v970_v49 = vrot.slane %v963_v15, 1  ;;  %v1106_v26 = vmax.f32 %v1103_v2, 0.0  ;;  %v1105_v28 = vmax.f32 %v1102_v3, 0.0  ;;  %v4976_v1 = vsel %vm329_vm10, %v1006_v0, %v1008_v7 }
  0x87   : > { %v1104_v48 = vadd.f32 %v1101_v50, %v1099_v32  ;;  %v1116_v2 = vstv %s4914_s8  ;;  %v1130_v55 = vstv %s4921_s9  ;;  %s5117_s8 = sld [smem:[#allocation3 + $0xb1]] }
  0x88   : > { %v4945_v40 = vmin.f32 %v1106_v26, %v4591_v46  ;;  %v4948_v41 = vmin.f32 %v1105_v28, %v4589_v43  ;;  %s5127_s9 = sld [smem:[#allocation3 + $0x65]] }
  0x89   : > { %v1107_v50 = vmax.f32 %v1104_v48, 0.0 }
  0x8a   : > { %809 = vrot.lane.b32.xlu1 %v806_v8, %s4422_s27  ;;  %790 = vrot.lane.b32.xlu0 %v787_v16, %s8493_s28  ;;  %v909_v8 = vmul.f32 %v908_v37, %v4850_v20  ;;  %v4898_v16 = vsel %vm269_vm9, %v968_v52, %v970_v49  ;;  %v265_v37 = vmul.f32 %v262_v18, %v4620_v11  ;;  %v330_v11 = vrot.slane %v323_v42, 2 }
  0x8b   : > { %8567 = vst [vmem:[#allocation12_spill] sm:$0xff] %v4945_v40  ;;  %v333_v18 = vrot.slane %v325_v54, 2  ;;  %v5000_v25 = vmul.f32 %v1116_v2, %v4945_v40  ;;  %v5017_v34 = vmul.f32 %v1116_v2, %v4948_v41  ;;  %v5056_v54 = vld [vmem:[%s4510_s7 + $0x8] sm:$0xff] }
  0x8c   : > { %8568 = vst [vmem:[#allocation13_spill] sm:$0xff] %v4948_v41 }
  0x8d   : > { %8570 = vst [vmem:[#allocation15_spill] sm:$0xff] %v5056_v54 }
  0x8e   : > { %811 = vrot.lane.b32.xlu2 %v808_v9, %s4422_s27  ;;  %v999_v9 = vmul.f32 %v998_v62, %v4850_v20  ;;  %v273_v62 = vrot.slane %v265_v37, 1  ;;  %v5044_v37 = vmul.f32 %v1130_v55, %v4945_v40 }
  0x90   : > { %v4882_v60 = vpop.permute.xlu2 %292  ;;  %v1005_v52 = vrot.slane %v999_v9, 2  ;;  %v5036_v9 = vstv %s4957_s19  ;;  %s5175_s19 = sld [smem:[#allocation3 + $0xf3]] }
  0x92   : > { %901 = vrot.lane.b32.xlu1 %v896_v38, %s8493_s28  ;;  %899 = vrot.lane.b32.xlu0 %v895_v45, %s8493_s28  ;;  %v4940_v38 = vstv %s4886_s6  ;;  %v324_v45 = vmul.f32 %v322_v33, %v4604_v56  ;;  %s5065_s6 = sld [smem:[#allocation3 + $0x45]] }
  0x93   : > { %v1162_v49 = vmul.f32 %v4940_v38, %v4948_v41  ;;  %v4963_v53 = vmul.f32 %v4940_v38, %v4945_v40 }
  0x94   : > { %v331_v3 = vrot.slane %v324_v45, 2 }
  0x95   : > { %v1168_v57 = vrot.slane %v1162_v49, 1  ;;  %v8476_v23 = vrot.slane %v4963_v53, 1  ;;  %v1220_v49 = vstv %s4986_s30  ;;  %s5219_s30 = sld [smem:[#allocation3 + $0xa5]] }
  0x96   : > { %913 = vrot.lane.b32.xlu2 %v909_v8, %s4422_s27  ;;  %v1182_v8 = vstv %s4927_s10  ;;  %v5020_v35 = vsel %vm329_vm10, %v330_v11, %v331_v3  ;;  %v478_v11 = vstv %s4994_s3  ;;  %s5148_s10 = sld [smem:[#allocation3 + $0x95]] }
  0x97   : > { %v1184_v28 = vmul.f32 %v1182_v8, %v4945_v40  ;;  %v1183_v33 = vmul.f32 %v1182_v8, %v4948_v41  ;;  %s5226_s3 = sld [smem:[#allocation3 + $0xf5]] }
  0x98   : > { %v4935_v15 = vpop.permute.xlu2 %294 }
  0x99   : > { %v1190_v45 = vrot.slane %v1184_v28, 1  ;;  %v1189_v48 = vrot.slane %v1183_v33, 1 }
  0x9a   : > { %951 = vrot.lane.b32.xlu1 %v948_v4, %s8493_s28  ;;  %915 = vrot.lane.b32.xlu0 %v910_v51, %s4422_s27  ;;  %v271_v51 = vrot.slane %v264_v36, 1  ;;  %v4983_v4 = vmin.f32 %v1107_v50, %v4611_v61  ;;  %v5039_v36 = vstv %s4966_s21  ;;  %v446_v50 = vstv %s4968_s23  ;;  %s5190_s21 = sld [smem:[#allocation3 + $0x75]] }
  0x9b   : > { %v5101_v33 = vmul.f32 %v446_v50, %v4671_v30  ;;  %s5196_s23 = sld [smem:[#allocation3 + $0xe1]] }
  0x9c   : > { %8569 = vst [vmem:[#allocation14_spill] sm:$0xff] %v4983_v4  ;;  %v5003_v26 = vsel %vm269_vm9, %v271_v51, %v273_v62  ;;  %v272_v56 = vsel %vm269_vm9, %v270_v59, %v271_v51  ;;  %v1185_v31 = vmul.f32 %v1182_v8, %v4983_v4  ;;  %v1296_v51 = vmul.f32 %v5056_v54, %v5036_v9  ;;  %v5061_v62 = vld [vmem:[%s4510_s7 + $0x20] sm:$0xff] }
  0x9d   : > { %v1301_v59 = vmul.f32 %v5061_v62, %v5039_v36  ;;  %v1164_v2 = vmul.f32 %v4940_v38, %v4983_v4  ;;  %v5089_v38 = vsel %vm269_vm9, %v1189_v48, %v1190_v45  ;;  %v1223_v28 = vmul.f32 %v1220_v49, %v4983_v4 }
  0x9e   : > { %953 = vrot.lane.b32.xlu2 %v950_v24, %s8493_s28  ;;  %v1007_v24 = vsel %vm329_vm10, %v1005_v52, %v1006_v0  ;;  %v1030_v0 = vsel %vm329_vm10, %v1027_v27, %v1029_v5  ;;  %v1192_v47 = vrot.slane %v1185_v31, 1  ;;  %v5052_v52 = vstv %s4979_s29  ;;  %s5200_s29 = sld [smem:[#allocation3 + $0xf4]] }
  0x9f   : > { %v1242_v8 = vmul.f32 %v5052_v52, %v4948_v41 }
  0xa0   : > { %v4996_v21 = vpop.permute.xlu2 %352 }
  0xa2   : > { %974 = vrot.lane.b32.xlu1 %v4898_v16, %s4422_s27  ;;  %972 = vrot.lane.b32.xlu0 %v4907_v58, %s4422_s27  ;;  %v5030_v16 = vsel %vm269_vm9, %v1168_v57, %v8476_v23  ;;  %v5033_v58 = vsel %vm329_vm10, %v331_v3, %v333_v18  ;;  %v5080_v57 = vmul.f32 %v5052_v52, %v4945_v40  ;;  %v5083_v18 = vstv %s5006_s26  ;;  %s5230_s26 = sld [smem:[#allocation3 + $0xf6]] }
  0xa4   : > { %v254_v22 = vpop.permute.xlu1 %253  ;;  %v240_v27 = vpop.permute.xlu0 %239 }
  0xa5   : > { %v245_v42 = vadd.f32 %v240_v27, %v4912_v17  ;;  %v5068_v17 = vmul.f32 %v1130_v55, %v4948_v41  ;;  %v5092_v55 = vmul.f32 %v1220_v49, %v4945_v40  ;;  %v1304_v27 = vadd.f32 %v1301_v59, %v1296_v51  ;;  %v5139_v59 = vld [vmem:[%s4510_s7 + $0x18] sm:$0xff] }
  0xa6   : > { %1010 = vrot.lane.b32.xlu2 %v1007_v24, %s8493_s28  ;;  %v5086_v24 = vsel %vm269_vm9, %v1190_v45, %v1192_v47  ;;  %v5107_v45 = vmul.f32 %v478_v11, %v4668_v29  ;;  %v5110_v47 = vld [vmem:[%s4510_s7 + $0x38] sm:$0xff]  ;;  %v1248_v51 = vrot.slane %v1242_v8, 2  ;;  %v1230_v40 = vrot.slane %v1223_v28, 2  ;;  %8574 = vst [vmem:[#allocation19_spill] sm:$0xff] %v5139_v59 }
  0xa7   : > { %v259_v3 = vadd.f32 %v254_v22, %v245_v42  ;;  %v5104_v22 = vmul.f32 %v478_v11, %v4671_v30  ;;  %v1171_v42 = vrot.slane %v1164_v2, 1  ;;  %8571 = vst [vmem:[#allocation16_spill] sm:$0xff] %v5110_v47  ;;  %v5121_v2 = vld [vmem:[%s4510_s7 + $0x50] sm:$0xff] }
  0xa8   : > { %v5074_v5 = vpop.permute.xlu2 %375  ;;  %8572 = vst [vmem:[#allocation17_spill] sm:$0xff] %v5121_v2 }
  0xa9   : > { %v277_v7 = vadd.f32 %v272_v56, %v259_v3  ;;  %v5131_v56 = vstv %s5065_s6  ;;  %v5134_v3 = vld [vmem:[%s4510_s7] sm:$0xff]  ;;  %v485_v10 = vrot.slane %v5104_v22, 1  ;;  %s5276_s6 = sld [smem:[#allocation3 + $0x6]] }
  0xaa   : > { %1031 = vrot.lane.b32.xlu1 %v4973_v63, %s4422_s27  ;;  %1012 = vrot.lane.b32.xlu0 %v4976_v1, %s8493_s28  ;;  %v1309_v63 = vmul.f32 %v5110_v47, %v5083_v18  ;;  %v5115_v1 = vstv %s5041_s5  ;;  %8573 = vst [vmem:[#allocation18_spill] sm:$0xff] %v5134_v3  ;;  %v1295_v8 = vmul.f32 %v5134_v3, %v5036_v9  ;;  %s5262_s5 = sld [smem:[#allocation3 + $0xf7]] }
  0xab   : > { %v1317_v32 = vmul.f32 %v5121_v2, %v5115_v1  ;;  %v5159_v2 = vld [vmem:[%s4510_s7 + $0x48] sm:$0xff] }
  0xac   : > { %v256_v48 = vpop.permute.xlu1 %255  ;;  %v242_v31 = vpop.permute.xlu0 %241  ;;  %v1312_v19 = vadd.f32 %v1309_v63, %v1304_v27  ;;  %v5151_v27 = vmul.f32 %v446_v50, %v4668_v29  ;;  %v481_v63 = vmul.f32 %v478_v11, %v4681_v44  ;;  %8576 = vst [vmem:[#allocation21_spill] sm:$0xff] %v5159_v2  ;;  %v298_v50 = vadd.f32 %v4882_v60, %v277_v7 }
  0xad   : > { %v246_v14 = vadd.f32 %v242_v31, %v4991_v6  ;;  %v1300_v6 = vmul.f32 %v5139_v59, %v5039_v36  ;;  %v5144_v31 = vld [vmem:[%s4510_s7 + $0x30] sm:$0xff]  ;;  %v1221_v59 = vmul.f32 %v1220_v49, %v4948_v41  ;;  %v8577_v11 = vrot.slane %v4963_v53, 1 }
  0xae   : > { %1033 = vrot.lane.b32.xlu2 %v1030_v0, %s4422_s27  ;;  %8575 = vst [vmem:[#allocation20_spill] sm:$0xff] %v5144_v31  ;;  %v1308_v28 = vmul.f32 %v5144_v31, %v5083_v18  ;;  %v1320_v23 = vadd.f32 %v1317_v32, %v1312_v19  ;;  %v1316_v31 = vmul.f32 %v5159_v2, %v5115_v1  ;;  %v8578_v49 = vrot.slane %v5080_v57, 2 }
  0xaf   : > { %v260_v0 = vadd.f32 %v256_v48, %v246_v14  ;;  %v1303_v3 = vadd.f32 %v1300_v6, %v1295_v8  ;;  %v5168_v19 = vsel %vm269_vm9, %v8577_v11, %v1171_v42  ;;  %v8579_v60 = vrot.slane %v5092_v55, 2 }
  0xb0   : > { %v5154_v20 = vpop.permute.xlu2 %469  ;;  %v1325_v32 = vadd.f32 %v5131_v56, %v1320_v23  ;;  %v486_v23 = vrot.slane %v5107_v45, 1  ;;  %v488_v22 = vrot.slane %v481_v63, 1  ;;  %v537_v42 = vstv %s5117_s8  ;;  %s5285_s8 = sld [smem:[#allocation3 + $0x52]] }
  0xb1   : > { %v278_v14 = vadd.f32 %v5003_v26, %v260_v0  ;;  %v5180_v26 = vsel %vm329_vm10, %v1248_v51, %v8578_v49  ;;  %v5185_v53 = vsel %vm329_vm10, %v8579_v60, %v1230_v40  ;;  %v1311_v7 = vadd.f32 %v1308_v28, %v1303_v3  ;;  %v5203_v28 = vld [vmem:[%s4510_s7 + $0x10] sm:$0x3]  ;;  %v5208_v0 = vld [vmem:[%s4510_s7 + $0x28] sm:$0x3]  ;;  %v5234_v60 = vld [vmem:[%s4510_s7 + $0x40] sm:$0x3] }
  0xb2   : > { %1123 = vrot.lane.b32.xlu1 %v5000_v25, %s8493_s28  ;;  %1121 = vrot.lane.b32.xlu0 %v5017_v34, %s8493_s28  ;;  %v1328_v34 = vmax.f32 %v1325_v32, 0.0  ;;  %v1227_v8 = vrot.slane %v1221_v59, 2  ;;  %v538_v40 = vmul.f32 %v537_v42, %v4671_v30  ;;  %v5194_v45 = vmul.f32 %v537_v42, %v4668_v29 }
  0xb3   : > { %v299_v25 = vadd.f32 %v4935_v15, %v278_v14  ;;  %v1319_v6 = vadd.f32 %v1316_v31, %v1311_v7  ;;  %v1244_v3 = vmul.f32 %v5052_v52, %v4983_v4  ;;  %v1297_v59 = vmul.f32 %v5203_v28, %v5036_v9 }
  0xb4   : > { %v316_v48 = vpop.permute.xlu1 %315  ;;  %v314_v51 = vpop.permute.xlu0 %313  ;;  %v1302_v30 = vmul.f32 %v5208_v0, %v5039_v36  ;;  %v1338_v31 = vstv %s5127_s9  ;;  %v5217_v63 = vstv %s5148_s10  ;;  %v5223_v9 = vmin.f32 %v1328_v34, %v4591_v46  ;;  %s5293_s10 = sld [smem:[#allocation3 + $0x16]]  ;;  %s8589_s9 = smov 127  }
  0xb5   : > { %v319_v15 = vadd.f32 %v314_v51, %v298_v50  ;;  %v320_v29 = vadd.f32 %v316_v48, %v299_v25  ;;  %v1324_v52 = vadd.f32 %v5131_v56, %v1319_v6  ;;  %v544_v50 = vrot.slane %v538_v40, 2 }
  0xb6   : > { %1135 = vrot.lane.b32.xlu2 %v5068_v17, %s4422_s27  ;;  %8580 = vst [vmem:[#allocation22_spill] sm:$0xff] %v5223_v9  ;;  %v545_v36 = vrot.slane %v5194_v45, 2  ;;  %v1251_v32 = vrot.slane %v1244_v3, 2  ;;  %v540_v49 = vmul.f32 %v537_v42, %v4681_v44  ;;  %v5239_v7 = vsel %vm269_vm9, %v485_v10, %v486_v23 }
  0xb7   : > { %v337_v14 = vadd.f32 %v5020_v35, %v319_v15  ;;  %v1327_v17 = vmax.f32 %v1324_v52, 0.0  ;;  %v1310_v35 = vmul.f32 %v5234_v60, %v5083_v18  ;;  %v5242_v25 = vsel %vm269_vm9, %v486_v23, %v488_v22 }
  0xb8   : > { %v5228_v11 = vpop.permute.xlu2 %509  ;;  %v5246_v34 = vmul.f32 %v5217_v63, %v5223_v9  ;;  %v1305_v48 = vadd.f32 %v1302_v30, %v1297_v59  ;;  %v8497_v44 = vstv %s5175_s19  ;;  %v338_v18 = vadd.f32 %v5033_v58, %v320_v29  ;;  %v5289_v29 = vld [vmem:[%s4510_s7 + $0x58] sm:$0x3] }
  0xb9   : > { %v8581_v10 = vrot.slane %v5092_v55, 2  ;;  %v5260_v23 = vmin.f32 %v1327_v17, %v4589_v43  ;;  %v358_v22 = vadd.f32 %v4996_v21, %v337_v14  ;;  %v5273_v58 = vsel %vm329_vm10, %v544_v50, %v545_v36 }
  0xba   : > { %1173 = vrot.lane.b32.xlu1 %v5030_v16, %s8493_s28  ;;  %1137 = vrot.lane.b32.xlu0 %v5044_v37, %s4422_s27  ;;  %v5268_v16 = vmul.f32 %v1338_v31, %v5223_v9  ;;  %v1352_v37 = vstv %s5190_s21  ;;  %v547_v40 = vrot.slane %v540_v49, 2  ;;  %v1313_v15 = vadd.f32 %v1310_v35, %v1305_v48  ;;  %s5303_s21 = sld [smem:[#allocation3 + $0xd5]] }
  0xbb   : > { %v5257_v42 = vsel %vm329_vm10, %v1227_v8, %v8581_v10  ;;  %8582 = vst [vmem:[#allocation23_spill] sm:$0xff] %v5260_v23  ;;  %v8583_v8 = vrot.slane %v5080_v57, 2  ;;  %v1384_v6 = vmul.f32 %v5217_v63, %v5260_v23  ;;  %v8495_v30 = vrot.slane %v5246_v34, 1 }
  0xbc   : > { %v374_v55 = vpop.permute.xlu1 %373  ;;  %v355_v51 = vpop.permute.xlu0 %354  ;;  %v1318_v57 = vmul.f32 %v5289_v29, %v5115_v1  ;;  %v5298_v52 = vmul.f32 %v1352_v37, %v5223_v9  ;;  %v1404_v17 = vstv %s5219_s30  ;;  %s5390_s30 = sld [smem:[#allocation3 + $0x26]] }
  0xbd   : > { %v5281_v21 = vsel %vm329_vm10, %v8583_v8, %v1251_v32  ;;  %v379_v3 = vadd.f32 %v374_v55, %v358_v22  ;;  %v359_v59 = vadd.f32 %v355_v51, %v338_v18  ;;  %v8584_v32 = vstv %s4933_s11  ;;  %s5337_s11 = sld [smem:[#allocation3 + $0x82]] }
  0xbe   : > { %1175 = vrot.lane.b32.xlu2 %v5168_v19, %s8493_s28  ;;  %v1321_v35 = vadd.f32 %v1318_v57, %v1313_v15  ;;  %v5309_v48 = vmul.f32 %v1404_v17, %v5223_v9  ;;  %s5311_s28 = sld [smem:[#allocation3 + $0xc5]]  ;;  %v1390_v18 = vrot.slane %v1384_v6, 1  ;;  %v1405_v55 = vmul.f32 %v1404_v17, %v5260_v23 }
  0xbf   : > { %v383_v49 = vadd.f32 %v8584_v32, %v379_v3  ;;  %v380_v1 = vadd.f32 %v5074_v5, %v359_v59  ;;  %v8585_v8 = vmov %v8584_v32  ;;  %v5329_v6 = vmul.f32 %v1338_v31, %v5260_v23 }
  0xc0   : > { %v5313_v19 = vpop.permute.xlu2 %566  ;;  %v1326_v5 = vadd.f32 %v5131_v56, %v1321_v35  ;;  %v8496_v15 = vrot.slane %v5309_v48, 1  ;;  %v5335_v56 = vsel %vm329_vm10, %v545_v36, %v547_v40  ;;  %v1411_v57 = vrot.slane %v1405_v55, 1 }
  0xc1   : > { %v385_v51 = vmax.f32 %v383_v49, 0.0  ;;  %v384_v3 = vadd.f32 %v8585_v8, %v380_v1  ;;  %v5340_v49 = vstv %s5276_s6  ;;  %v5345_v45 = vsel %vm269_vm9, %v1390_v18, %v8495_v30  ;;  %s5408_s6 = sld [smem:[#allocation3 + $0x36]] }
  0xc2   : > { %1196 = vrot.lane.b32.xlu1 %v5086_v24, %s4422_s27  ;;  %1194 = vrot.lane.b32.xlu0 %v5089_v38, %s4422_s27  ;;  %v1329_v38 = vmax.f32 %v1326_v5, 0.0  ;;  %v5348_v36 = vmul.f32 %v1352_v37, %v5260_v23  ;;  %v5353_v40 = vsel %vm269_vm9, %v1411_v57, %v8496_v15  ;;  %v668_v35 = vstv %s5285_s8  ;;  %s5490_s8 = sld [smem:[#allocation3 + $0xe2]] }
  0xc3   : > { %v387_v24 = vmin.f32 %v385_v51, 6.0  ;;  %v386_v32 = vmax.f32 %v384_v3, 0.0  ;;  %v8586_v55 = vstv %s4942_s12  ;;  %v8587_v8 = vstv %s4951_s0 }
  0xc4   : > { %v458_v31 = vpop.permute.xlu1 %457  ;;  %v456_v1 = vpop.permute.xlu0 %455  ;;  %v5366_v18 = vmul.f32 %v5056_v54, %v5340_v49  ;;  %v5369_v37 = vstv %s5293_s10  ;;  %v8588_v5 = vstv %s5025_s4  ;;  %v5387_v50 = vstv %s5303_s21  ;;  %s5500_s10 = sld [smem:[#allocation3 + $0xf8]] }
  0xc5   : > { %v5358_v51 = vmul.f32 %v8586_v55, %v387_v24  ;;  %v5362_v3 = vmul.f32 %v8587_v8, %v387_v24  ;;  %v5373_v59 = vmul.f32 %v8588_v5, %v387_v24  ;;  %v388_v57 = vmin.f32 %v386_v32, 6.0  ;;  %s5510_s21 = sld [smem:[#allocation3 + $0xf9]] }
  0xc6   : > { %v461_v22 = vadd.f32 %v456_v1, %v5101_v33  ;;  %1232 = vrot.lane.b32.xlu2 %v5257_v42, %s8589_s9  ;;  %v5379_v55 = vmin.f32 %v1329_v38, %v4611_v61  ;;  %v5383_v8 = vmul.f32 %v8497_v44, %v387_v24  ;;  %v462_v10 = vadd.f32 %v458_v31, %v5151_v27 }
  0xc7   : > { %v1442_v14 = vstv %s5311_s28  ;;  %v8590_v5 = vstv %s4942_s12  ;;  %v8591_v33 = vstv %s4951_s0  ;;  %v5403_v24 = vmul.f32 %v668_v35, %v4730_v12  ;;  %s5416_s28 = sld [smem:[#allocation3 + $0x46]] }
  0xc8   : > { %v5394_v32 = vmul.f32 %v8590_v5, %v388_v57  ;;  %v5398_v1 = vmul.f32 %v8591_v33, %v388_v57  ;;  %v5400_v42 = vpop.permute.xlu2 %589  ;;  %v5406_v27 = vmul.f32 %v668_v35, %v4733_v13  ;;  %v475_v38 = vadd.f32 %v5154_v20, %v461_v22  ;;  %s5436_s12 = sld [smem:[#allocation3 + $0x66]] }
  0xc9   : > { %v1407_v31 = vmul.f32 %v1404_v17, %v5379_v55  ;;  %v1386_v5 = vmul.f32 %v5217_v63, %v5379_v55  ;;  %v1464_v33 = vmul.f32 %v5387_v50, %v5260_v23  ;;  %v5424_v20 = vmul.f32 %v5387_v50, %v5223_v9  ;;  %s5444_s0 = sld [smem:[#allocation3 + $0xb2]] }
  0xca   : > { %8592 = vst [vmem:[#allocation24_spill] sm:$0xff] %v5398_v1  ;;  %1253 = vrot.lane.b32.xlu1 %v5180_v26, %s4422_s27  ;;  %1234 = vrot.lane.b32.xlu0 %v5185_v53, %s8589_s9  ;;  %v5427_v17 = vmul.f32 %v1442_v14, %v5223_v9  ;;  %v1445_v63 = vmul.f32 %v1442_v14, %v5379_v55  ;;  %v700_v22 = vstv %s5337_s11  ;;  %v8593_v35 = vstv %s5025_s4  ;;  %s5465_s4 = sld [smem:[#allocation3 + $0x96]] }
  0xcb   : > { %v5433_v30 = vmul.f32 %v8593_v35, %v388_v57  ;;  %v492_v15 = vadd.f32 %v5239_v7, %v475_v38  ;;  %v1414_v44 = vrot.slane %v1407_v31, 1  ;;  %v1393_v26 = vrot.slane %v1386_v5, 1  ;;  %s5517_s11 = sld [smem:[#allocation3 + $0xfa]] }
  0xcc   : > { %v8595_v53 = vstv %s5175_s19  ;;  %v508_v41 = vpop.permute.xlu1 %507  ;;  %v472_v61 = vpop.permute.xlu0 %471  ;;  %v1470_v54 = vrot.slane %v1464_v33, 2  ;;  %v8507_v9 = vrot.slane %v5424_v20, 2  ;;  %v701_v1 = vmul.f32 %v700_v22, %v4733_v13  ;;  %s5480_s19 = sld [smem:[#allocation3 + $0x76]] }
  0xcd   : > { %8594 = vst [vmem:[#allocation25_spill] sm:$0xff] %v5433_v30  ;;  %v5440_v4 = vmul.f32 %v8595_v53, %v388_v57  ;;  %v513_v35 = vadd.f32 %v508_v41, %v492_v15  ;;  %v476_v30 = vadd.f32 %v472_v61, %v462_v10  ;;  %v1450_v7 = vrot.slane %v5427_v17, 2  ;;  %v8598_v53 = vld [vmem:[#allocation17_spill] sm:$0xff] }
  0xce   : > { %v1452_v38 = vrot.slane %v1445_v63, 2  ;;  %1255 = vrot.lane.b32.xlu2 %v5281_v21, %s4422_s27  ;;  %v8596_v57 = vrot.slane %v5309_v48, 1  ;;  %v8597_v5 = vrot.slane %v5246_v34, 1  ;;  %v702_v61 = vmul.f32 %v700_v22, %v4730_v12 }
  0xcf   : > { %v707_v41 = vrot.slane %v701_v1, 1  ;;  %v493_v10 = vadd.f32 %v5242_v25, %v476_v30  ;;  %v703_v15 = vmul.f32 %v700_v22, %v4754_v39  ;;  %v1443_v21 = vmul.f32 %v1442_v14, %v5260_v23 }
  0xd0   : > { %v5452_v31 = vsel %vm269_vm9, %v8596_v57, %v1414_v44  ;;  %v5457_v33 = vsel %vm269_vm9, %v8597_v5, %v1393_v26  ;;  %v1523_v48 = vmul.f32 %v5061_v62, %v5369_v37  ;;  %v5467_v44 = vpop.permute.xlu2 %691  ;;  %v5472_v34 = vsel %vm329_vm10, %v1470_v54, %v8507_v9 }
  0xd1   : > { %v708_v17 = vrot.slane %v702_v61, 1  ;;  %v5475_v1 = vstv %s5390_s30  ;;  %v5478_v25 = vstv %s5408_s6  ;;  %v514_v30 = vadd.f32 %v5228_v11, %v493_v10  ;;  %s5528_s30 = sld [smem:[#allocation3 + $0xfb]] }
  0xd2   : > { %v5484_v14 = vsel %vm329_vm10, %v1450_v7, %v1452_v38  ;;  %v1526_v63 = vadd.f32 %v1523_v48, %v5366_v18  ;;  %v5488_v22 = vstv %s5416_s28  ;;  %1345 = vrot.lane.b32.xlu1 %v5268_v16, %s8589_s9  ;;  %1343 = vrot.lane.b32.xlu0 %v5329_v6, %s8589_s9  ;;  %v710_v54 = vrot.slane %v703_v15, 1  ;;  %v8599_v16 = vld [vmem:[#allocation18_spill] sm:$0xff]  ;;  %v8600_v6 = vld [vmem:[#allocation19_spill] sm:$0xff]  ;;  %v8601_v48 = vld [vmem:[#allocation20_spill] sm:$0xff]  ;;  %s5538_s6 = sld [smem:[#allocation3 + $0xa6]] }
  0xd3   : > { %v1449_v26 = vrot.slane %v1443_v21, 2  ;;  %v1531_v11 = vmul.f32 %v5110_v47, %v5475_v1  ;;  %v1539_v38 = vmul.f32 %v8598_v53, %v5478_v25  ;;  %v5503_v18 = vsel %vm269_vm9, %v707_v41, %v708_v17  ;;  %s5562_s28 = sld [smem:[#allocation3 + $0x53]] }
  0xd4   : > { %v1517_v5 = vmul.f32 %v8599_v16, %v5340_v49  ;;  %v1522_v61 = vmul.f32 %v8600_v6, %v5369_v37  ;;  %v531_v10 = vpop.permute.xlu1 %530  ;;  %v529_v15 = vpop.permute.xlu0 %528  ;;  %v1530_v9 = vmul.f32 %v8601_v48, %v5475_v1  ;;  %v1538_v23 = vmul.f32 %v5159_v2, %v5478_v25 }
  0xd5   : > { %v1534_v21 = vadd.f32 %v1531_v11, %v1526_v63  ;;  %v759_v41 = vstv %s5444_s0  ;;  %v535_v57 = vadd.f32 %v531_v10, %v514_v30  ;;  %v534_v53 = vadd.f32 %v529_v15, %v513_v35  ;;  %s5570_s0 = sld [smem:[#allocation3 + $0x7]] }
  0xd6   : > { %v1525_v16 = vadd.f32 %v1522_v61, %v1517_v5  ;;  %v760_v47 = vmul.f32 %v759_v41, %v4733_v13  ;;  %1357 = vrot.lane.b32.xlu2 %v5348_v36, %s4422_s27  ;;  %v5523_v6 = vsel %vm269_vm9, %v708_v17, %v710_v54  ;;  %v761_v11 = vmul.f32 %v759_v41, %v4730_v12 }
  0xd7   : > { %v1542_v63 = vadd.f32 %v1539_v38, %v1534_v21  ;;  %v1466_v2 = vmul.f32 %v5387_v50, %v5379_v55  ;;  %v551_v35 = vadd.f32 %v5273_v58, %v534_v53  ;;  %v5532_v30 = vsel %vm329_vm10, %v1449_v26, %v1450_v7 }
  0xd8   : > { %v1533_v13 = vadd.f32 %v1530_v9, %v1525_v16  ;;  %v766_v36 = vrot.slane %v760_v47, 2  ;;  %v5534_v5 = vpop.permute.xlu2 %731  ;;  %v767_v54 = vrot.slane %v761_v11, 2  ;;  %v762_v38 = vmul.f32 %v759_v41, %v4754_v39 }
  0xd9   : > { %v1547_v17 = vadd.f32 %v5488_v22, %v1542_v63  ;;  %v1473_v12 = vrot.slane %v1466_v2, 2  ;;  %v572_v50 = vadd.f32 %v5313_v19, %v551_v35  ;;  %v552_v58 = vadd.f32 %v5335_v56, %v535_v57 }
  0xda   : > { %v1541_v7 = vadd.f32 %v1538_v23, %v1533_v13  ;;  %v5543_v26 = vstv %s5465_s4  ;;  %1395 = vrot.lane.b32.xlu1 %v5345_v45, %s8589_s9  ;;  %1359 = vrot.lane.b32.xlu0 %v5298_v52, %s4422_s27  ;;  %v1574_v39 = vstv %s5480_s19  ;;  %v769_v2 = vrot.slane %v762_v38, 2  ;;  %s5636_s4 = sld [smem:[#allocation3 + $0x83]] }
  0xdb   : > { %v1550_v47 = vmax.f32 %v1547_v17, 0.0  ;;  %v1519_v9 = vmul.f32 %v5203_v28, %v5340_v49  ;;  %v5554_v23 = vsel %vm329_vm10, %v766_v36, %v767_v54  ;;  %v8602_v56 = vrot.slane %v5424_v20, 2  ;;  %s5744_s19 = sld [smem:[#allocation3 + $0x67]] }
  0xdc   : > { %v1546_v19 = vadd.f32 %v5488_v22, %v1541_v7  ;;  %v588_v52 = vpop.permute.xlu1 %587  ;;  %v569_v57 = vpop.permute.xlu0 %568  ;;  %v1524_v41 = vmul.f32 %v5208_v0, %v5369_v37  ;;  %v5582_v35 = vsel %vm329_vm10, %v767_v54, %v769_v2  ;;  %v1532_v13 = vmul.f32 %v5234_v60, %v5475_v1 }
  0xdd   : > { %v5559_v53 = vsel %vm329_vm10, %v8602_v56, %v1473_v12  ;;  %v5565_v16 = vmin.f32 %v1550_v47, %v4591_v46  ;;  %v593_v20 = vadd.f32 %v588_v52, %v572_v50  ;;  %v573_v15 = vadd.f32 %v569_v57, %v552_v58 }
  0xde   : > { %v1549_v21 = vmax.f32 %v1546_v19, 0.0  ;;  %1397 = vrot.lane.b32.xlu2 %v5457_v33, %s8589_s9  ;;  %v8604_v36 = vstv %s5196_s23  ;;  %v1527_v33 = vadd.f32 %v1524_v41, %v1519_v9  ;;  %v8606_v50 = vstv %s5436_s12  ;;  %s5628_s23 = sld [smem:[#allocation3 + $0xd6]] }
  0xdf   : > { %8603 = vst [vmem:[#allocation20_spill] sm:$0xff] %v5565_v16  ;;  %v5578_v63 = vmul.f32 %v5543_v26, %v5565_v16  ;;  %v597_v17 = vadd.f32 %v8604_v36, %v593_v20  ;;  %v594_v37 = vadd.f32 %v5400_v42, %v573_v15  ;;  %v5597_v58 = vmul.f32 %v8606_v50, %v5565_v16  ;;  %s5632_s12 = sld [smem:[#allocation3 + $0xc6]] }
  0xe0   : > { %v5590_v12 = vmin.f32 %v1549_v21, %v4589_v43  ;;  %v5592_v38 = vpop.permute.xlu2 %788  ;;  %v5600_v54 = vmul.f32 %v1574_v39, %v5565_v16  ;;  %v1540_v1 = vmul.f32 %v5289_v29, %v5478_v25  ;;  %v5605_v7 = vstv %s5538_s6  ;;  %s5750_s6 = sld [smem:[#allocation3 + $0xb3]] }
  0xe1   : > { %v599_v47 = vmax.f32 %v597_v17, 0.0  ;;  %v8607_v42 = vmov %v8604_v36  ;;  %v8608_v19 = vmov %v8606_v50  ;;  %v8512_v25 = vrot.slane %v5578_v63, 1 }
  0xe2   : > { %8605 = vst [vmem:[#allocation26_spill] sm:$0xff] %v5590_v12  ;;  %v598_v2 = vadd.f32 %v8607_v42, %v594_v37  ;;  %v5612_v9 = vmul.f32 %v8608_v19, %v5590_v12  ;;  %v1606_v56 = vmul.f32 %v5543_v26, %v5590_v12  ;;  %1418 = vrot.lane.b32.xlu1 %v5452_v31, %s4422_s27  ;;  %v890_v17 = vstv %s5562_s28  ;;  %s5753_s28 = sld [smem:[#allocation3 + $0x97]] }
  0xe3   : > { %1416 = vrot.lane.b32.xlu0 %v5353_v40, %s4422_s27  ;;  %v5622_v52 = vmul.f32 %v1574_v39, %v5590_v12  ;;  %v1535_v57 = vadd.f32 %v1532_v13, %v1527_v33  ;;  %v5626_v20 = vmul.f32 %v5605_v7, %v5565_v16  ;;  %v601_v31 = vmin.f32 %v599_v47, 6.0 }
  0xe4   : > { %v600_v15 = vmax.f32 %v598_v2, 0.0  ;;  %v1612_v40 = vrot.slane %v1606_v56, 1  ;;  %v1627_v21 = vmul.f32 %v5605_v7, %v5590_v12  ;;  %v680_v39 = vpop.permute.xlu1 %679  ;;  %v678_v41 = vpop.permute.xlu0 %677  ;;  %v5639_v37 = vstv %s5570_s0  ;;  %s5764_s0 = sld [smem:[#allocation3 + $0x77]] }
  0xe5   : > { %v1543_v13 = vadd.f32 %v1540_v1, %v1535_v57  ;;  %v8513_v36 = vrot.slane %v5626_v20, 1  ;;  %v8609_v33 = vstv %s5200_s29  ;;  %v8610_v47 = vstv %s5226_s3 }
  0xe6   : > { %v605_v50 = vmul.f32 %v8609_v33, %v601_v31  ;;  %v611_v42 = vmul.f32 %v8610_v47, %v601_v31  ;;  %v8611_v2 = vstv %s5230_s26  ;;  %v8612_v56 = vstv %s5262_s5  ;;  %1454 = vrot.lane.b32.xlu2 %v5532_v30, %s8589_s9  ;;  %s5726_s26 = sld [smem:[#allocation3 + $0x37]] }
  0xe7   : > { %v617_v19 = vmul.f32 %v8611_v2, %v601_v31  ;;  %v623_v11 = vmul.f32 %v8612_v56, %v601_v31  ;;  %v602_v1 = vmin.f32 %v600_v15, 6.0  ;;  %v684_v57 = vadd.f32 %v680_v39, %v5403_v24  ;;  %s5737_s5 = sld [smem:[#allocation3 + $0x47]] }
  0xe8   : > { %v683_v10 = vadd.f32 %v678_v41, %v5406_v27  ;;  %v5656_v61 = vsel %vm269_vm9, %v1612_v40, %v8512_v25  ;;  %v5659_v33 = vadd.f32 %v605_v50, %v5358_v51  ;;  %v5662_v47 = vadd.f32 %v611_v42, %v5362_v3  ;;  %v5678_v49 = vpop.permute.xlu2 %811  ;;  %v8617_v50 = vld [vmem:[#allocation10_spill] sm:$0xff]  ;;  %v8618_v42 = vld [vmem:[#allocation24_spill] sm:$0xff] }
  0xe9   : > { %v5665_v31 = vadd.f32 %v617_v19, %v5373_v59  ;;  %v5668_v24 = vadd.f32 %v623_v11, %v5383_v8  ;;  %v8613_v27 = vstv %s5200_s29  ;;  %v8614_v30 = vstv %s5226_s3  ;;  %s5710_s29 = sld [smem:[#allocation3 + $0x17]] }
  0xea   : > { %v606_v15 = vmul.f32 %v8613_v27, %v602_v1  ;;  %v612_v39 = vmul.f32 %v8614_v30, %v602_v1  ;;  %v8615_v41 = vmov %v8611_v2  ;;  %v8616_v40 = vmov %v8612_v56  ;;  %1475 = vrot.lane.b32.xlu1 %v5472_v34, %s4422_s27  ;;  %s5719_s3 = sld [smem:[#allocation3 + $0x27]] }
  0xeb   : > { %v618_v2 = vmul.f32 %v8615_v41, %v602_v1  ;;  %v624_v56 = vmul.f32 %v8616_v40, %v602_v1  ;;  %v697_v51 = vadd.f32 %v5467_v44, %v683_v10  ;;  %v1548_v3 = vadd.f32 %v5488_v22, %v1543_v13  ;;  %v8619_v1 = vld [vmem:[#allocation25_spill] sm:$0xff]  ;;  %1456 = vrot.lane.b32.xlu0 %v5484_v14, %s8589_s9  ;;  %v8621_v14 = vld [vmem:[#allocation15_spill] sm:$0xff]  ;;  %v8622_v40 = vld [vmem:[#allocation8_spill] sm:$0xff] }
  0xec   : > { %v1633_v59 = vrot.slane %v1627_v21, 1  ;;  %v5683_v8 = vmul.f32 %v890_v17, %v8617_v50  ;;  %v5686_v11 = vadd.f32 %v606_v15, %v5394_v32  ;;  %v5689_v19 = vadd.f32 %v612_v39, %v8618_v42  ;;  %v8620_v21 = vld [vmem:[#allocation11_spill] sm:$0xff]  ;;  %v694_v15 = vpop.permute.xlu0 %693 }
  0xed   : > { %v5692_v27 = vadd.f32 %v618_v2, %v8619_v1  ;;  %v5695_v44 = vadd.f32 %v624_v56, %v5440_v4  ;;  %v714_v22 = vadd.f32 %v5503_v18, %v697_v51  ;;  %v1551_v10 = vmax.f32 %v1548_v3, 0.0  ;;  %v730_v4 = vpop.permute.xlu1 %729 }
  0xee   : > { %v5705_v32 = vsel %vm269_vm9, %v1633_v59, %v8513_v36  ;;  %v5708_v13 = vmul.f32 %v890_v17, %v8620_v21  ;;  %v5713_v30 = vstv %s5628_s23  ;;  %v1664_v34 = vstv %s5632_s12  ;;  %1477 = vrot.lane.b32.xlu2 %v5559_v53, %s4422_s27  ;;  %s5782_s23 = sld [smem:[#allocation3 + $0xe3]] }
  0xef   : > { %v922_v39 = vstv %s5636_s4  ;;  %v1740_v18 = vmul.f32 %v8621_v14, %v5639_v37  ;;  %v735_v41 = vadd.f32 %v730_v4, %v714_v22  ;;  %v698_v2 = vadd.f32 %v694_v15, %v684_v57  ;;  %s5795_s12 = sld [smem:[#allocation3 + $0xfc]] }
  0xf0   : > { %v5722_v56 = vmin.f32 %v1551_v10, %v8622_v40  ;;  %v1686_v17 = vmul.f32 %v5713_v30, %v5590_v12  ;;  %v5732_v51 = vmul.f32 %v5713_v30, %v5565_v16  ;;  %v1666_v3 = vmul.f32 %v1664_v34, %v5565_v16  ;;  %v5746_v10 = vpop.permute.xlu2 %913  ;;  %s5807_s4 = sld [smem:[#allocation3 + $0xfd]] }
  0xf1   : > { %v923_v59 = vmul.f32 %v922_v39, %v8620_v21  ;;  %v924_v57 = vmul.f32 %v922_v39, %v8617_v50  ;;  %v715_v42 = vadd.f32 %v5523_v6, %v698_v2  ;;  %v1665_v36 = vmul.f32 %v1664_v34, %v5590_v12 }
  0xf2   : > { %8623 = vst [vmem:[#allocation10_spill] sm:$0xff] %v5722_v56  ;;  %v1629_v1 = vmul.f32 %v5605_v7, %v5722_v56  ;;  %v1608_v53 = vmul.f32 %v5543_v26, %v5722_v56  ;;  %v1692_v22 = vrot.slane %v1686_v17, 2  ;;  %v1693_v4 = vrot.slane %v5732_v51, 2  ;;  %1567 = vrot.lane.b32.xlu1 %v5597_v58, %s8589_s9 }
  0xf3   : > { %v1667_v15 = vmul.f32 %v1664_v34, %v5722_v56  ;;  %v1672_v14 = vrot.slane %v1666_v3, 2  ;;  %v929_v45 = vrot.slane %v923_v59, 1  ;;  %v736_v6 = vadd.f32 %v5534_v5, %v715_v42  ;;  %v8624_v3 = vld [vmem:[#allocation9_spill] sm:$0xff]  ;;  %1565 = vrot.lane.b32.xlu0 %v5612_v9, %s8589_s9 }
  0xf4   : > { %v1636_v7 = vrot.slane %v1629_v1, 1  ;;  %v1615_v2 = vrot.slane %v1608_v53, 1  ;;  %v930_v25 = vrot.slane %v924_v57, 1  ;;  %v5760_v26 = vsel %vm329_vm10, %v1692_v22, %v1693_v4  ;;  %v751_v53 = vpop.permute.xlu0 %750 }
  0xf5   : > { %v1674_v17 = vrot.slane %v1667_v15, 2  ;;  %v925_v59 = vmul.f32 %v922_v39, %v8624_v3  ;;  %v8625_v5 = vrot.slane %v5626_v20, 1  ;;  %v8626_v57 = vrot.slane %v5578_v63, 1  ;;  %v753_v1 = vpop.permute.xlu1 %752 }
  0xf6   : > { %v5777_v39 = vsel %vm269_vm9, %v929_v45, %v930_v25  ;;  %v5780_v34 = vstv %s5710_s29  ;;  %v1671_v22 = vrot.slane %v1665_v36, 2  ;;  %v757_v15 = vadd.f32 %v753_v1, %v736_v6  ;;  %1579 = vrot.lane.b32.xlu2 %v5622_v52, %s4422_s27  ;;  %s5816_s29 = sld [smem:[#allocation3 + $0xfe]] }
  0xf7   : > { %v5771_v58 = vsel %vm269_vm9, %v8625_v5, %v1636_v7  ;;  %v1616_v42 = vsel %vm269_vm9, %v8626_v57, %v1615_v2  ;;  %v5785_v9 = vsel %vm329_vm10, %v1672_v14, %v1674_v17  ;;  %v932_v20 = vrot.slane %v925_v59, 1  ;;  %v8628_v57 = vld [vmem:[#allocation17_spill] sm:$0xff] }
  0xf8   : > { %v1745_v63 = vmul.f32 %v5061_v62, %v5780_v34  ;;  %v756_v7 = vadd.f32 %v751_v53, %v735_v41  ;;  %v5790_v2 = vstv %s5719_s3  ;;  %v5793_v45 = vstv %s5726_s26  ;;  %v8627_v62 = vld [vmem:[#allocation16_spill] sm:$0xff]  ;;  %v8629_v53 = vld [vmem:[#allocation18_spill] sm:$0xff]  ;;  %s5825_s3 = sld [smem:[#allocation3 + $0xff]] }
  0xf9   : > { %v5800_v17 = vsel %vm269_vm9, %v930_v25, %v932_v20  ;;  %v5803_v36 = vsel %vm329_vm10, %v1671_v22, %v1672_v14  ;;  %v1753_v41 = vmul.f32 %v8627_v62, %v5790_v2  ;;  %v774_v5 = vadd.f32 %v5582_v35, %v757_v15  ;;  %v5818_v25 = vpop.permute.xlu2 %953  ;;  %v8631_v15 = vld [vmem:[#allocation21_spill] sm:$0xff]  ;;  %s5901_s26 = sld [smem:[#allocation3 + $0x54]] }
  0xfa   : > { %v1748_v59 = vadd.f32 %v1745_v63, %v1740_v18  ;;  %v773_v6 = vadd.f32 %v5554_v23, %v756_v7  ;;  %v1761_v52 = vmul.f32 %v8628_v57, %v5793_v45  ;;  %v5814_v1 = vstv %s5737_s5  ;;  %v8630_v23 = vld [vmem:[#allocation19_spill] sm:$0xff]  ;;  %1617 = vrot.lane.b32.xlu1 %v5656_v61, %s8589_s9  ;;  %s5911_s5 = sld [smem:[#allocation3 + $0xd7]] }
  0xfb   : > { %v1739_v20 = vmul.f32 %v8629_v53, %v5639_v37  ;;  %v1744_v35 = vmul.f32 %v8630_v23, %v5780_v34  ;;  %v1752_v63 = vmul.f32 %v8601_v48, %v5790_v2  ;;  %v1760_v7 = vmul.f32 %v8631_v15, %v5793_v45  ;;  %1581 = vrot.lane.b32.xlu0 %v5600_v54, %s4422_s27 }
  0xfc   : > { %v1756_v18 = vadd.f32 %v1753_v41, %v1748_v59  ;;  %v794_v22 = vadd.f32 %v5592_v38, %v773_v6  ;;  %v981_v59 = vstv %s5750_s6  ;;  %v1688_v48 = vmul.f32 %v5713_v30, %v5722_v56  ;;  %s5930_s6 = sld [smem:[#allocation3 + $0xc7]] }
  0xfd   : > { %v1747_v41 = vadd.f32 %v1744_v35, %v1739_v20  ;;  %v982_v57 = vmul.f32 %v981_v59, %v8620_v21  ;;  %v5837_v53 = vmul.f32 %v981_v59, %v8617_v50  ;;  %v5844_v38 = vstv %s5753_s28  ;;  %v810_v61 = vpop.permute.xlu1 %809  ;;  %s5944_s28 = sld [smem:[#allocation3 + $0x84]] }
  0xfe   : > { %v1764_v62 = vadd.f32 %v1761_v52, %v1756_v18  ;;  %v791_v52 = vpop.permute.xlu0 %790  ;;  %v815_v35 = vadd.f32 %v810_v61, %v794_v22  ;;  %v1695_v15 = vrot.slane %v1688_v48, 2  ;;  %1619 = vrot.lane.b32.xlu2 %v1616_v42, %s8589_s9  ;;  %v1741_v51 = vmul.f32 %v5203_v28, %v5639_v37 }
  0xff   : > { %v1755_v18 = vadd.f32 %v1752_v63, %v1747_v41  ;;  %v988_v50 = vrot.slane %v982_v57, 2  ;;  %v989_v20 = vrot.slane %v5837_v53, 2  ;;  %v795_v54 = vadd.f32 %v791_v52, %v774_v5 }
 0x100   : > { %v1769_v21 = vadd.f32 %v5814_v1, %v1764_v62  ;;  %v8632_v62 = vstv %s5490_s8  ;;  %v5864_v5 = vsel %vm329_vm10, %v1693_v4, %v1695_v15  ;;  %v984_v52 = vmul.f32 %v981_v59, %v8624_v3  ;;  %s5897_s8 = sld [smem:[#allocation3 + $0xa7]] }
 0x101   : > { %v1763_v23 = vadd.f32 %v1760_v7, %v1755_v18  ;;  %v5855_v14 = vsel %vm329_vm10, %v988_v50, %v989_v20  ;;  %v819_v41 = vadd.f32 %v8632_v62, %v815_v35  ;;  %v816_v22 = vadd.f32 %v5678_v49, %v795_v54  ;;  %v5867_v57 = vpop.permute.xlu2 %1010 }
 0x102   : > { %v1772_v6 = vmax.f32 %v1769_v21, 0.0  ;;  %v8634_v18 = vmov %v8632_v62  ;;  %v1746_v4 = vmul.f32 %v5208_v0, %v5780_v34  ;;  %1640 = vrot.lane.b32.xlu1 %v5771_v58, %s4422_s27  ;;  %v8636_v59 = vstv %s5764_s0 }
 0x103   : > { %v1768_v48 = vadd.f32 %v5814_v1, %v1763_v23  ;;  %v821_v21 = vmax.f32 %v819_v41, 0.0  ;;  %v820_v49 = vadd.f32 %v8634_v18, %v816_v22  ;;  %1638 = vrot.lane.b32.xlu0 %v5705_v32, %s4422_s27  ;;  %v991_v37 = vrot.slane %v984_v52, 2 }
 0x104   : > { %v5870_v7 = vmin.f32 %v1772_v6, %v4591_v46  ;;  %v8635_v6 = vstv %s5744_s19  ;;  %v1749_v58 = vadd.f32 %v1746_v4, %v1741_v51  ;;  %v1754_v41 = vmul.f32 %v5234_v60, %v5790_v2 }
 0x105   : > { %v1771_v23 = vmax.f32 %v1768_v48, 0.0  ;;  %v823_v28 = vmin.f32 %v821_v21, 6.0  ;;  %v822_v0 = vmax.f32 %v820_v49, 0.0  ;;  %v902_v34 = vpop.permute.xlu1 %901  ;;  %v1762_v22 = vmul.f32 %v5289_v29, %v5793_v45 }
 0x106   : > { %8633 = vst [vmem:[#allocation24_spill] sm:$0xff] %v5870_v7  ;;  %v5886_v50 = vmul.f32 %v8635_v6, %v5870_v7  ;;  %v5890_v3 = vmul.f32 %v5844_v38, %v5870_v7  ;;  %v5895_v35 = vmul.f32 %v8636_v59, %v5870_v7  ;;  %v900_v54 = vpop.permute.xlu0 %899  ;;  %v8638_v32 = vstv %s5500_s10  ;;  %1676 = vrot.lane.b32.xlu2 %v5803_v36, %s8589_s9  ;;  %s6019_s10 = sld [smem:[#allocation3 + $0x18]] }
 0x107   : > { %v5904_v15 = vmin.f32 %v1771_v23, %v4589_v43  ;;  %v827_v48 = vmul.f32 %v8638_v32, %v823_v28  ;;  %v8639_v52 = vstv %s5510_s21  ;;  %v8640_v18 = vstv %s5517_s11  ;;  %s6033_s21 = sld [smem:[#allocation3 + $0x28]] }
 0x108   : > { %v1835_v62 = vrot.slane %v5890_v3, 1  ;;  %v833_v21 = vmul.f32 %v8639_v52, %v823_v28  ;;  %v839_v49 = vmul.f32 %v8640_v18, %v823_v28  ;;  %v8641_v51 = vstv %s5528_s30  ;;  %s6037_s11 = sld [smem:[#allocation3 + $0x38]] }
 0x109   : > { %8637 = vst [vmem:[#allocation25_spill] sm:$0xff] %v5904_v15  ;;  %v845_v4 = vmul.f32 %v8641_v51, %v823_v28  ;;  %v824_v6 = vmin.f32 %v822_v0, 6.0  ;;  %v906_v60 = vadd.f32 %v902_v34, %v5683_v8  ;;  %v905_v2 = vadd.f32 %v900_v54, %v5708_v13  ;;  %s6045_s30 = sld [smem:[#allocation3 + $0x48]] }
 0x10a   : > { %v8642_v29 = vstv %s5744_s19  ;;  %v5933_v23 = vadd.f32 %v827_v48, %v5659_v33  ;;  %v5936_v59 = vadd.f32 %v833_v21, %v5662_v47  ;;  %v5939_v8 = vadd.f32 %v839_v49, %v5665_v31  ;;  %v5954_v48 = vpop.permute.xlu2 %1033  ;;  %s5956_s19 = sld [smem:[#allocation3 + $0x8]]  ;;  %1697 = vrot.lane.b32.xlu1 %v5760_v26, %s4422_s27 }
 0x10b   : > { %v5928_v45 = vmul.f32 %v8642_v29, %v5904_v15  ;;  %v5942_v13 = vadd.f32 %v845_v4, %v5668_v24  ;;  %v8643_v36 = vmov %v8638_v32  ;;  %v8644_v0 = vmov %v8639_v52  ;;  %1678 = vrot.lane.b32.xlu0 %v5785_v9, %s8589_s9 }
 0x10c   : > { %v828_v28 = vmul.f32 %v8643_v36, %v824_v6  ;;  %v834_v34 = vmul.f32 %v8644_v0, %v824_v6  ;;  %v8645_v54 = vmov %v8640_v18  ;;  %v8646_v52 = vmov %v8641_v51 }
 0x10d   : > { %v840_v32 = vmul.f32 %v8645_v54, %v824_v6  ;;  %v846_v33 = vmul.f32 %v8646_v52, %v824_v6  ;;  %v919_v47 = vadd.f32 %v5746_v10, %v905_v2  ;;  %v1828_v31 = vmul.f32 %v5844_v38, %v5904_v15  ;;  %v952_v6 = vpop.permute.xlu1 %951 }
 0x10e   : > { %v5964_v24 = vsel %vm329_vm10, %v989_v20, %v991_v37  ;;  %v8647_v21 = vstv %s5764_s0  ;;  %v5972_v49 = vadd.f32 %v828_v28, %v5686_v11  ;;  %v5975_v51 = vadd.f32 %v834_v34, %v5689_v19  ;;  %v916_v19 = vpop.permute.xlu0 %915  ;;  %1699 = vrot.lane.b32.xlu2 %v5864_v5, %s4422_s27  ;;  %v8648_v28 = vld [vmem:[#allocation12_spill] sm:$0xff]  ;;  %v8649_v34 = vld [vmem:[#allocation13_spill] sm:$0xff]  ;;  %s6063_s0 = sld [smem:[#allocation3 + $0x68]] }
 0x10f   : > { %v5969_v18 = vmul.f32 %v8647_v21, %v5904_v15  ;;  %v5978_v10 = vadd.f32 %v840_v32, %v5692_v27  ;;  %v5981_v53 = vadd.f32 %v846_v33, %v5695_v44  ;;  %v936_v20 = vadd.f32 %v5777_v39, %v919_v47 }
 0x110   : > { %v1834_v37 = vrot.slane %v1828_v31, 1  ;;  %v1757_v11 = vadd.f32 %v1754_v41, %v1749_v58  ;;  %v1848_v4 = vstv %s5897_s8  ;;  %v1112_v44 = vstv %s5901_s26  ;;  %s6065_s8 = sld [smem:[#allocation3 + $0xb4]] }
 0x111   : > { %v5990_v2 = vmul.f32 %v1848_v4, %v5870_v7  ;;  %v1849_v27 = vmul.f32 %v1848_v4, %v5904_v15  ;;  %v5995_v29 = vstv %s5911_s5  ;;  %v957_v36 = vadd.f32 %v952_v6, %v936_v20  ;;  %s6079_s26 = sld [smem:[#allocation3 + $0x98]] }
 0x112   : > { %v920_v26 = vadd.f32 %v916_v19, %v906_v60  ;;  %v6000_v39 = vsel %vm269_vm9, %v1834_v37, %v1835_v62  ;;  %v1765_v9 = vadd.f32 %v1762_v22, %v1757_v11  ;;  %v6006_v0 = vmul.f32 %v1112_v44, %v8648_v28  ;;  %v6021_v5 = vpop.permute.xlu2 %1135  ;;  %1789 = vrot.lane.b32.xlu1 %v5886_v50, %s8589_s9  ;;  %s6083_s5 = sld [smem:[#allocation3 + $0x78]] }
 0x113   : > { %v1856_v58 = vrot.slane %v5990_v2, 1  ;;  %v1855_v41 = vrot.slane %v1849_v27, 1  ;;  %v6009_v54 = vmul.f32 %v1112_v44, %v8649_v34  ;;  %v1908_v52 = vmul.f32 %v5995_v29, %v5904_v15  ;;  %v8650_v27 = vld [vmem:[#allocation14_spill] sm:$0xff]  ;;  %1787 = vrot.lane.b32.xlu0 %v5928_v45, %s8589_s9 }
 0x114   : > { %v937_v60 = vadd.f32 %v5800_v17, %v920_v26  ;;  %v1770_v32 = vadd.f32 %v5814_v1, %v1765_v9  ;;  %v6017_v22 = vmul.f32 %v5995_v29, %v5870_v7  ;;  %v1886_v47 = vstv %s5930_s6  ;;  %v6059_v9 = vld [vmem:[%s4510_s7 + $0x8] sm:$0xff]  ;;  %s6096_s6 = sld [smem:[#allocation3 + $0xe4]] }
 0x115   : > { %v6026_v33 = vsel %vm269_vm9, %v1855_v41, %v1856_v58  ;;  %v1144_v17 = vstv %s5944_s28  ;;  %v6031_v31 = vstv %s5956_s19  ;;  %v1914_v20 = vrot.slane %v1908_v52, 2  ;;  %s6110_s28 = sld [smem:[#allocation3 + $0x100]] }
 0x116   : > { %v958_v1 = vadd.f32 %v5818_v25, %v937_v60  ;;  %v1773_v21 = vmax.f32 %v1770_v32, 0.0  ;;  %v8514_v37 = vrot.slane %v6017_v22, 2  ;;  %v1888_v11 = vmul.f32 %v1886_v47, %v5870_v7  ;;  %v975_v60 = vpop.permute.xlu1 %974  ;;  %v973_v32 = vpop.permute.xlu0 %972  ;;  %1801 = vrot.lane.b32.xlu2 %v5969_v18, %s4422_s27  ;;  %s6128_s19 = sld [smem:[#allocation3 + $0x101]] }
 0x117   : > { %v1145_v6 = vmul.f32 %v1144_v17, %v8649_v34  ;;  %v1146_v19 = vmul.f32 %v1144_v17, %v8648_v28  ;;  %v1147_v44 = vmul.f32 %v1144_v17, %v8650_v27  ;;  %v1887_v26 = vmul.f32 %v1886_v47, %v5904_v15 }
 0x118   : > { %v6050_v25 = vmin.f32 %v1773_v21, %v8622_v40  ;;  %v6055_v50 = vsel %vm329_vm10, %v1914_v20, %v8514_v37  ;;  %v1962_v41 = vmul.f32 %v6059_v9, %v6031_v31  ;;  %v1894_v45 = vrot.slane %v1888_v11, 2 }
 0x119   : > { %v1151_v52 = vrot.slane %v1145_v6, 1  ;;  %v1152_v17 = vrot.slane %v1146_v19, 1  ;;  %v1154_v21 = vrot.slane %v1147_v44, 1  ;;  %v979_v61 = vadd.f32 %v975_v60, %v958_v1 }
 0x11a   : > { %8651 = vst [vmem:[#allocation11_spill] sm:$0xff] %v6050_v25  ;;  %v978_v20 = vadd.f32 %v973_v32, %v957_v36  ;;  %v1851_v42 = vmul.f32 %v1848_v4, %v6050_v25  ;;  %v1830_v63 = vmul.f32 %v5844_v38, %v6050_v25  ;;  %v1889_v30 = vmul.f32 %v1886_v47, %v6050_v25  ;;  %v6085_v18 = vpop.permute.xlu2 %1175 }
 0x11b   : > { %v6074_v11 = vsel %vm269_vm9, %v1151_v52, %v1152_v17  ;;  %v6077_v6 = vsel %vm269_vm9, %v1152_v17, %v1154_v21  ;;  %v1893_v1 = vrot.slane %v1887_v26, 2  ;;  %v996_v38 = vadd.f32 %v5964_v24, %v979_v61  ;;  %1839 = vrot.lane.b32.xlu1 %v6000_v39, %s8589_s9  ;;  %v6118_v24 = vld [vmem:[%s4510_s7 + $0x38] sm:$0xff]  ;;  %1803 = vrot.lane.b32.xlu0 %v5895_v35, %s4422_s27  ;;  %v6139_v52 = vld [vmem:[%s4510_s7] sm:$0xff] }
 0x11c   : > { %v995_v4 = vadd.f32 %v5855_v14, %v978_v20  ;;  %v1858_v36 = vrot.slane %v1851_v42, 1  ;;  %v1837_v19 = vrot.slane %v1830_v63, 1  ;;  %v1896_v47 = vrot.slane %v1889_v30, 2  ;;  %v6106_v42 = vld [vmem:[%s4510_s7 + $0x20] sm:$0xff]  ;;  %8652 = vst [vmem:[#allocation15_spill] sm:$0xff] %v6118_v24 }
 0x11d   : > { %v6088_v44 = vsel %vm329_vm10, %v1893_v1, %v1894_v45  ;;  %v6091_v26 = vstv %s6019_s10  ;;  %v6094_v60 = vstv %s6033_s21  ;;  %v6126_v2 = vstv %s6045_s30  ;;  %s6143_s10 = sld [smem:[#allocation3 + $0x102]]  ;;  %v6146_v1 = vld [vmem:[%s4510_s7 + $0x18] sm:$0xff] }
 0x11e   : > { %v1016_v14 = vadd.f32 %v5867_v57, %v995_v4  ;;  %v1859_v63 = vsel %vm269_vm9, %v1856_v58, %v1858_v36  ;;  %v1838_v30 = vsel %vm269_vm9, %v1835_v62, %v1837_v19  ;;  %v1967_v61 = vmul.f32 %v6106_v42, %v6091_v26  ;;  %v6133_v58 = vld [vmem:[%s4510_s7 + $0x50] sm:$0xff]  ;;  %v1032_v21 = vpop.permute.xlu1 %1031  ;;  %v1013_v20 = vpop.permute.xlu0 %1012  ;;  %v6156_v36 = vld [vmem:[%s4510_s7 + $0x48] sm:$0xff]  ;;  %s6161_s21 = sld [smem:[#allocation3 + $0x103]] }
 0x11f   : > { %v6115_v57 = vsel %vm329_vm10, %v1894_v45, %v1896_v47  ;;  %v1975_v3 = vmul.f32 %v6118_v24, %v6094_v60  ;;  %v6123_v62 = vstv %s6037_s11  ;;  %v1961_v17 = vmul.f32 %v6139_v52, %v6031_v31  ;;  %8653 = vst [vmem:[#allocation9_spill] sm:$0xff] %v6156_v36  ;;  %1841 = vrot.lane.b32.xlu2 %v1838_v30, %s8589_s9  ;;  %s6232_s11 = sld [smem:[#allocation3 + $0x55]] }
 0x120   : > { %v1970_v39 = vadd.f32 %v1967_v61, %v1962_v41  ;;  %v1983_v32 = vmul.f32 %v6133_v58, %v6123_v62  ;;  %v1966_v35 = vmul.f32 %v6146_v1, %v6091_v26  ;;  %v6151_v41 = vld [vmem:[%s4510_s7 + $0x30] sm:$0xff]  ;;  %v1982_v19 = vmul.f32 %v6156_v36, %v6123_v62  ;;  %s6244_s30 = sld [smem:[#allocation3 + $0xd8]] }
 0x121   : > { %v1974_v4 = vmul.f32 %v6151_v41, %v6094_v60  ;;  %v1203_v47 = vstv %s6065_s8  ;;  %v1037_v61 = vadd.f32 %v1032_v21, %v1016_v14  ;;  %v1017_v45 = vadd.f32 %v1013_v20, %v996_v38  ;;  %s6366_s8 = sld [smem:[#allocation3 + $0x39]] }
 0x122   : > { %v1978_v37 = vadd.f32 %v1975_v3, %v1970_v39  ;;  %v1204_v15 = vmul.f32 %v1203_v47, %v8649_v34  ;;  %v1969_v7 = vadd.f32 %v1966_v35, %v1961_v17  ;;  %v6166_v56 = vmul.f32 %v1203_v47, %v8648_v28  ;;  %v6176_v39 = vpop.permute.xlu2 %1232 }
 0x123   : > { %v1910_v12 = vmul.f32 %v5995_v29, %v6050_v25  ;;  %v6171_v16 = vstv %s6079_s26  ;;  %v8654_v36 = vstv %s5782_s23  ;;  %v1038_v38 = vadd.f32 %v5954_v48, %v1017_v45  ;;  %1862 = vrot.lane.b32.xlu1 %v1859_v63, %s4422_s27  ;;  %1860 = vrot.lane.b32.xlu0 %v6026_v33, %s4422_s27  ;;  %s6218_s23 = sld [smem:[#allocation3 + $0xa8]] }
 0x124   : > { %v1041_v14 = vadd.f32 %v8654_v36, %v1037_v61  ;;  %v1986_v3 = vadd.f32 %v1983_v32, %v1978_v37  ;;  %v1210_v34 = vrot.slane %v1204_v15, 2  ;;  %v1977_v30 = vadd.f32 %v1974_v4, %v1969_v7  ;;  %s6379_s26 = sld [smem:[#allocation3 + $0x49]] }
 0x125   : > { %v1211_v17 = vrot.slane %v6166_v56, 2  ;;  %v1917_v28 = vrot.slane %v1910_v12, 2  ;;  %v2018_v21 = vstv %s6083_s5  ;;  %v8655_v35 = vmov %v8654_v36  ;;  %s6387_s5 = sld [smem:[#allocation3 + $0x69]] }
 0x126   : > { %v1043_v20 = vmax.f32 %v1041_v14, 0.0  ;;  %v1042_v29 = vadd.f32 %v8655_v35, %v1038_v38  ;;  %v1991_v25 = vadd.f32 %v6126_v2, %v1986_v3  ;;  %v1985_v15 = vadd.f32 %v1982_v19, %v1977_v30  ;;  %v1124_v19 = vpop.permute.xlu1 %1123  ;;  %v1122_v61 = vpop.permute.xlu0 %1121 }
 0x127   : > { %v6188_v7 = vsel %vm329_vm10, %v1210_v34, %v1211_v17  ;;  %v8656_v12 = vrot.slane %v6017_v22, 2  ;;  %v1206_v22 = vmul.f32 %v1203_v47, %v8650_v27  ;;  %v8657_v34 = vstv %s5795_s12  ;;  %1898 = vrot.lane.b32.xlu2 %v6088_v44, %s8589_s9 }
 0x128   : > { %v1045_v32 = vmin.f32 %v1043_v20, 6.0  ;;  %v1044_v45 = vmax.f32 %v1042_v29, 0.0  ;;  %v1994_v63 = vmax.f32 %v1991_v25, 0.0  ;;  %v1990_v14 = vadd.f32 %v6126_v2, %v1985_v15 }
 0x129   : > { %v6193_v48 = vsel %vm329_vm10, %v8656_v12, %v1917_v28  ;;  %v8658_v28 = vstv %s5807_s4  ;;  %v8659_v35 = vstv %s5816_s29  ;;  %v8660_v33 = vstv %s5825_s3  ;;  %s6270_s4 = sld [smem:[#allocation3 + $0x85]] }
 0x12a   : > { %v1049_v30 = vmul.f32 %v8657_v34, %v1045_v32  ;;  %v1055_v20 = vmul.f32 %v8658_v28, %v1045_v32  ;;  %v1061_v29 = vmul.f32 %v8659_v35, %v1045_v32  ;;  %v1067_v25 = vmul.f32 %v8660_v33, %v1045_v32  ;;  %s6284_s29 = sld [smem:[#allocation3 + $0x9]] }
 0x12b   : > { %v1046_v12 = vmin.f32 %v1044_v45, 6.0  ;;  %v1128_v4 = vadd.f32 %v1124_v19, %v6006_v0  ;;  %v1127_v15 = vadd.f32 %v1122_v61, %v6009_v54  ;;  %v6216_v27 = vmin.f32 %v1994_v63, %v4591_v46  ;;  %1919 = vrot.lane.b32.xlu1 %v6055_v50, %s4422_s27  ;;  %1900 = vrot.lane.b32.xlu0 %v6115_v57, %s8589_s9  ;;  %v6287_v57 = vld [vmem:[%s4510_s7 + $0x10] sm:$0x3]  ;;  %s6331_s3 = sld [smem:[#allocation3 + $0x19]] }
 0x12c   : > { %v6221_v47 = vadd.f32 %v1049_v30, %v5933_v23  ;;  %v6224_v34 = vadd.f32 %v1055_v20, %v5936_v59  ;;  %v6227_v32 = vadd.f32 %v1061_v29, %v5939_v8  ;;  %v6230_v0 = vadd.f32 %v1067_v25, %v5942_v13  ;;  %v6242_v30 = vpop.permute.xlu2 %1255 }
 0x12d   : > { %8661 = vst [vmem:[#allocation16_spill] sm:$0xff] %v6216_v27  ;;  %v8662_v54 = vstv %s5795_s12  ;;  %v8663_v45 = vmov %v8658_v28  ;;  %v8664_v19 = vmov %v8659_v35  ;;  %v8665_v28 = vmov %v8660_v33  ;;  %s6254_s12 = sld [smem:[#allocation3 + $0xc8]] }
 0x12e   : > { %v1050_v44 = vmul.f32 %v8662_v54, %v1046_v12  ;;  %v1056_v63 = vmul.f32 %v8663_v45, %v1046_v12  ;;  %v1062_v61 = vmul.f32 %v8664_v19, %v1046_v12  ;;  %v1068_v23 = vmul.f32 %v8665_v28, %v1046_v12  ;;  %v1174_v50 = vpop.permute.xlu1 %1173 }
 0x12f   : > { %v1141_v59 = vadd.f32 %v6021_v5, %v1127_v15  ;;  %v8666_v8 = vstv %s6063_s0  ;;  %v1993_v20 = vmax.f32 %v1990_v14, 0.0  ;;  %v6252_v35 = vmul.f32 %v6171_v16, %v6216_v27  ;;  %v1138_v14 = vpop.permute.xlu0 %1137  ;;  %v6292_v15 = vld [vmem:[%s4510_s7 + $0x28] sm:$0x3]  ;;  %1921 = vrot.lane.b32.xlu2 %v6193_v48, %s4422_s27  ;;  %s6343_s0 = sld [smem:[#allocation3 + $0x29]] }
 0x130   : > { %v2006_v13 = vmul.f32 %v8666_v8, %v6216_v27  ;;  %v6257_v29 = vadd.f32 %v1050_v44, %v5972_v49  ;;  %v6260_v33 = vadd.f32 %v1056_v63, %v5975_v51  ;;  %v6263_v5 = vadd.f32 %v1062_v61, %v5978_v10  ;;  %v6297_v44 = vld [vmem:[%s4510_s7 + $0x40] sm:$0x3] }
 0x131   : > { %v6266_v25 = vadd.f32 %v1068_v23, %v5981_v53  ;;  %v1158_v49 = vadd.f32 %v6074_v11, %v1141_v59  ;;  %v6276_v51 = vmin.f32 %v1993_v20, %v4589_v43  ;;  %v8529_v10 = vrot.slane %v6252_v35, 1 }
 0x132   : > { %v6282_v53 = vmul.f32 %v2018_v21, %v6216_v27  ;;  %v1213_v12 = vrot.slane %v1206_v22, 2  ;;  %v1963_v11 = vmul.f32 %v6287_v57, %v6031_v31  ;;  %v1968_v54 = vmul.f32 %v6292_v15, %v6091_v26 }
 0x133   : > { %8667 = vst [vmem:[#allocation17_spill] sm:$0xff] %v6276_v51  ;;  %v1976_v45 = vmul.f32 %v6297_v44, %v6094_v60  ;;  %v1179_v63 = vadd.f32 %v1174_v50, %v1158_v49  ;;  %v1142_v19 = vadd.f32 %v1138_v14, %v1128_v4  ;;  %v8668_v22 = vmov %v8666_v8  ;;  %v6315_v60 = vld [vmem:[%s4510_s7 + $0x58] sm:$0x3]  ;;  %v8669_v50 = vld [vmem:[#allocation22_spill] sm:$0xff] }
 0x134   : > { %v2005_v61 = vmul.f32 %v8668_v22, %v6276_v51  ;;  %v2050_v31 = vmul.f32 %v6171_v16, %v6276_v51  ;;  %v1214_v26 = vsel %vm329_vm10, %v1211_v17, %v1213_v12  ;;  %v2019_v28 = vmul.f32 %v2018_v21, %v6276_v51  ;;  %v6322_v48 = vpop.permute.xlu2 %1357  ;;  %v8670_v12 = vld [vmem:[#allocation23_spill] sm:$0xff]  ;;  %2011 = vrot.lane.b32.xlu1 %v2006_v13, %s8589_s9 }
 0x135   : > { %v1971_v23 = vadd.f32 %v1968_v54, %v1963_v11  ;;  %v1984_v4 = vmul.f32 %v6315_v60, %v6123_v62  ;;  %v1159_v59 = vadd.f32 %v6077_v6, %v1142_v19  ;;  %v2070_v20 = vstv %s6218_s23  ;;  %s6398_s23 = sld [smem:[#allocation3 + $0xb5]] }
 0x136   : > { %v2056_v8 = vrot.slane %v2050_v31, 1  ;;  %v1334_v49 = vstv %s6232_s11  ;;  %v6325_v17 = vmul.f32 %v2070_v20, %v6216_v27  ;;  %v2071_v21 = vmul.f32 %v2070_v20, %v6276_v51  ;;  %2009 = vrot.lane.b32.xlu0 %v2005_v61, %s8589_s9  ;;  %s6408_s11 = sld [smem:[#allocation3 + $0x99]] }
 0x137   : > { %v1979_v56 = vadd.f32 %v1976_v45, %v1971_v23  ;;  %v6329_v14 = vmul.f32 %v1334_v49, %v8669_v50  ;;  %v1180_v6 = vadd.f32 %v6085_v18, %v1159_v59  ;;  %v6338_v11 = vmul.f32 %v1334_v49, %v8670_v12  ;;  %v1197_v49 = vpop.permute.xlu1 %1196  ;;  %v1195_v3 = vpop.permute.xlu0 %1194  ;;  %2023 = vrot.lane.b32.xlu2 %v2019_v28, %s4422_s27 }
 0x138   : > { %v2058_v62 = vsel %vm269_vm9, %v2056_v8, %v8529_v10  ;;  %v6341_v54 = vstv %s6244_s30  ;;  %v8530_v19 = vrot.slane %v6325_v17, 1  ;;  %v2077_v22 = vrot.slane %v2071_v21, 1  ;;  %s6422_s30 = sld [smem:[#allocation3 + $0x79]] }
 0x139   : > { %v1987_v45 = vadd.f32 %v1984_v4, %v1979_v56  ;;  %v2130_v18 = vmul.f32 %v6341_v54, %v6276_v51  ;;  %v6352_v31 = vmul.f32 %v6341_v54, %v6216_v27  ;;  %v2108_v23 = vstv %s6254_s12  ;;  %s6477_s12 = sld [smem:[#allocation3 + $0x104]] }
 0x13a   : > { %v1366_v59 = vstv %s6270_s4  ;;  %v6357_v8 = vstv %s6284_s29  ;;  %v6363_v4 = vsel %vm269_vm9, %v2077_v22, %v8530_v19  ;;  %v2110_v61 = vmul.f32 %v2108_v23, %v6216_v27  ;;  %s6487_s4 = sld [smem:[#allocation3 + $0x105]] }
 0x13b   : > { %v1992_v13 = vadd.f32 %v6126_v2, %v1987_v45  ;;  %v2136_v56 = vrot.slane %v2130_v18, 2  ;;  %v1201_v21 = vadd.f32 %v1197_v49, %v1180_v6  ;;  %v1200_v38 = vadd.f32 %v1195_v3, %v1179_v63  ;;  %s6491_s29 = sld [smem:[#allocation3 + $0x106]] }
 0x13c   : > { %v8531_v37 = vrot.slane %v6352_v31, 2  ;;  %v1367_v36 = vmul.f32 %v1366_v59, %v8670_v12  ;;  %v2116_v2 = vrot.slane %v2110_v61, 2  ;;  %v1368_v45 = vmul.f32 %v1366_v59, %v8669_v50  ;;  %v6381_v28 = vpop.permute.xlu2 %1397  ;;  %2061 = vrot.lane.b32.xlu1 %v2058_v62, %s8589_s9 }
 0x13d   : > { %v1995_v10 = vmax.f32 %v1992_v13, 0.0  ;;  %v1369_v22 = vmul.f32 %v1366_v59, %v5379_v55  ;;  %v1217_v18 = vadd.f32 %v6188_v7, %v1200_v38  ;;  %v1218_v19 = vadd.f32 %v1214_v26, %v1201_v21 }
 0x13e   : > { %v6377_v3 = vsel %vm329_vm10, %v2136_v56, %v8531_v37  ;;  %v1373_v63 = vrot.slane %v1367_v36, 1  ;;  %v1374_v49 = vrot.slane %v1368_v45, 1  ;;  %v2109_v59 = vmul.f32 %v2108_v23, %v6276_v51  ;;  %2025 = vrot.lane.b32.xlu0 %v6282_v53, %s4422_s27 }
 0x13f   : > { %v6384_v6 = vmin.f32 %v1995_v10, %v8622_v40  ;;  %v1376_v13 = vrot.slane %v1369_v22, 1  ;;  %v1238_v7 = vadd.f32 %v6176_v39, %v1217_v18  ;;  %v2184_v38 = vmul.f32 %v6059_v9, %v6357_v8  ;;  %v1235_v45 = vpop.permute.xlu0 %1234 }
 0x140   : > { %v6393_v26 = vstv %s6331_s3  ;;  %v6396_v36 = vstv %s6343_s0  ;;  %v6406_v39 = vsel %vm269_vm9, %v1373_v63, %v1374_v49  ;;  %v2115_v62 = vrot.slane %v2109_v59, 2  ;;  %s6506_s3 = sld [smem:[#allocation3 + $0x107]] }
 0x141   : > { %8671 = vst [vmem:[#allocation18_spill] sm:$0xff] %v6384_v6  ;;  %v2073_v10 = vmul.f32 %v2070_v20, %v6384_v6  ;;  %v2052_v56 = vmul.f32 %v6171_v16, %v6384_v6  ;;  %v2111_v61 = vmul.f32 %v2108_v23, %v6384_v6  ;;  %v6413_v21 = vsel %vm269_vm9, %v1374_v49, %v1376_v13  ;;  %v1254_v23 = vpop.permute.xlu1 %1253  ;;  %s6522_s0 = sld [smem:[#allocation3 + $0xa9]] }
 0x142   : > { %v2189_v20 = vmul.f32 %v6106_v42, %v6393_v26  ;;  %v2197_v16 = vmul.f32 %v6118_v24, %v6396_v36  ;;  %v6420_v37 = vstv %s6366_s8  ;;  %v1259_v53 = vadd.f32 %v1254_v23, %v1238_v7  ;;  %s6608_s8 = sld [smem:[#allocation3 + $0xa]] }
 0x143   : > { %v2080_v22 = vrot.slane %v2073_v10, 1  ;;  %v2059_v18 = vrot.slane %v2052_v56, 1  ;;  %v2118_v63 = vrot.slane %v2111_v61, 2  ;;  %v1239_v49 = vadd.f32 %v1235_v45, %v1218_v19 }
 0x144   : > { %v2117_v13 = vsel %vm329_vm10, %v2115_v62, %v2116_v2  ;;  %v2192_v59 = vadd.f32 %v2189_v20, %v2184_v38  ;;  %v8672_v51 = vrot.slane %v6325_v17, 1  ;;  %v8673_v10 = vrot.slane %v6252_v35, 1  ;;  %v6443_v35 = vpop.permute.xlu2 %1454 }
 0x145   : > { %v6432_v61 = vsel %vm329_vm10, %v2116_v2, %v2118_v63  ;;  %v2205_v24 = vmul.f32 %v6133_v58, %v6420_v37  ;;  %v8674_v7 = vstv %s6096_s6  ;;  %v1260_v38 = vadd.f32 %v6242_v30, %v1239_v49  ;;  %s6470_s6 = sld [smem:[#allocation3 + $0xe5]] }
 0x146   : > { %v2081_v27 = vsel %vm269_vm9, %v8672_v51, %v2080_v22  ;;  %v2060_v56 = vsel %vm269_vm9, %v8673_v10, %v2059_v18  ;;  %v1263_v19 = vadd.f32 %v8674_v7, %v1259_v53  ;;  %v2200_v17 = vadd.f32 %v2197_v16, %v2192_v59  ;;  %v8676_v16 = vld [vmem:[#allocation9_spill] sm:$0xff]  ;;  %2082 = vrot.lane.b32.xlu0 %v6363_v4, %s4422_s27 }
 0x147   : > { %2063 = vrot.lane.b32.xlu2 %v2060_v56, %s8589_s9  ;;  %v6441_v51 = vstv %s6379_s26  ;;  %v2183_v2 = vmul.f32 %v6139_v52, %v6357_v8  ;;  %v2188_v20 = vmul.f32 %v6146_v1, %v6393_v26  ;;  %v2196_v23 = vmul.f32 %v6151_v41, %v6396_v36  ;;  %2084 = vrot.lane.b32.xlu1 %v2081_v27, %s4422_s27  ;;  %s6619_s26 = sld [smem:[#allocation3 + $0x1a]] }
 0x148   : > { %v1265_v45 = vmax.f32 %v1263_v19, 0.0  ;;  %v8675_v30 = vmov %v8674_v7  ;;  %v2208_v18 = vadd.f32 %v2205_v24, %v2200_v17  ;;  %v2204_v63 = vmul.f32 %v8676_v16, %v6420_v37 }
 0x149   : > { %v1264_v22 = vadd.f32 %v8675_v30, %v1260_v38  ;;  %v2191_v53 = vadd.f32 %v2188_v20, %v2183_v2  ;;  %v6458_v49 = vstv %s6398_s23  ;;  %v2132_v59 = vmul.f32 %v6341_v54, %v6384_v6  ;;  %v1346_v19 = vpop.permute.xlu1 %1345  ;;  %v1344_v38 = vpop.permute.xlu0 %1343  ;;  %s6645_s23 = sld [smem:[#allocation3 + $0x3a]] }
 0x14a   : > { %v6463_v10 = vstv %s6408_s11  ;;  %v1267_v56 = vmin.f32 %v1265_v45, 6.0  ;;  %v2213_v27 = vadd.f32 %v6441_v51, %v2208_v18  ;;  %v1426_v7 = vmul.f32 %v6458_v49, %v8670_v12  ;;  %s6660_s11 = sld [smem:[#allocation3 + $0x4a]] }
 0x14b   : > { %v1266_v24 = vmax.f32 %v1264_v22, 0.0  ;;  %v2199_v54 = vadd.f32 %v2196_v23, %v2191_v53  ;;  %v6474_v17 = vmul.f32 %v6458_v49, %v8669_v50  ;;  %v2139_v2 = vrot.slane %v2132_v59, 2 }
 0x14c   : > { %v2240_v20 = vstv %s6422_s30  ;;  %v8677_v45 = vstv %s6110_s28  ;;  %v8678_v30 = vstv %s6128_s19  ;;  %v8679_v18 = vstv %s6143_s10  ;;  %s6667_s30 = sld [smem:[#allocation3 + $0x6a]] }
 0x14d   : > { %v1271_v4 = vmul.f32 %v8677_v45, %v1267_v56  ;;  %v1277_v22 = vmul.f32 %v8678_v30, %v1267_v56  ;;  %v1283_v12 = vmul.f32 %v8679_v18, %v1267_v56  ;;  %v8680_v62 = vstv %s6161_s21 }
 0x14e   : > { %v1289_v6 = vmul.f32 %v8680_v62, %v1267_v56  ;;  %v1268_v50 = vmin.f32 %v1266_v24, 6.0  ;;  %v1350_v23 = vadd.f32 %v1346_v19, %v6329_v14  ;;  %v1349_v53 = vadd.f32 %v1344_v38, %v6338_v11  ;;  %v6516_v38 = vpop.permute.xlu2 %1477  ;;  %2122 = vrot.lane.b32.xlu0 %v6432_v61, %s8589_s9 }
 0x14f   : > { %v2216_v59 = vmax.f32 %v2213_v27, 0.0  ;;  %v6494_v45 = vadd.f32 %v1271_v4, %v6221_v47  ;;  %v6497_v30 = vadd.f32 %v1277_v22, %v6224_v34  ;;  %v6500_v18 = vadd.f32 %v1283_v12, %v6227_v32  ;;  %2120 = vrot.lane.b32.xlu2 %v2117_v13, %s8589_s9  ;;  %2141 = vrot.lane.b32.xlu1 %v6377_v3, %s4422_s27 }
 0x150   : > { %v6503_v62 = vadd.f32 %v1289_v6, %v6230_v0  ;;  %v8681_v14 = vstv %s6110_s28  ;;  %v8682_v56 = vstv %s6128_s19  ;;  %v8683_v27 = vstv %s6143_s10  ;;  %s6538_s28 = sld [smem:[#allocation3 + $0x56]] }
 0x151   : > { %v1272_v11 = vmul.f32 %v8681_v14, %v1268_v50  ;;  %v1278_v24 = vmul.f32 %v8682_v56, %v1268_v50  ;;  %v1284_v47 = vmul.f32 %v8683_v27, %v1268_v50  ;;  %v8684_v19 = vstv %s6161_s21  ;;  %s6561_s19 = sld [smem:[#allocation3 + $0xd9]] }
 0x152   : > { %v1290_v34 = vmul.f32 %v8684_v19, %v1268_v50  ;;  %v1363_v32 = vadd.f32 %v6322_v48, %v1349_v53  ;;  %v6520_v0 = vmin.f32 %v2216_v59, %v4591_v46  ;;  %v2207_v6 = vadd.f32 %v2204_v63, %v2199_v54  ;;  %v1360_v54 = vpop.permute.xlu0 %1359  ;;  %s6568_s10 = sld [smem:[#allocation3 + $0xc9]] }
 0x153   : > { %v1432_v13 = vrot.slane %v1426_v7, 2  ;;  %v6525_v4 = vadd.f32 %v1272_v11, %v6257_v29  ;;  %v6528_v22 = vadd.f32 %v1278_v24, %v6260_v33  ;;  %v6531_v12 = vadd.f32 %v1284_v47, %v6263_v5  ;;  %v1396_v7 = vpop.permute.xlu1 %1395  ;;  %s6578_s21 = sld [smem:[#allocation3 + $0x86]] }
 0x154   : > { %v6534_v48 = vadd.f32 %v1290_v34, %v6266_v25  ;;  %v1380_v29 = vadd.f32 %v6406_v39, %v1363_v32  ;;  %v8685_v63 = vstv %s6387_s5  ;;  %v2212_v5 = vadd.f32 %v6441_v51, %v2207_v6  ;;  %s6625_s5 = sld [smem:[#allocation3 + $0x2a]] }
 0x155   : > { %v2228_v33 = vmul.f32 %v8685_v63, %v6520_v0  ;;  %v1433_v25 = vrot.slane %v6474_v17, 2  ;;  %v8686_v3 = vrot.slane %v6352_v31, 2  ;;  %v6553_v61 = vmul.f32 %v6463_v10, %v6520_v0 }
 0x156   : > { %v6558_v39 = vmul.f32 %v2240_v20, %v6520_v0  ;;  %v1484_v53 = vstv %s6470_s6  ;;  %v1401_v59 = vadd.f32 %v1396_v7, %v1380_v29  ;;  %v1364_v17 = vadd.f32 %v1360_v54, %v1350_v23  ;;  %v6580_v34 = vpop.permute.xlu2 %1579  ;;  %s6716_s6 = sld [smem:[#allocation3 + $0x9a]] }
 0x157   : > { %v2140_v50 = vsel %vm329_vm10, %v8686_v3, %v2139_v2  ;;  %v2215_v14 = vmax.f32 %v2212_v5, 0.0  ;;  %v1434_v11 = vsel %vm329_vm10, %v1432_v13, %v1433_v25  ;;  %v8540_v31 = vrot.slane %v6553_v61, 1  ;;  %2233 = vrot.lane.b32.xlu1 %v2228_v33, %s8589_s9 }
 0x158   : > { %v1381_v27 = vadd.f32 %v6413_v21, %v1364_v17  ;;  %2143 = vrot.lane.b32.xlu2 %v2140_v50, %s4422_s27  ;;  %v1428_v19 = vmul.f32 %v6458_v49, %v5379_v55  ;;  %v2185_v32 = vmul.f32 %v6287_v57, %v6357_v8  ;;  %v2190_v21 = vmul.f32 %v6292_v15, %v6393_v26 }
 0x159   : > { %v6572_v47 = vmin.f32 %v2215_v14, %v4589_v43  ;;  %v2198_v6 = vmul.f32 %v6297_v44, %v6396_v36  ;;  %v2206_v13 = vmul.f32 %v6315_v60, %v6420_v37  ;;  %v8687_v29 = vmov %v8685_v63  ;;  %v8688_v14 = vld [vmem:[#allocation20_spill] sm:$0xff] }
 0x15a   : > { %v1402_v55 = vadd.f32 %v6381_v28, %v1381_v27  ;;  %v1435_v5 = vrot.slane %v1428_v19, 2  ;;  %v2193_v26 = vadd.f32 %v2190_v21, %v2185_v32  ;;  %v2292_v36 = vstv %s6522_s0  ;;  %v1417_v50 = vpop.permute.xlu0 %1416  ;;  %v8689_v27 = vld [vmem:[#allocation26_spill] sm:$0xff]  ;;  %s6707_s0 = sld [smem:[#allocation3 + $0xb6]] }
 0x15b   : > { %v2227_v63 = vmul.f32 %v8687_v29, %v6572_v47  ;;  %v2272_v49 = vmul.f32 %v6463_v10, %v6572_v47  ;;  %v2241_v8 = vmul.f32 %v2240_v20, %v6572_v47  ;;  %v1556_v7 = vstv %s6538_s28  ;;  %v1419_v33 = vpop.permute.xlu1 %1418  ;;  %s6724_s28 = sld [smem:[#allocation3 + $0x7a]] }
 0x15c   : > { %v1436_v54 = vsel %vm329_vm10, %v1433_v25, %v1435_v5  ;;  %v6605_v28 = vmul.f32 %v2292_v36, %v6520_v0  ;;  %v2293_v3 = vmul.f32 %v2292_v36, %v6572_v47  ;;  %v2201_v17 = vadd.f32 %v2198_v6, %v2193_v26 }
 0x15d   : > { %2231 = vrot.lane.b32.xlu0 %v2227_v63, %s8589_s9  ;;  %v2278_v37 = vrot.slane %v2272_v49, 1  ;;  %v6611_v20 = vmul.f32 %v1556_v7, %v8688_v14  ;;  %v6614_v19 = vmul.f32 %v1556_v7, %v8689_v27  ;;  %v6617_v32 = vstv %s6561_s19  ;;  %s6736_s19 = sld [smem:[#allocation3 + $0xe6]] }
 0x15e   : > { %v1423_v25 = vadd.f32 %v1419_v33, %v1402_v55  ;;  %v1422_v21 = vadd.f32 %v1417_v50, %v1401_v59  ;;  %v2300_v6 = vrot.slane %v6605_v28, 1  ;;  %v2209_v63 = vadd.f32 %v2206_v13, %v2201_v17 }
 0x15f   : > { %v2280_v29 = vsel %vm269_vm9, %v2278_v37, %v8540_v31  ;;  %v2299_v49 = vrot.slane %v2293_v3, 1  ;;  %v2352_v5 = vmul.f32 %v6617_v32, %v6572_v47  ;;  %v6631_v26 = vmul.f32 %v6617_v32, %v6520_v0  ;;  %v6636_v37 = vpop.permute.xlu2 %1619 }
 0x160   : > { %v1439_v7 = vadd.f32 %v1434_v11, %v1422_v21  ;;  %v1440_v55 = vadd.f32 %v1436_v54, %v1423_v25  ;;  %2245 = vrot.lane.b32.xlu2 %v2241_v8, %s4422_s27  ;;  %v2330_v59 = vstv %s6568_s10  ;;  %v1588_v33 = vstv %s6578_s21  ;;  %2283 = vrot.lane.b32.xlu1 %v2280_v29, %s8589_s9  ;;  %v8690_v25 = vld [vmem:[#allocation10_spill] sm:$0xff]  ;;  %s6750_s10 = sld [smem:[#allocation3 + $0x108]] }
 0x161   : > { %v2214_v28 = vadd.f32 %v6441_v51, %v2209_v63  ;;  %v2301_v13 = vsel %vm269_vm9, %v2299_v49, %v2300_v6  ;;  %v2358_v3 = vrot.slane %v2352_v5, 2  ;;  %v8539_v50 = vrot.slane %v6631_v26, 2  ;;  %s6762_s21 = sld [smem:[#allocation3 + $0x109]] }
 0x162   : > { %v1460_v17 = vadd.f32 %v6443_v35, %v1439_v7  ;;  %v2332_v23 = vmul.f32 %v2330_v59, %v6520_v0  ;;  %v1589_v11 = vmul.f32 %v1588_v33, %v8689_v27  ;;  %v1590_v8 = vmul.f32 %v1588_v33, %v8688_v14 }
 0x163   : > { %v2217_v54 = vmax.f32 %v2214_v28, 0.0  ;;  %v6651_v51 = vsel %vm329_vm10, %v2358_v3, %v8539_v50  ;;  %v1591_v21 = vmul.f32 %v1588_v33, %v8690_v25  ;;  %v2331_v35 = vmul.f32 %v2330_v59, %v6572_v47  ;;  %v1476_v29 = vpop.permute.xlu1 %1475 }
 0x164   : > { %v2338_v63 = vrot.slane %v2332_v23, 2  ;;  %v1595_v49 = vrot.slane %v1589_v11, 1  ;;  %v1596_v5 = vrot.slane %v1590_v8, 1  ;;  %v6658_v7 = vstv %s6608_s8  ;;  %v1457_v23 = vpop.permute.xlu0 %1456  ;;  %s6826_s8 = sld [smem:[#allocation3 + $0xda]] }
 0x165   : > { %2247 = vrot.lane.b32.xlu0 %v6558_v39, %s4422_s27  ;;  %v6663_v28 = vmin.f32 %v2217_v54, %v8622_v40  ;;  %v1598_v33 = vrot.slane %v1591_v21, 1  ;;  %v2337_v3 = vrot.slane %v2331_v35, 2  ;;  %v2406_v50 = vmul.f32 %v6059_v9, %v6658_v7 }
 0x166   : > { %v1481_v39 = vadd.f32 %v1476_v29, %v1460_v17  ;;  %v6670_v11 = vsel %vm269_vm9, %v1595_v49, %v1596_v5  ;;  %v6673_v8 = vstv %s6619_s26  ;;  %v6676_v24 = vstv %s6625_s5  ;;  %s6831_s26 = sld [smem:[#allocation3 + $0xca]] }
 0x167   : > { %8691 = vst [vmem:[#allocation19_spill] sm:$0xff] %v6663_v28  ;;  %v1461_v56 = vadd.f32 %v1457_v23, %v1440_v55  ;;  %v2295_v54 = vmul.f32 %v2292_v36, %v6663_v28  ;;  %v2274_v21 = vmul.f32 %v6463_v10, %v6663_v28  ;;  %v2333_v9 = vmul.f32 %v2330_v59, %v6663_v28  ;;  %v6693_v2 = vpop.permute.xlu2 %1676  ;;  %s6837_s5 = sld [smem:[#allocation3 + $0x87]] }
 0x168   : > { %v1485_v17 = vadd.f32 %v1484_v53, %v1481_v39  ;;  %v6685_v35 = vsel %vm269_vm9, %v1596_v5, %v1598_v33  ;;  %v6688_v49 = vsel %vm329_vm10, %v2337_v3, %v2338_v63  ;;  %v2411_v55 = vmul.f32 %v6106_v42, %v6673_v8  ;;  %v8692_v39 = vld [vmem:[#allocation15_spill] sm:$0xff] }
 0x169   : > { %v1482_v29 = vadd.f32 %v6516_v38, %v1461_v56  ;;  %v2302_v36 = vrot.slane %v2295_v54, 1  ;;  %v2281_v23 = vrot.slane %v2274_v21, 1  ;;  %v2340_v10 = vrot.slane %v2333_v9, 2 }
 0x16a   : > { %v1487_v59 = vmax.f32 %v1485_v17, 0.0  ;;  %v2414_v31 = vadd.f32 %v2411_v55, %v2406_v50  ;;  %v2419_v5 = vmul.f32 %v8692_v39, %v6676_v24  ;;  %v6698_v33 = vstv %s6645_s23  ;;  %s6848_s23 = sld [smem:[#allocation3 + $0xb]] }
 0x16b   : > { %v1486_v3 = vadd.f32 %v1484_v53, %v1482_v29  ;;  %v2303_v42 = vsel %vm269_vm9, %v2300_v6, %v2302_v36  ;;  %v8693_v38 = vrot.slane %v6553_v61, 1  ;;  %v2341_v54 = vsel %vm329_vm10, %v2338_v63, %v2340_v10  ;;  %v1568_v21 = vpop.permute.xlu1 %1567 }
 0x16c   : > { %v1489_v50 = vmin.f32 %v1487_v59, 6.0  ;;  %2306 = vrot.lane.b32.xlu1 %v2303_v42, %s4422_s27  ;;  %v2422_v53 = vadd.f32 %v2419_v5, %v2414_v31  ;;  %v2427_v6 = vmul.f32 %v6133_v58, %v6698_v33  ;;  %v6714_v61 = vstv %s6660_s11  ;;  %v1566_v39 = vpop.permute.xlu0 %1565  ;;  %s6888_s11 = sld [smem:[#allocation3 + $0x1b]] }
 0x16d   : > { %v2282_v56 = vsel %vm269_vm9, %v8693_v38, %v2281_v23  ;;  %2304 = vrot.lane.b32.xlu0 %v2301_v13, %s4422_s27  ;;  %v1488_v63 = vmax.f32 %v1486_v3, 0.0  ;;  %v2448_v9 = vstv %s6667_s30  ;;  %v2405_v17 = vmul.f32 %v6139_v52, %v6658_v7  ;;  %s6908_s30 = sld [smem:[#allocation3 + $0x2b]] }
 0x16e   : > { %2285 = vrot.lane.b32.xlu2 %v2282_v56, %s8589_s9  ;;  %v2410_v55 = vmul.f32 %v6146_v1, %v6673_v8  ;;  %v8694_v31 = vstv %s6477_s12  ;;  %v8695_v13 = vstv %s6487_s4  ;;  %v8696_v36 = vstv %s6491_s29  ;;  %s6768_s12 = sld [smem:[#allocation3 + $0x10a]] }
 0x16f   : > { %v1493_v58 = vmul.f32 %v8694_v31, %v1489_v50  ;;  %v1499_v29 = vmul.f32 %v8695_v13, %v1489_v50  ;;  %v1505_v23 = vmul.f32 %v8696_v36, %v1489_v50  ;;  %v8697_v10 = vstv %s6506_s3  ;;  %s6782_s4 = sld [smem:[#allocation3 + $0x10b]] }
 0x170   : > { %v1511_v59 = vmul.f32 %v8697_v10, %v1489_v50  ;;  %v1490_v5 = vmin.f32 %v1488_v63, 6.0  ;;  %v1572_v52 = vadd.f32 %v1568_v21, %v6611_v20  ;;  %v1571_v1 = vadd.f32 %v1566_v39, %v6614_v19  ;;  %s6790_s29 = sld [smem:[#allocation3 + $0xaa]] }
 0x171   : > { %v2430_v3 = vadd.f32 %v2427_v6, %v2422_v53  ;;  %v6739_v42 = vadd.f32 %v1493_v58, %v6494_v45  ;;  %v6742_v38 = vadd.f32 %v1499_v29, %v6497_v30  ;;  %v6745_v56 = vadd.f32 %v1505_v23, %v6500_v18  ;;  %v6760_v58 = vpop.permute.xlu2 %1699  ;;  %s6801_s3 = sld [smem:[#allocation3 + $0x57]] }
 0x172   : > { %v6748_v50 = vadd.f32 %v1511_v59, %v6503_v62  ;;  %v8698_v20 = vmov %v8694_v31  ;;  %v8699_v19 = vmov %v8695_v13  ;;  %v8700_v6 = vmov %v8696_v36 }
 0x173   : > { %v1494_v63 = vmul.f32 %v8698_v20, %v1490_v5  ;;  %v1500_v53 = vmul.f32 %v8699_v19, %v1490_v5  ;;  %v1506_v21 = vmul.f32 %v8700_v6, %v1490_v5  ;;  %v8701_v31 = vmov %v8697_v10 }
 0x174   : > { %v1512_v45 = vmul.f32 %v8701_v31, %v1490_v5  ;;  %v1585_v30 = vadd.f32 %v6580_v34, %v1571_v1  ;;  %v2435_v18 = vadd.f32 %v6714_v61, %v2430_v3  ;;  %v2413_v62 = vadd.f32 %v2410_v55, %v2405_v17  ;;  %2363 = vrot.lane.b32.xlu1 %v6651_v51, %s4422_s27  ;;  %v1582_v10 = vpop.permute.xlu0 %1581 }
 0x175   : > { %v2418_v13 = vmul.f32 %v6151_v41, %v6676_v24  ;;  %v6771_v29 = vadd.f32 %v1494_v63, %v6525_v4  ;;  %v6774_v36 = vadd.f32 %v1500_v53, %v6528_v22  ;;  %v6777_v23 = vadd.f32 %v1506_v21, %v6531_v12  ;;  %2344 = vrot.lane.b32.xlu0 %v2341_v54, %s8589_s9  ;;  %v1618_v12 = vpop.permute.xlu1 %1617 }
 0x176   : > { %v6780_v34 = vadd.f32 %v1512_v45, %v6534_v48  ;;  %v1602_v41 = vadd.f32 %v6670_v11, %v1585_v30  ;;  %v2438_v4 = vmax.f32 %v2435_v18, 0.0  ;;  %v2426_v22 = vmul.f32 %v8676_v16, %v6698_v33  ;;  %2342 = vrot.lane.b32.xlu2 %v6688_v49, %s8589_s9 }
 0x177   : > { %v2421_v17 = vadd.f32 %v2418_v13, %v2413_v62  ;;  %v1647_v48 = vstv %s6707_s0  ;;  %v2354_v51 = vmul.f32 %v6617_v32, %v6663_v28  ;;  %v6798_v54 = vstv %s6716_s6  ;;  %s6955_s0 = sld [smem:[#allocation3 + $0x3b]] }
 0x178   : > { %v2462_v11 = vstv %s6724_s28  ;;  %v1623_v55 = vadd.f32 %v1618_v12, %v1602_v41  ;;  %v6804_v16 = vmin.f32 %v2438_v4, %v4591_v46  ;;  %v1648_v39 = vmul.f32 %v1647_v48, %v8689_v27  ;;  %s6965_s6 = sld [smem:[#allocation3 + $0x4b]] }
 0x179   : > { %v2429_v59 = vadd.f32 %v2426_v22, %v2421_v17  ;;  %v1586_v5 = vadd.f32 %v1582_v10, %v1572_v52  ;;  %v1649_v49 = vmul.f32 %v1647_v48, %v8688_v14  ;;  %v2361_v1 = vrot.slane %v2354_v51, 2  ;;  %v6821_v6 = vpop.permute.xlu2 %1801  ;;  %s6967_s28 = sld [smem:[#allocation3 + $0x6b]] }
 0x17a   : > { %8702 = vst [vmem:[#allocation21_spill] sm:$0xff] %v6804_v16  ;;  %v1706_v32 = vstv %s6736_s19  ;;  %v2450_v3 = vmul.f32 %v2448_v9, %v6804_v16  ;;  %v1654_v63 = vrot.slane %v1648_v39, 2  ;;  %v6815_v19 = vmul.f32 %v6798_v54, %v6804_v16  ;;  %s6977_s19 = sld [smem:[#allocation3 + $0xb7]] }
 0x17b   : > { %v2434_v20 = vadd.f32 %v6714_v61, %v2429_v59  ;;  %v1603_v27 = vadd.f32 %v6685_v35, %v1586_v5  ;;  %v1655_v52 = vrot.slane %v1649_v49, 2  ;;  %v8703_v14 = vrot.slane %v6631_v26, 2  ;;  %v8705_v5 = vld [vmem:[#allocation24_spill] sm:$0xff] }
 0x17c   : > { %v6824_v21 = vmul.f32 %v2462_v11, %v6804_v16  ;;  %v8542_v45 = vrot.slane %v6815_v19, 1  ;;  %v1714_v30 = vstv %s6750_s10  ;;  %v1720_v18 = vstv %s6762_s21  ;;  %2455 = vrot.lane.b32.xlu1 %v2450_v3, %s8589_s9  ;;  %s7021_s10 = sld [smem:[#allocation3 + $0x10c]] }
 0x17d   : > { %v2362_v53 = vsel %vm329_vm10, %v8703_v14, %v2361_v1  ;;  %v2437_v31 = vmax.f32 %v2434_v20, 0.0  ;;  %v1624_v35 = vadd.f32 %v6636_v37, %v1603_v27  ;;  %v1656_v26 = vsel %vm329_vm10, %v1654_v63, %v1655_v52  ;;  %v1641_v22 = vpop.permute.xlu1 %1640  ;;  %s7036_s21 = sld [smem:[#allocation3 + $0x10d]] }
 0x17e   : > { %v1726_v62 = vstv %s6768_s12  ;;  %v1732_v13 = vstv %s6782_s4  ;;  %v1650_v4 = vmul.f32 %v1647_v48, %v8690_v25  ;;  %v2407_v17 = vmul.f32 %v6287_v57, %v6658_v7  ;;  %2365 = vrot.lane.b32.xlu2 %v2362_v53, %s4422_s27  ;;  %v1639_v48 = vpop.permute.xlu0 %1638  ;;  %s7046_s12 = sld [smem:[#allocation3 + $0x10e]] }
 0x17f   : > { %v6841_v41 = vmin.f32 %v2437_v31, %v4589_v43  ;;  %v2412_v37 = vmul.f32 %v6292_v15, %v6673_v8  ;;  %v2420_v12 = vmul.f32 %v6297_v44, %v6676_v24  ;;  %v2428_v51 = vmul.f32 %v6315_v60, %v6698_v33  ;;  %s7062_s4 = sld [smem:[#allocation3 + $0x10f]] }
 0x180   : > { %v6856_v10 = vstv %s6790_s29  ;;  %v1778_v25 = vstv %s6801_s3  ;;  %v1645_v7 = vadd.f32 %v1641_v22, %v1624_v35  ;;  %v1657_v8 = vrot.slane %v1650_v4, 2  ;;  %s6984_s29 = sld [smem:[#allocation3 + $0x9b]] }
 0x181   : > { %8704 = vst [vmem:[#allocation12_spill] sm:$0xff] %v6841_v41  ;;  %v2449_v57 = vmul.f32 %v2448_v9, %v6841_v41  ;;  %v2494_v15 = vmul.f32 %v6798_v54, %v6841_v41  ;;  %v1644_v59 = vadd.f32 %v1639_v48, %v1623_v55  ;;  %v2463_v39 = vmul.f32 %v2462_v11, %v6841_v41  ;;  %v6876_v1 = vpop.permute.xlu2 %1841  ;;  %s6999_s3 = sld [smem:[#allocation3 + $0x7b]] }
 0x182   : > { %v2415_v44 = vadd.f32 %v2412_v37, %v2407_v17  ;;  %v6867_v60 = vmul.f32 %v6856_v10, %v6804_v16  ;;  %v1658_v33 = vsel %vm329_vm10, %v1655_v52, %v1657_v8  ;;  %v2515_v9 = vmul.f32 %v6856_v10, %v6841_v41  ;;  %v8706_v52 = vld [vmem:[#allocation25_spill] sm:$0xff] }
 0x183   : > { %2453 = vrot.lane.b32.xlu0 %v2449_v57, %s8589_s9  ;;  %v2500_v24 = vrot.slane %v2494_v15, 1  ;;  %v6874_v49 = vmul.f32 %v1778_v25, %v8705_v5  ;;  %v1661_v55 = vadd.f32 %v1656_v26, %v1644_v59  ;;  %v1662_v11 = vadd.f32 %v1658_v33, %v1645_v7 }
 0x184   : > { %v2423_v3 = vadd.f32 %v2420_v12, %v2415_v44  ;;  %v2522_v20 = vrot.slane %v6867_v60, 1  ;;  %v2521_v27 = vrot.slane %v2515_v9, 1  ;;  %v6883_v14 = vmul.f32 %v1778_v25, %v8706_v52  ;;  %v8707_v44 = vld [vmem:[#allocation11_spill] sm:$0xff] }
 0x185   : > { %v2502_v63 = vsel %vm269_vm9, %v2500_v24, %v8542_v45  ;;  %v6886_v53 = vstv %s6826_s8  ;;  %v1682_v31 = vadd.f32 %v6693_v2, %v1661_v55  ;;  %v2552_v37 = vstv %s6831_s26  ;;  %v1698_v2 = vpop.permute.xlu1 %1697  ;;  %s7013_s8 = sld [smem:[#allocation3 + $0xe7]] }
 0x186   : > { %v2431_v35 = vadd.f32 %v2428_v51, %v2423_v3  ;;  %v2574_v26 = vmul.f32 %v6886_v53, %v6841_v41  ;;  %v6895_v4 = vmul.f32 %v6886_v53, %v6804_v16  ;;  %2505 = vrot.lane.b32.xlu1 %v2502_v63, %s8589_s9  ;;  %v6901_v17 = vsel %vm269_vm9, %v2521_v27, %v2522_v20  ;;  %v1679_v15 = vpop.permute.xlu0 %1678  ;;  %s7094_s26 = sld [smem:[#allocation3 + $0xab]] }
 0x187   : > { %v1810_v22 = vstv %s6837_s5  ;;  %v6906_v12 = vstv %s6848_s23  ;;  %2467 = vrot.lane.b32.xlu2 %v2463_v39, %s4422_s27  ;;  %v6914_v7 = vmul.f32 %v2552_v37, %v6804_v16  ;;  %v1703_v48 = vadd.f32 %v1698_v2, %v1682_v31  ;;  %s7097_s5 = sld [smem:[#allocation3 + $0x58]] }
 0x188   : > { %v2436_v51 = vadd.f32 %v6714_v61, %v2431_v35  ;;  %v2580_v25 = vrot.slane %v2574_v26, 2  ;;  %v8541_v57 = vrot.slane %v6895_v4, 2  ;;  %v1811_v8 = vmul.f32 %v1810_v22, %v8706_v52  ;;  %s7106_s23 = sld [smem:[#allocation3 + $0xdb]] }
 0x189   : > { %v1812_v59 = vmul.f32 %v1810_v22, %v8705_v5  ;;  %v1813_v24 = vmul.f32 %v1810_v22, %v8707_v44  ;;  %v1683_v33 = vadd.f32 %v1679_v15, %v1662_v11  ;;  %v2560_v39 = vrot.slane %v6914_v7, 2  ;;  %v6933_v35 = vpop.permute.xlu2 %1898  ;;  %v6937_v22 = vld [vmem:[%s4510_s7 + $0x8] sm:$0xff] }
 0x18a   : > { %v2439_v9 = vmax.f32 %v2436_v51, 0.0  ;;  %v6922_v61 = vsel %vm329_vm10, %v2580_v25, %v8541_v57  ;;  %v1707_v55 = vadd.f32 %v1706_v32, %v1703_v48  ;;  %v1817_v3 = vrot.slane %v1811_v8, 1 }
 0x18b   : > { %2469 = vrot.lane.b32.xlu0 %v6824_v21, %s4422_s27  ;;  %v1818_v63 = vrot.slane %v1812_v59, 1  ;;  %v1820_v27 = vrot.slane %v1813_v24, 1  ;;  %v1704_v11 = vadd.f32 %v6760_v58, %v1683_v33  ;;  %v2553_v26 = vmul.f32 %v2552_v37, %v6841_v41  ;;  %v6958_v33 = vld [vmem:[%s4510_s7 + $0x20] sm:$0xff] }
 0x18c   : > { %v6931_v31 = vmin.f32 %v2439_v9, %v8622_v40  ;;  %v2628_v21 = vmul.f32 %v6937_v22, %v6906_v12  ;;  %v1709_v2 = vmax.f32 %v1707_v55, 0.0  ;;  %v6946_v58 = vstv %s6888_s11  ;;  %s7137_s11 = sld [smem:[#allocation3 + $0xcb]] }
 0x18d   : > { %v1819_v51 = vsel %vm269_vm9, %v1817_v3, %v1818_v63  ;;  %v6943_v25 = vsel %vm269_vm9, %v1818_v63, %v1820_v27  ;;  %v1708_v7 = vadd.f32 %v1706_v32, %v1704_v11  ;;  %v2559_v24 = vrot.slane %v2553_v26, 2  ;;  %v1790_v55 = vpop.permute.xlu1 %1789 }
 0x18e   : > { %8708 = vst [vmem:[#allocation13_spill] sm:$0xff] %v6931_v31  ;;  %v2517_v48 = vmul.f32 %v6856_v10, %v6931_v31  ;;  %v2496_v15 = vmul.f32 %v6798_v54, %v6931_v31  ;;  %v2555_v8 = vmul.f32 %v2552_v37, %v6931_v31  ;;  %v1711_v59 = vmin.f32 %v1709_v2, 6.0  ;;  %v1788_v2 = vpop.permute.xlu0 %1787 }
 0x18f   : > { %v2633_v32 = vmul.f32 %v6958_v33, %v6946_v58  ;;  %v6963_v9 = vstv %s6908_s30  ;;  %v1710_v10 = vmax.f32 %v1708_v7, 0.0  ;;  %s7161_s30 = sld [smem:[#allocation3 + $0x88]] }
 0x190   : > { %v2524_v54 = vrot.slane %v2517_v48, 1  ;;  %v2503_v3 = vrot.slane %v2496_v15, 1  ;;  %v2562_v37 = vrot.slane %v2555_v8, 2  ;;  %v1715_v63 = vmul.f32 %v1714_v30, %v1711_v59 }
 0x191   : > { %v1721_v27 = vmul.f32 %v1720_v18, %v1711_v59  ;;  %v1727_v11 = vmul.f32 %v1726_v62, %v1711_v59  ;;  %v1733_v26 = vmul.f32 %v1732_v13, %v1711_v59  ;;  %v1712_v7 = vmin.f32 %v1710_v10, 6.0 }
 0x192   : > { %v2525_v48 = vsel %vm269_vm9, %v2522_v20, %v2524_v54  ;;  %v1794_v15 = vadd.f32 %v1790_v55, %v6874_v49  ;;  %v1793_v8 = vadd.f32 %v1788_v2, %v6883_v14  ;;  %v6987_v57 = vadd.f32 %v1715_v63, %v6739_v42 }
 0x193   : > { %v6990_v59 = vadd.f32 %v1721_v27, %v6742_v38  ;;  %v6993_v45 = vadd.f32 %v1727_v11, %v6745_v56  ;;  %v6996_v10 = vadd.f32 %v1733_v26, %v6748_v50  ;;  %2528 = vrot.lane.b32.xlu1 %v2525_v48, %s4422_s27  ;;  %v1716_v60 = vmul.f32 %v1714_v30, %v1712_v7  ;;  %v7011_v38 = vpop.permute.xlu2 %1921  ;;  %v7065_v27 = vld [vmem:[%s4510_s7 + $0x18] sm:$0xff]  ;;  %v7070_v26 = vld [vmem:[%s4510_s7 + $0x30] sm:$0xff]  ;;  %v7075_v48 = vld [vmem:[%s4510_s7 + $0x48] sm:$0xff] }
 0x194   : > { %v1722_v49 = vmul.f32 %v1720_v18, %v1712_v7  ;;  %v1728_v42 = vmul.f32 %v1726_v62, %v1712_v7  ;;  %v1734_v20 = vmul.f32 %v1732_v13, %v1712_v7  ;;  %2526 = vrot.lane.b32.xlu0 %v6901_v17, %s4422_s27  ;;  %v1807_v56 = vadd.f32 %v6821_v6, %v1793_v8 }
 0x195   : > { %v8709_v50 = vrot.slane %v6815_v19, 1  ;;  %v2563_v18 = vsel %vm329_vm10, %v2560_v39, %v2562_v37  ;;  %v2561_v62 = vsel %vm329_vm10, %v2559_v24, %v2560_v39  ;;  %v7024_v13 = vadd.f32 %v1716_v60, %v6771_v29  ;;  %v7039_v29 = vld [vmem:[%s4510_s7 + $0x38] sm:$0xff] }
 0x196   : > { %v7027_v14 = vadd.f32 %v1722_v49, %v6774_v36  ;;  %v7030_v19 = vadd.f32 %v1728_v42, %v6777_v23  ;;  %v7033_v6 = vadd.f32 %v1734_v20, %v6780_v34  ;;  %v1824_v17 = vadd.f32 %v1819_v51, %v1807_v56  ;;  %v1840_v23 = vpop.permute.xlu1 %1839  ;;  %v7049_v34 = vld [vmem:[%s4510_s7 + $0x50] sm:$0xff]  ;;  %v1804_v37 = vpop.permute.xlu0 %1803 }
 0x197   : > { %v2504_v30 = vsel %vm269_vm9, %v8709_v50, %v2503_v3  ;;  %v2636_v39 = vadd.f32 %v2633_v32, %v2628_v21  ;;  %v2641_v36 = vmul.f32 %v7039_v29, %v6963_v9  ;;  %v7044_v24 = vstv %s6955_s0  ;;  %v7058_v32 = vld [vmem:[%s4510_s7] sm:$0xff]  ;;  %s7221_s0 = sld [smem:[#allocation3 + $0xc]] }
 0x198   : > { %2507 = vrot.lane.b32.xlu2 %v2504_v30, %s8589_s9  ;;  %v2649_v54 = vmul.f32 %v7049_v34, %v7044_v24  ;;  %v7054_v21 = vstv %s6965_s6  ;;  %v2670_v51 = vstv %s6967_s28  ;;  %v2627_v55 = vmul.f32 %v7058_v32, %v6906_v12  ;;  %s7229_s6 = sld [smem:[#allocation3 + $0x1c]] }
 0x199   : > { %v1845_v3 = vadd.f32 %v1840_v23, %v1824_v17  ;;  %v2644_v63 = vadd.f32 %v2641_v36, %v2636_v39  ;;  %v2632_v11 = vmul.f32 %v7065_v27, %v6946_v58  ;;  %v2640_v2 = vmul.f32 %v7070_v26, %v6963_v9  ;;  %s7235_s28 = sld [smem:[#allocation3 + $0x2c]] }
 0x19a   : > { %v1808_v7 = vadd.f32 %v1804_v37, %v1794_v15  ;;  %v2648_v8 = vmul.f32 %v7075_v48, %v7044_v24  ;;  %v1869_v60 = vstv %s6977_s19  ;;  %v2576_v49 = vmul.f32 %v6886_v53, %v6931_v31  ;;  %s7247_s19 = sld [smem:[#allocation3 + $0x3c]] }
 0x19b   : > { %2585 = vrot.lane.b32.xlu1 %v6922_v61, %s4422_s27  ;;  %v2652_v42 = vadd.f32 %v2649_v54, %v2644_v63  ;;  %v2635_v20 = vadd.f32 %v2632_v11, %v2627_v55  ;;  %v1870_v56 = vmul.f32 %v1869_v60, %v8706_v52  ;;  %v1871_v50 = vmul.f32 %v1869_v60, %v8705_v5  ;;  %v7088_v17 = vpop.permute.xlu2 %2023 }
 0x19c   : > { %2566 = vrot.lane.b32.xlu0 %v2563_v18, %s8589_s9  ;;  %v1825_v15 = vadd.f32 %v6943_v25, %v1808_v7  ;;  %v2583_v30 = vrot.slane %v2576_v49, 2  ;;  %v7091_v39 = vstv %s6984_s29  ;;  %v2684_v53 = vstv %s6999_s3  ;;  %s7249_s29 = sld [smem:[#allocation3 + $0x4c]] }
 0x19d   : > { %v2657_v61 = vadd.f32 %v7054_v21, %v2652_v42  ;;  %v2643_v52 = vadd.f32 %v2640_v2, %v2635_v20  ;;  %v1876_v5 = vrot.slane %v1870_v56, 2  ;;  %v1877_v36 = vrot.slane %v1871_v50, 2  ;;  %s7263_s3 = sld [smem:[#allocation3 + $0x6c]] }
 0x19e   : > { %v1846_v25 = vadd.f32 %v6876_v1, %v1825_v15  ;;  %v8710_v18 = vrot.slane %v6895_v4, 2  ;;  %v1863_v7 = vpop.permute.xlu1 %1862  ;;  %v1872_v1 = vmul.f32 %v1869_v60, %v8707_v44  ;;  %v7114_v4 = vld [vmem:[%s4510_s7 + $0x10] sm:$0x3]  ;;  %v1861_v50 = vpop.permute.xlu0 %1860  ;;  %v7123_v15 = vld [vmem:[%s4510_s7 + $0x28] sm:$0x3]  ;;  %v2774_v54 = vstv %s7137_s11  ;;  %s7345_s11 = sld [smem:[#allocation3 + $0xac]] }
 0x19f   : > { %v2660_v37 = vmax.f32 %v2657_v61, 0.0  ;;  %v2651_v63 = vadd.f32 %v2648_v8, %v2643_v52  ;;  %v1878_v11 = vsel %vm329_vm10, %v1876_v5, %v1877_v36  ;;  %v2629_v42 = vmul.f32 %v7114_v4, %v6906_v12  ;;  %v7128_v61 = vld [vmem:[%s4510_s7 + $0x40] sm:$0x3]  ;;  %v7133_v52 = vld [vmem:[%s4510_s7 + $0x58] sm:$0x3] }
 0x1a0   : > { %2564 = vrot.lane.b32.xlu2 %v2561_v62, %s8589_s9  ;;  %v2584_v23 = vsel %vm329_vm10, %v8710_v18, %v2583_v30  ;;  %v1867_v56 = vadd.f32 %v1863_v7, %v1846_v25  ;;  %v2634_v30 = vmul.f32 %v7123_v15, %v6946_v58  ;;  %v1866_v44 = vadd.f32 %v1861_v50, %v1845_v3 }
 0x1a1   : > { %v7119_v20 = vmin.f32 %v2660_v37, %v4591_v46  ;;  %v2656_v8 = vadd.f32 %v7054_v21, %v2651_v63  ;;  %v1879_v60 = vrot.slane %v1872_v1, 2  ;;  %v2642_v12 = vmul.f32 %v7128_v61, %v6963_v9 }
 0x1a2   : > { %v2650_v5 = vmul.f32 %v7133_v52, %v7044_v24  ;;  %v1883_v9 = vadd.f32 %v1878_v11, %v1866_v44  ;;  %v2637_v24 = vadd.f32 %v2634_v30, %v2629_v42  ;;  %v2736_v63 = vstv %s7094_s26  ;;  %s7279_s26 = sld [smem:[#allocation3 + $0x9c]] }
 0x1a3   : > { %8711 = vst [vmem:[#allocation14_spill] sm:$0xff] %v7119_v20  ;;  %v2672_v25 = vmul.f32 %v2670_v51, %v7119_v20  ;;  %v2659_v18 = vmax.f32 %v2656_v8, 0.0  ;;  %v7144_v58 = vmul.f32 %v7091_v39, %v7119_v20  ;;  %v7147_v3 = vmul.f32 %v2684_v53, %v7119_v20  ;;  %v7156_v50 = vpop.permute.xlu2 %2063 }
 0x1a4   : > { %v1880_v37 = vsel %vm329_vm10, %v1877_v36, %v1879_v60  ;;  %v7159_v49 = vmul.f32 %v2736_v63, %v7119_v20  ;;  %v1904_v36 = vadd.f32 %v6933_v35, %v1883_v9  ;;  %v2645_v11 = vadd.f32 %v2642_v12, %v2637_v24  ;;  %v8713_v12 = vld [vmem:[#allocation16_spill] sm:$0xff] }
 0x1a5   : > { %2677 = vrot.lane.b32.xlu1 %v2672_v25, %s8589_s9  ;;  %v7153_v7 = vmin.f32 %v2659_v18, %v4589_v43  ;;  %v8548_v1 = vrot.slane %v7144_v58, 1  ;;  %v1884_v8 = vadd.f32 %v1880_v37, %v1867_v56  ;;  %v2000_v42 = vstv %s7097_s5  ;;  %v8714_v37 = vld [vmem:[#allocation17_spill] sm:$0xff]  ;;  %s7322_s5 = sld [smem:[#allocation3 + $0x112]] }
 0x1a6   : > { %v7167_v30 = vstv %s7106_s23  ;;  %v1920_v18 = vpop.permute.xlu1 %1919  ;;  %v2002_v9 = vmul.f32 %v2000_v42, %v8713_v12  ;;  %v2001_v24 = vmul.f32 %v2000_v42, %v8714_v37  ;;  %v1901_v2 = vpop.permute.xlu0 %1900  ;;  %s7329_s23 = sld [smem:[#allocation3 + $0x113]] }
 0x1a7   : > { %8712 = vst [vmem:[#allocation22_spill] sm:$0xff] %v7153_v7  ;;  %v2671_v44 = vmul.f32 %v2670_v51, %v7153_v7  ;;  %v2716_v56 = vmul.f32 %v7091_v39, %v7153_v7  ;;  %v2685_v60 = vmul.f32 %v2684_v53, %v7153_v7  ;;  %v2737_v35 = vmul.f32 %v2736_v63, %v7153_v7 }
 0x1a8   : > { %2587 = vrot.lane.b32.xlu2 %v2584_v23, %s4422_s27  ;;  %v2653_v23 = vadd.f32 %v2650_v5, %v2645_v11  ;;  %v1925_v62 = vadd.f32 %v1920_v18, %v1904_v36  ;;  %v2796_v53 = vmul.f32 %v7167_v30, %v7153_v7  ;;  %v7184_v55 = vmul.f32 %v7167_v30, %v7119_v20 }
 0x1a9   : > { %2675 = vrot.lane.b32.xlu0 %v2671_v44, %s8589_s9  ;;  %v2722_v51 = vrot.slane %v2716_v56, 1  ;;  %v1905_v25 = vadd.f32 %v1901_v2, %v1884_v8  ;;  %v2743_v11 = vrot.slane %v2737_v35, 1  ;;  %v8715_v36 = vstv %s7013_s8  ;;  %s7273_s8 = sld [smem:[#allocation3 + $0xb8]] }
 0x1aa   : > { %v2658_v5 = vadd.f32 %v7054_v21, %v2653_v23  ;;  %v1929_v44 = vadd.f32 %v8715_v36, %v1925_v62  ;;  %v2802_v56 = vrot.slane %v2796_v53, 2  ;;  %v8547_v18 = vrot.slane %v7184_v55, 2 }
 0x1ab   : > { %v2724_v42 = vsel %vm269_vm9, %v2722_v51, %v8548_v1  ;;  %v1926_v31 = vadd.f32 %v7011_v38, %v1905_v25  ;;  %v8716_v2 = vrot.slane %v7159_v49, 1  ;;  %v7201_v21 = vmul.f32 %v2774_v54, %v7119_v20  ;;  %v7204_v35 = vpop.permute.xlu2 %2120 }
 0x1ac   : > { %v2661_v41 = vmax.f32 %v2658_v5, 0.0  ;;  %v1931_v23 = vmax.f32 %v1929_v44, 0.0  ;;  %v7209_v62 = vsel %vm329_vm10, %v2802_v56, %v8547_v18  ;;  %v2032_v38 = vstv %s7161_s30  ;;  %s7357_s30 = sld [smem:[#allocation3 + $0x59]] }
 0x1ad   : > { %v7198_v8 = vsel %vm269_vm9, %v2743_v11, %v8716_v2  ;;  %2727 = vrot.lane.b32.xlu1 %v2724_v42, %s8589_s9  ;;  %v2775_v25 = vmul.f32 %v2774_v54, %v7153_v7  ;;  %v8717_v51 = vmov %v8715_v36  ;;  %v2782_v11 = vrot.slane %v7201_v21, 2 }
 0x1ae   : > { %v1930_v53 = vadd.f32 %v8717_v51, %v1926_v31  ;;  %v7217_v5 = vmin.f32 %v2661_v41, %v8622_v40  ;;  %v2033_v42 = vmul.f32 %v2032_v38, %v8714_v37  ;;  %v1933_v36 = vmin.f32 %v1931_v23, 6.0  ;;  %v8718_v31 = vld [vmem:[#allocation18_spill] sm:$0xff]  ;;  %v2012_v21 = vpop.permute.xlu1 %2011 }
 0x1af   : > { %v7224_v44 = vmul.f32 %v2032_v38, %v8713_v12  ;;  %v7227_v56 = vmul.f32 %v2032_v38, %v8718_v31  ;;  %v8719_v23 = vstv %s7021_s10  ;;  %v8720_v1 = vstv %s7036_s21  ;;  %s7296_s10 = sld [smem:[#allocation3 + $0x7c]] }
 0x1b0   : > { %2689 = vrot.lane.b32.xlu2 %v2685_v60, %s4422_s27  ;;  %v2781_v60 = vrot.slane %v2775_v25, 2  ;;  %v1932_v41 = vmax.f32 %v1930_v53, 0.0  ;;  %v2739_v2 = vmul.f32 %v2736_v63, %v7217_v5  ;;  %v2718_v51 = vmul.f32 %v7091_v39, %v7217_v5  ;;  %v2010_v39 = vpop.permute.xlu0 %2009 }
 0x1b1   : > { %v2777_v18 = vmul.f32 %v2774_v54, %v7217_v5  ;;  %2691 = vrot.lane.b32.xlu0 %v7147_v3, %s4422_s27  ;;  %v1937_v38 = vmul.f32 %v8719_v23, %v1933_v36  ;;  %v1943_v25 = vmul.f32 %v8720_v1, %v1933_v36  ;;  %v8721_v7 = vstv %s7046_s12 }
 0x1b2   : > { %v1949_v53 = vmul.f32 %v8721_v7, %v1933_v36  ;;  %v8722_v63 = vstv %s7062_s4  ;;  %v1934_v54 = vmin.f32 %v1932_v41, 6.0  ;;  %v2746_v16 = vrot.slane %v2739_v2, 1  ;;  %s7318_s4 = sld [smem:[#allocation3 + $0x111]] }
 0x1b3   : > { %v1955_v20 = vmul.f32 %v8722_v63, %v1933_v36  ;;  %v2016_v28 = vadd.f32 %v2012_v21, %v2002_v9  ;;  %v2015_v40 = vadd.f32 %v2010_v39, %v2001_v24  ;;  %v7252_v3 = vadd.f32 %v1937_v38, %v6987_v57 }
 0x1b4   : > { %v7255_v1 = vadd.f32 %v1943_v25, %v6990_v59  ;;  %v7258_v7 = vadd.f32 %v1949_v53, %v6993_v45  ;;  %v8723_v41 = vmov %v8719_v23  ;;  %v8724_v9 = vstv %s7036_s21  ;;  %s7303_s21 = sld [smem:[#allocation3 + $0xe8]] }
 0x1b5   : > { %v7261_v36 = vadd.f32 %v1955_v20, %v6996_v10  ;;  %v1938_v2 = vmul.f32 %v8723_v41, %v1934_v54  ;;  %v1944_v24 = vmul.f32 %v8724_v9, %v1934_v54  ;;  %v8725_v21 = vstv %s7046_s12  ;;  %s7310_s12 = sld [smem:[#allocation3 + $0x110]] }
 0x1b6   : > { %v1950_v23 = vmul.f32 %v8725_v21, %v1934_v54  ;;  %v1956_v57 = vmul.f32 %v8722_v63, %v1934_v54  ;;  %v8726_v59 = vrot.slane %v7159_v49, 1  ;;  %v2029_v38 = vadd.f32 %v7088_v17, %v2015_v40  ;;  %v7294_v40 = vpop.permute.xlu2 %2143 }
 0x1b7   : > { %v2725_v10 = vrot.slane %v2718_v51, 1  ;;  %v2784_v20 = vrot.slane %v2777_v18, 2  ;;  %v7282_v25 = vadd.f32 %v1938_v2, %v7024_v13  ;;  %v7285_v53 = vadd.f32 %v1944_v24, %v7027_v14 }
 0x1b8   : > { %v2747_v45 = vsel %vm269_vm9, %v8726_v59, %v2746_v16  ;;  %v7288_v39 = vadd.f32 %v1950_v23, %v7030_v19  ;;  %v7291_v49 = vadd.f32 %v1956_v57, %v7033_v6  ;;  %v8727_v16 = vrot.slane %v7144_v58, 1  ;;  %v2062_v6 = vpop.permute.xlu1 %2061 }
 0x1b9   : > { %2750 = vrot.lane.b32.xlu1 %v2747_v45, %s4422_s27  ;;  %v2785_v14 = vsel %vm329_vm10, %v2782_v11, %v2784_v20  ;;  %v2039_v17 = vrot.slane %v2033_v42, 1  ;;  %v2040_v19 = vrot.slane %v7224_v44, 1  ;;  %v2042_v18 = vrot.slane %v7227_v56, 1  ;;  %2748 = vrot.lane.b32.xlu0 %v7198_v8, %s4422_s27  ;;  %v2026_v44 = vpop.permute.xlu0 %2025 }
 0x1ba   : > { %v2726_v13 = vsel %vm269_vm9, %v8727_v16, %v2725_v10  ;;  %v2783_v51 = vsel %vm329_vm10, %v2781_v60, %v2782_v11  ;;  %v2848_v54 = vstv %s7221_s0  ;;  %v2853_v58 = vstv %s7229_s6  ;;  %s7369_s0 = sld [smem:[#allocation3 + $0xdc]] }
 0x1bb   : > { %2729 = vrot.lane.b32.xlu2 %v2726_v13, %s8589_s9  ;;  %v2041_v42 = vsel %vm269_vm9, %v2039_v17, %v2040_v19  ;;  %v2850_v41 = vmul.f32 %v6937_v22, %v2848_v54  ;;  %v2855_v2 = vmul.f32 %v6958_v33, %v2853_v58  ;;  %v2861_v56 = vstv %s7235_s28  ;;  %s7376_s6 = sld [smem:[#allocation3 + $0xcc]] }
 0x1bc   : > { %v2046_v11 = vadd.f32 %v2041_v42, %v2029_v38  ;;  %v2043_v60 = vsel %vm269_vm9, %v2040_v19, %v2042_v18  ;;  %v2030_v9 = vadd.f32 %v2026_v44, %v2016_v28  ;;  %v2863_v24 = vmul.f32 %v7039_v29, %v2861_v56  ;;  %s7453_s28 = sld [smem:[#allocation3 + $0x89]] }
 0x1bd   : > { %v2858_v8 = vadd.f32 %v2855_v2, %v2850_v41  ;;  %v2869_v21 = vstv %s7247_s19  ;;  %v7326_v23 = vstv %s7249_s29  ;;  %v2892_v63 = vstv %s7263_s3  ;;  %s7458_s19 = sld [smem:[#allocation3 + $0xd]] }
 0x1be   : > { %v2067_v57 = vadd.f32 %v2062_v6, %v2046_v11  ;;  %v2047_v59 = vadd.f32 %v2043_v60, %v2030_v9  ;;  %v2871_v45 = vmul.f32 %v7049_v34, %v2869_v21  ;;  %v2849_v38 = vmul.f32 %v7058_v32, %v2848_v54  ;;  %s7474_s29 = sld [smem:[#allocation3 + $0x1d]] }
 0x1bf   : > { %v2866_v28 = vadd.f32 %v2863_v24, %v2858_v8  ;;  %v2854_v10 = vmul.f32 %v7065_v27, %v2853_v58  ;;  %v2862_v20 = vmul.f32 %v7070_v26, %v2861_v56  ;;  %v2870_v16 = vmul.f32 %v7075_v48, %v2869_v21  ;;  %s7488_s3 = sld [smem:[#allocation3 + $0x2d]] }
 0x1c0   : > { %v2068_v13 = vadd.f32 %v7156_v50, %v2047_v59  ;;  %v2091_v17 = vstv %s7273_s8  ;;  %v2798_v19 = vmul.f32 %v7167_v30, %v7217_v5  ;;  %v7343_v6 = vstv %s7279_s26  ;;  %v7350_v50 = vpop.permute.xlu2 %2245  ;;  %s7500_s8 = sld [smem:[#allocation3 + $0x3d]] }
 0x1c1   : > { %2807 = vrot.lane.b32.xlu1 %v7209_v62, %s4422_s27  ;;  %v2874_v18 = vadd.f32 %v2871_v45, %v2866_v28  ;;  %v2857_v42 = vadd.f32 %v2854_v10, %v2849_v38  ;;  %v2092_v44 = vmul.f32 %v2091_v17, %v8714_v37  ;;  %v2093_v41 = vmul.f32 %v2091_v17, %v8713_v12  ;;  %v2085_v62 = vpop.permute.xlu1 %2084  ;;  %v2083_v12 = vpop.permute.xlu0 %2082  ;;  %s7506_s26 = sld [smem:[#allocation3 + $0x4d]] }
 0x1c2   : > { %v2805_v2 = vrot.slane %v2798_v19, 2  ;;  %v2906_v11 = vstv %s7296_s10  ;;  %v2150_v30 = vstv %s7303_s21  ;;  %2788 = vrot.lane.b32.xlu0 %v2785_v14, %s8589_s9  ;;  %v2089_v37 = vadd.f32 %v2085_v62, %v2068_v13  ;;  %s7520_s10 = sld [smem:[#allocation3 + $0x6d]] }
 0x1c3   : > { %2786 = vrot.lane.b32.xlu2 %v2783_v51, %s8589_s9  ;;  %v2879_v9 = vadd.f32 %v7326_v23, %v2874_v18  ;;  %v2865_v24 = vadd.f32 %v2862_v20, %v2857_v42  ;;  %v2098_v8 = vrot.slane %v2092_v44, 2  ;;  %v2099_v51 = vrot.slane %v2093_v41, 2  ;;  %s7531_s21 = sld [smem:[#allocation3 + $0xb9]] }
 0x1c4   : > { %v2088_v59 = vadd.f32 %v2083_v12, %v2067_v57  ;;  %v8728_v45 = vrot.slane %v7184_v55, 2  ;;  %v2164_v28 = vstv %s7318_s4  ;;  %v2170_v60 = vstv %s7322_s5  ;;  %s7547_s4 = sld [smem:[#allocation3 + $0x7d]] }
 0x1c5   : > { %v2882_v10 = vmax.f32 %v2879_v9, 0.0  ;;  %v2873_v19 = vadd.f32 %v2870_v16, %v2865_v24  ;;  %v2176_v14 = vstv %s7329_s23  ;;  %v2100_v20 = vsel %vm329_vm10, %v2098_v8, %v2099_v51  ;;  %s7552_s5 = sld [smem:[#allocation3 + $0xe9]] }
 0x1c6   : > { %v2806_v38 = vsel %vm329_vm10, %v8728_v45, %v2805_v2  ;;  %v2094_v13 = vmul.f32 %v2091_v17, %v8718_v31  ;;  %v2851_v18 = vmul.f32 %v7114_v4, %v2848_v54  ;;  %v2856_v42 = vmul.f32 %v7123_v15, %v2853_v58  ;;  %s7564_s23 = sld [smem:[#allocation3 + $0x114]] }
 0x1c7   : > { %v7372_v55 = vmin.f32 %v2882_v10, %v4591_v46  ;;  %v2878_v57 = vadd.f32 %v7326_v23, %v2873_v19  ;;  %v2105_v16 = vadd.f32 %v2100_v20, %v2088_v59  ;;  %v2864_v44 = vmul.f32 %v7128_v61, %v2861_v56 }
 0x1c8   : > { %v2101_v41 = vrot.slane %v2094_v13, 2  ;;  %v2859_v62 = vadd.f32 %v2856_v42, %v2851_v18  ;;  %v2872_v31 = vmul.f32 %v7133_v52, %v2869_v21  ;;  %v7380_v17 = vstv %s7345_s11  ;;  %s7573_s11 = sld [smem:[#allocation3 + $0x115]] }
 0x1c9   : > { %v2894_v54 = vmul.f32 %v2892_v63, %v7372_v55  ;;  %v2881_v58 = vmax.f32 %v2878_v57, 0.0  ;;  %v7387_v2 = vmul.f32 %v7343_v6, %v7372_v55  ;;  %v7390_v9 = vmul.f32 %v2906_v11, %v7372_v55  ;;  %v2142_v56 = vpop.permute.xlu1 %2141  ;;  %v2123_v10 = vpop.permute.xlu0 %2122 }
 0x1ca   : > { %v2126_v21 = vadd.f32 %v7204_v35, %v2105_v16  ;;  %v2102_v24 = vsel %vm329_vm10, %v2099_v51, %v2101_v41  ;;  %v2867_v8 = vadd.f32 %v2864_v44, %v2859_v62  ;;  %v7397_v12 = vmul.f32 %v7380_v17, %v7372_v55  ;;  %v7405_v35 = vpop.permute.xlu2 %2285 }
 0x1cb   : > { %2809 = vrot.lane.b32.xlu2 %v2806_v38, %s4422_s27  ;;  %2899 = vrot.lane.b32.xlu1 %v2894_v54, %s8589_s9  ;;  %v7401_v59 = vmin.f32 %v2881_v58, %v4589_v43  ;;  %v2945_v45 = vrot.slane %v7387_v2, 1  ;;  %v2106_v38 = vadd.f32 %v2102_v24, %v2089_v37  ;;  %v2222_v19 = vstv %s7357_s30  ;;  %s7578_s30 = sld [smem:[#allocation3 + $0x116]] }
 0x1cc   : > { %v2147_v20 = vadd.f32 %v2142_v56, %v2126_v21  ;;  %v2875_v51 = vadd.f32 %v2872_v31, %v2867_v8  ;;  %v2966_v13 = vrot.slane %v7397_v12, 1  ;;  %v2224_v18 = vmul.f32 %v2222_v19, %v6520_v0  ;;  %v8732_v12 = vld [vmem:[#allocation19_spill] sm:$0xff] }
 0x1cd   : > { %v2893_v42 = vmul.f32 %v2892_v63, %v7401_v59  ;;  %v2938_v57 = vmul.f32 %v7343_v6, %v7401_v59  ;;  %v2127_v16 = vadd.f32 %v2123_v10, %v2106_v38  ;;  %v2907_v37 = vmul.f32 %v2906_v11, %v7401_v59 }
 0x1ce   : > { %v2151_v44 = vadd.f32 %v2150_v30, %v2147_v20  ;;  %v2880_v41 = vadd.f32 %v7326_v23, %v2875_v51  ;;  %v2959_v62 = vmul.f32 %v7380_v17, %v7401_v59  ;;  %v2223_v31 = vmul.f32 %v2222_v19, %v6572_v47  ;;  %v8729_v20 = vld [vmem:[#allocation8_spill] sm:$0xff] }
 0x1cf   : > { %2897 = vrot.lane.b32.xlu0 %v2893_v42, %s8589_s9  ;;  %v2944_v54 = vrot.slane %v2938_v57, 1  ;;  %v2148_v63 = vadd.f32 %v7294_v40, %v2127_v16  ;;  %v7424_v58 = vstv %s7369_s0  ;;  %v7427_v56 = vstv %s7376_s6  ;;  %s7587_s0 = sld [smem:[#allocation3 + $0x117]] }
 0x1d0   : > { %v2153_v21 = vmax.f32 %v2151_v44, 0.0  ;;  %v2883_v11 = vmax.f32 %v2880_v41, 0.0  ;;  %v2965_v24 = vrot.slane %v2959_v62, 1  ;;  %v3018_v23 = vmul.f32 %v7424_v58, %v7401_v59  ;;  %s7605_s6 = sld [smem:[#allocation3 + $0xad]] }
 0x1d1   : > { %v2946_v8 = vsel %vm269_vm9, %v2944_v54, %v2945_v45  ;;  %v2152_v38 = vadd.f32 %v2150_v30, %v2148_v63  ;;  %v7438_v10 = vmul.f32 %v7424_v58, %v7372_v55  ;;  %v7442_v40 = vmul.f32 %v7427_v56, %v7372_v55  ;;  %v2234_v42 = vpop.permute.xlu1 %2233  ;;  %v2232_v41 = vpop.permute.xlu0 %2231 }
 0x1d2   : > { %v2155_v19 = vmin.f32 %v2153_v21, 6.0  ;;  %v7446_v51 = vmin.f32 %v2883_v11, %v8729_v20  ;;  %v7451_v30 = vsel %vm269_vm9, %v2965_v24, %v2966_v13  ;;  %v3024_v57 = vrot.slane %v3018_v23, 2 }
 0x1d3   : > { %2911 = vrot.lane.b32.xlu2 %v2907_v37, %s4422_s27  ;;  %2949 = vrot.lane.b32.xlu1 %v2946_v8, %s8589_s9  ;;  %v2154_v16 = vmax.f32 %v2152_v38, 0.0  ;;  %v2238_v44 = vadd.f32 %v2234_v42, %v2224_v18  ;;  %v3025_v37 = vrot.slane %v7438_v10, 2  ;;  %v8730_v54 = vstv %s7310_s12  ;;  %v7468_v18 = vpop.permute.xlu2 %2342 }
 0x1d4   : > { %v2159_v63 = vmul.f32 %v8730_v54, %v2155_v19  ;;  %v2165_v21 = vmul.f32 %v2164_v28, %v2155_v19  ;;  %v2171_v11 = vmul.f32 %v2170_v60, %v2155_v19  ;;  %v2177_v24 = vmul.f32 %v2176_v14, %v2155_v19 }
 0x1d5   : > { %v2156_v23 = vmin.f32 %v2154_v16, 6.0  ;;  %v2961_v8 = vmul.f32 %v7380_v17, %v7446_v51  ;;  %v2237_v38 = vadd.f32 %v2232_v41, %v2223_v31  ;;  %v2940_v42 = vmul.f32 %v7343_v6, %v7446_v51 }
 0x1d6   : > { %v7477_v54 = vadd.f32 %v2159_v63, %v7252_v3  ;;  %v7480_v62 = vadd.f32 %v2165_v21, %v7255_v1  ;;  %v7483_v19 = vadd.f32 %v2171_v11, %v7258_v7  ;;  %v7486_v16 = vadd.f32 %v2177_v24, %v7261_v36 }
 0x1d7   : > { %2913 = vrot.lane.b32.xlu0 %v7390_v9, %s4422_s27  ;;  %v8731_v6 = vstv %s7310_s12  ;;  %v2166_v31 = vmul.f32 %v2164_v28, %v2156_v23  ;;  %v2172_v3 = vmul.f32 %v2170_v60, %v2156_v23  ;;  %v2178_v1 = vmul.f32 %v2176_v14, %v2156_v23  ;;  %s7541_s12 = sld [smem:[#allocation3 + $0x9d]] }
 0x1d8   : > { %v2160_v17 = vmul.f32 %v8731_v6, %v2156_v23  ;;  %v2968_v7 = vrot.slane %v2961_v8, 1  ;;  %v2251_v36 = vadd.f32 %v7350_v50, %v2237_v38  ;;  %v2947_v41 = vrot.slane %v2940_v42, 1 }
 0x1d9   : > { %v3026_v63 = vsel %vm329_vm10, %v3024_v57, %v3025_v37  ;;  %v7512_v60 = vadd.f32 %v2166_v31, %v7285_v53  ;;  %v7515_v28 = vadd.f32 %v2172_v3, %v7288_v39  ;;  %v7518_v14 = vadd.f32 %v2178_v1, %v7291_v49  ;;  %v2284_v21 = vpop.permute.xlu1 %2283 }
 0x1da   : > { %v7509_v9 = vadd.f32 %v2160_v17, %v7282_v25  ;;  %v2969_v50 = vsel %vm269_vm9, %v2966_v13, %v2968_v7  ;;  %v2948_v25 = vsel %vm269_vm9, %v2945_v45, %v2947_v41  ;;  %v2999_v53 = vmul.f32 %v7427_v56, %v7446_v51  ;;  %v2248_v13 = vpop.permute.xlu0 %2247 }
 0x1db   : > { %v2254_v57 = vstv %s7453_s28  ;;  %2972 = vrot.lane.b32.xlu1 %v2969_v50, %s4422_s27  ;;  %2951 = vrot.lane.b32.xlu2 %v2948_v25, %s8589_s9  ;;  %v7539_v45 = vstv %s7458_s19  ;;  %v2252_v24 = vadd.f32 %v2248_v13, %v2238_v44  ;;  %v2997_v23 = vmul.f32 %v7427_v56, %v7401_v59  ;;  %v7557_v1 = vpop.permute.xlu2 %2365  ;;  %s7608_s28 = sld [smem:[#allocation3 + $0x5a]] }
 0x1dc   : > { %v2255_v39 = vmul.f32 %v2254_v57, %v6572_v47  ;;  %v2256_v49 = vmul.f32 %v2254_v57, %v6520_v0  ;;  %v2257_v2 = vmul.f32 %v2254_v57, %v8732_v12  ;;  %v3006_v11 = vrot.slane %v2999_v53, 2  ;;  %s7617_s19 = sld [smem:[#allocation3 + $0xdd]] }
 0x1dd   : > { %v3072_v8 = vmul.f32 %v6937_v22, %v7539_v45  ;;  %v7550_v17 = vstv %s7474_s29  ;;  %v8733_v31 = vrot.slane %v7442_v40, 2  ;;  %v3003_v3 = vrot.slane %v2997_v23, 2  ;;  %s7662_s29 = sld [smem:[#allocation3 + $0xcd]] }
 0x1de   : > { %v2261_v38 = vrot.slane %v2255_v39, 1  ;;  %v2262_v42 = vrot.slane %v2256_v49, 1  ;;  %v2264_v6 = vrot.slane %v2257_v2, 1  ;;  %v3077_v22 = vmul.f32 %v6958_v33, %v7550_v17 }
 0x1df   : > { %v3007_v44 = vsel %vm329_vm10, %v8733_v31, %v3006_v11  ;;  %v7562_v56 = vstv %s7488_s3  ;;  %2970 = vrot.lane.b32.xlu0 %v7451_v30, %s4422_s27  ;;  %v3091_v25 = vstv %s7500_s8  ;;  %v8734_v57 = vmov %v8733_v31  ;;  %s7670_s3 = sld [smem:[#allocation3 + $0x8a]] }
 0x1e0   : > { %v2263_v7 = vsel %vm269_vm9, %v2261_v38, %v2262_v42  ;;  %v2265_v41 = vsel %vm269_vm9, %v2262_v42, %v2264_v6  ;;  %v3085_v50 = vmul.f32 %v7039_v29, %v7562_v56  ;;  %v3005_v39 = vsel %vm329_vm10, %v3003_v3, %v8734_v57  ;;  %s7678_s8 = sld [smem:[#allocation3 + $0xe]] }
 0x1e1   : > { %v2268_v53 = vadd.f32 %v2263_v7, %v2251_v36  ;;  %v2269_v33 = vadd.f32 %v2265_v41, %v2252_v24  ;;  %v3080_v49 = vadd.f32 %v3077_v22, %v3072_v8  ;;  %v3093_v30 = vmul.f32 %v7049_v34, %v3091_v25  ;;  %v2307_v23 = vpop.permute.xlu1 %2306 }
 0x1e2   : > { %v7582_v2 = vstv %s7506_s26  ;;  %v3114_v13 = vstv %s7520_s10  ;;  %v3071_v29 = vmul.f32 %v7058_v32, %v7539_v45  ;;  %v3076_v40 = vmul.f32 %v7065_v27, %v7550_v17  ;;  %v2305_v38 = vpop.permute.xlu0 %2304  ;;  %s7683_s26 = sld [smem:[#allocation3 + $0x1e]] }
 0x1e3   : > { %v2289_v36 = vadd.f32 %v2284_v21, %v2268_v53  ;;  %v3088_v11 = vadd.f32 %v3085_v50, %v3080_v49  ;;  %v3084_v24 = vmul.f32 %v7070_v26, %v7562_v56  ;;  %3029 = vrot.lane.b32.xlu1 %v3026_v63, %s4422_s27  ;;  %3008 = vrot.lane.b32.xlu2 %v3005_v39, %s8589_s9  ;;  %v2313_v8 = vstv %s7531_s21  ;;  %v7620_v39 = vpop.permute.xlu2 %2467  ;;  %s7736_s10 = sld [smem:[#allocation3 + $0x2e]] }
 0x1e4   : > { %v3092_v34 = vmul.f32 %v7075_v48, %v3091_v25  ;;  %v2290_v32 = vadd.f32 %v7405_v35, %v2269_v33  ;;  %v3020_v21 = vmul.f32 %v7424_v58, %v7446_v51  ;;  %v3079_v27 = vadd.f32 %v3076_v40, %v3071_v29  ;;  %s7746_s21 = sld [smem:[#allocation3 + $0x3e]] }
 0x1e5   : > { %v3096_v42 = vadd.f32 %v3093_v30, %v3088_v11  ;;  %v2314_v26 = vmul.f32 %v2313_v8, %v6572_v47  ;;  %v2315_v63 = vmul.f32 %v2313_v8, %v6520_v0  ;;  %v2310_v31 = vadd.f32 %v2305_v38, %v2289_v36 }
 0x1e6   : > { %v2311_v6 = vadd.f32 %v2307_v23, %v2290_v32  ;;  %v3027_v48 = vrot.slane %v3020_v21, 2  ;;  %v7603_v3 = vstv %s7541_s12  ;;  %v3087_v58 = vadd.f32 %v3084_v24, %v3079_v27  ;;  %s7760_s12 = sld [smem:[#allocation3 + $0x4e]] }
 0x1e7   : > { %v3101_v35 = vadd.f32 %v7582_v2, %v3096_v42  ;;  %v2320_v22 = vrot.slane %v2314_v26, 2  ;;  %v2321_v7 = vrot.slane %v2315_v63, 2  ;;  %3010 = vrot.lane.b32.xlu0 %v3007_v44, %s8589_s9  ;;  %v3128_v47 = vstv %s7547_s4  ;;  %s7772_s4 = sld [smem:[#allocation3 + $0xf]] }
 0x1e8   : > { %v3028_v0 = vsel %vm329_vm10, %v3025_v37, %v3027_v48  ;;  %v2372_v41 = vstv %s7552_s5  ;;  %v2380_v50 = vstv %s7564_s23  ;;  %v3095_v33 = vadd.f32 %v3092_v34, %v3087_v58  ;;  %s7786_s5 = sld [smem:[#allocation3 + $0x6e]] }
 0x1e9   : > { %v3104_v53 = vmax.f32 %v3101_v35, 0.0  ;;  %v2322_v57 = vsel %vm329_vm10, %v2320_v22, %v2321_v7  ;;  %v2386_v49 = vstv %s7573_s11  ;;  %v2392_v29 = vstv %s7578_s30  ;;  %v2364_v24 = vpop.permute.xlu1 %2363  ;;  %s7790_s23 = sld [smem:[#allocation3 + $0x1f]] }
 0x1ea   : > { %v2327_v30 = vadd.f32 %v2322_v57, %v2310_v31  ;;  %v2398_v44 = vstv %s7587_s0  ;;  %v2316_v10 = vmul.f32 %v2313_v8, %v8732_v12  ;;  %v3100_v36 = vadd.f32 %v7582_v2, %v3095_v33  ;;  %v8735_v57 = vld [vmem:[#allocation21_spill] sm:$0xff]  ;;  %s7796_s11 = sld [smem:[#allocation3 + $0xba]] }
 0x1eb   : > { %v7627_v37 = vmin.f32 %v3104_v53, %v4591_v46  ;;  %v3073_v11 = vmul.f32 %v7114_v4, %v7539_v45  ;;  %v3078_v40 = vmul.f32 %v7123_v15, %v7550_v17  ;;  %3031 = vrot.lane.b32.xlu2 %v3028_v0, %s4422_s27  ;;  %v3086_v12 = vmul.f32 %v7128_v61, %v7562_v56  ;;  %v2345_v17 = vpop.permute.xlu0 %2344  ;;  %s7804_s30 = sld [smem:[#allocation3 + $0x2f]] }
 0x1ec   : > { %v2348_v34 = vadd.f32 %v7468_v18, %v2327_v30  ;;  %v2323_v23 = vrot.slane %v2316_v10, 2  ;;  %v3094_v32 = vmul.f32 %v7133_v52, %v3091_v25  ;;  %v3103_v4 = vmax.f32 %v3100_v36, 0.0  ;;  %v8736_v10 = vld [vmem:[#allocation12_spill] sm:$0xff]  ;;  %s7809_s0 = sld [smem:[#allocation3 + $0x3f]] }
 0x1ed   : > { %v3116_v8 = vmul.f32 %v3114_v13, %v7627_v37  ;;  %v7644_v15 = vmul.f32 %v7603_v3, %v7627_v37  ;;  %v7647_v45 = vmul.f32 %v3128_v47, %v7627_v37  ;;  %v3081_v52 = vadd.f32 %v3078_v40, %v3073_v11 }
 0x1ee   : > { %v2369_v18 = vadd.f32 %v2364_v24, %v2348_v34  ;;  %v2324_v61 = vsel %vm329_vm10, %v2321_v7, %v2323_v23  ;;  %v7651_v56 = vstv %s7605_s6  ;;  %v7655_v25 = vmin.f32 %v3103_v4, %v4589_v43  ;;  %s7822_s6 = sld [smem:[#allocation3 + $0x4f]] }
 0x1ef   : > { %3121 = vrot.lane.b32.xlu1 %v3116_v8, %s8589_s9  ;;  %v3167_v38 = vrot.slane %v7644_v15, 1  ;;  %v2328_v21 = vadd.f32 %v2324_v61, %v2311_v6  ;;  %v7660_v42 = vmul.f32 %v7651_v56, %v7627_v37  ;;  %v3089_v26 = vadd.f32 %v3086_v12, %v3081_v52 }
 0x1f0   : > { %v2373_v27 = vadd.f32 %v2372_v41, %v2369_v18  ;;  %v2444_v63 = vstv %s7608_s28  ;;  %v7668_v31 = vstv %s7617_s19  ;;  %v3115_v48 = vmul.f32 %v3114_v13, %v7655_v25  ;;  %s7836_s28 = sld [smem:[#allocation3 + $0x6f]] }
 0x1f1   : > { %v3160_v6 = vmul.f32 %v7603_v3, %v7655_v25  ;;  %v2349_v35 = vadd.f32 %v2345_v17, %v2328_v21  ;;  %v3129_v58 = vmul.f32 %v3128_v47, %v7655_v25  ;;  %v3097_v7 = vadd.f32 %v3094_v32, %v3089_v26  ;;  %v2456_v34 = vpop.permute.xlu1 %2455  ;;  %s7839_s19 = sld [smem:[#allocation3 + $0x7e]] }
 0x1f2   : > { %v2375_v22 = vmax.f32 %v2373_v27, 0.0  ;;  %v3188_v0 = vrot.slane %v7660_v42, 1  ;;  %v3181_v53 = vmul.f32 %v7651_v56, %v7655_v25  ;;  %3119 = vrot.lane.b32.xlu0 %v3115_v48, %s8589_s9  ;;  %v7687_v47 = vpop.permute.xlu2 %2507  ;;  %v2446_v30 = vmul.f32 %v2444_v63, %v8735_v57 }
 0x1f3   : > { %v3166_v13 = vrot.slane %v3160_v6, 1  ;;  %v2370_v33 = vadd.f32 %v7557_v1, %v2349_v35  ;;  %v2445_v36 = vmul.f32 %v2444_v63, %v8736_v10  ;;  %3133 = vrot.lane.b32.xlu2 %v3129_v58, %s4422_s27  ;;  %v3102_v40 = vadd.f32 %v7582_v2, %v3097_v7 }
 0x1f4   : > { %v2377_v11 = vmin.f32 %v2375_v22, 6.0  ;;  %v3187_v24 = vrot.slane %v3181_v53, 1  ;;  %v3240_v23 = vmul.f32 %v7668_v31, %v7655_v25  ;;  %v7700_v32 = vadd.f32 %v2456_v34, %v2446_v30 }
 0x1f5   : > { %v3168_v1 = vsel %vm269_vm9, %v3166_v13, %v3167_v38  ;;  %v2374_v12 = vadd.f32 %v2372_v41, %v2370_v33  ;;  %v7704_v8 = vmul.f32 %v7668_v31, %v7627_v37  ;;  %v3105_v41 = vmax.f32 %v3102_v40, 0.0  ;;  %v2454_v6 = vpop.permute.xlu0 %2453 }
 0x1f6   : > { %v2381_v4 = vmul.f32 %v2380_v50, %v2377_v11  ;;  %v2387_v2 = vmul.f32 %v2386_v49, %v2377_v11  ;;  %v2393_v18 = vmul.f32 %v2392_v29, %v2377_v11  ;;  %v2399_v61 = vmul.f32 %v2398_v44, %v2377_v11 }
 0x1f7   : > { %3171 = vrot.lane.b32.xlu1 %v3168_v1, %s8589_s9  ;;  %v2376_v17 = vmax.f32 %v2374_v12, 0.0  ;;  %v7718_v52 = vsel %vm269_vm9, %v3187_v24, %v3188_v0  ;;  %v3246_v21 = vrot.slane %v3240_v23, 2  ;;  %v7733_v58 = vmin.f32 %v3105_v41, %v8729_v20 }
 0x1f8   : > { %v7721_v27 = vadd.f32 %v2381_v4, %v7477_v54  ;;  %v7724_v26 = vadd.f32 %v2387_v2, %v7480_v62  ;;  %v7727_v63 = vadd.f32 %v2393_v18, %v7483_v19  ;;  %v7730_v48 = vadd.f32 %v2399_v61, %v7486_v16 }
 0x1f9   : > { %v2378_v35 = vmin.f32 %v2376_v17, 6.0  ;;  %v2459_v54 = vadd.f32 %v2454_v6, %v2445_v36  ;;  %v3247_v22 = vrot.slane %v7704_v8, 2  ;;  %v3218_v62 = vstv %s7662_s29  ;;  %v2506_v23 = vpop.permute.xlu1 %2505  ;;  %s7855_s29 = sld [smem:[#allocation3 + $0xea]] }
 0x1fa   : > { %v2476_v7 = vstv %s7670_s3  ;;  %v7741_v53 = vstv %s7678_s8  ;;  %v7744_v19 = vstv %s7683_s26  ;;  %3135 = vrot.lane.b32.xlu0 %v7647_v45, %s4422_s27  ;;  %v7758_v36 = vpop.permute.xlu2 %2564  ;;  %v3183_v11 = vmul.f32 %v7651_v56, %v7733_v58  ;;  %s7863_s3 = sld [smem:[#allocation3 + $0x118]] }
 0x1fb   : > { %v2382_v16 = vmul.f32 %v2380_v50, %v2378_v35  ;;  %v2388_v13 = vmul.f32 %v2386_v49, %v2378_v35  ;;  %v2394_v33 = vmul.f32 %v2392_v29, %v2378_v35  ;;  %v2400_v30 = vmul.f32 %v2398_v44, %v2378_v35  ;;  %v7818_v35 = vld [vmem:[%s4510_s7 + $0x20] sm:$0xff]  ;;  %s7869_s8 = sld [smem:[#allocation3 + $0x119]] }
 0x1fc   : > { %v2473_v40 = vadd.f32 %v7620_v39, %v2459_v54  ;;  %v3162_v45 = vmul.f32 %v7603_v3, %v7733_v58  ;;  %v7770_v50 = vsel %vm329_vm10, %v3246_v21, %v3247_v22  ;;  %v3190_v3 = vrot.slane %v3183_v11, 1  ;;  %v7813_v21 = vld [vmem:[%s4510_s7 + $0x8] sm:$0xff]  ;;  %s7877_s26 = sld [smem:[#allocation3 + $0x11a]] }
 0x1fd   : > { %v7775_v49 = vadd.f32 %v2382_v16, %v7509_v9  ;;  %v7778_v29 = vadd.f32 %v2388_v13, %v7512_v60  ;;  %v7781_v44 = vadd.f32 %v2394_v33, %v7515_v28  ;;  %v7784_v39 = vadd.f32 %v2400_v30, %v7518_v14  ;;  %v8737_v28 = vld [vmem:[#allocation13_spill] sm:$0xff]  ;;  %v2470_v61 = vpop.permute.xlu0 %2469 }
 0x1fe   : > { %v3169_v56 = vrot.slane %v3162_v45, 1  ;;  %v3220_v24 = vmul.f32 %v3218_v62, %v7627_v37  ;;  %v3221_v34 = vmul.f32 %v3218_v62, %v7733_v58  ;;  %v2477_v9 = vmul.f32 %v2476_v7, %v8736_v10  ;;  %v7842_v45 = vld [vmem:[%s4510_s7 + $0x38] sm:$0xff] }
 0x1ff   : > { %v2478_v60 = vmul.f32 %v2476_v7, %v8735_v57  ;;  %v2479_v1 = vmul.f32 %v2476_v7, %v8737_v28  ;;  %v3219_v14 = vmul.f32 %v3218_v62, %v7655_v25  ;;  %v3191_v12 = vsel %vm269_vm9, %v3188_v0, %v3190_v3 }
 0x200   : > { %v3170_v4 = vsel %vm269_vm9, %v3167_v38, %v3169_v56  ;;  %v3226_v2 = vrot.slane %v3220_v24, 2  ;;  %v3228_v18 = vrot.slane %v3221_v34, 2  ;;  %3194 = vrot.lane.b32.xlu1 %v3191_v12, %s4422_s27  ;;  %v2483_v17 = vrot.slane %v2477_v9, 1  ;;  %v7847_v56 = vld [vmem:[%s4510_s7 + $0x50] sm:$0xff] }
 0x201   : > { %3173 = vrot.lane.b32.xlu2 %v3170_v4, %s8589_s9  ;;  %v2484_v42 = vrot.slane %v2478_v60, 1  ;;  %v2486_v41 = vrot.slane %v2479_v1, 1  ;;  %v2474_v0 = vadd.f32 %v2470_v61, %v7700_v32  ;;  %v3225_v38 = vrot.slane %v3219_v14, 2  ;;  %v4318_v60 = vld [vmem:[%s4510_s7] sm:$0xff]  ;;  %v4319_v14 = vld [vmem:[%s4510_s7 + $0x18] sm:$0xff]  ;;  %v4320_v4 = vld [vmem:[%s4510_s7 + $0x30] sm:$0xff] }
 0x202   : > { %v3229_v15 = vsel %vm329_vm10, %v3226_v2, %v3228_v18  ;;  %v3294_v6 = vmul.f32 %v7813_v21, %v7741_v53  ;;  %v3299_v54 = vmul.f32 %v7818_v35, %v7744_v19  ;;  %3192 = vrot.lane.b32.xlu0 %v7718_v52, %s4422_s27  ;;  %v7828_v7 = vpop.permute.xlu2 %2587  ;;  %v7831_v16 = vstv %s7736_s10  ;;  %v4321_v61 = vld [vmem:[%s4510_s7 + $0x48] sm:$0xff]  ;;  %s7890_s10 = sld [smem:[#allocation3 + $0x11b]] }
 0x203   : > { %v2485_v32 = vsel %vm269_vm9, %v2483_v17, %v2484_v42  ;;  %v2487_v62 = vsel %vm269_vm9, %v2484_v42, %v2486_v41  ;;  %v7834_v13 = vstv %s7746_s21  ;;  %v3227_v52 = vsel %vm329_vm10, %v3225_v38, %v3226_v2  ;;  %s7906_s21 = sld [smem:[#allocation3 + $0x7f]] }
 0x204   : > { %v2490_v33 = vadd.f32 %v2485_v32, %v2473_v40  ;;  %v2491_v30 = vadd.f32 %v2487_v62, %v2474_v0  ;;  %v3302_v11 = vadd.f32 %v3299_v54, %v3294_v6  ;;  %v3307_v3 = vmul.f32 %v7842_v45, %v7831_v16 }
 0x205   : > { %v3315_v24 = vmul.f32 %v7847_v56, %v7834_v13  ;;  %v7852_v40 = vstv %s7760_s12  ;;  %v3336_v34 = vstv %s7786_s5  ;;  %v3293_v1 = vmul.f32 %v4318_v60, %v7741_v53  ;;  %v2529_v0 = vpop.permute.xlu1 %2528  ;;  %s7911_s12 = sld [smem:[#allocation3 + $0x5b]] }
 0x206   : > { %v2511_v9 = vadd.f32 %v2506_v23, %v2490_v33  ;;  %v3298_v12 = vmul.f32 %v4319_v14, %v7744_v19  ;;  %v3306_v2 = vmul.f32 %v4320_v4, %v7831_v16  ;;  %v3310_v18 = vadd.f32 %v3307_v3, %v3302_v11  ;;  %v2527_v62 = vpop.permute.xlu0 %2526  ;;  %s7969_s5 = sld [smem:[#allocation3 + $0x8b]] }
 0x207   : > { %v3314_v17 = vmul.f32 %v4321_v61, %v7834_v13  ;;  %v2512_v42 = vadd.f32 %v7687_v47, %v2491_v30  ;;  %v2535_v23 = vstv %s7796_s11  ;;  %v3242_v54 = vmul.f32 %v7668_v31, %v7733_v58  ;;  %s8038_s11 = sld [smem:[#allocation3 + $0x9f]] }
 0x208   : > { %v3301_v41 = vadd.f32 %v3298_v12, %v3293_v1  ;;  %v2536_v38 = vmul.f32 %v2535_v23, %v8736_v10  ;;  %v7873_v6 = vmul.f32 %v2535_v23, %v8735_v57  ;;  %3251 = vrot.lane.b32.xlu1 %v7770_v50, %s4422_s27  ;;  %v3318_v47 = vadd.f32 %v3315_v24, %v3310_v18 }
 0x209   : > { %3230 = vrot.lane.b32.xlu2 %v3227_v52, %s8589_s9  ;;  %v7882_v32 = vadd.f32 %v2529_v0, %v2512_v42  ;;  %v7885_v33 = vstv %s7772_s4  ;;  %v7888_v57 = vstv %s7790_s23  ;;  %v2532_v11 = vadd.f32 %v2527_v62, %v2511_v9  ;;  %s7925_s4 = sld [smem:[#allocation3 + $0xae]] }
 0x20a   : > { %v3309_v31 = vadd.f32 %v3306_v2, %v3301_v41  ;;  %v2542_v10 = vrot.slane %v2536_v38, 2  ;;  %v2543_v30 = vrot.slane %v7873_v6, 2  ;;  %3232 = vrot.lane.b32.xlu0 %v3229_v15, %s8589_s9  ;;  %v3323_v50 = vadd.f32 %v7852_v40, %v3318_v47  ;;  %v7895_v3 = vpop.permute.xlu2 %2689  ;;  %s7980_s23 = sld [smem:[#allocation3 + $0x9e]] }
 0x20b   : > { %v3249_v52 = vrot.slane %v3242_v54, 2  ;;  %v3515_v24 = vmul.f32 %v4318_v60, %v7885_v33  ;;  %v3520_v1 = vmul.f32 %v4319_v14, %v7888_v57  ;;  %v7901_v18 = vstv %s7804_s30  ;;  %s8080_s30 = sld [smem:[#allocation3 + $0xce]] }
 0x20c   : > { %v3317_v12 = vadd.f32 %v3314_v17, %v3309_v31  ;;  %v2544_v2 = vsel %vm329_vm10, %v2542_v10, %v2543_v30  ;;  %v7904_v9 = vstv %s7809_s0  ;;  %v3326_v15 = vmax.f32 %v3323_v50, 0.0  ;;  %s8090_s0 = sld [smem:[#allocation3 + $0xaf]] }
 0x20d   : > { %v2549_v42 = vadd.f32 %v2544_v2, %v2532_v11  ;;  %v3250_v60 = vsel %vm329_vm10, %v3247_v22, %v3249_v52  ;;  %v3523_v14 = vadd.f32 %v3520_v1, %v3515_v24  ;;  %v3528_v41 = vmul.f32 %v4320_v4, %v7901_v18  ;;  %v2586_v4 = vpop.permute.xlu1 %2585 }
 0x20e   : > { %v3322_v17 = vadd.f32 %v7852_v40, %v3317_v12  ;;  %v3536_v0 = vmul.f32 %v4321_v61, %v7904_v9  ;;  %v7917_v38 = vstv %s7822_s6  ;;  %v7920_v6 = vmin.f32 %v3326_v15, %v4591_v46  ;;  %s8111_s6 = sld [smem:[#allocation3 + $0xeb]] }
 0x20f   : > { %v8558_v8 = vstv %s7836_s28  ;;  %v3350_v54 = vstv %s7839_s19  ;;  %v2594_v22 = vstv %s7855_s29  ;;  %v3531_v62 = vadd.f32 %v3528_v41, %v3523_v14  ;;  %v2567_v41 = vpop.permute.xlu0 %2566  ;;  %s8126_s19 = sld [smem:[#allocation3 + $0x11c]] }
 0x210   : > { %v3325_v47 = vmax.f32 %v3322_v17, 0.0  ;;  %v2602_v31 = vstv %s7863_s3  ;;  %v2608_v10 = vstv %s7869_s8  ;;  %v3338_v61 = vmul.f32 %v3336_v34, %v7920_v6  ;;  %s8130_s29 = sld [smem:[#allocation3 + $0x11d]] }
 0x211   : > { %3253 = vrot.lane.b32.xlu2 %v3250_v60, %s4422_s27  ;;  %v3352_v11 = vmul.f32 %v3350_v54, %v7920_v6  ;;  %v2614_v50 = vstv %s7877_s26  ;;  %v2620_v52 = vstv %s7890_s10  ;;  %v3539_v1 = vadd.f32 %v3536_v0, %v3531_v62  ;;  %s8136_s3 = sld [smem:[#allocation3 + $0x11e]] }
 0x212   : > { %v7937_v24 = vmin.f32 %v3325_v47, %v4589_v43  ;;  %v2570_v12 = vadd.f32 %v7758_v36, %v2549_v42  ;;  %v2538_v2 = vmul.f32 %v2535_v23, %v8737_v28  ;;  %3343 = vrot.lane.b32.xlu1 %v3338_v61, %s8589_s9  ;;  %v3516_v15 = vmul.f32 %v7813_v21, %v7885_v33  ;;  %v8738_v61 = vld [vmem:[#allocation14_spill] sm:$0xff]  ;;  %s8145_s8 = sld [smem:[#allocation3 + $0x11f]] }
 0x213   : > { %v3521_v60 = vmul.f32 %v7818_v35, %v7888_v57  ;;  %v3529_v14 = vmul.f32 %v7842_v45, %v7901_v18  ;;  %v3537_v17 = vmul.f32 %v7847_v56, %v7904_v9  ;;  %v3544_v28 = vadd.f32 %v7917_v38, %v3539_v1  ;;  %s8150_s26 = sld [smem:[#allocation3 + $0x5c]] }
 0x214   : > { %v3337_v36 = vmul.f32 %v3336_v34, %v7937_v24  ;;  %v2591_v23 = vadd.f32 %v2586_v4, %v2570_v12  ;;  %v2545_v42 = vrot.slane %v2538_v2, 2  ;;  %v3351_v21 = vmul.f32 %v3350_v54, %v7937_v24  ;;  %v8739_v54 = vld [vmem:[#allocation22_spill] sm:$0xff]  ;;  %s8158_s10 = sld [smem:[#allocation3 + $0xdf]] }
 0x215   : > { %v7955_v0 = vpop.permute.xlu2 %2729  ;;  %v3524_v35 = vadd.f32 %v3521_v60, %v3516_v15  ;;  %v3572_v47 = vstv %s7906_s21  ;;  %v2666_v62 = vstv %s7911_s12  ;;  %v3547_v45 = vmax.f32 %v3544_v28, 0.0  ;;  %s8163_s21 = sld [smem:[#allocation3 + $0xcf]] }
 0x216   : > { %3341 = vrot.lane.b32.xlu0 %v3337_v36, %s8589_s9  ;;  %v2595_v56 = vadd.f32 %v2594_v22, %v2591_v23  ;;  %v2546_v34 = vsel %vm329_vm10, %v2543_v30, %v2545_v42  ;;  %v2668_v4 = vmul.f32 %v2666_v62, %v8738_v61  ;;  %v2667_v2 = vmul.f32 %v2666_v62, %v8739_v54  ;;  %v4322_v23 = vld [vmem:[%s4510_s7 + $0x10] sm:$0x3]  ;;  %v7986_v42 = vld [vmem:[%s4510_s7 + $0x28] sm:$0x3]  ;;  %s8169_s12 = sld [smem:[#allocation3 + $0x8c]] }
 0x217   : > { %v2550_v1 = vadd.f32 %v2546_v34, %v7882_v32  ;;  %v3532_v12 = vadd.f32 %v3529_v14, %v3524_v35  ;;  %v7967_v15 = vstv %s7925_s4  ;;  %v7972_v60 = vmin.f32 %v3547_v45, %v4589_v43  ;;  %v2678_v45 = vpop.permute.xlu1 %2677  ;;  %s8200_s4 = sld [smem:[#allocation3 + $0xbc]] }
 0x218   : > { %v2597_v36 = vmax.f32 %v2595_v56, 0.0  ;;  %v3403_v30 = vmul.f32 %v7967_v15, %v7937_v24  ;;  %v7978_v28 = vmul.f32 %v7967_v15, %v7920_v6  ;;  %v3295_v43 = vmul.f32 %v4322_v23, %v7741_v53 }
 0x219   : > { %v2571_v32 = vadd.f32 %v2567_v41, %v2550_v1  ;;  %3355 = vrot.lane.b32.xlu2 %v3351_v21, %s4422_s27  ;;  %v3540_v14 = vadd.f32 %v3537_v17, %v3532_v12  ;;  %v3300_v35 = vmul.f32 %v7986_v42, %v7744_v19  ;;  %v3559_v62 = vmul.f32 %v8558_v8, %v7972_v60 }
 0x21a   : > { %v2599_v41 = vmin.f32 %v2597_v36, 6.0  ;;  %v3573_v21 = vmul.f32 %v3572_v47, %v7972_v60  ;;  %v3409_v17 = vrot.slane %v3403_v30, 1  ;;  %v2682_v53 = vadd.f32 %v2678_v45, %v2668_v4 }
 0x21b   : > { %v2592_v56 = vadd.f32 %v7828_v7, %v2571_v32  ;;  %v3545_v34 = vadd.f32 %v7917_v38, %v3540_v14  ;;  %v3410_v1 = vrot.slane %v7978_v28, 1  ;;  %3563 = vrot.lane.b32.xlu1 %v3559_v62, %s8589_s9  ;;  %v3303_v32 = vadd.f32 %v3300_v35, %v3295_v43  ;;  %v2676_v45 = vpop.permute.xlu0 %2675 }
 0x21c   : > { %v2603_v12 = vmul.f32 %v2602_v31, %v2599_v41  ;;  %v2609_v19 = vmul.f32 %v2608_v10, %v2599_v41  ;;  %v2615_v8 = vmul.f32 %v2614_v50, %v2599_v41  ;;  %v2621_v36 = vmul.f32 %v2620_v52, %v2599_v41 }
 0x21d   : > { %v2596_v30 = vadd.f32 %v2594_v22, %v2592_v56  ;;  %v3548_v7 = vmax.f32 %v3545_v34, 0.0  ;;  %v8011_v4 = vsel %vm269_vm9, %v3409_v17, %v3410_v1  ;;  %v2681_v35 = vadd.f32 %v2676_v45, %v2667_v2 }
 0x21e   : > { %3357 = vrot.lane.b32.xlu0 %v3352_v11, %s4422_s27  ;;  %v8015_v14 = vadd.f32 %v2603_v12, %v7721_v27  ;;  %v8018_v62 = vadd.f32 %v2609_v19, %v7724_v26  ;;  %v8021_v22 = vadd.f32 %v2615_v8, %v7727_v63  ;;  %v8024_v41 = vadd.f32 %v2621_v36, %v7730_v48  ;;  %v8029_v11 = vpop.permute.xlu2 %2786  ;;  %v4324_v27 = vld [vmem:[%s4510_s7 + $0x40] sm:$0x3]  ;;  %v4325_v26 = vld [vmem:[%s4510_s7 + $0x58] sm:$0x3]  ;;  %s8045_s7 = sld [smem:[#allocation3 + $0xbb]] }
 0x21f   : > { %v2598_v17 = vmax.f32 %v2596_v30, 0.0  ;;  %v8027_v43 = vmin.f32 %v3548_v7, %v4591_v46  ;;  %v3308_v56 = vmul.f32 %v4324_v27, %v7831_v16  ;;  %v3316_v63 = vmul.f32 %v4325_v26, %v7834_v13 }
 0x220   : > { %v3381_v8 = vstv %s7980_s23  ;;  %v2698_v48 = vstv %s7969_s5  ;;  %v3517_v34 = vmul.f32 %v4322_v23, %v7885_v33  ;;  %v2695_v12 = vadd.f32 %v7895_v3, %v2681_v35  ;;  %v2728_v23 = vpop.permute.xlu1 %2727  ;;  %s8245_s5 = sld [smem:[#allocation3 + $0xec]] }
 0x221   : > { %v2600_v46 = vmin.f32 %v2598_v17, 6.0  ;;  %v3574_v2 = vmul.f32 %v3572_v47, %v8027_v43  ;;  %v8740_v16 = vstv %s7836_s28  ;;  %v3311_v13 = vadd.f32 %v3308_v56, %v3303_v32  ;;  %s8116_s28 = sld [smem:[#allocation3 + $0xde]] }
 0x222   : > { %v3560_v19 = vmul.f32 %v8740_v16, %v8027_v43  ;;  %v8048_v36 = vmul.f32 %v3381_v8, %v7920_v6  ;;  %v2699_v30 = vmul.f32 %v2698_v48, %v8739_v54  ;;  %v2700_v33 = vmul.f32 %v2698_v48, %v8738_v61  ;;  %s8250_s23 = sld [smem:[#allocation3 + $0x120]] }
 0x223   : > { %v2604_v7 = vmul.f32 %v2602_v31, %v2600_v46  ;;  %v2610_v47 = vmul.f32 %v2608_v10, %v2600_v46  ;;  %v2616_v3 = vmul.f32 %v2614_v50, %v2600_v46  ;;  %v2622_v45 = vmul.f32 %v2620_v52, %v2600_v46  ;;  %3579 = vrot.lane.b32.xlu1 %v3574_v2, %s4422_s27 }
 0x224   : > { %3565 = vrot.lane.b32.xlu2 %v3560_v19, %s8589_s9  ;;  %v3319_v32 = vadd.f32 %v3316_v63, %v3311_v13  ;;  %v3389_v17 = vrot.slane %v8048_v36, 1  ;;  %v2705_v35 = vrot.slane %v2699_v30, 1  ;;  %v2706_v56 = vrot.slane %v2700_v33, 1 }
 0x225   : > { %v8064_v16 = vadd.f32 %v2604_v7, %v7775_v49  ;;  %v8067_v31 = vadd.f32 %v2610_v47, %v7778_v29  ;;  %v8070_v10 = vadd.f32 %v2616_v3, %v7781_v44  ;;  %v8073_v50 = vadd.f32 %v2622_v45, %v7784_v39  ;;  %v2692_v49 = vpop.permute.xlu0 %2691 }
 0x226   : > { %3577 = vrot.lane.b32.xlu0 %v3573_v21, %s4422_s27  ;;  %v3324_v52 = vadd.f32 %v7852_v40, %v3319_v32  ;;  %v2707_v63 = vsel %vm269_vm9, %v2705_v35, %v2706_v56  ;;  %v2701_v46 = vmul.f32 %v2698_v48, %v7217_v5  ;;  %v3382_v29 = vmul.f32 %v3381_v8, %v7937_v24  ;;  %v8086_v48 = vpop.permute.xlu2 %2809 }
 0x227   : > { %v2712_v44 = vadd.f32 %v2707_v63, %v2695_v12  ;;  %v2696_v2 = vadd.f32 %v2692_v49, %v2682_v53  ;;  %v3522_v39 = vmul.f32 %v7986_v42, %v7888_v57  ;;  %v3530_v21 = vmul.f32 %v4324_v27, %v7901_v18 }
 0x228   : > { %v3327_v19 = vmax.f32 %v3324_v52, 0.0  ;;  %v2708_v40 = vrot.slane %v2701_v46, 1  ;;  %v3388_v13 = vrot.slane %v3382_v29, 1  ;;  %v3538_v36 = vmul.f32 %v4325_v26, %v7904_v9 }
 0x229   : > { %v2733_v30 = vadd.f32 %v2728_v23, %v2712_v44  ;;  %v3525_v33 = vadd.f32 %v3522_v39, %v3517_v34  ;;  %v3603_v7 = vstv %s8038_s11  ;;  %v2757_v47 = vstv %s8045_s7  ;;  %s4151_s11 = sld [smem:[#allocation3 + $0x8d]] }
 0x22a   : > { %v8093_v53 = vmin.f32 %v3327_v19, %v8729_v20  ;;  %v2709_v57 = vsel %vm269_vm9, %v2706_v56, %v2708_v40  ;;  %v3390_v18 = vsel %vm269_vm9, %v3388_v13, %v3389_v17  ;;  %v8098_v42 = vmul.f32 %v3603_v7, %v8027_v43  ;;  %s8253_s7 = sld [smem:[#allocation3 + $0x121]] }
 0x22b   : > { %v2713_v27 = vadd.f32 %v2709_v57, %v2696_v2  ;;  %v3533_v9 = vadd.f32 %v3530_v21, %v3525_v33  ;;  %v3604_v26 = vmul.f32 %v3603_v7, %v7972_v60  ;;  %v2751_v34 = vpop.permute.xlu1 %2750  ;;  %v2758_v12 = vmul.f32 %v2757_v47, %v8739_v54  ;;  %3414 = vrot.lane.b32.xlu1 %v8011_v4, %s4422_s27 }
 0x22c   : > { %3393 = vrot.lane.b32.xlu2 %v3390_v18, %s8589_s9  ;;  %v3384_v23 = vmul.f32 %v3381_v8, %v8093_v53  ;;  %v2759_v3 = vmul.f32 %v2757_v47, %v8738_v61  ;;  %v3405_v45 = vmul.f32 %v7967_v15, %v8093_v53  ;;  %v3611_v35 = vrot.slane %v8098_v42, 1 }
 0x22d   : > { %v3541_v32 = vadd.f32 %v3538_v36, %v3533_v9  ;;  %v2734_v56 = vadd.f32 %v7955_v0, %v2713_v27  ;;  %v2764_v52 = vrot.slane %v2758_v12, 2  ;;  %v2749_v46 = vpop.permute.xlu0 %2748  ;;  %v8114_v49 = vstv %s8080_s30  ;;  %s8258_s30 = sld [smem:[#allocation3 + $0x123]] }
 0x22e   : > { %v3391_v63 = vrot.slane %v3384_v23, 1  ;;  %v2765_v54 = vrot.slane %v2759_v3, 2  ;;  %v3412_v4 = vrot.slane %v3405_v45, 1  ;;  %v3610_v15 = vrot.slane %v3604_v26, 1 }
 0x22f   : > { %v3546_v61 = vadd.f32 %v7917_v38, %v3541_v32  ;;  %v2755_v8 = vadd.f32 %v2751_v34, %v2734_v56  ;;  %v2754_v29 = vadd.f32 %v2749_v46, %v2733_v30  ;;  %v3441_v39 = vmul.f32 %v8114_v49, %v7937_v24 }
 0x230   : > { %v3392_v44 = vsel %vm269_vm9, %v3389_v17, %v3391_v63  ;;  %v2766_v0 = vsel %vm329_vm10, %v2764_v52, %v2765_v54  ;;  %v3413_v2 = vsel %vm269_vm9, %v3410_v1, %v3412_v4  ;;  %v3624_v19 = vstv %s8090_s0  ;;  %v8142_v1 = vpop.permute.xlu2 %2911  ;;  %s8261_s0 = sld [smem:[#allocation3 + $0x5d]] }
 0x231   : > { %3395 = vrot.lane.b32.xlu0 %v3392_v44, %s8589_s9  ;;  %v3549_v21 = vmax.f32 %v3546_v61, 0.0  ;;  %v2771_v38 = vadd.f32 %v2766_v0, %v2754_v29  ;;  %v8134_v17 = vmul.f32 %v8114_v49, %v7920_v6  ;;  %v3626_v40 = vmul.f32 %v3624_v19, %v8027_v43 }
 0x232   : > { %v3612_v36 = vsel %vm269_vm9, %v3610_v15, %v3611_v35  ;;  %v3447_v30 = vrot.slane %v3441_v39, 2  ;;  %v2760_v57 = vmul.f32 %v2757_v47, %v7217_v5  ;;  %v2816_v42 = vstv %s8111_s6  ;;  %s4157_s6 = sld [smem:[#allocation3 + $0xed]] }
 0x233   : > { %v8139_v28 = vmin.f32 %v3549_v21, %v8729_v20  ;;  %v2808_v13 = vpop.permute.xlu1 %2807  ;;  %v2792_v33 = vadd.f32 %v8029_v11, %v2771_v38  ;;  %v3625_v27 = vmul.f32 %v3624_v19, %v7972_v60  ;;  %v3448_v9 = vrot.slane %v8134_v17, 2 }
 0x234   : > { %3416 = vrot.lane.b32.xlu2 %v3413_v2, %s4422_s27  ;;  %v2767_v34 = vrot.slane %v2760_v57, 2  ;;  %v3461_v12 = vstv %s8116_s28  ;;  %v3632_v3 = vrot.slane %v3626_v40, 1  ;;  %v2830_v61 = vstv %s8130_s29  ;;  %s8304_s28 = sld [smem:[#allocation3 + $0x124]] }
 0x235   : > { %v3606_v20 = vmul.f32 %v3603_v7, %v8139_v28  ;;  %v3627_v18 = vmul.f32 %v3624_v19, %v8139_v28  ;;  %v2813_v26 = vadd.f32 %v2808_v13, %v2792_v33  ;;  %v3631_v11 = vrot.slane %v3625_v27, 1  ;;  %v2789_v47 = vpop.permute.xlu0 %2788  ;;  %s8308_s29 = sld [smem:[#allocation3 + $0x126]] }
 0x236   : > { %v2768_v7 = vsel %vm329_vm10, %v2765_v54, %v2767_v34  ;;  %v3463_v32 = vmul.f32 %v3461_v12, %v7920_v6  ;;  %v3464_v56 = vmul.f32 %v3461_v12, %v8093_v53  ;;  %v3462_v4 = vmul.f32 %v3461_v12, %v7937_v24 }
 0x237   : > { %v3613_v23 = vrot.slane %v3606_v20, 1  ;;  %v3634_v45 = vrot.slane %v3627_v18, 1  ;;  %v2817_v5 = vadd.f32 %v2816_v42, %v2813_v26  ;;  %v2772_v63 = vadd.f32 %v2768_v7, %v2755_v8 }
 0x238   : > { %v3633_v46 = vsel %vm269_vm9, %v3631_v11, %v3632_v3  ;;  %v2824_v54 = vstv %s8126_s19  ;;  %v2836_v15 = vstv %s8136_s3  ;;  %v3449_v44 = vsel %vm329_vm10, %v3447_v30, %v3448_v9  ;;  %v8183_v17 = vpop.permute.xlu2 %2951  ;;  %s8306_s19 = sld [smem:[#allocation3 + $0x125]] }
 0x239   : > { %v3614_v52 = vsel %vm269_vm9, %v3611_v35, %v3613_v23  ;;  %3615 = vrot.lane.b32.xlu0 %v3612_v36, %s8589_s9  ;;  %v2819_v29 = vmax.f32 %v2817_v5, 0.0  ;;  %v2842_v0 = vstv %s8145_s8  ;;  %v2793_v35 = vadd.f32 %v2789_v47, %v2772_v63  ;;  %s8310_s3 = sld [smem:[#allocation3 + $0x127]] }
 0x23a   : > { %3617 = vrot.lane.b32.xlu1 %v3614_v52, %s8589_s9  ;;  %v3443_v8 = vmul.f32 %v8114_v49, %v8093_v53  ;;  %v3635_v2 = vsel %vm269_vm9, %v3632_v3, %v3634_v45  ;;  %v3469_v21 = vrot.slane %v3463_v32, 2  ;;  %v2888_v38 = vstv %s8150_s26  ;;  %s4167_s8 = sld [smem:[#allocation3 + $0x5e]] }
 0x23b   : > { %v2821_v39 = vmin.f32 %v2819_v29, 6.0  ;;  %v2814_v19 = vadd.f32 %v8086_v48, %v2793_v35  ;;  %v3471_v40 = vrot.slane %v3464_v56, 2  ;;  %v3468_v13 = vrot.slane %v3462_v4, 2  ;;  %s4170_s26 = sld [smem:[#allocation3 + $0x8e]] }
 0x23c   : > { %3636 = vrot.lane.b32.xlu2 %v3633_v46, %s4422_s27  ;;  %v3450_v36 = vrot.slane %v3443_v8, 2  ;;  %v2889_v27 = vmul.f32 %v2888_v38, %v7401_v59  ;;  %v3683_v34 = vstv %s8158_s10  ;;  %v3662_v45 = vstv %s8163_s21  ;;  %s4189_s10 = sld [smem:[#allocation3 + $0x8f]] }
 0x23d   : > { %v2825_v30 = vmul.f32 %v2824_v54, %v2821_v39  ;;  %v2831_v33 = vmul.f32 %v2830_v61, %v2821_v39  ;;  %v2837_v57 = vmul.f32 %v2836_v15, %v2821_v39  ;;  %v2843_v20 = vmul.f32 %v2842_v0, %v2821_v39  ;;  %v2900_v49 = vpop.permute.xlu1 %2899  ;;  %s4173_s21 = sld [smem:[#allocation3 + $0xbe]] }
 0x23e   : > { %v2818_v18 = vadd.f32 %v2816_v42, %v2814_v19  ;;  %v3451_v26 = vsel %vm329_vm10, %v3448_v9, %v3450_v36  ;;  %v2890_v9 = vmul.f32 %v2888_v38, %v7372_v55  ;;  %v2920_v11 = vstv %s8169_s12  ;;  %s8347_s12 = sld [smem:[#allocation3 + $0x5f]] }
 0x23f   : > { %v8189_v48 = vadd.f32 %v2825_v30, %v8015_v14  ;;  %v8192_v12 = vadd.f32 %v2831_v33, %v8018_v62  ;;  %v8195_v23 = vadd.f32 %v2837_v57, %v8021_v22  ;;  %v8198_v3 = vadd.f32 %v2843_v20, %v8024_v41 }
 0x240   : > { %v2820_v42 = vmax.f32 %v2818_v18, 0.0  ;;  %v3472_v14 = vsel %vm329_vm10, %v3469_v21, %v3471_v40  ;;  %v3470_v62 = vsel %vm329_vm10, %v3468_v13, %v3469_v21  ;;  %v2921_v5 = vmul.f32 %v2920_v11, %v7401_v59 }
 0x241   : > { %3638 = vrot.lane.b32.xlu0 %v3635_v2, %s4422_s27  ;;  %v2898_v22 = vpop.permute.xlu0 %2897  ;;  %v2922_v41 = vmul.f32 %v2920_v11, %v7372_v55  ;;  %v3684_v32 = vmul.f32 %v3683_v34, %v7972_v60  ;;  %v2923_v56 = vmul.f32 %v2920_v11, %v7446_v51  ;;  %v3664_v52 = vmul.f32 %v3662_v45, %v8027_v43 }
 0x242   : > { %3452 = vrot.lane.b32.xlu1 %v3449_v44, %s8589_s9  ;;  %v2822_v7 = vmin.f32 %v2820_v42, 6.0  ;;  %v2903_v47 = vadd.f32 %v2898_v22, %v2889_v27  ;;  %v3665_v63 = vmul.f32 %v3662_v45, %v8139_v28  ;;  %v2927_v46 = vrot.slane %v2921_v5, 1 }
 0x243   : > { %v2928_v4 = vrot.slane %v2922_v41, 1  ;;  %v3685_v39 = vmul.f32 %v3683_v34, %v8027_v43  ;;  %v2930_v19 = vrot.slane %v2923_v56, 1  ;;  %v2979_v36 = vstv %s8200_s4  ;;  %s4192_s4 = sld [smem:[#allocation3 + $0xbf]] }
 0x244   : > { %3454 = vrot.lane.b32.xlu2 %v3451_v26, %s8589_s9  ;;  %v2826_v29 = vmul.f32 %v2824_v54, %v2822_v7  ;;  %v2832_v44 = vmul.f32 %v2830_v61, %v2822_v7  ;;  %v2838_v35 = vmul.f32 %v2836_v15, %v2822_v7  ;;  %v2844_v8 = vmul.f32 %v2842_v0, %v2822_v7  ;;  %v3009_v15 = vpop.permute.xlu2 %3008 }
 0x245   : > { %v2917_v2 = vadd.f32 %v8142_v1, %v2903_v47  ;;  %v2929_v21 = vsel %vm269_vm9, %v2927_v46, %v2928_v4  ;;  %v2950_v38 = vpop.permute.xlu1 %2949  ;;  %v3663_v0 = vmul.f32 %v3662_v45, %v7972_v60  ;;  %v2904_v30 = vadd.f32 %v2900_v49, %v2890_v9 }
 0x246   : > { %v8220_v40 = vadd.f32 %v2826_v29, %v8064_v16  ;;  %v8223_v13 = vadd.f32 %v2832_v44, %v8067_v31  ;;  %v8226_v54 = vadd.f32 %v2838_v35, %v8070_v10  ;;  %v8229_v61 = vadd.f32 %v2844_v8, %v8073_v50 }
 0x247   : > { %v2934_v1 = vadd.f32 %v2929_v21, %v2917_v2  ;;  %v3670_v33 = vrot.slane %v3664_v52, 2  ;;  %v3672_v16 = vrot.slane %v3665_v63, 2  ;;  %v2931_v57 = vsel %vm269_vm9, %v2928_v4, %v2930_v19 }
 0x248   : > { %v3669_v20 = vrot.slane %v3663_v0, 2  ;;  %v2980_v50 = vmul.f32 %v2979_v36, %v7401_v59  ;;  %v2981_v18 = vmul.f32 %v2979_v36, %v7372_v55  ;;  %v3690_v27 = vrot.slane %v3684_v32, 2 }
 0x249   : > { %3473 = vrot.lane.b32.xlu0 %v3470_v62, %s4422_s27  ;;  %v2955_v31 = vadd.f32 %v2950_v38, %v2934_v1  ;;  %v2914_v10 = vpop.permute.xlu0 %2913  ;;  %v3691_v26 = vrot.slane %v3685_v39, 2  ;;  %v3686_v49 = vmul.f32 %v3683_v34, %v8139_v28  ;;  %v3673_v9 = vsel %vm329_vm10, %v3670_v33, %v3672_v16 }
 0x24a   : > { %3475 = vrot.lane.b32.xlu1 %v3472_v14, %s4422_s27  ;;  %v2918_v42 = vadd.f32 %v2914_v10, %v2904_v30  ;;  %v3671_v45 = vsel %vm329_vm10, %v3669_v20, %v3670_v33  ;;  %v2986_v62 = vrot.slane %v2980_v50, 2  ;;  %v2987_v22 = vrot.slane %v2981_v18, 2 }
 0x24b   : > { %v2982_v5 = vmul.f32 %v2979_v36, %v7446_v51  ;;  %v3693_v59 = vrot.slane %v3686_v49, 2  ;;  %v3692_v55 = vsel %vm329_vm10, %v3690_v27, %v3691_v26  ;;  %v3038_v29 = vstv %s8245_s5  ;;  %s8362_s5 = sld [smem:[#allocation3 + $0xee]] }
 0x24c   : > { %v2935_v11 = vadd.f32 %v2931_v57, %v2918_v42  ;;  %3674 = vrot.lane.b32.xlu2 %v3671_v45, %s8589_s9  ;;  %v3032_v34 = vpop.permute.xlu2 %3031  ;;  %v2988_v47 = vsel %vm329_vm10, %v2986_v62, %v2987_v22  ;;  %v3142_v38 = vstv %s4151_s11  ;;  %v3046_v19 = vstv %s8250_s23  ;;  %s8373_s23 = sld [smem:[#allocation3 + $0x128]] }
 0x24d   : > { %v2973_v14 = vpop.permute.xlu1 %2972  ;;  %v2989_v51 = vrot.slane %v2982_v5, 2  ;;  %v3694_v56 = vsel %vm329_vm10, %v3691_v26, %v3693_v59  ;;  %v3052_v1 = vstv %s8253_s7  ;;  %v3064_v33 = vstv %s8258_s30  ;;  %s8376_s11 = sld [smem:[#allocation3 + $0x129]] }
 0x24e   : > { %v2956_v41 = vadd.f32 %v8183_v17, %v2935_v11  ;;  %v3143_v16 = vmul.f32 %v3142_v38, %v7655_v25  ;;  %v3110_v10 = vstv %s8261_s0  ;;  %s8379_s7 = sld [smem:[#allocation3 + $0x12a]] }
 0x24f   : > { %v2990_v46 = vsel %vm329_vm10, %v2987_v22, %v2989_v51  ;;  %v3111_v45 = vmul.f32 %v3110_v10, %v7655_v25  ;;  %s8383_s30 = sld [smem:[#allocation3 + $0xef]] }
 0x250   : > { %v2977_v7 = vadd.f32 %v2973_v14, %v2956_v41  ;;  %v3149_v49 = vrot.slane %v3143_v16, 1  ;;  %v3145_v41 = vmul.f32 %v3142_v38, %v7733_v58  ;;  %s8386_s0 = sld [smem:[#allocation3 + $0x12c]] }
 0x251   : > { %3676 = vrot.lane.b32.xlu0 %v3673_v9, %s8589_s9  ;;  %v2971_v32 = vpop.permute.xlu0 %2970  ;;  %s8255_s9 = sld [smem:[#allocation3 + $0x122]] }
 0x252   : > { %3695 = vrot.lane.b32.xlu1 %v3692_v55, %s4422_s27  ;;  %v2976_v52 = vadd.f32 %v2971_v32, %v2955_v31  ;;  %v2994_v35 = vadd.f32 %v2990_v46, %v2977_v7  ;;  %v3152_v46 = vrot.slane %v3145_v41, 1 }
 0x254   : > { %v2993_v17 = vadd.f32 %v2988_v47, %v2976_v52  ;;  %3697 = vrot.lane.b32.xlu2 %v3694_v56, %s4422_s27  ;;  %v3134_v2 = vpop.permute.xlu2 %3133  ;;  %s4154_s27 = sld [smem:[#allocation3 + $0xbd]] }
 0x255   : > { %v3030_v63 = vpop.permute.xlu1 %3029 }
 0x256   : > { %v3014_v4 = vadd.f32 %v3009_v15, %v2993_v17  ;;  %v3144_v15 = vmul.f32 %v3142_v38, %v7627_v37 }
 0x257   : > { %v3058_v30 = vstv %s8255_s9  ;;  %s8381_s9 = sld [smem:[#allocation3 + $0x12b]] }
 0x258   : > { %v3035_v44 = vadd.f32 %v3030_v63, %v3014_v4  ;;  %v3150_v9 = vrot.slane %v3144_v15, 1 }
 0x259   : > { %v3011_v8 = vpop.permute.xlu0 %3010 }
 0x25a   : > { %v3039_v39 = vadd.f32 %v3038_v29, %v3035_v44  ;;  %v3015_v21 = vadd.f32 %v3011_v8, %v2994_v35  ;;  %v3201_v4 = vstv %s4154_s27  ;;  %v3153_v8 = vsel %vm269_vm9, %v3150_v9, %v3152_v46  ;;  %s8388_s27 = sld [smem:[#allocation3 + $0x12d]] }
 0x25c   : > { %v3041_v0 = vmax.f32 %v3039_v39, 0.0  ;;  %v3036_v36 = vadd.f32 %v3032_v34, %v3015_v21  ;;  %v3174_v59 = vpop.permute.xlu2 %3173  ;;  %v3202_v39 = vmul.f32 %v3201_v4, %v7655_v25 }
 0x25e   : > { %v3043_v57 = vmin.f32 %v3041_v0, 6.0  ;;  %v3040_v31 = vadd.f32 %v3038_v29, %v3036_v36 }
 0x260   : > { %v3047_v20 = vmul.f32 %v3046_v19, %v3043_v57  ;;  %v3053_v50 = vmul.f32 %v3052_v1, %v3043_v57  ;;  %v3059_v18 = vmul.f32 %v3058_v30, %v3043_v57  ;;  %v3065_v27 = vmul.f32 %v3064_v33, %v3043_v57 }
 0x261   : > { %v3122_v26 = vpop.permute.xlu1 %3121  ;;  %v3042_v42 = vmax.f32 %v3040_v31, 0.0  ;;  %v3260_v31 = vstv %s4157_s6  ;;  %s8390_s6 = sld [smem:[#allocation3 + $0x12e]] }
 0x262   : > { %v8273_v11 = vadd.f32 %v3047_v20, %v8189_v48  ;;  %v8276_v14 = vadd.f32 %v3053_v50, %v8192_v12  ;;  %v8279_v62 = vadd.f32 %v3059_v18, %v8195_v23  ;;  %v8282_v22 = vadd.f32 %v3065_v27, %v8198_v3 }
 0x263   : > { %v3044_v5 = vmin.f32 %v3042_v42, 6.0  ;;  %v3112_v48 = vmul.f32 %v3110_v10, %v7627_v37  ;;  %v3151_v12 = vsel %vm269_vm9, %v3149_v49, %v3150_v9  ;;  %v3268_v49 = vstv %s8304_s28  ;;  %s8392_s28 = sld [smem:[#allocation3 + $0x12f]] }
 0x264   : > { %v3120_v55 = vpop.permute.xlu0 %3119  ;;  %v3274_v9 = vstv %s8306_s19  ;;  %s8394_s19 = sld [smem:[#allocation3 + $0x130]] }
 0x265   : > { %v3048_v34 = vmul.f32 %v3046_v19, %v3044_v5  ;;  %v3054_v7 = vmul.f32 %v3052_v1, %v3044_v5  ;;  %v3060_v47 = vmul.f32 %v3058_v30, %v3044_v5  ;;  %v3066_v32 = vmul.f32 %v3064_v33, %v3044_v5 }
 0x266   : > { %v3125_v51 = vadd.f32 %v3120_v55, %v3111_v45  ;;  %v3126_v44 = vadd.f32 %v3122_v26, %v3112_v48  ;;  %v3208_v19 = vrot.slane %v3202_v39, 2  ;;  %v3280_v5 = vstv %s8308_s29  ;;  %s8397_s29 = sld [smem:[#allocation3 + $0x131]] }
 0x267   : > { %v8288_v23 = vadd.f32 %v3048_v34, %v8220_v40  ;;  %v8291_v3 = vadd.f32 %v3054_v7, %v8223_v13  ;;  %v8294_v56 = vadd.f32 %v3060_v47, %v8226_v54  ;;  %v8297_v52 = vadd.f32 %v3066_v32, %v8229_v61  ;;  %v3231_v54 = vpop.permute.xlu2 %3230 }
 0x268   : > { %v3139_v17 = vadd.f32 %v3134_v2, %v3125_v51  ;;  %v3203_v13 = vmul.f32 %v3201_v4, %v7627_v37  ;;  %v3204_v2 = vmul.f32 %v3201_v4, %v7733_v58 }
 0x269   : > { %v3172_v63 = vpop.permute.xlu1 %3171 }
 0x26a   : > { %v3156_v29 = vadd.f32 %v3151_v12, %v3139_v17  ;;  %v3209_v61 = vrot.slane %v3203_v13, 2  ;;  %v3211_v16 = vrot.slane %v3204_v2, 2  ;;  %v3364_v2 = vstv %s4170_s26  ;;  %s130_s26 = sand.u32 1, %s4402_s14  }
 0x26c   : > { %v3177_v35 = vadd.f32 %v3172_v63, %v3156_v29  ;;  %v3136_v40 = vpop.permute.xlu0 %3135  ;;  %v3210_v30 = vsel %vm329_vm10, %v3208_v19, %v3209_v61  ;;  %v3212_v58 = vsel %vm329_vm10, %v3209_v61, %v3211_v16  ;;  %v3332_v61 = vstv %s4167_s8  ;;  %s8401_s8 = sld [smem:[#allocation3 + $0x133]] }
 0x26d   : > { %v3140_v21 = vadd.f32 %v3136_v40, %v3126_v44 }
 0x26f   : > { %v3157_v38 = vadd.f32 %v3153_v8, %v3140_v21  ;;  %v3254_v25 = vpop.permute.xlu2 %3253 }
 0x271   : > { %v3178_v1 = vadd.f32 %v3174_v59, %v3157_v38  ;;  %v3286_v59 = vstv %s8310_s3  ;;  %s8399_s3 = sld [smem:[#allocation3 + $0x132]] }
 0x272   : > { %v3195_v0 = vpop.permute.xlu1 %3194 }
 0x273   : > { %v3199_v36 = vadd.f32 %v3195_v0, %v3178_v1  ;;  %v3334_v0 = vmul.f32 %v3332_v61, %v7920_v6 }
 0x274   : > { %v3193_v33 = vpop.permute.xlu0 %3192 }
 0x275   : > { %v3198_v15 = vadd.f32 %v3193_v33, %v3177_v35  ;;  %v3216_v50 = vadd.f32 %v3212_v58, %v3199_v36  ;;  %v3365_v36 = vmul.f32 %v3364_v2, %v7937_v24 }
 0x277   : > { %v3215_v37 = vadd.f32 %v3210_v30, %v3198_v15  ;;  %v3356_v34 = vpop.permute.xlu2 %3355  ;;  %v3366_v30 = vmul.f32 %v3364_v2, %v7920_v6 }
 0x279   : > { %v3236_v57 = vadd.f32 %v3231_v54, %v3215_v37  ;;  %v3372_v58 = vrot.slane %v3366_v30, 1 }
 0x27a   : > { %v3252_v10 = vpop.permute.xlu1 %3251 }
 0x27b   : > { %v3257_v20 = vadd.f32 %v3252_v10, %v3236_v57 }
 0x27c   : > { %v3233_v18 = vpop.permute.xlu0 %3232 }
 0x27d   : > { %v3261_v27 = vadd.f32 %v3260_v31, %v3257_v20  ;;  %v3237_v26 = vadd.f32 %v3233_v18, %v3216_v50  ;;  %v3423_v50 = vstv %s4173_s21  ;;  %v3554_v18 = vstv %s8347_s12  ;;  %s4215_s21 = sshll.u32 %s4410_s16, 6 }
 0x27f   : > { %v3263_v42 = vmax.f32 %v3261_v27, 0.0  ;;  %v3258_v45 = vadd.f32 %v3254_v25, %v3237_v26  ;;  %v3371_v25 = vrot.slane %v3365_v36, 1 }
 0x281   : > { %v3265_v55 = vmin.f32 %v3263_v42, 6.0  ;;  %v3262_v41 = vadd.f32 %v3260_v31, %v3258_v45  ;;  %v3586_v31 = vstv %s4189_s10  ;;  %v3373_v27 = vsel %vm269_vm9, %v3371_v25, %v3372_v58  ;;  %s3886_s10 = sshll.u32 %s130_s26, 6 }
 0x282   : > { %v3426_v45 = vmul.f32 %v3423_v50, %v8093_v53  ;;  %s132_s16 = scalar_lea.vmem [#allocation4], %s3886_s10 }
 0x283   : > { %v3269_v7 = vmul.f32 %v3268_v49, %v3265_v55  ;;  %v3275_v47 = vmul.f32 %v3274_v9, %v3265_v55  ;;  %v3281_v32 = vmul.f32 %v3280_v5, %v3265_v55  ;;  %v3287_v48 = vmul.f32 %v3286_v59, %v3265_v55 }
 0x284   : > { %v3264_v51 = vmax.f32 %v3262_v41, 0.0  ;;  %v3344_v12 = vpop.permute.xlu1 %3343  ;;  %v3587_v55 = vmul.f32 %v3586_v31, %v7972_v60  ;;  %v3424_v41 = vmul.f32 %v3423_v50, %v7937_v24 }
 0x285   : > { %v8318_v17 = vadd.f32 %v3269_v7, %v8273_v11  ;;  %v8321_v63 = vadd.f32 %v3275_v47, %v8276_v14  ;;  %v8324_v46 = vadd.f32 %v3281_v32, %v8279_v62  ;;  %v8327_v4 = vadd.f32 %v3287_v48, %v8282_v22  ;;  %v8341_v22 = vpop.permute.xlu2 %3565 }
 0x286   : > { %v3266_v29 = vmin.f32 %v3264_v51, 6.0  ;;  %v3348_v37 = vadd.f32 %v3344_v12, %v3334_v0  ;;  %v3555_v7 = vmul.f32 %v3554_v18, %v7972_v60  ;;  %v3433_v32 = vrot.slane %v3426_v45, 2 }
 0x287   : > { %v3589_v48 = vmul.f32 %v3586_v31, %v8139_v28 }
 0x288   : > { %v3342_v44 = vpop.permute.xlu0 %3341  ;;  %v3270_v35 = vmul.f32 %v3268_v49, %v3266_v29  ;;  %v3276_v8 = vmul.f32 %v3274_v9, %v3266_v29  ;;  %v3282_v40 = vmul.f32 %v3280_v5, %v3266_v29  ;;  %v3288_v39 = vmul.f32 %v3286_v59, %v3266_v29 }
 0x289   : > { %v3588_v49 = vmul.f32 %v3586_v31, %v8027_v43  ;;  %v3425_v59 = vmul.f32 %v3423_v50, %v7920_v6  ;;  %v3430_v29 = vrot.slane %v3424_v41, 2  ;;  %v3482_v31 = vstv %s8362_s5  ;;  %s3793_s5 = scalar_lea.hbm %s8475_s2, %s4215_s21 }
 0x28a   : > { %v8330_v13 = vadd.f32 %v3270_v35, %v8288_v23  ;;  %v8333_v11 = vadd.f32 %v3276_v8, %v8291_v3  ;;  %v8336_v14 = vadd.f32 %v3282_v40, %v8294_v56  ;;  %v8339_v62 = vadd.f32 %v3288_v39, %v8297_v52 }
 0x28b   : > { %v3333_v56 = vmul.f32 %v3332_v61, %v7937_v24  ;;  %v3367_v52 = vmul.f32 %v3364_v2, %v8093_v53  ;;  %v3431_v51 = vrot.slane %v3425_v59, 2  ;;  %v3594_v12 = vrot.slane %v3588_v49, 1 }
 0x28c   : > { %v3593_v53 = vrot.slane %v3587_v55, 1  ;;  %v3645_v40 = vstv %s4192_s4  ;;  %v3556_v24 = vmul.f32 %v3554_v18, %v8027_v43 }
 0x28d   : > { %v3564_v21 = vpop.permute.xlu1 %3563  ;;  %v3394_v38 = vpop.permute.xlu2 %3393  ;;  %v3347_v16 = vadd.f32 %v3342_v44, %v3333_v56  ;;  %v3374_v15 = vrot.slane %v3367_v52, 1  ;;  %v3434_v61 = vsel %vm329_vm10, %v3431_v51, %v3433_v32  ;;  %v3596_v52 = vrot.slane %v3589_v48, 1 }
 0x28e   : > { %v3569_v35 = vadd.f32 %v3564_v21, %v3555_v7  ;;  %v3595_v0 = vsel %vm269_vm9, %v3593_v53, %v3594_v12  ;;  %v3646_v21 = vmul.f32 %v3645_v40, %v7972_v60  ;;  %v3647_v36 = vmul.f32 %v3645_v40, %v8027_v43 }
 0x28f   : > { %v3361_v10 = vadd.f32 %v3356_v34, %v3347_v16  ;;  %v3375_v20 = vsel %vm269_vm9, %v3372_v58, %v3374_v15  ;;  %v3570_v30 = vadd.f32 %v8341_v22, %v3556_v24  ;;  %v3648_v43 = vmul.f32 %v3645_v40, %v8139_v28 }
 0x290   : > { %v3358_v54 = vpop.permute.xlu0 %3357  ;;  %v3490_v48 = vstv %s8373_s23  ;;  %v3704_v53 = vstv %s8383_s30  ;;  %v3718_v24 = vstv %s8388_s27  ;;  %s3794_s23 = sshll.u32 %s132_s16, 4  ;;  %s3795_s23 = int_to_ptr.vmem [resolvable:$true] %s3794_s23 }
 0x291   : > { %v3362_v57 = vadd.f32 %v3358_v54, %v3348_v37  ;;  %v3378_v34 = vadd.f32 %v3373_v27, %v3361_v10  ;;  %v3652_v37 = vrot.slane %v3646_v21, 2  ;;  %v3655_v49 = vrot.slane %v3648_v43, 2 }
 0x293   : > { %v3379_v5 = vadd.f32 %v3375_v20, %v3362_v57  ;;  %v3399_v44 = vadd.f32 %v3394_v38, %v3378_v34  ;;  %v3432_v38 = vsel %vm329_vm10, %v3430_v29, %v3431_v51  ;;  %v3653_v57 = vrot.slane %v3647_v36, 2 }
 0x294   : > { %v3496_v51 = vstv %s8376_s11  ;;  %v3747_v36 = vstv %s8397_s29  ;;  %s3796_s11 = sshll.u32 %s3793_s5, 4  ;;  %s3797_s11 = int_to_ptr.hbm [resolvable:$true] %s3796_s11 }
 0x295   : > { %v8343_v19 = vpop.permute.xlu1 %3579  ;;  %v3417_v3 = vpop.permute.xlu2 %3416  ;;  %v3654_v27 = vsel %vm329_vm10, %v3652_v37, %v3653_v57  ;;  %v3656_v41 = vsel %vm329_vm10, %v3653_v57, %v3655_v49 }
 0x296   : > { %v3584_v16 = vadd.f32 %v8343_v19, %v3570_v30 }
 0x298   : > { %v3578_v23 = vpop.permute.xlu0 %3577 }
 0x299   : > { %v3583_v39 = vadd.f32 %v3578_v23, %v3569_v35  ;;  %v3508_v35 = vstv %s8381_s9  ;;  %s4352_s9 = sshra.s32 %s3797_s11, 4  ;;  %s4353_s9 = int_to_ptr.hbm [resolvable:$true] %s4352_s9 }
 0x29a   : > { %s4354_s30 = scalar_lea.hbm %s4353_s9, 64  ;;  %p4359_p1 = scmp.lt.s32.totalorder %s4353_s9, %s8475_s2 }
 0x29b   : > { %p4355_p12 = scmp.ne.s32.totalorder %s4353_s9, %s4354_s30 }
 0x29d   : > { %v3415_v1 = vpop.permute.xlu1 %3414  ;;  %v3637_v26 = vpop.permute.xlu2 %3636  ;;  %p4356_p13 = pnand %p4355_p12, %p4484_p4 }
 0x29e   : > { %v3420_v54 = vadd.f32 %v3415_v1, %v3399_v44  ;;  %v3597_v1 = vsel %vm269_vm9, %v3594_v12, %v3596_v52  ;;  %v3502_v44 = vstv %s8379_s7  ;;  %s3780_s7 = scalar_lea.sflag [#allocation5], %s130_s26 }
 0x29f   : > { %v3601_v20 = vadd.f32 %v3597_v1, %v3584_v16  ;;  %p4357_p0 = pneg %p4356_p13 }
 0x2a0   : > { %v3437_v23 = vadd.f32 %v3432_v38, %v3420_v54 }
 0x2a3   : > { %v3396_v33 = vpop.permute.xlu0 %3395 }
 0x2a4   : > { %v3400_v47 = vadd.f32 %v3396_v33, %v3379_v5  ;;  %v3600_v33 = vadd.f32 %v3595_v0, %v3583_v39  ;;  %v3724_v39 = vstv %s8390_s6  ;;  %s4358_s6 = scalar_lea.hbm %s8475_s2, 128 }
 0x2a5   : > { %v3455_v56 = vpop.permute.xlu2 %3454  ;;  %p4360_p2 = scmp.lt.s32.totalorder %s4358_s6, %s4354_s30 }
 0x2a6   : > { %v3421_v8 = vadd.f32 %v3417_v3, %v3400_v47 }
 0x2a7   : > { %p4361_p3 = por %p4360_p2, %p4359_p1 }
 0x2a8   : > { %v3438_v3 = vadd.f32 %v3434_v61, %v3421_v8  ;;  %v3730_v61 = vstv %s8392_s28 }
 0x2a9   : > { %p4362_p5 = pnand %p4361_p3, %p4357_p0 }
 0x2aa   : > { %v3459_v58 = vadd.f32 %v3455_v56, %v3438_v3  ;;  %v3736_v3 = vstv %s8394_s19 }
 0x2ab   : > { %v3616_v42 = vpop.permute.xlu0 %3615 }
 0x2ac   : > { %v3618_v9 = vpop.permute.xlu1 %3617  ;;  %v3621_v15 = vadd.f32 %v3616_v42, %v3600_v33 }
 0x2ad   : > { %v3675_v42 = vpop.permute.xlu2 %3674  ;;  %v3622_v28 = vadd.f32 %v3618_v9, %v3601_v20 }
 0x2ae   : > { %v3642_v50 = vadd.f32 %v3637_v26, %v3621_v15  ;;  %v3758_v15 = vstv %s8399_s3 }
 0x2b0   : > { %v3659_v5 = vadd.f32 %v3654_v27, %v3642_v50 }
 0x2b2   : > { %v3680_v7 = vadd.f32 %v3675_v42, %v3659_v5 }
 0x2b3   : > { %v3639_v6 = vpop.permute.xlu0 %3638 }
 0x2b4   : > { %v3453_v2 = vpop.permute.xlu1 %3452  ;;  %v3643_v59 = vadd.f32 %v3639_v6, %v3622_v28  ;;  %v3712_v6 = vstv %s8386_s0 }
 0x2b5   : > { %v3458_v25 = vadd.f32 %v3453_v2, %v3437_v23  ;;  %v3698_v29 = vpop.permute.xlu2 %3697 }
 0x2b6   : > { %v3660_v32 = vadd.f32 %v3656_v41, %v3643_v59 }
 0x2bb   : > { %v3474_v60 = vpop.permute.xlu0 %3473 }
 0x2bc   : > { %v3476_v22 = vpop.permute.xlu1 %3475  ;;  %v3479_v10 = vadd.f32 %v3474_v60, %v3458_v25  ;;  %v3769_v25 = vstv %s8401_s8 }
 0x2bd   : > { %v3480_v19 = vadd.f32 %v3476_v22, %v3459_v58 }
 0x2be   : > { %v3483_v18 = vadd.f32 %v3482_v31, %v3479_v10 }
 0x2bf   : > { %v3484_v45 = vadd.f32 %v3482_v31, %v3480_v19 }
 0x2c0   : > { %v3485_v26 = vmax.f32 %v3483_v18, 0.0 }
 0x2c1   : > { %v3486_v55 = vmax.f32 %v3484_v45, 0.0 }
 0x2c2   : > { %v3487_v47 = vmin.f32 %v3485_v26, 6.0 }
 0x2c3   : > { %v3677_v34 = vpop.permute.xlu0 %3676  ;;  %v3488_v12 = vmin.f32 %v3486_v55, 6.0 }
 0x2c4   : > { %v3696_v9 = vpop.permute.xlu1 %3695  ;;  %v3681_v40 = vadd.f32 %v3677_v34, %v3660_v32  ;;  %v3491_v54 = vmul.f32 %v3490_v48, %v3487_v47  ;;  %v3497_v0 = vmul.f32 %v3496_v51, %v3487_v47  ;;  %v3503_v38 = vmul.f32 %v3502_v44, %v3487_v47 }
 0x2c5   : > { %v3701_v8 = vadd.f32 %v3696_v9, %v3680_v7  ;;  %v3492_v52 = vmul.f32 %v3490_v48, %v3488_v12  ;;  %v3509_v21 = vmul.f32 %v3508_v35, %v3487_v47  ;;  %v3498_v23 = vmul.f32 %v3496_v51, %v3488_v12 }
 0x2c6   : > { %v3702_v56 = vadd.f32 %v3698_v29, %v3681_v40  ;;  %v3504_v1 = vmul.f32 %v3502_v44, %v3488_v12  ;;  %v3510_v16 = vmul.f32 %v3508_v35, %v3488_v12  ;;  %v3493_v37 = vadd.f32 %v3491_v54, %v8318_v17 }
 0x2c7   : > { %v3705_v2 = vadd.f32 %v3704_v53, %v3701_v8  ;;  %v3494_v31 = vadd.f32 %v3492_v52, %v8330_v13  ;;  %v3499_v60 = vadd.f32 %v3497_v0, %v8321_v63  ;;  %v3505_v43 = vadd.f32 %v3503_v38, %v8324_v46 }
 0x2c8   : > { %v3706_v33 = vadd.f32 %v3704_v53, %v3702_v56  ;;  %v3511_v22 = vadd.f32 %v3509_v21, %v8327_v4  ;;  %v3500_v17 = vadd.f32 %v3498_v23, %v8333_v11  ;;  %v3506_v18 = vadd.f32 %v3504_v1, %v8336_v14 }
 0x2c9   : > { %v3707_v30 = vmax.f32 %v3705_v2, 0.0  ;;  %v3512_v27 = vadd.f32 %v3510_v16, %v8339_v62 }
 0x2ca   : > { %v3708_v57 = vmax.f32 %v3706_v33, 0.0 }
 0x2cb   : > { %v3709_v58 = vmin.f32 %v3707_v30, 6.0 }
 0x2cc   : > { %v3710_v13 = vmin.f32 %v3708_v57, 6.0 }
 0x2cd   : > { %v3713_v10 = vmul.f32 %v3712_v6, %v3709_v58  ;;  %v3719_v19 = vmul.f32 %v3718_v24, %v3709_v58  ;;  %v3725_v20 = vmul.f32 %v3724_v39, %v3709_v58  ;;  %v3731_v50 = vmul.f32 %v3730_v61, %v3709_v58 }
 0x2ce   : > { %v3714_v4 = vmul.f32 %v3712_v6, %v3710_v13  ;;  %v3720_v49 = vmul.f32 %v3718_v24, %v3710_v13  ;;  %v3726_v28 = vmul.f32 %v3724_v39, %v3710_v13  ;;  %v3732_v5 = vmul.f32 %v3730_v61, %v3710_v13 }
 0x2cf   : > { %v3715_v42 = vadd.f32 %v3713_v10, %v3493_v37  ;;  %v3721_v63 = vadd.f32 %v3719_v19, %v3499_v60  ;;  %v3727_v46 = vadd.f32 %v3725_v20, %v3505_v43  ;;  %v3733_v45 = vadd.f32 %v3731_v50, %v3511_v22 }
 0x2d0   : > { %v3716_v14 = vadd.f32 %v3714_v4, %v3494_v31  ;;  %v3722_v41 = vadd.f32 %v3720_v49, %v3500_v17  ;;  %v3728_v62 = vadd.f32 %v3726_v28, %v3506_v18  ;;  %v3734_v9 = vadd.f32 %v3732_v5, %v3512_v27 }
 0x2d1   : > { %v3737_v59 = vadd.f32 %v3736_v3, %v3715_v42  ;;  %v3748_v26 = vadd.f32 %v3747_v36, %v3721_v63  ;;  %v3759_v11 = vadd.f32 %v3758_v15, %v3727_v46  ;;  %v3770_v55 = vadd.f32 %v3769_v25, %v3733_v45 }
 0x2d2   : > { %v3738_v48 = vadd.f32 %v3736_v3, %v3716_v14  ;;  %v3749_v51 = vadd.f32 %v3747_v36, %v3722_v41  ;;  %v3760_v12 = vadd.f32 %v3758_v15, %v3728_v62  ;;  %v3771_v53 = vadd.f32 %v3769_v25, %v3734_v9 }
 0x2d3   : > { %v3739_v34 = vmax.f32 %v3737_v59, 0.0  ;;  %v3750_v7 = vmax.f32 %v3748_v26, 0.0  ;;  %v3761_v47 = vmax.f32 %v3759_v11, 0.0  ;;  %v3772_v32 = vmax.f32 %v3770_v55, 0.0 }
 0x2d4   : > { %v3740_v40 = vmax.f32 %v3738_v48, 0.0  ;;  %v3751_v6 = vmax.f32 %v3749_v51, 0.0  ;;  %v3762_v24 = vmax.f32 %v3760_v12, 0.0  ;;  %v3773_v39 = vmax.f32 %v3771_v53, 0.0 }
 0x2d5   : > { %v3741_v29 = vmin.f32 %v3739_v34, 6.0  ;;  %v3752_v44 = vmin.f32 %v3750_v7, 6.0  ;;  %v3763_v35 = vmin.f32 %v3761_v47, 6.0  ;;  %v3774_v8 = vmin.f32 %v3772_v32, 6.0 }
 0x2d6   : > { %v3742_v54 = vmin.f32 %v3740_v40, 6.0  ;;  %v3753_v61 = vmin.f32 %v3751_v6, 6.0  ;;  %v3764_v2 = vmin.f32 %v3762_v24, 6.0  ;;  %v3775_v56 = vmin.f32 %v3773_v39, 6.0 }
 0x2d7   : > { %3744 = vst.msk [vmem:[%s132_s16] sm:$0xff] %vm3743_vm11, %v3741_v29 }
 0x2d8   : > { %4202 = vst.msk [vmem:[%s132_s16 + $0x10] sm:$0xff] %vm3743_vm11, %v3752_v44 }
 0x2d9   : > { %4205 = vst.msk [vmem:[%s132_s16 + $0x20] sm:$0xff] %vm3743_vm11, %v3763_v35 }
 0x2da   : > { %4208 = vst.msk [vmem:[%s132_s16 + $0x30] sm:$0xff] %vm3743_vm11, %v3774_v8 }
 0x2db   : > { %3745 = vst.msk [vmem:[%s132_s16 + $0x8] sm:$0xff] %vm3743_vm11, %v3742_v54 }
 0x2dc   : > { %4203 = vst.msk [vmem:[%s132_s16 + $0x18] sm:$0xff] %vm3743_vm11, %v3753_v61 }
 0x2dd   : > { %4206 = vst.msk [vmem:[%s132_s16 + $0x28] sm:$0xff] %vm3743_vm11, %v3764_v2 }
 0x2de   : > { %4209 = vst.msk [vmem:[%s132_s16 + $0x38] sm:$0xff] %vm3743_vm11, %v3775_v56 }
 0x2df   : > { %4365 = shalt.err (!%p4362_p5)
}
 0x2e0   : > { %s4424_s29 = smov 128   ;;  %s4425_s3 = smov 8  }
 0x2e1   : > { %4217 = dma.vmem_to_hbm [thread:$0]  (%p4484_p4), %s3795_s23, 1024, %s3797_s11, %s3780_s7, %s4424_s29, %s4424_s29, %s4425_s3  }
 0x2e2 PF: > { %p4223_p6 = scmp.ge.s32.totalorder %s4418_s18, 2  ;;  %s3811_s8 = sand.u32 1, %s4398_s13  }
 0x2e3   : > { %s3812_s26 = scalar_lea.sflag [#allocation5], %s3811_s8 }
 0x2e4   : > { %p4220_p7 = pnand %p4223_p6, %p4491_p8 }
 0x2e6   : > { %p4221_p9 = pneg %p4220_p7 }
 0x2e8   : > { %4393 = dma.done.wait (%p4221_p9), %s3812_s26, 1024  }
 0x2e9   : > { %4395 = vsyncadd (%p4221_p9), %s3812_s26, 4294966272  ;;  %s23_s18 = sadd.s32 1, %s4418_s18   ;;  %s8741_s13 = smov %s4402_s14 }
 0x2ea   : > { %p20_p10 = scmp.ge.s32.totalorder %s23_s18, 4   ;;  %s8742_s14 = smov %s4406_s15 }
 0x2eb   : > { %s8743_s15 = smov %s4497_s25  ;;  %s8744_s16 = smov %s4414_s17 }
 0x2ec   : > { %s8745_s17 = smov %s8747_s20  ;;  %22 = sbr.rel (!%p20_p10) target bundleno = 10 (0xa), region = 66 }
 0x2f1   :  { %3818 = vsyncpa [#allocation5], 1 }
 0x2f2   :  { %3820 = vsyncpa [#allocation5 + $0x1], 1 }

</bundles_post_ra>
